<compile_context>
chip_gen: v5e
topology: v5e:2x2
jax: 0.10.0
libtpu: 0.0.40
codegen_flags: <defaults>
</compile_context>

<pallas_src>
import functools

import jax
import jax.numpy as jnp
from jax import lax
from jax.experimental import pallas as pl
from jax.experimental.pallas import tpu as pltpu

LAYERS = [2, 100, 100, 100, 2]   # EquationNet layer sizes
PAD = 128                        # lane-padded hidden width
DEFAULT_TM = 512                 # batch tile (sweepable; 256-1024 per perf review)


def _gelu_exact(x):
    # PyTorch nn.GELU() default is the exact (erf-based) GELU.
    return 0.5 * x * (1.0 + lax.erf(x * (1.0 / jnp.sqrt(2.0).astype(x.dtype))))


def _mlp_kernel(x_ref, w1_ref, b_ref, w_ref, o_ref):
    # x_ref : (TM, 2)        f32   input tile (only real lanes, no padding)
    # w1_ref: (8, 128)       f32   rows 0..1 = W1^T rows (lane-padded), rest zero
    # b_ref : (8, 128)       f32   rows 0..3 = b1..b4 (lane-padded), rest zero
    # w_ref : (3, 128, 128)  f32/bf16  stacked padded W2^T, W3^T, W4^T
    # o_ref : (TM, 2)        f32   output tile
    x = x_ref[...]                                    # (TM, 2)
    w1 = w1_ref[...]                                  # (8, 128)
    b = b_ref[...]                                    # (8, 128)

    # Layer 1 on the VPU: fan_in == 2, so two broadcast multiply-accumulates
    # beat a K=128 MXU matmul whose K is 126/128 zeros.
    h = x[:, 0:1] * w1[0:1, :] + x[:, 1:2] * w1[1:2, :] + b[0:1, :]   # (TM, 128) f32
    h = _gelu_exact(h)

    wd = w_ref.dtype  # bf16 fast path on v6e/v7x; f32 keeps exact PyTorch numerics.

    # Layer 2
    h = jnp.dot(h.astype(wd), w_ref[0], preferred_element_type=jnp.float32) + b[1:2, :]
    h = _gelu_exact(h)
    # Layer 3
    h = jnp.dot(h.astype(wd), w_ref[1], preferred_element_type=jnp.float32) + b[2:3, :]
    h = _gelu_exact(h)
    # Layer 4 (no activation); only lanes [0, 2) are real.
    h = jnp.dot(h.astype(wd), w_ref[2], preferred_element_type=jnp.float32) + b[3:4, :]

    o_ref[...] = h[:, : o_ref.shape[-1]].astype(o_ref.dtype)


def _init_raw_params(key, layers=LAYERS, dtype=jnp.float32):
    """PyTorch-style uniform(-1/sqrt(fan_in), 1/sqrt(fan_in)) init.
    Returns list of (W, b) with W of shape (out, in), like nn.Linear."""
    raw = []
    for i in range(len(layers) - 1):
        fan_in, fan_out = layers[i], layers[i + 1]
        key, kw, kb = jax.random.split(key, 3)
        bound = float(fan_in) ** -0.5
        w = jax.random.uniform(kw, (fan_out, fan_in), dtype, -bound, bound)
        b = jax.random.uniform(kb, (fan_out,), dtype, -bound, bound)
        raw.append((w, b))
    return raw


def pack_params(raw, matmul_dtype=jnp.float32):
    """Pack raw (W, b) pairs into the kernel layout:
       w1_rows (8,128) f32, b_stack (8,128) f32, w_stack (3,128,128) matmul_dtype."""
    (w1, b1), (w2, b2), (w3, b3), (w4, b4) = raw

    w1t = w1.T.astype(jnp.float32)                       # (2, 100)
    w1_rows = jnp.zeros((8, PAD), jnp.float32)
    w1_rows = w1_rows.at[: w1t.shape[0], : w1t.shape[1]].set(w1t)

    b_stack = jnp.zeros((8, PAD), jnp.float32)
    for r, b in enumerate((b1, b2, b3, b4)):
        b_stack = b_stack.at[r, : b.shape[0]].set(b.astype(jnp.float32))

    w_stack = jnp.zeros((3, PAD, PAD), matmul_dtype)
    for l, w in enumerate((w2, w3, w4)):
        wt = w.T.astype(matmul_dtype)                    # (in, out)
        w_stack = w_stack.at[l, : wt.shape[0], : wt.shape[1]].set(wt)

    return {"w1_rows": w1_rows, "b_stack": b_stack, "w_stack": w_stack}


def init_params(key, layers=LAYERS, dtype=jnp.float32, matmul_dtype=jnp.float32):
    raw = _init_raw_params(key, layers, dtype)
    return pack_params(raw, matmul_dtype), raw


@functools.partial(jax.jit, static_argnames=("tm",))
def equation_net_forward(x, params, *, tm=DEFAULT_TM):
    """x: (N, 2) -> (N, 2) float32, fused 4-layer MLP with exact GELU."""
    n, d_in = x.shape
    d_out = LAYERS[-1]
    n_pad = pl.cdiv(n, tm) * tm
    # Only the batch dim is padded (to a multiple of the tile); features stay 2-wide.
    x_pad = jnp.zeros((n_pad, d_in), jnp.float32).at[:n].set(x.astype(jnp.float32))

    out = pl.pallas_call(
        _mlp_kernel,
        out_shape=jax.ShapeDtypeStruct((n_pad, d_out), jnp.float32),
        grid_spec=pltpu.PrefetchScalarGridSpec(
            num_scalar_prefetch=0,
            grid=(n_pad // tm,),
            in_specs=[
                # 2-wide input tile: last dim equals full array dim -> legal block.
                # TODO(synk): if xprof shows exposed input DMA at large TM, add
                # pipeline_mode=pl.Buffered(3) here (weights are resident anyway).
                pl.BlockSpec((tm, d_in), lambda i: (i, 0)),
                pl.BlockSpec((8, PAD), lambda i: (0, 0)),        # W1^T rows
                pl.BlockSpec((8, PAD), lambda i: (0, 0)),        # biases b1..b4
                pl.BlockSpec((3, PAD, PAD), lambda i: (0, 0, 0)),  # stacked W2^T..W4^T
            ],
            out_specs=pl.BlockSpec((tm, d_out), lambda i: (i, 0)),
        ),
        compiler_params=pltpu.CompilerParams(
            dimension_semantics=("parallel",)),
    )(x_pad, params["w1_rows"], params["b_stack"], params["w_stack"])

    return out[:n]


def _reference_forward(x, raw):
    """Pure-JAX f32 reference of the PyTorch forward."""
    h = x.astype(jnp.float32)
    for i, (w, b) in enumerate(raw):
        h = h @ w.T.astype(jnp.float32) + b.astype(jnp.float32)
        if i < len(raw) - 1:
            h = 0.5 * h * (1.0 + lax.erf(h / jnp.sqrt(2.0).astype(h.dtype)))
    return h


if __name__ == "__main__":
    key = jax.random.PRNGKey(0)
    kp, kx = jax.random.split(key)

    # Exact-semantics (f32 matmul) parameters.
    params_f32, raw = init_params(kp, matmul_dtype=jnp.float32)

    # Small deterministic input, matching the module's (N, 2) signature.
    N = 8
    x = jax.random.normal(kx, (N, LAYERS[0]), dtype=jnp.float32)
    y = equation_net_forward(x, params_f32, tm=256)
    jax.block_until_ready(y)
    y_ref = _reference_forward(x, raw)
    assert y.shape == (N, LAYERS[-1]), y.shape
    assert jnp.allclose(y, y_ref, atol=1e-4, rtol=1e-4), (
        float(jnp.max(jnp.abs(y - y_ref))))

    # A batch spanning several grid tiles (exercises batch padding + multi-step grid).
    N2 = 700
    x2 = jax.random.normal(jax.random.PRNGKey(1), (N2, LAYERS[0]), dtype=jnp.float32)
    y2 = equation_net_forward(x2, params_f32, tm=256)
    jax.block_until_ready(y2)
    y2_ref = _reference_forward(x2, raw)
    assert y2.shape == (N2, LAYERS[-1]), y2.shape
    assert jnp.allclose(y2, y2_ref, atol=1e-4, rtol=1e-4), (
        float(jnp.max(jnp.abs(y2 - y2_ref))))

    # bf16-matmul fast path (v6e/v7x MXU): f32 accumulation + f32 GELU/bias,
    # validated with a relative-error bound (intentionally looser than f32).
    params_bf16 = pack_params(raw, matmul_dtype=jnp.bfloat16)
    y3 = equation_net_forward(x2, params_bf16, tm=256)
    jax.block_until_ready(y3)
    rel = float(jnp.linalg.norm(y3 - y2_ref) /
                (jnp.linalg.norm(y2_ref) + 1e-12))
    assert rel < 0.05, rel

    print("KERNEL_OK")
</pallas_src>

<mosaic_0001>
module attributes {stable_mosaic.version = 11 : i64} {
  func.func @_mlp_kernel(%arg0: i32, %arg1: memref<256x2xf32, #tpu.memory_space<vmem>>, %arg2: memref<8x128xf32, #tpu.memory_space<vmem>>, %arg3: memref<8x128xf32, #tpu.memory_space<vmem>>, %arg4: memref<3x128x128xf32, #tpu.memory_space<vmem>>, %arg5: memref<256x2xf32, #tpu.memory_space<vmem>>) attributes {dimension_semantics = [#tpu.dimension_semantics<parallel>], iteration_bounds = array<i64: 1>, scalar_prefetch = 0 : i64, scratch_operands = 0 : i64, tpu.core_type = #tpu.core_type<tc>, window_params = [{transform_indices = @transform_0, window_bounds = array<i64: 256, 2>}, {pipeline_mode = #tpu.pipeline_mode<synchronous>, transform_indices = @transform_1, window_bounds = array<i64: 8, 128>}, {pipeline_mode = #tpu.pipeline_mode<synchronous>, transform_indices = @transform_2, window_bounds = array<i64: 8, 128>}, {pipeline_mode = #tpu.pipeline_mode<synchronous>, transform_indices = @transform_3, window_bounds = array<i64: 3, 128, 128>}, {transform_indices = @transform_4, window_bounds = array<i64: 256, 2>}]} {
    %c0 = arith.constant 0 : index
    %c0_0 = arith.constant 0 : index
    %0 = vector.load %arg1[%c0, %c0_0] : memref<256x2xf32, #tpu.memory_space<vmem>>, vector<256x2xf32>
    %c0_1 = arith.constant 0 : index
    %c0_2 = arith.constant 0 : index
    %1 = vector.load %arg2[%c0_1, %c0_2] : memref<8x128xf32, #tpu.memory_space<vmem>>, vector<8x128xf32>
    %c0_3 = arith.constant 0 : index
    %c0_4 = arith.constant 0 : index
    %2 = vector.load %arg3[%c0_3, %c0_4] : memref<8x128xf32, #tpu.memory_space<vmem>>, vector<8x128xf32>
    %3 = vector.extract_strided_slice %0 {offsets = [0, 0], sizes = [256, 1], strides = [1, 1]} : vector<256x2xf32> to vector<256x1xf32>
    %4 = vector.extract_strided_slice %1 {offsets = [0, 0], sizes = [1, 128], strides = [1, 1]} : vector<8x128xf32> to vector<1x128xf32>
    %5 = vector.broadcast %3 : vector<256x1xf32> to vector<256x128xf32>
    %6 = vector.broadcast %4 : vector<1x128xf32> to vector<256x128xf32>
    %7 = arith.mulf %5, %6 : vector<256x128xf32>
    %8 = vector.extract_strided_slice %0 {offsets = [0, 1], sizes = [256, 1], strides = [1, 1]} : vector<256x2xf32> to vector<256x1xf32>
    %9 = vector.extract_strided_slice %1 {offsets = [1, 0], sizes = [1, 128], strides = [1, 1]} : vector<8x128xf32> to vector<1x128xf32>
    %10 = vector.broadcast %8 : vector<256x1xf32> to vector<256x128xf32>
    %11 = vector.broadcast %9 : vector<1x128xf32> to vector<256x128xf32>
    %12 = arith.mulf %10, %11 : vector<256x128xf32>
    %13 = arith.addf %7, %12 : vector<256x128xf32>
    %14 = vector.extract_strided_slice %2 {offsets = [0, 0], sizes = [1, 128], strides = [1, 1]} : vector<8x128xf32> to vector<1x128xf32>
    %15 = vector.broadcast %14 : vector<1x128xf32> to vector<256x128xf32>
    %16 = arith.addf %13, %15 : vector<256x128xf32>
    %cst = arith.constant 5.000000e-01 : f32
    %17 = vector.broadcast %cst : f32 to vector<256x128xf32>
    %18 = arith.mulf %17, %16 : vector<256x128xf32>
    %cst_5 = arith.constant 2.000000e+00 : f32
    %19 = math.sqrt %cst_5 : f32
    %cst_6 = arith.constant 1.000000e+00 : f32
    %20 = arith.divf %cst_6, %19 : f32
    %21 = vector.broadcast %20 : f32 to vector<256x128xf32>
    %22 = arith.mulf %16, %21 : vector<256x128xf32>
    %23 = math.erf %22 : vector<256x128xf32>
    %cst_7 = arith.constant 1.000000e+00 : f32
    %24 = vector.broadcast %cst_7 : f32 to vector<256x128xf32>
    %25 = arith.addf %24, %23 : vector<256x128xf32>
    %26 = arith.mulf %18, %25 : vector<256x128xf32>
    %c0_8 = arith.constant 0 : index
    %c0_9 = arith.constant 0 : index
    %c0_10 = arith.constant 0 : index
    %27 = vector.load %arg4[%c0_8, %c0_9, %c0_10] : memref<3x128x128xf32, #tpu.memory_space<vmem>>, vector<1x128x128xf32>
    %28 = vector.shape_cast %27 : vector<1x128x128xf32> to vector<128x128xf32>
    %cst_11 = arith.constant dense<0.000000e+00> : vector<256x128xf32>
    %29 = tpu.matmul %26, %28, %cst_11 {dimension_numbers = #tpu.dot_dimension_numbers<[1], [0], [0], [1], [0, 0, 1, 1], [], []>} : vector<256x128xf32>, vector<128x128xf32>, vector<256x128xf32> -> vector<256x128xf32>
    %30 = vector.extract_strided_slice %2 {offsets = [1, 0], sizes = [1, 128], strides = [1, 1]} : vector<8x128xf32> to vector<1x128xf32>
    %31 = vector.broadcast %30 : vector<1x128xf32> to vector<256x128xf32>
    %32 = arith.addf %29, %31 : vector<256x128xf32>
    %cst_12 = arith.constant 5.000000e-01 : f32
    %33 = vector.broadcast %cst_12 : f32 to vector<256x128xf32>
    %34 = arith.mulf %33, %32 : vector<256x128xf32>
    %cst_13 = arith.constant 2.000000e+00 : f32
    %35 = math.sqrt %cst_13 : f32
    %cst_14 = arith.constant 1.000000e+00 : f32
    %36 = arith.divf %cst_14, %35 : f32
    %37 = vector.broadcast %36 : f32 to vector<256x128xf32>
    %38 = arith.mulf %32, %37 : vector<256x128xf32>
    %39 = math.erf %38 : vector<256x128xf32>
    %cst_15 = arith.constant 1.000000e+00 : f32
    %40 = vector.broadcast %cst_15 : f32 to vector<256x128xf32>
    %41 = arith.addf %40, %39 : vector<256x128xf32>
    %42 = arith.mulf %34, %41 : vector<256x128xf32>
    %c1 = arith.constant 1 : index
    %c0_16 = arith.constant 0 : index
    %c0_17 = arith.constant 0 : index
    %43 = vector.load %arg4[%c1, %c0_16, %c0_17] : memref<3x128x128xf32, #tpu.memory_space<vmem>>, vector<1x128x128xf32>
    %44 = vector.shape_cast %43 : vector<1x128x128xf32> to vector<128x128xf32>
    %cst_18 = arith.constant dense<0.000000e+00> : vector<256x128xf32>
    %45 = tpu.matmul %42, %44, %cst_18 {dimension_numbers = #tpu.dot_dimension_numbers<[1], [0], [0], [1], [0, 0, 1, 1], [], []>} : vector<256x128xf32>, vector<128x128xf32>, vector<256x128xf32> -> vector<256x128xf32>
    %46 = vector.extract_strided_slice %2 {offsets = [2, 0], sizes = [1, 128], strides = [1, 1]} : vector<8x128xf32> to vector<1x128xf32>
    %47 = vector.broadcast %46 : vector<1x128xf32> to vector<256x128xf32>
    %48 = arith.addf %45, %47 : vector<256x128xf32>
    %cst_19 = arith.constant 5.000000e-01 : f32
    %49 = vector.broadcast %cst_19 : f32 to vector<256x128xf32>
    %50 = arith.mulf %49, %48 : vector<256x128xf32>
    %cst_20 = arith.constant 2.000000e+00 : f32
    %51 = math.sqrt %cst_20 : f32
    %cst_21 = arith.constant 1.000000e+00 : f32
    %52 = arith.divf %cst_21, %51 : f32
    %53 = vector.broadcast %52 : f32 to vector<256x128xf32>
    %54 = arith.mulf %48, %53 : vector<256x128xf32>
    %55 = math.erf %54 : vector<256x128xf32>
    %cst_22 = arith.constant 1.000000e+00 : f32
    %56 = vector.broadcast %cst_22 : f32 to vector<256x128xf32>
    %57 = arith.addf %56, %55 : vector<256x128xf32>
    %58 = arith.mulf %50, %57 : vector<256x128xf32>
    %c2 = arith.constant 2 : index
    %c0_23 = arith.constant 0 : index
    %c0_24 = arith.constant 0 : index
    %59 = vector.load %arg4[%c2, %c0_23, %c0_24] : memref<3x128x128xf32, #tpu.memory_space<vmem>>, vector<1x128x128xf32>
    %60 = vector.shape_cast %59 : vector<1x128x128xf32> to vector<128x128xf32>
    %cst_25 = arith.constant dense<0.000000e+00> : vector<256x128xf32>
    %61 = tpu.matmul %58, %60, %cst_25 {dimension_numbers = #tpu.dot_dimension_numbers<[1], [0], [0], [1], [0, 0, 1, 1], [], []>} : vector<256x128xf32>, vector<128x128xf32>, vector<256x128xf32> -> vector<256x128xf32>
    %62 = vector.extract_strided_slice %2 {offsets = [3, 0], sizes = [1, 128], strides = [1, 1]} : vector<8x128xf32> to vector<1x128xf32>
    %63 = vector.broadcast %62 : vector<1x128xf32> to vector<256x128xf32>
    %64 = arith.addf %61, %63 : vector<256x128xf32>
    %65 = vector.extract_strided_slice %64 {offsets = [0, 0], sizes = [256, 2], strides = [1, 1]} : vector<256x128xf32> to vector<256x2xf32>
    %c0_26 = arith.constant 0 : index
    %c0_27 = arith.constant 0 : index
    %66 = vector.load %arg5[%c0_26, %c0_27] : memref<256x2xf32, #tpu.memory_space<vmem>>, vector<256x2xf32>
    tpu.vector_store %arg5[%c0_26, %c0_27], %65 {strides = array<i32>} : memref<256x2xf32, #tpu.memory_space<vmem>>, vector<256x2xf32>,
    return
  }
  func.func @transform_0(%arg0: i32) -> (i32, i32) {
    %c0_i32 = arith.constant 0 : i32
    %c0_i32_0 = arith.constant 0 : i32
    return %arg0, %c0_i32 : i32, i32
  }
  func.func @transform_1(%arg0: i32) -> (i32, i32) {
    %c0_i32 = arith.constant 0 : i32
    %c0_i32_0 = arith.constant 0 : i32
    %c0_i32_1 = arith.constant 0 : i32
    return %c0_i32, %c0_i32_0 : i32, i32
  }
  func.func @transform_2(%arg0: i32) -> (i32, i32) {
    %c0_i32 = arith.constant 0 : i32
    %c0_i32_0 = arith.constant 0 : i32
    %c0_i32_1 = arith.constant 0 : i32
    return %c0_i32, %c0_i32_0 : i32, i32
  }
  func.func @transform_3(%arg0: i32) -> (i32, i32, i32) {
    %c0_i32 = arith.constant 0 : i32
    %c0_i32_0 = arith.constant 0 : i32
    %c0_i32_1 = arith.constant 0 : i32
    %c0_i32_2 = arith.constant 0 : i32
    return %c0_i32, %c0_i32_0, %c0_i32_1 : i32, i32, i32
  }
  func.func @transform_4(%arg0: i32) -> (i32, i32) {
    %c0_i32 = arith.constant 0 : i32
    %c0_i32_0 = arith.constant 0 : i32
    return %arg0, %c0_i32 : i32, i32
  }
}

</mosaic_0001>

<bundles_post_ra>
// kernel: equation_net_forward.1
= control target key start
LH: loop header
LB: loop body
LE: loop exit
PB: predicated region body
PF: predicated region fallthrough
CT: control target
= control target key end

     0   :  { %9 = vsyncpa [#allocation3], 0  ;;  %s5549_s18 = smov [#allocation2]   ;;  %s5550_s20 = smov 128   ;;  %s9480_s0 = inlined_call_operand.vmem [shape: f32[256,2], index: 0, kind: input, shape index: {}]   ;;  %s9481_s1 = inlined_call_operand.vmem [shape: f32[8,128], index: 1, kind: input, shape index: {}]   ;;  %s9482_s2 = inlined_call_operand.vmem [shape: f32[8,128], index: 2, kind: input, shape index: {}]   ;;  %s9483_s3 = inlined_call_operand.hbm [shape: f32[3,128,128], index: 3, kind: input, shape index: {}]   ;;  %s9484_s4 = inlined_call_operand.vmem [shape: f32[256,2], index: 4, kind: output, shape index: {}]  }
   0x1   :  { %s20_s17 = sshll.u32 %s9483_s3, 4  ;;  %s22_s19 = sshll.u32 %s5549_s18, 4  ;;  %s21_s17 = int_to_ptr.hbm [resolvable:$true] %s20_s17  ;;  %s23_s19 = int_to_ptr.vmem [resolvable:$true] %s22_s19 }
   0x2   :  { %s5551_s21 = smov 8  }
   0x3   :  { %28 = dma.hbm_to_vmem [thread:$0]  %s21_s17, 6144, %s23_s19, [#allocation3], %s5550_s20, %s5550_s20, %s5551_s21  }
   0x4   :  { %5547 = dma.done.wait [#allocation3], 6144  }
   0x5   :  { %5548 = vsyncadd [#allocation3], 4294961152  ;;  %v5552_v0 = vmov 0   ;;  %v35_v1 = vld [vmem:[%s9480_s0 + $0x10] sm:$0xff]  ;;  %v34_v2 = vld [vmem:[%s9480_s0 + $0x8] sm:$0xff]  ;;  %v5553_v4 = vmov 1  }
   0x6   :  { %5293 = vset.pattern.permute.xlu2 %v5552_v0  ;;  %5291 = vset.pattern.permute.xlu1 %v5552_v0  ;;  %v33_v3 = vld [vmem:[%s9480_s0] sm:$0xff]  ;;  %v36_v5 = vld [vmem:[%s9480_s0 + $0x18] sm:$0xff]  ;;  %v38_v7 = vld [vmem:[%s9480_s0 + $0x28] sm:$0xff] }
   0x7   :  { %5289 = vset.pattern.permute.xlu0 %v5552_v0  ;;  %79 = vperm.xlu2 %5293, %v35_v1   ;;  %v37_v6 = vld [vmem:[%s9480_s0 + $0x20] sm:$0xff]  ;;  %v39_v8 = vld [vmem:[%s9480_s0 + $0x30] sm:$0xff]  ;;  %v42_v9 = vld [vmem:[%s9480_s0 + $0x48] sm:$0xff] }
   0x8   :  { %74 = vperm.xlu1 %5291, %v34_v2   ;;  %69 = vperm.xlu0 %5289, %v33_v3   ;;  %v40_v10 = vld [vmem:[%s9480_s0 + $0x38] sm:$0xff]  ;;  %v41_v12 = vld [vmem:[%s9480_s0 + $0x40] sm:$0xff]  ;;  %v47_v13 = vld [vmem:[%s9480_s0 + $0x70] sm:$0xff] }
   0x9   :  { %v44_v11 = vld [vmem:[%s9480_s0 + $0x58] sm:$0xff]  ;;  %v43_v14 = vld [vmem:[%s9480_s0 + $0x50] sm:$0xff]  ;;  %v45_v16 = vld [vmem:[%s9480_s0 + $0x60] sm:$0xff] }
   0xa   :  { %v48_v15 = vld [vmem:[%s9480_s0 + $0x78] sm:$0xff]  ;;  %v46_v18 = vld [vmem:[%s9480_s0 + $0x68] sm:$0xff]  ;;  %v65_v20 = vld [vmem:[%s9481_s1] sm:$0xff] }
   0xb   :  { %v5651_v17 = vld [vmem:[%s9480_s0 + $0xd8] sm:$0xff]  ;;  %v57_v21 = vld [vmem:[%s9480_s0 + $0xc0] sm:$0xff]  ;;  %v5665_v22 = vperm.slane %v65_v20, 0  ;;  %v5668_v23 = vperm.slane %v65_v20, 1  ;;  %v5676_v25 = vld [vmem:[%s9480_s0 + $0xd0] sm:$0xff] }
   0xc   :  { %v66_v24 = vld [vmem:[%s9482_s2] sm:$0xff]  ;;  %v5689_v32 = vld [vmem:[%s9480_s0 + $0x98] sm:$0xff]  ;;  %v58_v35 = vld [vmem:[%s9480_s0 + $0xc8] sm:$0xff] }
   0xd   :  { %v5680_v28 = vperm.slane %v66_v24, 0  ;;  %v5709_v39 = vld [vmem:[%s9480_s0 + $0xa0] sm:$0xff]  ;;  %v1909_v44 = vld [vmem:[#allocation2 + $0x78] sm:$0xff]  ;;  %v1908_v45 = vld [vmem:[#allocation2 + $0x70] sm:$0xff] }
   0xe   :  { %v49_v42 = vld [vmem:[%s9480_s0 + $0x80] sm:$0xff]  ;;  %1911 = vmatpush.msra.mxu0 %v1909_v44  ;;  %5236 = vmatpush.msra.mxu3 %v1909_v44  ;;  %v1907_v47 = vld [vmem:[#allocation2 + $0x68] sm:$0xff]  ;;  %v1905_v58 = vld [vmem:[#allocation2 + $0x58] sm:$0xff] }
   0xf   :  { %5294 = vset.pattern.permute.xlu2 %v5553_v4  ;;  %v1906_v52 = vld [vmem:[#allocation2 + $0x60] sm:$0xff]  ;;  %v50_v57 = vld [vmem:[%s9480_s0 + $0x88] sm:$0xff]  ;;  %v1904_v62 = vld [vmem:[#allocation2 + $0x50] sm:$0xff] }
  0x10   :  { %5292 = vset.pattern.permute.xlu1 %v5553_v4  ;;  %5290 = vset.pattern.permute.xlu0 %v5553_v4  ;;  %v1900_v24 = vld [vmem:[#allocation2 + $0x30] sm:$0xff] }
  0x11   :  { %269 = vperm.xlu2 %5294, %v35_v1   ;;  %265 = vperm.xlu1 %5292, %v34_v2  }
  0x12   :  { %261 = vperm.xlu0 %5290, %v33_v3   ;;  %1912 = vmatpush.msra.mxu0 %v1908_v45  ;;  %v1903_v3 = vld [vmem:[#allocation2 + $0x48] sm:$0xff] }
  0x13   :  { %5237 = vmatpush.msra.mxu3 %v1908_v45 }
  0x14   :  { %1913 = vmatpush.msra.mxu0 %v1907_v47 }
  0x15   :  { %5238 = vmatpush.msra.mxu3 %v1907_v47 }
  0x16   :  { %1914 = vmatpush.msra.mxu0 %v1906_v52 }
  0x17   :  { %5239 = vmatpush.msra.mxu3 %v1906_v52 }
  0x18   :  { %1915 = vmatpush.msra.mxu0 %v1905_v58 }
  0x19   :  { %273 = vperm.xlu2 %5294, %v36_v5   ;;  %5295 = vset.pattern.permute.xlu1 %v5552_v0 }
  0x1a   :  { %5296 = vset.pattern.permute.xlu0 %v5552_v0  ;;  %84 = vperm.xlu1 %5295, %v36_v5  }
  0x1b   :  { %89 = vperm.xlu0 %5296, %v37_v6   ;;  %5240 = vmatpush.msra.mxu3 %v1905_v58 }
  0x1c   :  { %1916 = vmatpush.msra.mxu0 %v1904_v62 }
  0x1d   :  { %5241 = vmatpush.msra.mxu3 %v1904_v62  ;;  %v1895_v62 = vld [vmem:[#allocation2 + $0x8] sm:$0xff] }
  0x1e   :  { %1917 = vmatpush.msra.mxu0 %v1903_v3 }
  0x1f   :  { %5242 = vmatpush.msra.mxu3 %v1903_v3 }
  0x21   :  { %5298 = vset.pattern.permute.xlu2 %v5552_v0 }
  0x22   :  { %94 = vperm.xlu2 %5298, %v38_v7   ;;  %5297 = vset.pattern.permute.xlu1 %v5553_v4 }
  0x23   :  { %5299 = vset.pattern.permute.xlu0 %v5553_v4  ;;  %277 = vperm.xlu1 %5297, %v37_v6  }
  0x24   :  { %285 = vperm.xlu0 %5299, %v39_v8  }
  0x2a   :  { %99 = vperm.xlu2 %5298, %v39_v8  }
  0x2b   :  { %281 = vperm.xlu1 %5297, %v38_v7  }
  0x2c   :  { %5302 = vset.pattern.permute.xlu0 %v5552_v0 }
  0x2d   :  { %114 = vperm.xlu0 %5302, %v42_v9  }
  0x32   :  { %5301 = vset.pattern.permute.xlu2 %v5553_v4 }
  0x33   :  { %289 = vperm.xlu2 %5301, %v40_v10   ;;  %5300 = vset.pattern.permute.xlu1 %v5552_v0 }
  0x34   :  { %104 = vperm.xlu1 %5300, %v40_v10   ;;  %v1902_v10 = vld [vmem:[#allocation2 + $0x40] sm:$0xff] }
  0x35   :  { %5305 = vset.pattern.permute.xlu0 %v5553_v4  ;;  %1918 = vmatpush.msra.mxu0 %v1902_v10 }
  0x36   :  { %305 = vperm.xlu0 %5305, %v44_v11   ;;  %5243 = vmatpush.msra.mxu3 %v1902_v10 }
  0x3b   :  { %293 = vperm.xlu2 %5301, %v41_v12  }
  0x3c   :  { %109 = vperm.xlu1 %5300, %v41_v12  }
  0x3e   :  { %5308 = vset.pattern.permute.xlu0 %v5552_v0 }
  0x3f   :  { %139 = vperm.xlu0 %5308, %v47_v13  }
  0x43   :  { %5304 = vset.pattern.permute.xlu2 %v5552_v0 }
  0x44   :  { %119 = vperm.xlu2 %5304, %v43_v14   ;;  %5303 = vset.pattern.permute.xlu1 %v5553_v4 }
  0x45   :  { %297 = vperm.xlu1 %5303, %v42_v9  }
  0x47   :  { %5311 = vset.pattern.permute.xlu0 %v5553_v4 }
  0x48   :  { %321 = vperm.xlu0 %5311, %v48_v15  }
  0x4c   :  { %124 = vperm.xlu2 %5304, %v44_v11  }
  0x4d   :  { %301 = vperm.xlu1 %5303, %v43_v14  }
  0x50   :  { %369 = vperm.xlu0 %5311, %v5651_v17  }
  0x54   :  { %5307 = vset.pattern.permute.xlu2 %v5553_v4 }
  0x55   :  { %309 = vperm.xlu2 %5307, %v45_v16   ;;  %5306 = vset.pattern.permute.xlu1 %v5552_v0 }
  0x56   :  { %129 = vperm.xlu1 %5306, %v45_v16   ;;  %v1901_v16 = vld [vmem:[#allocation2 + $0x38] sm:$0xff] }
  0x57   :  { %1919 = vmatpush.msra.mxu0 %v1901_v16  ;;  %5244 = vmatpush.msra.mxu3 %v1901_v16 }
  0x58   :  { %5316 = vset.pattern.permute.xlu0 %v5552_v0 }
  0x59   :  { %199 = vperm.xlu0 %5316, %v5676_v25   ;;  %1920 = vmatpush.msra.mxu0 %v1900_v24 }
  0x5a   :  { %5245 = vmatpush.msra.mxu3 %v1900_v24 }
  0x5d   :  { %313 = vperm.xlu2 %5307, %v46_v18  }
  0x5e   :  { %134 = vperm.xlu1 %5306, %v46_v18  }
  0x61   :  { %v80_v19 = vpop.permute.xlu2 %79  ;;  %164 = vperm.xlu0 %5316, %v5689_v32  }
  0x62   :  { %v230_v26 = vmul.f32 %v5665_v22, %v80_v19 }
  0x65   :  { %5310 = vset.pattern.permute.xlu2 %v5552_v0 }
  0x66   :  { %189 = vperm.xlu2 %5310, %v57_v21   ;;  %5309 = vset.pattern.permute.xlu1 %v5553_v4 }
  0x67   :  { %317 = vperm.xlu1 %5309, %v47_v13  }
  0x69   :  { %5321 = vset.pattern.permute.xlu0 %v5553_v4 }
  0x6a   :  { %341 = vperm.xlu0 %5321, %v5709_v39  }
  0x6b   :  { %v270_v27 = vpop.permute.xlu2 %269 }
  0x6c   :  { %v391_v29 = vmul.f32 %v5668_v23, %v270_v27 }
  0x6e   :  { %v423_v30 = vadd.f32 %v391_v29, %v230_v26  ;;  %144 = vperm.xlu2 %5310, %v48_v15  }
  0x6f   :  { %357 = vperm.xlu1 %5309, %v57_v21  }
  0x70   :  { %v5684_v31 = vadd.f32 %v5680_v28, %v423_v30  ;;  %v1899_v30 = vld [vmem:[#allocation2 + $0x28] sm:$0xff] }
  0x71   :  { %1921 = vmatpush.msra.mxu0 %v1899_v30  ;;  %5246 = vmatpush.msra.mxu3 %v1899_v30 }
  0x72   :  { %v5692_v33 = vmul.f32 0.70710677, %v5684_v31  ;;  %5324 = vset.pattern.permute.xlu0 %v5552_v0 }
  0x73   :  { %v274_v6 = vpop.permute.xlu2 %273 }
  0x74   :  { %v630_v34 = vmul.f32 %v5692_v33, %v5692_v33  ;;  %v392_v9 = vmul.f32 %v5668_v23, %v274_v6 }
  0x76   :  { %v5700_v36 = vmin.f32 %v630_v34, 16.0  ;;  %5313 = vset.pattern.permute.xlu2 %v5553_v4 }
  0x77   :  { %361 = vperm.xlu2 %5313, %v58_v35   ;;  %5312 = vset.pattern.permute.xlu1 %v5552_v0 }
  0x78   :  { %v643_v37 = vmul.f32 3.8918573e-05, %v5700_v36  ;;  %194 = vperm.xlu1 %5312, %v58_v35   ;;  %v632_v48 = vmul.f32 2.1237322e-06, %v5700_v36 }
  0x7a   :  { %v75_v38 = vpop.permute.xlu1 %74  ;;  %v644_v40 = vadd.f32 0.001143296, %v643_v37  ;;  %v70_v41 = vpop.permute.xlu0 %69  ;;  %v633_v59 = vadd.f32 0.00028619796, %v632_v48 }
  0x7b   :  { %v228_v49 = vmul.f32 %v5665_v22, %v70_v41  ;;  %v229_v54 = vmul.f32 %v5665_v22, %v75_v38  ;;  %v1898_v41 = vld [vmem:[#allocation2 + $0x20] sm:$0xff] }
  0x7c   :  { %v645_v43 = vmul.f32 %v644_v40, %v5700_v36  ;;  %v634_v5 = vmul.f32 %v633_v59, %v5700_v36  ;;  %1922 = vmatpush.msra.mxu0 %v1898_v41  ;;  %v95_v47 = vpop.permute.xlu2 %94  ;;  %5247 = vmatpush.msra.mxu3 %v1898_v41  ;;  %v1896_v59 = vld [vmem:[#allocation2 + $0x10] sm:$0xff] }
  0x7e   :  { %v646_v46 = vadd.f32 0.014752088, %v645_v43  ;;  %v635_v18 = vadd.f32 0.0036580483, %v634_v5 }
  0x7f   :  { %325 = vperm.xlu2 %5313, %v49_v42  }
  0x80   :  { %149 = vperm.xlu1 %5312, %v49_v42   ;;  %v647_v53 = vmul.f32 %v646_v46, %v5700_v36  ;;  %v636_v35 = vmul.f32 %v635_v18, %v5700_v36  ;;  %v61_v18 = vld [vmem:[%s9480_s0 + $0xe0] sm:$0xff] }
  0x82   :  { %v648_v63 = vadd.f32 0.112945676, %v647_v53  ;;  %v637_v52 = vadd.f32 0.05243302, %v636_v35 }
  0x83   :  { %v266_v50 = vpop.permute.xlu1 %265 }
  0x84   :  { %v262_v51 = vpop.permute.xlu0 %261  ;;  %v390_v55 = vmul.f32 %v5668_v23, %v266_v50  ;;  %v649_v11 = vmul.f32 %v648_v63, %v5700_v36  ;;  %v1897_v50 = vld [vmem:[#allocation2 + $0x18] sm:$0xff]  ;;  %v638_v10 = vmul.f32 %v637_v52, %v5700_v36  ;;  %v100_v35 = vpop.permute.xlu2 %99 }
  0x85   :  { %v389_v56 = vmul.f32 %v5668_v23, %v262_v51  ;;  %1923 = vmatpush.msra.mxu0 %v1897_v50  ;;  %5248 = vmatpush.msra.mxu3 %v1897_v50 }
  0x86   :  { %v422_v60 = vadd.f32 %v390_v55, %v229_v54 }
  0x87   :  { %v421_v61 = vadd.f32 %v389_v56, %v228_v49  ;;  %5315 = vset.pattern.permute.xlu2 %v5552_v0  ;;  %v51_v49 = vld [vmem:[%s9480_s0 + $0x90] sm:$0xff]  ;;  %1924 = vmatpush.msra.mxu0 %v1896_v59 }
  0x88   :  { %154 = vperm.xlu2 %5315, %v50_v57   ;;  %v5728_v1 = vadd.f32 %v5680_v28, %v422_v60  ;;  %5314 = vset.pattern.permute.xlu1 %v5553_v4 }
  0x89   :  { %v5731_v2 = vadd.f32 %v5680_v28, %v421_v61  ;;  %365 = vperm.xlu1 %5314, %v5676_v25   ;;  %v650_v25 = vadd.f32 0.4994258, %v649_v11  ;;  %5249 = vmatpush.msra.mxu3 %v1896_v59 }
  0x8a   :  { %v5737_v7 = vmul.f32 0.70710677, %v5728_v1  ;;  %1925 = vmatpush.msra.mxu0 %v1895_v62 }
  0x8b   :  { %v5740_v8 = vmul.f32 0.70710677, %v5731_v2  ;;  %v651_v43 = vmul.f32 %v650_v25, %v5700_v36  ;;  %5250 = vmatpush.msra.mxu3 %v1895_v62  ;;  %v234_v62 = vmul.f32 %v5665_v22, %v100_v35 }
  0x8c   :  { %v590_v12 = vmul.f32 %v5737_v7, %v5737_v7  ;;  %v85_v14 = vpop.permute.xlu1 %84 }
  0x8d   :  { %v550_v13 = vmul.f32 %v5740_v8, %v5740_v8  ;;  %v231_v15 = vmul.f32 %v5665_v22, %v85_v14  ;;  %v90_v54 = vpop.permute.xlu0 %89  ;;  %v5782_v61 = vadd.f32 1.0, %v651_v43 }
  0x8e   :  { %v5749_v19 = vmin.f32 %v590_v12, 16.0  ;;  %v1894_v12 = vld [vmem:[#allocation2] sm:$0xff] }
  0x8f   :  { %v5751_v20 = vmin.f32 %v550_v13, 16.0  ;;  %v424_v21 = vadd.f32 %v392_v9, %v231_v15  ;;  %v5794_v13 = vld [vmem:[%s9480_s0 + $0xb8] sm:$0xff]  ;;  %5328 = vrcp.f32 %v5782_v61  ;;  %1926 = vmatpush.msra.mxu0 %v1894_v12  ;;  %5251 = vmatpush.msra.mxu3 %v1894_v12  ;;  %v664_v12 = vand.u32 2147483648, %v5782_v61 }
  0x90   :  { %204 = vperm.xlu2 %5315, %v5651_v17   ;;  %v592_v29 = vmul.f32 2.1237322e-06, %v5749_v19  ;;  %v603_v34 = vmul.f32 3.8918573e-05, %v5749_v19  ;;  %v5765_v17 = vld [vmem:[%s9480_s0 + $0xf8] sm:$0xff]  ;;  %vm658_vm0 = vweird.f32 %v5782_v61 }
  0x91   :  { %v552_v26 = vmul.f32 2.1237322e-06, %v5751_v20  ;;  %v563_v27 = vmul.f32 3.8918573e-05, %v5751_v20  ;;  %329 = vperm.xlu1 %5314, %v50_v57   ;;  %v5760_v37 = vadd.f32 %v5680_v28, %v424_v21  ;;  %224 = vperm.xlu0 %5324, %v5765_v17   ;;  %v232_v57 = vmul.f32 %v5665_v22, %v90_v54 }
  0x92   :  { %v593_v42 = vadd.f32 0.00028619796, %v592_v29  ;;  %v604_v46 = vadd.f32 0.001143296, %v603_v34  ;;  %v639_v34 = vadd.f32 0.18741608, %v638_v10 }
  0x93   :  { %v553_v38 = vadd.f32 0.00028619796, %v552_v26  ;;  %v564_v40 = vadd.f32 0.001143296, %v563_v27  ;;  %v5776_v53 = vmul.f32 0.70710677, %v5760_v37  ;;  %v233_v27 = vmul.f32 %v5665_v22, %v95_v47 }
  0x94   :  { %v594_v51 = vmul.f32 %v593_v42, %v5749_v19  ;;  %v605_v60 = vmul.f32 %v604_v46, %v5749_v19  ;;  %v640_v47 = vmul.f32 %v639_v34, %v5700_v36  ;;  %v62_v36 = vld [vmem:[%s9480_s0 + $0xe8] sm:$0xff]  ;;  %v5867_v35 = vor.u32 1.1754944e-38, %v664_v12 }
  0x95   :  { %v554_v44 = vmul.f32 %v553_v38, %v5751_v20  ;;  %v565_v45 = vmul.f32 %v564_v40, %v5751_v20  ;;  %v278_v48 = vpop.permute.xlu1 %277  ;;  %v670_v9 = vmul.f32 %v5776_v53, %v5776_v53  ;;  %v5811_v41 = vpop.eup %5328 }
  0x96   :  { %v393_v58 = vmul.f32 %v5668_v23, %v278_v48  ;;  %v595_v5 = vadd.f32 0.0036580483, %v594_v51  ;;  %v606_v6 = vadd.f32 0.014752088, %v605_v60  ;;  %v654_v52 = vmul.f32 %v5811_v41, %v5782_v61 }
  0x97   :  { %v555_v55 = vadd.f32 0.0036580483, %v554_v44  ;;  %v566_v56 = vadd.f32 0.014752088, %v565_v45  ;;  %v5805_v29 = vmin.f32 %v670_v9, 16.0  ;;  %v290_v9 = vpop.permute.xlu2 %289  ;;  %vm659_vm1 = vweird.f32 %v5811_v41 }
  0x98   :  { %5318 = vset.pattern.permute.xlu2 %v5553_v4  ;;  %v425_v11 = vadd.f32 %v393_v58, %v232_v57  ;;  %v607_v15 = vmul.f32 %v606_v6, %v5749_v19  ;;  %v596_v25 = vmul.f32 %v595_v5, %v5749_v19  ;;  %v641_v58 = vadd.f32 1.1283791, %v640_v47  ;;  %vm5899_vm8 = vmor %vm658_vm0, %vm659_vm1 }
  0x99   :  { %333 = vperm.xlu2 %5318, %v51_v49   ;;  %5317 = vset.pattern.permute.xlu1 %v5552_v0  ;;  %v556_v63 = vmul.f32 %v555_v55, %v5751_v20  ;;  %v567_v3 = vmul.f32 %v566_v56, %v5751_v20  ;;  %v672_v48 = vmul.f32 2.1237322e-06, %v5805_v29  ;;  %v655_v6 = vsub.f32 1.0, %v654_v52 }
  0x9a   :  { %159 = vperm.xlu1 %5317, %v51_v49   ;;  %5327 = vset.pattern.permute.xlu0 %v5553_v4  ;;  %v608_v26 = vadd.f32 0.112945676, %v607_v15  ;;  %v5809_v38 = vadd.f32 %v5680_v28, %v425_v11  ;;  %v597_v44 = vadd.f32 0.05243302, %v596_v25  ;;  %v5861_v25 = vmul.f32 %v5668_v23, %v290_v9 }
  0x9b   :  { %v568_v14 = vadd.f32 0.112945676, %v567_v3  ;;  %353 = vperm.xlu0 %5327, %v5794_v13   ;;  %v557_v21 = vadd.f32 0.05243302, %v556_v63  ;;  %v673_v60 = vadd.f32 0.00028619796, %v672_v48  ;;  %v286_v63 = vpop.permute.xlu0 %285 }
  0x9c   :  { %v609_v45 = vmul.f32 %v608_v26, %v5749_v19  ;;  %v5819_v49 = vmul.f32 0.70710677, %v5809_v38  ;;  %v598_v55 = vmul.f32 %v597_v44, %v5749_v19  ;;  %v5839_v3 = vmul.f32 0.5, %v5731_v2 }
  0x9d   :  { %v282_v16 = vpop.permute.xlu1 %281  ;;  %v569_v24 = vmul.f32 %v568_v14, %v5751_v20  ;;  %v558_v42 = vmul.f32 %v557_v21, %v5751_v20  ;;  %v683_v14 = vmul.f32 3.8918573e-05, %v5805_v29  ;;  %v5852_v2 = vmul.f32 %v641_v58, %v5692_v33 }
  0x9e   :  { %v394_v30 = vmul.f32 %v5668_v23, %v282_v16  ;;  %v610_v51 = vadd.f32 0.4994258, %v609_v45  ;;  %v710_v59 = vmul.f32 %v5819_v49, %v5819_v49  ;;  %v599_v11 = vadd.f32 0.18741608, %v598_v55 }
  0x9f   :  { %v570_v40 = vadd.f32 0.4994258, %v569_v24  ;;  %v559_v54 = vadd.f32 0.18741608, %v558_v42  ;;  %v674_v21 = vmul.f32 %v673_v60, %v5805_v29  ;;  %v684_v24 = vadd.f32 0.001143296, %v683_v14 }
  0xa0   :  { %v426_v46 = vadd.f32 %v394_v30, %v233_v27  ;;  %v611_v57 = vmul.f32 %v610_v51, %v5749_v19  ;;  %v656_v33 = vmul.f32 %v5811_v41, %v655_v6  ;;  %v662_v27 = vand.u32 2147483647, %v5782_v61 }
  0xa1   :  { %373 = vperm.xlu2 %5318, %v61_v18   ;;  %v571_v43 = vmul.f32 %v570_v40, %v5751_v20  ;;  %v560_v10 = vmul.f32 %v559_v54, %v5751_v20  ;;  %v395_v20 = vmul.f32 %v5668_v23, %v286_v63  ;;  %v600_v34 = vmul.f32 %v599_v11, %v5749_v19  ;;  %v5887_v63 = vpop.permute.xlu2 %293 }
  0xa2   :  { %209 = vperm.xlu1 %5317, %v61_v18   ;;  %v5828_v56 = vadd.f32 %v5680_v28, %v426_v46  ;;  %v5841_v5 = vadd.f32 1.0, %v611_v57  ;;  %v5855_v18 = vmin.f32 %v710_v59, 16.0  ;;  %v685_v40 = vmul.f32 %v684_v24, %v5805_v29 }
  0xa3   :  { %v5821_v50 = vadd.f32 1.0, %v571_v43  ;;  %v561_v30 = vadd.f32 1.1283791, %v560_v10  ;;  %v427_v45 = vadd.f32 %v395_v20, %v234_v62  ;;  %v675_v46 = vadd.f32 0.0036580483, %v674_v21 }
  0xa4   :  { %v5847_v15 = vmul.f32 0.70710677, %v5828_v56  ;;  %v712_v47 = vmul.f32 2.1237322e-06, %v5855_v18  ;;  %v657_v51 = vadd.f32 %v5811_v41, %v656_v33  ;;  %v686_v52 = vadd.f32 0.014752088, %v685_v40 }
  0xa5   :  { %5330 = vrcp.f32 %v5821_v50  ;;  %v582_v43 = vand.u32 2147483647, %v5821_v50  ;;  %v584_v44 = vand.u32 2147483648, %v5821_v50  ;;  %v562_v54 = vmul.f32 %v561_v30, %v5740_v8 }
  0xa6   :  { %5332 = vrcp.f32 %v5841_v5  ;;  %vm578_vm3 = vweird.f32 %v5821_v50  ;;  %v601_v55 = vadd.f32 1.1283791, %v600_v34  ;;  %vm5881_vm4 = vcmp.eq.f32.partialorder %v662_v27, 8.507059e+37  ;;  %v63_v27 = vld [vmem:[%s9480_s0 + $0xf0] sm:$0xff] }
  0xa7   :  { %vm583_vm5 = vcmp.eq.f32.partialorder %v582_v43, 8.507059e+37  ;;  %v585_v62 = vor.u32 1.1754944e-38, %v584_v44  ;;  %v676_v8 = vmul.f32 %v675_v46, %v5805_v29  ;;  %v713_v6 = vadd.f32 0.00028619796, %v712_v47  ;;  %v105_v43 = vpop.permute.xlu1 %104 }
  0xa8   :  { %v622_v10 = vand.u32 2147483647, %v5841_v5  ;;  %v624_v11 = vand.u32 2147483648, %v5841_v5  ;;  %v723_v12 = vmul.f32 3.8918573e-05, %v5855_v18  ;;  %vm618_vm9 = vweird.f32 %v5841_v5 }
  0xa9   :  { %5320 = vset.pattern.permute.xlu2 %v5552_v0  ;;  %v714_v34 = vmul.f32 %v713_v6, %v5855_v18 }
  0xaa   :  { %214 = vperm.xlu2 %5320, %v62_v36   ;;  %5319 = vset.pattern.permute.xlu1 %v5553_v4  ;;  %v724_v33 = vadd.f32 0.001143296, %v723_v12  ;;  %vm623_vm11 = vcmp.eq.f32.partialorder %v622_v10, 8.507059e+37 }
  0xab   :  { %v5331_v16 = vpop.eup %5330  ;;  %337 = vperm.xlu1 %5319, %v5689_v32   ;;  %v750_v32 = vmul.f32 %v5847_v15, %v5847_v15 }
  0xac   :  { %v574_v26 = vmul.f32 %v5331_v16, %v5821_v50  ;;  %v5333_v48 = vpop.eup %5332  ;;  %vm579_vm2 = vweird.f32 %v5331_v16  ;;  %v687_v50 = vmul.f32 %v686_v52, %v5805_v29 }
  0xad   :  { %v614_v57 = vmul.f32 %v5333_v48, %v5841_v5  ;;  %v5885_v59 = vmin.f32 %v750_v32, 16.0  ;;  %vm580_vm6 = vmor %vm578_vm3, %vm579_vm2  ;;  %vm619_vm7 = vweird.f32 %v5333_v48  ;;  %v625_v32 = vor.u32 1.1754944e-38, %v624_v11 }
  0xae   :  { %v575_v42 = vsub.f32 1.0, %v574_v26  ;;  %v688_v21 = vadd.f32 0.112945676, %v687_v50  ;;  %v661_v26 = vsel %vm5899_vm8, %v5811_v41, %v657_v51  ;;  %vm620_vm10 = vmor %vm618_vm9, %vm619_vm7  ;;  %v5917_v5 = vadd.f32 %v5680_v28, %v427_v45 }
  0xaf   :  { %v752_v46 = vmul.f32 2.1237322e-06, %v5885_v59  ;;  %v666_v51 = vsel %vm5881_vm4, %v5867_v35, %v661_v26 }
  0xb0   :  { %v576_v19 = vmul.f32 %v5331_v16, %v575_v42  ;;  %v689_v61 = vmul.f32 %v688_v21, %v5805_v29  ;;  %v725_v42 = vmul.f32 %v724_v33, %v5855_v18  ;;  %v5934_v6 = vmul.f32 0.70710677, %v5917_v5 }
  0xb1   :  { %v753_v50 = vadd.f32 0.00028619796, %v752_v46 }
  0xb2   :  { %169 = vperm.xlu2 %5320, %v5709_v39   ;;  %v577_v60 = vadd.f32 %v5331_v16, %v576_v19  ;;  %v615_v39 = vsub.f32 1.0, %v614_v57  ;;  %v690_v44 = vadd.f32 0.4994258, %v689_v61  ;;  %v235_v57 = vmul.f32 %v5665_v22, %v105_v43 }
  0xb3   :  { %377 = vperm.xlu1 %5319, %v62_v36   ;;  %v754_v21 = vmul.f32 %v753_v50, %v5885_v59 }
  0xb4   :  { %v581_v9 = vsel %vm580_vm6, %v5331_v16, %v577_v60  ;;  %v616_v20 = vmul.f32 %v5333_v48, %v615_v39  ;;  %v602_v16 = vmul.f32 %v601_v55, %v5737_v7  ;;  %v677_v7 = vadd.f32 0.05243302, %v676_v8  ;;  %v5928_v39 = vpop.permute.xlu2 %119 }
  0xb5   :  { %v586_v14 = vsel %vm583_vm5, %v585_v62, %v581_v9  ;;  %v726_v55 = vadd.f32 0.014752088, %v725_v42  ;;  %v763_v62 = vmul.f32 3.8918573e-05, %v5885_v59  ;;  %v667_v9 = vmul.f32 %v666_v51, %v5852_v2 }
  0xb6   :  { %v587_v24 = vmul.f32 %v586_v14, %v562_v54  ;;  %v617_v30 = vadd.f32 %v5333_v48, %v616_v20  ;;  %v691_v54 = vmul.f32 %v690_v44, %v5805_v29  ;;  %v678_v60 = vmul.f32 %v677_v7, %v5805_v29  ;;  %v115_v44 = vpop.permute.xlu0 %114 }
  0xb7   :  { %v727_v8 = vmul.f32 %v726_v55, %v5855_v18  ;;  %v764_v11 = vadd.f32 0.001143296, %v763_v62  ;;  %v428_v12 = vadd.f32 %v5861_v25, %v235_v57  ;;  %v487_v2 = vmul.f32 0.5, %v5728_v1  ;;  %v110_v25 = vpop.permute.xlu1 %109 }
  0xb8   :  { %v5140_v40 = vclamps-f32 %v587_v24, 1.0  ;;  %v621_v41 = vsel %vm620_vm10, %v5333_v48, %v617_v30  ;;  %v715_v48 = vadd.f32 0.0036580483, %v714_v34  ;;  %v5930_v35 = vadd.f32 1.0, %v691_v54 }
  0xb9   :  { %v626_v19 = vsel %vm623_vm11, %v625_v32, %v621_v41  ;;  %v679_v20 = vadd.f32 0.18741608, %v678_v60  ;;  %v728_v36 = vadd.f32 0.112945676, %v727_v8  ;;  %v790_v24 = vmul.f32 %v5934_v6, %v5934_v6 }
  0xba   :  { %5323 = vset.pattern.permute.xlu2 %v5553_v4  ;;  %v1830_v47 = vadd.f32 1.0, %v5140_v40  ;;  %v627_v52 = vmul.f32 %v626_v19, %v602_v16  ;;  %5334 = vrcp.f32 %v5930_v35  ;;  %v716_v10 = vmul.f32 %v715_v48, %v5855_v18 }
  0xbb   :  { %381 = vperm.xlu2 %5323, %v63_v27   ;;  %5322 = vset.pattern.permute.xlu1 %v5552_v0  ;;  %v5142_v16 = vclamps-f32 %v667_v9, 1.0  ;;  %v729_v33 = vmul.f32 %v728_v36, %v5855_v18  ;;  %v5950_v30 = vadd.f32 %v5680_v28, %v428_v12  ;;  %v488_v34 = vmul.f32 0.5, %v5684_v31 }
  0xbc   :  { %219 = vperm.xlu1 %5322, %v63_v27   ;;  %v1862_v45 = vmul.f32 %v1830_v47, %v5839_v3  ;;  %v5141_v58 = vclamps-f32 %v627_v52, 1.0  ;;  %v54_v3 = vld [vmem:[%s9480_s0 + $0xa8] sm:$0xff]  ;;  %v717_v26 = vadd.f32 0.05243302, %v716_v10  ;;  %v765_v27 = vmul.f32 %v764_v11, %v5885_v59  ;;  %v125_v19 = vpop.permute.xlu2 %124 }
  0xbd   :  { %v680_v40 = vmul.f32 %v679_v20, %v5805_v29  ;;  %v730_v7 = vadd.f32 0.4994258, %v729_v33  ;;  %v755_v42 = vadd.f32 0.0036580483, %v754_v21  ;;  %v5954_v43 = vmin.f32 %v790_v24, 16.0 }
  0xbe   :  { %1927 = vmatmul.f32.vlgmr.msra.gmra.mxu0 %v1862_v45  ;;  %v1831_v14 = vadd.f32 1.0, %v5141_v58  ;;  %v766_v1 = vadd.f32 0.014752088, %v765_v27  ;;  %v397_v41 = vmul.f32 %v5668_v23, %v5887_v63  ;;  %v1832_v46 = vadd.f32 1.0, %v5142_v16  ;;  %v55_v63 = vld [vmem:[%s9480_s0 + $0xb0] sm:$0xff]  ;;  %v306_v27 = vpop.permute.xlu0 %305 }
  0xbf   :  { %v236_v51 = vmul.f32 %v5665_v22, %v110_v25  ;;  %v718_v31 = vmul.f32 %v717_v26, %v5855_v18  ;;  %v731_v29 = vmul.f32 %v730_v7, %v5855_v18  ;;  %v5964_v54 = vmul.f32 0.70710677, %v5950_v30  ;;  %v298_v21 = vpop.permute.xlu1 %297 }
  0xc0   :  { %v1863_v61 = vmul.f32 %v1831_v14, %v487_v2  ;;  %v5335_v32 = vpop.eup %5334  ;;  %v767_v52 = vmul.f32 %v766_v1, %v5885_v59  ;;  %v681_v48 = vadd.f32 1.1283791, %v680_v40  ;;  %v704_v57 = vand.u32 2147483648, %v5930_v35 }
  0xc1   :  { %v694_v47 = vmul.f32 %v5335_v32, %v5930_v35  ;;  %v5970_v45 = vadd.f32 1.0, %v731_v29  ;;  %v756_v60 = vmul.f32 %v755_v42, %v5885_v59  ;;  %vm699_vm12 = vweird.f32 %v5335_v32 }
  0xc2   :  { %v768_v62 = vadd.f32 0.112945676, %v767_v52  ;;  %v702_v8 = vand.u32 2147483647, %v5930_v35  ;;  %v792_v50 = vmul.f32 2.1237322e-06, %v5954_v43  ;;  %v429_v9 = vadd.f32 %v397_v41, %v236_v51 }
  0xc3   :  { %345 = vperm.xlu2 %5323, %v54_v3   ;;  %v695_v55 = vsub.f32 1.0, %v694_v47  ;;  %v719_v10 = vadd.f32 0.18741608, %v718_v31  ;;  %5336 = vrcp.f32 %v5970_v45  ;;  %v830_v11 = vmul.f32 %v5964_v54, %v5964_v54 }
  0xc4   :  { %174 = vperm.xlu1 %5322, %v54_v3   ;;  %v1864_v3 = vmul.f32 %v1832_v46, %v488_v34  ;;  %vm698_vm13 = vweird.f32 %v5930_v35  ;;  %v705_v14 = vor.u32 1.1754944e-38, %v704_v57  ;;  %v757_v20 = vadd.f32 0.05243302, %v756_v60  ;;  %v5997_v7 = vpop.permute.xlu2 %309 }
  0xc5   :  { %v696_v58 = vmul.f32 %v5335_v32, %v695_v55  ;;  %vm700_vm14 = vmor %vm698_vm13, %vm699_vm12  ;;  %v769_v36 = vmul.f32 %v768_v62, %v5885_v59  ;;  %v682_v24 = vmul.f32 %v681_v48, %v5776_v53  ;;  %vm703_vm15 = vcmp.eq.f32.partialorder %v702_v8, 8.507059e+37 }
  0xc6   :  { %1930 = vmatmul.f32.gmra.mxu0 %v1863_v61  ;;  %v793_v16 = vadd.f32 0.00028619796, %v792_v50  ;;  %v720_v26 = vmul.f32 %v719_v10, %v5855_v18  ;;  %v489_v25 = vmul.f32 0.5, %v5760_v37  ;;  %v5994_v53 = vmul.f32 %v5665_v22, %v5928_v39 }
  0xc7   :  { %v697_v12 = vadd.f32 %v5335_v32, %v696_v58  ;;  %v770_v33 = vadd.f32 0.4994258, %v769_v36  ;;  %v758_v42 = vmul.f32 %v757_v20, %v5885_v59  ;;  %v239_v1 = vmul.f32 %v5665_v22, %v125_v19 }
  0xc8   :  { %v794_v46 = vmul.f32 %v793_v16, %v5954_v43  ;;  %v400_v47 = vmul.f32 %v5668_v23, %v306_v27  ;;  %v742_v48 = vand.u32 2147483647, %v5970_v45  ;;  %v744_v55 = vand.u32 2147483648, %v5970_v45 }
  0xc9   :  { %v701_v2 = vsel %vm700_vm14, %v5335_v32, %v697_v12  ;;  %v5337_v40 = vpop.eup %5336  ;;  %v237_v32 = vmul.f32 %v5665_v22, %v115_v44  ;;  %v771_v18 = vmul.f32 %v770_v33, %v5885_v59  ;;  %v721_v44 = vadd.f32 1.1283791, %v720_v26 }
  0xca   :  { %v706_v35 = vsel %vm703_vm15, %v705_v14, %v701_v2  ;;  %v734_v37 = vmul.f32 %v5337_v40, %v5970_v45  ;;  %v759_v57 = vadd.f32 0.18741608, %v758_v42  ;;  %vm739_vm0 = vweird.f32 %v5337_v40 }
  0xcb   :  { %5326 = vset.pattern.permute.xlu2 %v5552_v0  ;;  %v803_v0 = vmul.f32 3.8918573e-05, %v5954_v43  ;;  %v707_v61 = vmul.f32 %v706_v35, %v682_v24  ;;  %v6009_v51 = vadd.f32 1.0, %v771_v18  ;;  %v398_v8 = vmul.f32 %v5668_v23, %v298_v21 }
  0xcc   :  { %179 = vperm.xlu2 %5326, %v55_v63   ;;  %5325 = vset.pattern.permute.xlu1 %v5553_v4  ;;  %v5986_v4 = vadd.f32 %v5680_v28, %v429_v9  ;;  %v735_v29 = vsub.f32 1.0, %v734_v37  ;;  %v490_v50 = vmul.f32 0.5, %v5809_v38  ;;  %vm738_vm1 = vweird.f32 %v5970_v45  ;;  %v6026_v16 = vpop.permute.xlu2 %313 }
  0xcd   :  { %385 = vperm.xlu1 %5325, %v5765_v17   ;;  %v5989_v17 = vmin.f32 %v830_v11, 16.0  ;;  %v804_v34 = vadd.f32 0.001143296, %v803_v0  ;;  %v5143_v41 = vclamps-f32 %v707_v61, 1.0  ;;  %5338 = vrcp.f32 %v6009_v51  ;;  %vm740_vm2 = vmor %vm738_vm1, %vm739_vm0 }
  0xce   :  { %1933 = vmatmul.f32.gmra.mxu0 %v1864_v3  ;;  %v6006_v39 = vmul.f32 0.70710677, %v5986_v4  ;;  %v736_v62 = vmul.f32 %v5337_v40, %v735_v29  ;;  %v722_v12 = vmul.f32 %v721_v44, %v5819_v49  ;;  %v745_v0 = vor.u32 1.1754944e-38, %v744_v55 }
  0xcf   :  { %v1833_v31 = vadd.f32 1.0, %v5143_v41  ;;  %v805_v52 = vmul.f32 %v804_v34, %v5954_v43  ;;  %v832_v19 = vmul.f32 2.1237322e-06, %v5989_v17  ;;  %v843_v11 = vmul.f32 3.8918573e-05, %v5989_v17 }
  0xd0   :  { %v870_v58 = vmul.f32 %v6006_v39, %v6006_v39  ;;  %v737_v3 = vadd.f32 %v5337_v40, %v736_v62  ;;  %v760_v14 = vmul.f32 %v759_v57, %v5885_v59  ;;  %vm743_vm3 = vcmp.eq.f32.partialorder %v742_v48, 8.507059e+37 }
  0xd1   :  { %v1865_v60 = vmul.f32 %v1833_v31, %v489_v25  ;;  %v806_v9 = vadd.f32 0.014752088, %v805_v52  ;;  %v833_v10 = vadd.f32 0.00028619796, %v832_v19  ;;  %v844_v21 = vadd.f32 0.001143296, %v843_v11 }
  0xd2   :  { %v741_v36 = vsel %vm740_vm2, %v5337_v40, %v737_v3  ;;  %v432_v2 = vadd.f32 %v400_v47, %v239_v1  ;;  %v6029_v49 = vmin.f32 %v870_v58, 16.0  ;;  %v430_v33 = vadd.f32 %v398_v8, %v237_v32  ;;  %v140_v3 = vpop.permute.xlu0 %139 }
  0xd3   :  { %v807_v20 = vmul.f32 %v806_v9, %v5954_v43  ;;  %v5339_v24 = vpop.eup %5338  ;;  %v746_v45 = vsel %vm743_vm3, %v745_v0, %v741_v36  ;;  %v834_v26 = vmul.f32 %v833_v10, %v5989_v17  ;;  %v761_v61 = vadd.f32 1.1283791, %v760_v14 }
  0xd4   :  { %184 = vperm.xlu2 %5326, %v5794_v13   ;;  %v795_v13 = vadd.f32 0.0036580483, %v794_v46  ;;  %v747_v27 = vmul.f32 %v746_v45, %v722_v12  ;;  %v774_v59 = vmul.f32 %v5339_v24, %v6009_v51  ;;  %v845_v40 = vmul.f32 %v844_v21, %v5989_v17  ;;  %v6056_v0 = vpop.permute.xlu2 %189 }
  0xd5   :  { %349 = vperm.xlu1 %5325, %v55_v63   ;;  %v302_v63 = vpop.permute.xlu1 %301  ;;  %v808_v35 = vadd.f32 0.112945676, %v807_v20  ;;  %v782_v1 = vand.u32 2147483647, %v6009_v51  ;;  %v6037_v37 = vadd.f32 %v5680_v28, %v432_v2  ;;  %v835_v32 = vadd.f32 0.0036580483, %v834_v26 }
  0xd6   :  { %1936 = vmatmul.f32.gmra.mxu0 %v1865_v60  ;;  %v796_v38 = vmul.f32 %v795_v13, %v5954_v43  ;;  %v399_v25 = vmul.f32 %v5668_v23, %v302_v63  ;;  %v5144_v42 = vclamps-f32 %v747_v27, 1.0  ;;  %v775_v18 = vsub.f32 1.0, %v774_v59 }
  0xd7   :  { %v809_v34 = vmul.f32 %v808_v35, %v5954_v43  ;;  %v846_v47 = vadd.f32 0.014752088, %v845_v40  ;;  %v784_v29 = vand.u32 2147483648, %v6009_v51  ;;  %v872_v52 = vmul.f32 2.1237322e-06, %v6029_v49 }
  0xd8   :  { %v797_v41 = vadd.f32 0.05243302, %v796_v38  ;;  %v1834_v44 = vadd.f32 1.0, %v5144_v42  ;;  %v776_v31 = vmul.f32 %v5339_v24, %v775_v18  ;;  %vm779_vm4 = vweird.f32 %v5339_v24 }
  0xd9   :  { %v810_v46 = vadd.f32 0.4994258, %v809_v34  ;;  %v847_v48 = vmul.f32 %v846_v47, %v5989_v17  ;;  %v883_v55 = vmul.f32 3.8918573e-05, %v6029_v49  ;;  %v6045_v57 = vadd.f32 %v5680_v28, %v430_v33 }
  0xda   :  { %v431_v60 = vadd.f32 %v399_v25, %v5994_v53  ;;  %v1866_v13 = vmul.f32 %v1834_v44, %v490_v50  ;;  %vm778_vm5 = vweird.f32 %v6009_v51  ;;  %v777_v58 = vadd.f32 %v5339_v24, %v776_v31 }
  0xdb   :  { %v811_v19 = vmul.f32 %v810_v46, %v5954_v43  ;;  %v836_v9 = vmul.f32 %v835_v32, %v5989_v17  ;;  %v848_v63 = vadd.f32 0.112945676, %v847_v48  ;;  %vm780_vm6 = vmor %vm778_vm5, %vm779_vm4  ;;  %v785_v10 = vor.u32 1.1754944e-38, %v784_v29 }
  0xdc   :  { %v798_v11 = vmul.f32 %v797_v41, %v5954_v43  ;;  %v873_v12 = vadd.f32 0.00028619796, %v872_v52  ;;  %v884_v53 = vadd.f32 0.001143296, %v883_v55  ;;  %v762_v50 = vmul.f32 %v761_v61, %v5847_v15  ;;  %v145_v48 = vpop.permute.xlu2 %144 }
  0xdd   :  { %v6048_v62 = vpop.permute.xlu1 %129  ;;  %v6051_v8 = vadd.f32 1.0, %v811_v19  ;;  %v781_v51 = vsel %vm780_vm6, %v5339_v24, %v777_v58  ;;  %vm783_vm7 = vcmp.eq.f32.partialorder %v782_v1, 8.507059e+37  ;;  %v6061_v14 = vmul.f32 0.70710677, %v6045_v57 }
  0xde   :  { %1939 = vmatmul.f32.gmra.mxu0 %v1866_v13  ;;  %v786_v20 = vsel %vm783_vm7, %v785_v10, %v781_v51  ;;  %v837_v38 = vadd.f32 0.05243302, %v836_v9  ;;  %v849_v21 = vmul.f32 %v848_v63, %v5989_v17  ;;  %v874_v2 = vmul.f32 %v873_v12, %v6029_v49 }
  0xdf   :  { %5340 = vrcp.f32 %v6051_v8  ;;  %v787_v36 = vmul.f32 %v786_v20, %v762_v50  ;;  %v799_v45 = vadd.f32 0.18741608, %v798_v11  ;;  %v885_v35 = vmul.f32 %v884_v53, %v6029_v49 }
  0xe0   :  { %v6067_v26 = vmul.f32 0.70710677, %v6037_v37  ;;  %v6070_v15 = vadd.f32 %v5680_v28, %v431_v60  ;;  %v850_v33 = vadd.f32 0.4994258, %v849_v21  ;;  %v910_v27 = vmul.f32 %v6061_v14, %v6061_v14 }
  0xe1   :  { %v5145_v24 = vclamps-f32 %v787_v36, 1.0  ;;  %v491_v59 = vmul.f32 0.5, %v5828_v56  ;;  %v886_v25 = vadd.f32 0.014752088, %v885_v35  ;;  %v838_v40 = vmul.f32 %v837_v38, %v5989_v17 }
  0xe2   :  { %v851_v42 = vmul.f32 %v850_v33, %v5989_v17  ;;  %v875_v18 = vadd.f32 0.0036580483, %v874_v2  ;;  %v401_v1 = vmul.f32 %v5668_v23, %v5997_v7  ;;  %v800_v46 = vmul.f32 %v799_v45, %v5954_v43  ;;  %v322_v7 = vpop.permute.xlu0 %321 }
  0xe3   :  { %v1835_v34 = vadd.f32 1.0, %v5145_v24  ;;  %v990_v56 = vmul.f32 %v6067_v26, %v6067_v26  ;;  %v6086_v47 = vmul.f32 0.70710677, %v6070_v15  ;;  %v6090_v29 = vmin.f32 %v910_v27, 16.0 }
  0xe4   :  { %v6088_v31 = vadd.f32 1.0, %v851_v42  ;;  %v6093_v52 = vmul.f32 %v5665_v22, %v140_v3  ;;  %v887_v43 = vmul.f32 %v886_v25, %v6029_v49  ;;  %v824_v55 = vand.u32 2147483648, %v6051_v8 }
  0xe5   :  { %v5341_v61 = vpop.eup %5340  ;;  %v6079_v41 = vpop.permute.xlu1 %134  ;;  %v1867_v44 = vmul.f32 %v1835_v34, %v491_v59  ;;  %v839_v60 = vadd.f32 0.18741608, %v838_v40  ;;  %v876_v13 = vmul.f32 %v875_v18, %v6029_v49  ;;  %v801_v58 = vadd.f32 1.1283791, %v800_v46 }
  0xe6   :  { %v814_v32 = vmul.f32 %v5341_v61, %v6051_v8  ;;  %5342 = vrcp.f32 %v6088_v31  ;;  %vm819_vm8 = vweird.f32 %v5341_v61  ;;  %v822_v63 = vand.u32 2147483647, %v6051_v8  ;;  %v6119_v46 = vpop.permute.xlu2 %361 }
  0xe7   :  { %1942 = vmatmul.f32.gmra.mxu0 %v1867_v44  ;;  %v6100_v3 = vmin.f32 %v990_v56, 16.0  ;;  %v950_v10 = vmul.f32 %v6086_v47, %v6086_v47  ;;  %v404_v11 = vmul.f32 %v5668_v23, %v322_v7  ;;  %v888_v12 = vadd.f32 0.112945676, %v887_v43 }
  0xe8   :  { %v815_v19 = vsub.f32 1.0, %v814_v32  ;;  %v243_v53 = vmul.f32 %v5665_v22, %v145_v48  ;;  %v240_v50 = vmul.f32 %v5665_v22, %v6048_v62  ;;  %vm818_vm9 = vweird.f32 %v6051_v8 }
  0xe9   :  { %vm820_vm10 = vmor %vm818_vm9, %vm819_vm8  ;;  %v825_v20 = vor.u32 1.1754944e-38, %v824_v55  ;;  %v840_v36 = vmul.f32 %v839_v60, %v5989_v17  ;;  %v877_v38 = vadd.f32 0.05243302, %v876_v13  ;;  %v889_v21 = vmul.f32 %v888_v12, %v6029_v49 }
  0xea   :  { %v816_v9 = vmul.f32 %v5341_v61, %v815_v19  ;;  %v802_v2 = vmul.f32 %v801_v58, %v5934_v6  ;;  %vm823_vm11 = vcmp.eq.f32.partialorder %v822_v63, 8.507059e+37  ;;  %v912_v35 = vmul.f32 2.1237322e-06, %v6090_v29 }
  0xeb   :  { %v6113_v33 = vmin.f32 %v950_v10, 16.0  ;;  %v492_v62 = vmul.f32 0.5, %v5917_v5  ;;  %v890_v8 = vadd.f32 0.4994258, %v889_v21  ;;  %v433_v59 = vadd.f32 %v401_v1, %v240_v50 }
  0xec   :  { %v817_v51 = vadd.f32 %v5341_v61, %v816_v9  ;;  %v5343_v24 = vpop.eup %5342  ;;  %v436_v25 = vadd.f32 %v404_v11, %v243_v53  ;;  %v841_v42 = vadd.f32 1.1283791, %v840_v36  ;;  %v878_v6 = vmul.f32 %v877_v38, %v6029_v49 }
  0xed   :  { %v318_v34 = vpop.permute.xlu1 %317  ;;  %v854_v40 = vmul.f32 %v5343_v24, %v6088_v31  ;;  %v913_v18 = vadd.f32 0.00028619796, %v912_v35  ;;  %v862_v5 = vand.u32 2147483647, %v6088_v31  ;;  %v923_v44 = vmul.f32 3.8918573e-05, %v6090_v29 }
  0xee   :  { %v821_v45 = vsel %vm820_vm10, %v5341_v61, %v817_v51  ;;  %v891_v61 = vmul.f32 %v890_v8, %v6029_v49  ;;  %vm859_vm12 = vweird.f32 %v5343_v24  ;;  %v864_v1 = vand.u32 2147483648, %v6088_v31 }
  0xef   :  { %v826_v27 = vsel %vm823_vm11, %v825_v20, %v821_v45  ;;  %v855_v56 = vsub.f32 1.0, %v854_v40  ;;  %v914_v19 = vmul.f32 %v913_v18, %v6090_v29  ;;  %v924_v55 = vadd.f32 0.001143296, %v923_v44 }
  0xf0   :  { %v827_v17 = vmul.f32 %v826_v27, %v802_v2  ;;  %v6124_v7 = vadd.f32 1.0, %v891_v61  ;;  %v952_v60 = vmul.f32 2.1237322e-06, %v6113_v33  ;;  %v402_v13 = vmul.f32 %v5668_v23, %v6026_v16 }
  0xf1   :  { %v856_v48 = vmul.f32 %v5343_v24, %v855_v56  ;;  %v6131_v58 = vadd.f32 %v5680_v28, %v436_v25  ;;  %v879_v9 = vadd.f32 0.18741608, %v878_v6  ;;  %v6135_v63 = vadd.f32 %v5680_v28, %v433_v59 }
  0xf2   :  { %v5146_v32 = vclamps-f32 %v827_v17, 1.0  ;;  %5344 = vrcp.f32 %v6124_v7  ;;  %vm858_vm13 = vweird.f32 %v6088_v31  ;;  %v241_v12 = vmul.f32 %v5665_v22, %v6079_v41 }
  0xf3   :  { %v857_v11 = vadd.f32 %v5343_v24, %v856_v48  ;;  %vm860_vm14 = vmor %vm858_vm13, %vm859_vm12  ;;  %v865_v53 = vor.u32 1.1754944e-38, %v864_v1  ;;  %v915_v16 = vadd.f32 0.0036580483, %v914_v19  ;;  %v925_v50 = vmul.f32 %v924_v55, %v6090_v29 }
  0xf4   :  { %v1836_v43 = vadd.f32 1.0, %v5146_v32  ;;  %v842_v51 = vmul.f32 %v841_v42, %v5964_v54  ;;  %vm863_vm15 = vcmp.eq.f32.partialorder %v862_v5, 8.507059e+37  ;;  %v953_v36 = vadd.f32 0.00028619796, %v952_v60 }
  0xf5   :  { %v861_v20 = vsel %vm860_vm14, %v5343_v24, %v857_v11  ;;  %v403_v38 = vmul.f32 %v5668_v23, %v318_v34  ;;  %v880_v31 = vmul.f32 %v879_v9, %v6029_v49  ;;  %v926_v2 = vadd.f32 0.014752088, %v925_v50  ;;  %v358_v35 = vpop.permute.xlu1 %357  ;;  %v6157_v34 = vpop.permute.xlu2 %325 }
  0xf6   :  { %v1868_v10 = vmul.f32 %v1836_v43, %v492_v62  ;;  %v866_v21 = vsel %vm863_vm15, %v865_v53, %v861_v20  ;;  %v252_v41 = vmul.f32 %v5665_v22, %v6056_v0  ;;  %v6148_v45 = vmul.f32 0.70710677, %v6131_v58 }
  0xf7   :  { %v867_v62 = vmul.f32 %v866_v21, %v842_v51  ;;  %v963_v27 = vmul.f32 3.8918573e-05, %v6113_v33  ;;  %v6152_v24 = vmul.f32 0.70710677, %v6135_v63  ;;  %v493_v8 = vmul.f32 0.5, %v5950_v30 }
  0xf8   :  { %1945 = vmatmul.f32.gmra.mxu0 %v1868_v10  ;;  %v5345_v54 = vpop.eup %5344  ;;  %v916_v59 = vmul.f32 %v915_v16, %v6090_v29  ;;  %v927_v49 = vmul.f32 %v926_v2, %v6090_v29  ;;  %v434_v25 = vadd.f32 %v402_v13, %v241_v12  ;;  %v954_v40 = vmul.f32 %v953_v36, %v6113_v33 }
  0xf9   :  { %v5147_v0 = vclamps-f32 %v867_v62, 1.0  ;;  %v894_v17 = vmul.f32 %v5345_v54, %v6124_v7  ;;  %v435_v42 = vadd.f32 %v403_v38, %v6093_v52  ;;  %v413_v6 = vmul.f32 %v5668_v23, %v358_v35 }
  0xfa   :  { %v881_v61 = vadd.f32 1.1283791, %v880_v31  ;;  %v928_v18 = vadd.f32 0.112945676, %v927_v49  ;;  %v902_v56 = vand.u32 2147483647, %v6124_v7  ;;  %vm899_vm0 = vweird.f32 %v5345_v54 }
  0xfb   :  { %v1837_v32 = vadd.f32 1.0, %v5147_v0  ;;  %v895_v30 = vsub.f32 1.0, %v894_v17  ;;  %v964_v5 = vadd.f32 0.001143296, %v963_v27  ;;  %v904_v44 = vand.u32 2147483648, %v6124_v7 }
  0xfc   :  { %v917_v1 = vadd.f32 0.05243302, %v916_v59  ;;  %v929_v19 = vmul.f32 %v928_v18, %v6090_v29  ;;  %v992_v43 = vmul.f32 2.1237322e-06, %v6100_v3  ;;  %v955_v52 = vadd.f32 0.0036580483, %v954_v40  ;;  %v370_v18 = vpop.permute.xlu0 %369 }
  0xfd   :  { %v1869_v48 = vmul.f32 %v1837_v32, %v493_v8  ;;  %v896_v55 = vmul.f32 %v5345_v54, %v895_v30  ;;  %v6168_v60 = vadd.f32 %v5680_v28, %v434_v25  ;;  %v6171_v13 = vadd.f32 %v5680_v28, %v435_v42  ;;  %v6192_v62 = vpop.permute.xlu2 %154  ;;  %v195_v25 = vpop.permute.xlu1 %194 }
  0xfe   :  { %v445_v9 = vadd.f32 %v413_v6, %v252_v41  ;;  %v930_v10 = vadd.f32 0.4994258, %v929_v19  ;;  %v882_v11 = vmul.f32 %v881_v61, %v6006_v39  ;;  %vm898_vm1 = vweird.f32 %v6124_v7 }
  0xff   :  { %v897_v12 = vadd.f32 %v5345_v54, %v896_v55  ;;  %v965_v53 = vmul.f32 %v964_v5, %v6113_v33  ;;  %vm900_vm2 = vmor %vm898_vm1, %vm899_vm0  ;;  %vm903_vm3 = vcmp.eq.f32.partialorder %v902_v56, 8.507059e+37  ;;  %v905_v16 = vor.u32 1.1754944e-38, %v904_v44 }
 0x100   :  { %1948 = vmatmul.f32.gmra.mxu0 %v1869_v48  ;;  %v918_v50 = vmul.f32 %v917_v1, %v6090_v29  ;;  %v931_v51 = vmul.f32 %v930_v10, %v6090_v29  ;;  %v956_v36 = vmul.f32 %v955_v52, %v6113_v33  ;;  %v993_v21 = vadd.f32 0.00028619796, %v992_v43 }
 0x101   :  { %v901_v20 = vsel %vm900_vm2, %v5345_v54, %v897_v12  ;;  %v966_v38 = vadd.f32 0.014752088, %v965_v53  ;;  %v1030_v39 = vmul.f32 %v6152_v24, %v6152_v24  ;;  %v6182_v31 = vmul.f32 0.70710677, %v6168_v60 }
 0x102   :  { %v906_v7 = vsel %vm903_vm3, %v905_v16, %v901_v20  ;;  %v6184_v2 = vadd.f32 1.0, %v931_v51  ;;  %v6187_v41 = vmul.f32 0.70710677, %v6171_v13  ;;  %v6190_v35 = vadd.f32 %v5680_v28, %v445_v9 }
 0x103   :  { %v907_v27 = vmul.f32 %v906_v7, %v882_v11  ;;  %v967_v54 = vmul.f32 %v966_v38, %v6113_v33  ;;  %v919_v8 = vadd.f32 0.18741608, %v918_v50  ;;  %v1003_v59 = vmul.f32 3.8918573e-05, %v6100_v3 }
 0x104   :  { %5346 = vrcp.f32 %v6184_v2  ;;  %v6199_v49 = vmul.f32 %v6148_v45, %v6148_v45  ;;  %v957_v17 = vadd.f32 0.05243302, %v956_v36  ;;  %v994_v40 = vmul.f32 %v993_v21, %v6100_v3 }
 0x105   :  { %v5148_v0 = vclamps-f32 %v907_v27, 1.0  ;;  %v6202_v42 = vmin.f32 %v1030_v39, 16.0  ;;  %v1070_v6 = vmul.f32 %v6182_v31, %v6182_v31  ;;  %v414_v61 = vmul.f32 %v5668_v23, %v6119_v46  ;;  %v205_v21 = vpop.permute.xlu2 %204 }
 0x106   :  { %v968_v32 = vadd.f32 0.112945676, %v967_v54  ;;  %v1110_v30 = vmul.f32 %v6187_v41, %v6187_v41  ;;  %v6211_v56 = vmul.f32 0.70710677, %v6190_v35  ;;  %v494_v5 = vmul.f32 0.5, %v5986_v4 }
 0x107   :  { %v1838_v44 = vadd.f32 1.0, %v5148_v0  ;;  %v253_v1 = vmul.f32 %v5665_v22, %v195_v25  ;;  %v920_v19 = vmul.f32 %v919_v8, %v6090_v29  ;;  %v1004_v48 = vadd.f32 0.001143296, %v1003_v59 }
 0x108   :  { %v969_v43 = vmul.f32 %v968_v32, %v6113_v33  ;;  %v416_v46 = vmul.f32 %v5668_v23, %v370_v18  ;;  %v958_v52 = vmul.f32 %v957_v17, %v6113_v33  ;;  %v995_v9 = vadd.f32 0.0036580483, %v994_v40 }
 0x109   :  { %v1870_v55 = vmul.f32 %v1838_v44, %v494_v5  ;;  %v6221_v11 = vmul.f32 %v5668_v23, %v6157_v34  ;;  %v1005_v12 = vmul.f32 %v1004_v48, %v6100_v3  ;;  %v1032_v53 = vmul.f32 2.1237322e-06, %v6202_v42 }
 0x10a   :  { %v5347_v10 = vpop.eup %5346  ;;  %v970_v4 = vadd.f32 0.4994258, %v969_v43  ;;  %v6225_v29 = vmin.f32 %v1070_v6, 16.0  ;;  %v6227_v16 = vmin.f32 %v1110_v30, 16.0  ;;  %v1510_v50 = vmul.f32 %v6211_v56, %v6211_v56  ;;  %v200_v30 = vpop.permute.xlu0 %199 }
 0x10b   :  { %1951 = vmatmul.f32.gmra.mxu0 %v1870_v55  ;;  %v934_v51 = vmul.f32 %v5347_v10, %v6184_v2  ;;  %v446_v20 = vadd.f32 %v414_v61, %v253_v1  ;;  %v921_v36 = vadd.f32 1.1283791, %v920_v19  ;;  %v1006_v38 = vadd.f32 0.014752088, %v1005_v12 }
 0x10c   :  { %v971_v34 = vmul.f32 %v970_v4, %v6113_v33  ;;  %v959_v7 = vadd.f32 0.18741608, %v958_v52  ;;  %v996_v27 = vmul.f32 %v995_v9, %v6100_v3  ;;  %v1033_v54 = vadd.f32 0.00028619796, %v1032_v53 }
 0x10d   :  { %v935_v39 = vsub.f32 1.0, %v934_v51  ;;  %v942_v8 = vand.u32 2147483647, %v6184_v2  ;;  %v944_v59 = vand.u32 2147483648, %v6184_v2  ;;  %v1007_v0 = vmul.f32 %v1006_v38, %v6100_v3 }
 0x10e   :  { %v6236_v25 = vadd.f32 1.0, %v971_v34  ;;  %vm939_vm4 = vweird.f32 %v5347_v10  ;;  %v1034_v40 = vmul.f32 %v1033_v54, %v6202_v42  ;;  %v1043_v6 = vmul.f32 3.8918573e-05, %v6202_v42 }
 0x10f   :  { %v936_v17 = vmul.f32 %v5347_v10, %v935_v39  ;;  %v6241_v61 = vmin.f32 %v1510_v50, 16.0  ;;  %v255_v18 = vmul.f32 %v5665_v22, %v205_v21  ;;  %v6245_v32 = vadd.f32 %v5680_v28, %v446_v20 }
 0x110   :  { %5348 = vrcp.f32 %v6236_v25  ;;  %vm938_vm5 = vweird.f32 %v6184_v2  ;;  %v997_v44 = vadd.f32 0.05243302, %v996_v27  ;;  %v1008_v1 = vadd.f32 0.112945676, %v1007_v0 }
 0x111   :  { %v937_v5 = vadd.f32 %v5347_v10, %v936_v17  ;;  %v922_v19 = vmul.f32 %v921_v36, %v6061_v14  ;;  %vm940_vm6 = vmor %vm938_vm5, %vm939_vm4  ;;  %v945_v43 = vor.u32 1.1754944e-38, %v944_v59  ;;  %v1035_v48 = vadd.f32 0.0036580483, %v1034_v40 }
 0x112   :  { %v1044_v55 = vadd.f32 0.001143296, %v1043_v6  ;;  %vm943_vm7 = vcmp.eq.f32.partialorder %v942_v8, 8.507059e+37  ;;  %v960_v9 = vmul.f32 %v959_v7, %v6113_v33  ;;  %v1009_v4 = vmul.f32 %v1008_v1, %v6100_v3 }
 0x113   :  { %v941_v52 = vsel %vm940_vm6, %v5347_v10, %v937_v5  ;;  %v6253_v12 = vmul.f32 0.70710677, %v6245_v32  ;;  %v448_v53 = vadd.f32 %v416_v46, %v255_v18  ;;  %v6256_v2 = vmul.f32 %v5665_v22, %v200_v30 }
 0x114   :  { %v946_v50 = vsel %vm943_vm7, %v945_v43, %v941_v52  ;;  %v998_v14 = vmul.f32 %v997_v44, %v6100_v3  ;;  %v1010_v20 = vadd.f32 0.4994258, %v1009_v4  ;;  %v1045_v36 = vmul.f32 %v1044_v55, %v6202_v42  ;;  %v150_v55 = vpop.permute.xlu1 %149 }
 0x115   :  { %v947_v51 = vmul.f32 %v946_v50, %v922_v19  ;;  %v495_v34 = vmul.f32 0.5, %v6045_v57  ;;  %v1512_v33 = vmul.f32 2.1237322e-06, %v6241_v61  ;;  %v1523_v38 = vmul.f32 3.8918573e-05, %v6241_v61 }
 0x116   :  { %v5349_v10 = vpop.eup %5348  ;;  %v1036_v21 = vmul.f32 %v1035_v48, %v6202_v42  ;;  %v961_v39 = vadd.f32 1.1283791, %v960_v9  ;;  %v982_v27 = vand.u32 2147483647, %v6236_v25  ;;  %v984_v54 = vand.u32 2147483648, %v6236_v25 }
 0x117   :  { %v5149_v46 = vclamps-f32 %v947_v51, 1.0  ;;  %v974_v7 = vmul.f32 %v5349_v10, %v6236_v25  ;;  %v1011_v8 = vmul.f32 %v1010_v20, %v6100_v3  ;;  %v1513_v59 = vadd.f32 0.00028619796, %v1512_v33 }
 0x118   :  { %v1524_v0 = vadd.f32 0.001143296, %v1523_v38  ;;  %v999_v40 = vadd.f32 0.18741608, %v998_v14  ;;  %v1046_v6 = vadd.f32 0.014752088, %v1045_v36  ;;  %vm979_vm8 = vweird.f32 %v5349_v10 }
 0x119   :  { %v1839_v17 = vadd.f32 1.0, %v5149_v46  ;;  %v975_v57 = vsub.f32 1.0, %v974_v7  ;;  %v6268_v18 = vadd.f32 1.0, %v1011_v8  ;;  %v1514_v30 = vmul.f32 %v1513_v59, %v6241_v61 }
 0x11a   :  { %v1525_v5 = vmul.f32 %v1524_v0, %v6241_v61  ;;  %v1037_v44 = vadd.f32 0.05243302, %v1036_v21  ;;  %v1047_v43 = vmul.f32 %v1046_v6, %v6202_v42  ;;  %v1550_v48 = vmul.f32 %v6253_v12, %v6253_v12 }
 0x11b   :  { %v1871_v1 = vmul.f32 %v1839_v17, %v495_v34  ;;  %v976_v19 = vmul.f32 %v5349_v10, %v975_v57  ;;  %v962_v52 = vmul.f32 %v961_v39, %v6086_v47  ;;  %vm978_vm9 = vweird.f32 %v6236_v25 }
 0x11c   :  { %5350 = vrcp.f32 %v6268_v18  ;;  %v1000_v4 = vmul.f32 %v999_v40, %v6100_v3  ;;  %v1515_v50 = vadd.f32 0.0036580483, %v1514_v30  ;;  %v1526_v51 = vadd.f32 0.014752088, %v1525_v5  ;;  %vm980_vm10 = vmor %vm978_vm9, %vm979_vm8 }
 0x11d   :  { %1954 = vmatmul.f32.gmra.mxu0 %v1871_v1  ;;  %v977_v9 = vadd.f32 %v5349_v10, %v976_v19  ;;  %v985_v14 = vor.u32 1.1754944e-38, %v984_v54  ;;  %v1038_v20 = vmul.f32 %v1037_v44, %v6202_v42  ;;  %v1048_v36 = vadd.f32 0.112945676, %v1047_v43 }
 0x11e   :  { %v1072_v34 = vmul.f32 2.1237322e-06, %v6225_v29  ;;  %vm983_vm11 = vcmp.eq.f32.partialorder %v982_v27, 8.507059e+37  ;;  %v1516_v47 = vmul.f32 %v1515_v50, %v6241_v61  ;;  %v1527_v25 = vmul.f32 %v1526_v51, %v6241_v61 }
 0x11f   :  { %v981_v33 = vsel %vm980_vm10, %v5349_v10, %v977_v9  ;;  %v6283_v38 = vmin.f32 %v1550_v48, 16.0  ;;  %v496_v21 = vmul.f32 0.5, %v6070_v15  ;;  %v1049_v46 = vmul.f32 %v1048_v36, %v6202_v42  ;;  %v366_v48 = vpop.permute.xlu1 %365 }
 0x120   :  { %v986_v3 = vsel %vm983_vm11, %v985_v14, %v981_v33  ;;  %v1001_v7 = vadd.f32 1.1283791, %v1000_v4  ;;  %v1517_v54 = vadd.f32 0.05243302, %v1516_v47  ;;  %v1528_v8 = vadd.f32 0.112945676, %v1527_v25 }
 0x121   :  { %v987_v39 = vmul.f32 %v986_v3, %v962_v52  ;;  %v6288_v0 = vadd.f32 %v5680_v28, %v448_v53  ;;  %v1039_v10 = vadd.f32 0.18741608, %v1038_v20  ;;  %v1050_v27 = vadd.f32 0.4994258, %v1049_v46 }
 0x122   :  { %v5351_v59 = vpop.eup %5350  ;;  %v1073_v17 = vadd.f32 0.00028619796, %v1072_v34  ;;  %vm1018_vm12 = vweird.f32 %v6268_v18  ;;  %v1518_v15 = vmul.f32 %v1517_v54, %v6241_v61  ;;  %v1022_v6 = vand.u32 2147483647, %v6268_v18 }
 0x123   :  { %v5150_v57 = vclamps-f32 %v987_v39, 1.0  ;;  %v1014_v40 = vmul.f32 %v5351_v59, %v6268_v18  ;;  %v1024_v30 = vand.u32 2147483648, %v6268_v18  ;;  %v1529_v5 = vmul.f32 %v1528_v8, %v6241_v61 }
 0x124   :  { %v1051_v44 = vmul.f32 %v1050_v27, %v6202_v42  ;;  %v1519_v19 = vadd.f32 0.18741608, %v1518_v15  ;;  %v1083_v43 = vmul.f32 3.8918573e-05, %v6225_v29  ;;  %v1040_v9 = vmul.f32 %v1039_v10, %v6202_v42 }
 0x125   :  { %v1840_v53 = vadd.f32 1.0, %v5150_v57  ;;  %v1015_v1 = vsub.f32 1.0, %v1014_v40  ;;  %v1530_v52 = vadd.f32 0.4994258, %v1529_v5  ;;  %v1074_v50 = vmul.f32 %v1073_v17, %v6225_v29 }
 0x126   :  { %v6299_v4 = vadd.f32 1.0, %v1051_v44  ;;  %vm1019_vm13 = vweird.f32 %v5351_v59  ;;  %v1552_v20 = vmul.f32 2.1237322e-06, %v6283_v38  ;;  %v244_v36 = vmul.f32 %v5665_v22, %v150_v55 }
 0x127   :  { %v1872_v51 = vmul.f32 %v1840_v53, %v496_v21  ;;  %v1016_v14 = vmul.f32 %v5351_v59, %v1015_v1  ;;  %v1520_v34 = vmul.f32 %v1519_v19, %v6241_v61  ;;  %v1531_v33 = vmul.f32 %v1530_v52, %v6241_v61  ;;  %vm1020_vm14 = vmor %vm1018_vm12, %vm1019_vm13 }
 0x128   :  { %5352 = vrcp.f32 %v6299_v4  ;;  %v415_v47 = vmul.f32 %v5668_v23, %v366_v48  ;;  %v1002_v42 = vmul.f32 %v1001_v7, %v6067_v26  ;;  %v1084_v3 = vadd.f32 0.001143296, %v1083_v43 }
 0x129   :  { %1957 = vmatmul.f32.gmra.mxu0 %v1872_v51  ;;  %v1017_v25 = vadd.f32 %v5351_v59, %v1016_v14  ;;  %v1025_v21 = vor.u32 1.1754944e-38, %v1024_v30  ;;  %v6311_v46 = vadd.f32 1.0, %v1531_v33  ;;  %v1553_v55 = vadd.f32 0.00028619796, %v1552_v20 }
 0x12a   :  { %v1563_v39 = vmul.f32 3.8918573e-05, %v6283_v38  ;;  %vm1023_vm15 = vcmp.eq.f32.partialorder %v1022_v6, 8.507059e+37  ;;  %v1041_v61 = vadd.f32 1.1283791, %v1040_v9  ;;  %v6315_v10 = vadd.f32 %v6221_v11, %v244_v36 }
 0x12b   :  { %v1021_v54 = vsel %vm1020_vm14, %v5351_v59, %v1017_v25  ;;  %v1075_v8 = vadd.f32 0.0036580483, %v1074_v50  ;;  %v1521_v26 = vadd.f32 1.1283791, %v1520_v34  ;;  %5354 = vrcp.f32 %v6311_v46 }
 0x12c   :  { %v1026_v27 = vsel %vm1023_vm15, %v1025_v21, %v1021_v54  ;;  %v6319_v18 = vadd.f32 %v415_v47, %v6256_v2  ;;  %v1062_v17 = vand.u32 2147483647, %v6299_v4  ;;  %v1554_v57 = vmul.f32 %v1553_v55, %v6283_v38 }
 0x12d   :  { %v1027_v7 = vmul.f32 %v1026_v27, %v1002_v42  ;;  %v497_v59 = vmul.f32 0.5, %v6037_v37  ;;  %v1064_v15 = vand.u32 2147483648, %v6299_v4  ;;  %v1564_v6 = vadd.f32 0.001143296, %v1563_v39 }
 0x12e   :  { %v5353_v40 = vpop.eup %5352  ;;  %v1085_v11 = vmul.f32 %v1084_v3, %v6225_v29  ;;  %v1042_v5 = vmul.f32 %v1041_v61, %v6152_v24  ;;  %v1076_v2 = vmul.f32 %v1075_v8, %v6225_v29  ;;  %v1522_v53 = vmul.f32 %v1521_v26, %v6211_v56 }
 0x12f   :  { %v5151_v30 = vclamps-f32 %v1027_v7, 1.0  ;;  %v1054_v44 = vmul.f32 %v5353_v40, %v6299_v4  ;;  %vm1058_vm0 = vweird.f32 %v6299_v4  ;;  %v1555_v1 = vadd.f32 0.0036580483, %v1554_v57 }
 0x130   :  { %v1565_v19 = vmul.f32 %v1564_v6, %v6283_v38  ;;  %vm6332_vm1 = vcmp.eq.f32.partialorder %v1062_v17, 8.507059e+37  ;;  %v1086_v52 = vadd.f32 0.014752088, %v1085_v11  ;;  %v1542_v24 = vand.u32 2147483647, %v6311_v46 }
 0x131   :  { %v1841_v37 = vadd.f32 1.0, %v5151_v30  ;;  %v1055_v43 = vsub.f32 1.0, %v1054_v44  ;;  %v5355_v9 = vpop.eup %5354  ;;  %v1065_v50 = vor.u32 1.1754944e-38, %v1064_v15  ;;  %v1556_v51 = vmul.f32 %v1555_v1, %v6283_v38 }
 0x132   :  { %v1566_v14 = vadd.f32 0.014752088, %v1565_v19  ;;  %v1534_v20 = vmul.f32 %v5355_v9, %v6311_v46  ;;  %vm1059_vm2 = vweird.f32 %v5353_v40  ;;  %v1077_v47 = vadd.f32 0.05243302, %v1076_v2 }
 0x133   :  { %v1873_v56 = vmul.f32 %v1841_v37, %v497_v59  ;;  %v1056_v36 = vmul.f32 %v5353_v40, %v1055_v43  ;;  %v1557_v34 = vadd.f32 0.05243302, %v1556_v51  ;;  %v1087_v42 = vmul.f32 %v1086_v52, %v6225_v29  ;;  %vm1060_vm4 = vmor %vm1058_vm0, %vm1059_vm2 }
 0x134   :  { %v1567_v33 = vmul.f32 %v1566_v14, %v6283_v38  ;;  %v1535_v25 = vsub.f32 1.0, %v1534_v20  ;;  %v1112_v21 = vmul.f32 2.1237322e-06, %v6227_v16  ;;  %v1123_v55 = vmul.f32 3.8918573e-05, %v6227_v16 }
 0x135   :  { %1960 = vmatmul.f32.gmra.mxu0 %v1873_v56  ;;  %v1057_v3 = vadd.f32 %v5353_v40, %v1056_v36  ;;  %vm1539_vm3 = vweird.f32 %v5355_v9  ;;  %v1544_v39 = vand.u32 2147483648, %v6311_v46  ;;  %v1088_v61 = vadd.f32 0.112945676, %v1087_v42 }
 0x136   :  { %v1568_v54 = vadd.f32 0.112945676, %v1567_v33  ;;  %v1536_v8 = vmul.f32 %v5355_v9, %v1535_v25  ;;  %v1113_v26 = vadd.f32 0.00028619796, %v1112_v21  ;;  %v1124_v7 = vadd.f32 0.001143296, %v1123_v55 }
 0x137   :  { %v1061_v27 = vsel %vm1060_vm4, %v5353_v40, %v1057_v3  ;;  %vm1538_vm5 = vweird.f32 %v6311_v46  ;;  %v1078_v59 = vmul.f32 %v1077_v47, %v6225_v29  ;;  %v1558_v4 = vmul.f32 %v1557_v34, %v6283_v38  ;;  %v330_v47 = vpop.permute.xlu1 %329 }
 0x138   :  { %v1066_v17 = vsel %vm6332_vm1, %v1065_v50, %v1061_v27  ;;  %v1569_v57 = vmul.f32 %v1568_v54, %v6283_v38  ;;  %v1537_v15 = vadd.f32 %v5355_v9, %v1536_v8  ;;  %v1089_v11 = vmul.f32 %v1088_v61, %v6225_v29  ;;  %vm1540_vm6 = vmor %vm1538_vm5, %vm1539_vm3  ;;  %v334_v54 = vpop.permute.xlu2 %333 }
 0x139   :  { %v1067_v6 = vmul.f32 %v1066_v17, %v1042_v5  ;;  %vm1543_vm7 = vcmp.eq.f32.partialorder %v1542_v24, 8.507059e+37  ;;  %v1545_v40 = vor.u32 1.1754944e-38, %v1544_v39  ;;  %v1114_v46 = vmul.f32 %v1113_v26, %v6227_v16 }
 0x13a   :  { %v1570_v30 = vadd.f32 0.4994258, %v1569_v57  ;;  %v1541_v44 = vsel %vm1540_vm6, %v5355_v9, %v1537_v15  ;;  %v1090_v1 = vadd.f32 0.4994258, %v1089_v11  ;;  %v1125_v19 = vmul.f32 %v1124_v7, %v6227_v16 }
 0x13b   :  { %v5152_v2 = vclamps-f32 %v1067_v6, 1.0  ;;  %v1546_v37 = vsel %vm1543_vm7, %v1545_v40, %v1541_v44  ;;  %v498_v43 = vmul.f32 0.5, %v6135_v63  ;;  %v1079_v48 = vadd.f32 0.18741608, %v1078_v59 }
 0x13c   :  { %v1571_v5 = vmul.f32 %v1570_v30, %v6283_v38  ;;  %v1547_v52 = vmul.f32 %v1546_v37, %v1522_v53  ;;  %v1559_v51 = vadd.f32 0.18741608, %v1558_v4  ;;  %v1091_v24 = vmul.f32 %v1090_v1, %v6225_v29 }
 0x13d   :  { %v1842_v50 = vadd.f32 1.0, %v5152_v2  ;;  %v6361_v14 = vadd.f32 %v5680_v28, %v6315_v10  ;;  %v6365_v9 = vadd.f32 %v5680_v28, %v6319_v18  ;;  %v1115_v20 = vadd.f32 0.0036580483, %v1114_v46 }
 0x13e   :  { %v6367_v56 = vadd.f32 1.0, %v1571_v5  ;;  %v5164_v63 = vclamps-f32 %v1547_v52, 1.0  ;;  %v6369_v34 = vadd.f32 1.0, %v1091_v24  ;;  %v1126_v53 = vadd.f32 0.014752088, %v1125_v19 }
 0x13f   :  { %v1874_v36 = vmul.f32 %v1842_v50, %v498_v43  ;;  %v6372_v33 = vmin.f32 %v6199_v49, 16.0  ;;  %v1080_v10 = vmul.f32 %v1079_v48, %v6225_v29  ;;  %v510_v42 = vmul.f32 0.5, %v6190_v35 }
 0x140   :  { %5356 = vrcp.f32 %v6367_v56  ;;  %v1854_v18 = vadd.f32 1.0, %v5164_v63  ;;  %v1560_v25 = vmul.f32 %v1559_v51, %v6283_v38  ;;  %v245_v3 = vmul.f32 %v5665_v22, %v6192_v62 }
 0x141   :  { %1963 = vmatmul.f32.gmra.mxu0 %v1874_v36  ;;  %5358 = vrcp.f32 %v6369_v34  ;;  %v6382_v21 = vmul.f32 0.70710677, %v6288_v0  ;;  %v6385_v49 = vmul.f32 0.70710677, %v6361_v14  ;;  %v6388_v55 = vmul.f32 0.70710677, %v6365_v9 }
 0x142   :  { %v406_v35 = vmul.f32 %v5668_v23, %v330_v47  ;;  %v1886_v29 = vmul.f32 %v1854_v18, %v510_v42  ;;  %v1116_v39 = vmul.f32 %v1115_v20, %v6227_v16  ;;  %v1127_v38 = vmul.f32 %v1126_v53, %v6227_v16 }
 0x143   :  { %v1081_v61 = vadd.f32 1.1283791, %v1080_v10  ;;  %v1152_v62 = vmul.f32 2.1237322e-06, %v6372_v33  ;;  %v1561_v8 = vadd.f32 1.1283791, %v1560_v25  ;;  %v1630_v17 = vmul.f32 %v6382_v21, %v6382_v21  ;;  %v6418_v10 = vpop.permute.xlu2 %373 }
 0x144   :  { %1999 = vmatmul.f32.vlgmr.msra.gmra.mxu3 %v1886_v29  ;;  %v1117_v27 = vadd.f32 0.05243302, %v1116_v39  ;;  %v1128_v26 = vadd.f32 0.112945676, %v1127_v38  ;;  %v1190_v57 = vmul.f32 %v6385_v49, %v6385_v49  ;;  %v1163_v15 = vmul.f32 3.8918573e-05, %v6372_v33 }
 0x145   :  { %v1153_v59 = vadd.f32 0.00028619796, %v1152_v62  ;;  %v1590_v4 = vmul.f32 %v6388_v55, %v6388_v55  ;;  %v438_v11 = vadd.f32 %v406_v35, %v245_v3  ;;  %v1082_v46 = vmul.f32 %v1081_v61, %v6182_v31 }
 0x146   :  { %v5357_v7 = vpop.eup %5356  ;;  %v1129_v30 = vmul.f32 %v1128_v26, %v6227_v16  ;;  %v1118_v2 = vmul.f32 %v1117_v27, %v6227_v16  ;;  %v1164_v1 = vadd.f32 0.001143296, %v1163_v15  ;;  %v1562_v19 = vmul.f32 %v1561_v8, %v6253_v12 }
 0x147   :  { %v5359_v6 = vpop.eup %5358  ;;  %v1574_v40 = vmul.f32 %v5357_v7, %v6367_v56  ;;  %v1582_v43 = vand.u32 2147483647, %v6367_v56  ;;  %v1584_v48 = vand.u32 2147483648, %v6367_v56  ;;  %v1104_v50 = vand.u32 2147483648, %v6369_v34 }
 0x148   :  { %v1094_v44 = vmul.f32 %v5359_v6, %v6369_v34  ;;  %v1130_v5 = vadd.f32 0.4994258, %v1129_v30  ;;  %v1154_v51 = vmul.f32 %v1153_v59, %v6372_v33  ;;  %vm1579_vm8 = vweird.f32 %v5357_v7 }
 0x149   :  { %v1575_v37 = vsub.f32 1.0, %v1574_v40  ;;  %v1165_v20 = vmul.f32 %v1164_v1, %v6372_v33  ;;  %vm1099_vm9 = vweird.f32 %v5359_v6  ;;  %v1102_v12 = vand.u32 2147483647, %v6369_v34 }
 0x14a   :  { %v1095_v52 = vsub.f32 1.0, %v1094_v44  ;;  %v1131_v31 = vmul.f32 %v1130_v5, %v6227_v16  ;;  %v1119_v36 = vadd.f32 0.18741608, %v1118_v2  ;;  %vm1578_vm10 = vweird.f32 %v6367_v56 }
 0x14b   :  { %v1576_v24 = vmul.f32 %v5357_v7, %v1575_v37  ;;  %vm1098_vm11 = vweird.f32 %v6369_v34  ;;  %vm1580_vm12 = vmor %vm1578_vm10, %vm1579_vm8  ;;  %vm1583_vm13 = vcmp.eq.f32.partialorder %v1582_v43, 8.507059e+37  ;;  %v1585_v42 = vor.u32 1.1754944e-38, %v1584_v48  ;;  %v160_v34 = vpop.permute.xlu1 %159 }
 0x14c   :  { %v1096_v63 = vmul.f32 %v5359_v6, %v1095_v52  ;;  %v6416_v47 = vadd.f32 1.0, %v1131_v31  ;;  %v1155_v25 = vadd.f32 0.0036580483, %v1154_v51  ;;  %vm1100_vm14 = vmor %vm1098_vm11, %vm1099_vm9  ;;  %v1105_v35 = vor.u32 1.1754944e-38, %v1104_v50 }
 0x14d   :  { %v1577_v53 = vadd.f32 %v5357_v7, %v1576_v24  ;;  %v1166_v29 = vadd.f32 0.014752088, %v1165_v20  ;;  %vm1103_vm15 = vcmp.eq.f32.partialorder %v1102_v12, 8.507059e+37  ;;  %v1120_v56 = vmul.f32 %v1119_v36, %v6227_v16 }
 0x14e   :  { %v1097_v18 = vadd.f32 %v5359_v6, %v1096_v63  ;;  %5360 = vrcp.f32 %v6416_v47  ;;  %v6422_v8 = vmin.f32 %v1630_v17, 16.0  ;;  %v6425_v27 = vmul.f32 %v5668_v23, %v334_v54 }
 0x14f   :  { %v1581_v3 = vsel %vm1580_vm12, %v5357_v7, %v1577_v53  ;;  %v1156_v7 = vmul.f32 %v1155_v25, %v6372_v33  ;;  %v6428_v59 = vmin.f32 %v1190_v57, 16.0  ;;  %v6430_v15 = vmin.f32 %v1590_v4, 16.0 }
 0x150   :  { %v1586_v39 = vsel %vm1583_vm13, %v1585_v42, %v1581_v3  ;;  %v1101_v38 = vsel %vm1100_vm14, %v5359_v6, %v1097_v18  ;;  %v1167_v6 = vmul.f32 %v1166_v29, %v6372_v33  ;;  %v6434_v16 = vadd.f32 %v5680_v28, %v438_v11 }
 0x151   :  { %v1587_v61 = vmul.f32 %v1586_v39, %v1562_v19  ;;  %v1106_v62 = vsel %vm1103_vm15, %v1105_v35, %v1101_v38  ;;  %v246_v30 = vmul.f32 %v5665_v22, %v160_v34  ;;  %v1121_v44 = vadd.f32 1.1283791, %v1120_v56  ;;  %v6439_v19 = vpop.permute.xlu0 %164 }
 0x152   :  { %v1107_v26 = vmul.f32 %v1106_v62, %v1082_v46  ;;  %v511_v54 = vmul.f32 0.5, %v6245_v32  ;;  %v499_v1 = vmul.f32 0.5, %v6168_v60  ;;  %v1168_v57 = vadd.f32 0.112945676, %v1167_v6  ;;  %v6446_v32 = vpop.permute.xlu2 %214 }
 0x153   :  { %v5165_v40 = vclamps-f32 %v1587_v61, 1.0  ;;  %v1142_v43 = vand.u32 2147483647, %v6416_v47  ;;  %v1157_v11 = vadd.f32 0.05243302, %v1156_v7  ;;  %v1122_v60 = vmul.f32 %v1121_v44, %v6187_v41  ;;  %v210_v18 = vpop.permute.xlu1 %209 }
 0x154   :  { %v5153_v17 = vclamps-f32 %v1107_v26, 1.0  ;;  %v5361_v2 = vpop.eup %5360  ;;  %v1169_v48 = vmul.f32 %v1168_v57, %v6372_v33  ;;  %v1192_v52 = vmul.f32 2.1237322e-06, %v6428_v59  ;;  %v1203_v50 = vmul.f32 3.8918573e-05, %v6428_v59 }
 0x155   :  { %v1855_v46 = vadd.f32 1.0, %v5165_v40  ;;  %v1134_v37 = vmul.f32 %v5361_v2, %v6416_v47  ;;  %v1144_v31 = vand.u32 2147483648, %v6416_v47  ;;  %vm1138_vm0 = vweird.f32 %v6416_v47 }
 0x156   :  { %v1843_v4 = vadd.f32 1.0, %v5153_v17  ;;  %v1170_v20 = vadd.f32 0.4994258, %v1169_v48  ;;  %v1592_v63 = vmul.f32 2.1237322e-06, %v6430_v15  ;;  %vm1139_vm1 = vweird.f32 %v5361_v2 }
 0x157   :  { %v1887_v5 = vmul.f32 %v1855_v46, %v511_v54  ;;  %v1135_v24 = vsub.f32 1.0, %v1134_v37  ;;  %v1603_v12 = vmul.f32 3.8918573e-05, %v6430_v15  ;;  %v1193_v53 = vadd.f32 0.00028619796, %v1192_v52  ;;  %vm1140_vm3 = vmor %vm1138_vm0, %vm1139_vm1 }
 0x158   :  { %v1875_v51 = vmul.f32 %v1843_v4, %v499_v1  ;;  %v1204_v42 = vadd.f32 0.001143296, %v1203_v50  ;;  %vm6453_vm2 = vcmp.eq.f32.partialorder %v1142_v43, 8.507059e+37  ;;  %v1171_v41 = vmul.f32 %v1170_v20, %v6372_v33 }
 0x159   :  { %2002 = vmatmul.f32.gmra.mxu3 %v1887_v5  ;;  %v1136_v36 = vmul.f32 %v5361_v2, %v1135_v24  ;;  %v1593_v25 = vadd.f32 0.00028619796, %v1592_v63  ;;  %v1604_v3 = vadd.f32 0.001143296, %v1603_v12  ;;  %v1158_v29 = vmul.f32 %v1157_v11, %v6372_v33  ;;  %v342_v54 = vpop.permute.xlu0 %341 }
 0x15a   :  { %1966 = vmatmul.f32.gmra.mxu0 %v1875_v51  ;;  %v1194_v39 = vmul.f32 %v1193_v53, %v6428_v59  ;;  %v1205_v38 = vmul.f32 %v1204_v42, %v6428_v59  ;;  %v1145_v56 = vor.u32 1.1754944e-38, %v1144_v31  ;;  %v6463_v34 = vadd.f32 1.0, %v1171_v41  ;;  %v170_v11 = vpop.permute.xlu2 %169 }
 0x15b   :  { %v1137_v35 = vadd.f32 %v5361_v2, %v1136_v36  ;;  %v1594_v61 = vmul.f32 %v1593_v25, %v6430_v15  ;;  %v1605_v62 = vmul.f32 %v1604_v3, %v6430_v15  ;;  %v1632_v6 = vmul.f32 2.1237322e-06, %v6422_v8 }
 0x15c   :  { %v1195_v7 = vadd.f32 0.0036580483, %v1194_v39  ;;  %v1206_v40 = vadd.f32 0.014752088, %v1205_v38  ;;  %v417_v17 = vmul.f32 %v5668_v23, %v6418_v10  ;;  %5362 = vrcp.f32 %v6463_v34 }
 0x15d   :  { %v1141_v26 = vsel %vm1140_vm3, %v5361_v2, %v1137_v35  ;;  %v1643_v47 = vmul.f32 3.8918573e-05, %v6422_v8  ;;  %v1159_v1 = vadd.f32 0.18741608, %v1158_v29  ;;  %v1595_v57 = vadd.f32 0.0036580483, %v1594_v61 }
 0x15e   :  { %v1146_v44 = vsel %vm6453_vm2, %v1145_v56, %v1141_v26  ;;  %v1606_v4 = vadd.f32 0.014752088, %v1605_v62  ;;  %v6475_v2 = vmul.f32 0.70710677, %v6434_v16  ;;  %v439_v37 = vadd.f32 %v6425_v27, %v246_v30 }
 0x15f   :  { %v1147_v46 = vmul.f32 %v1146_v44, %v1122_v60  ;;  %v1196_v43 = vmul.f32 %v1195_v7, %v6428_v59  ;;  %v1207_v10 = vmul.f32 %v1206_v40, %v6428_v59  ;;  %v1596_v48 = vmul.f32 %v1595_v57, %v6430_v15 }
 0x160   :  { %v1607_v52 = vmul.f32 %v1606_v4, %v6430_v15  ;;  %v1633_v50 = vadd.f32 0.00028619796, %v1632_v6  ;;  %v409_v51 = vmul.f32 %v5668_v23, %v342_v54  ;;  %v1644_v31 = vadd.f32 0.001143296, %v1643_v47 }
 0x161   :  { %v5154_v5 = vclamps-f32 %v1147_v46, 1.0  ;;  %v1197_v60 = vadd.f32 0.05243302, %v1196_v43  ;;  %v1208_v24 = vadd.f32 0.112945676, %v1207_v10  ;;  %v500_v20 = vmul.f32 0.5, %v6171_v13 }
 0x162   :  { %v1160_v27 = vmul.f32 %v1159_v1, %v6372_v33  ;;  %v1608_v30 = vadd.f32 0.112945676, %v1607_v52  ;;  %v5363_v12 = vpop.eup %5362  ;;  %v1230_v36 = vmul.f32 %v6475_v2, %v6475_v2  ;;  %v248_v53 = vmul.f32 %v5665_v22, %v170_v11 }
 0x163   :  { %v1844_v63 = vadd.f32 1.0, %v5154_v5  ;;  %v6489_v42 = vadd.f32 %v5680_v28, %v439_v37  ;;  %v1209_v41 = vmul.f32 %v1208_v24, %v6428_v59  ;;  %v1174_v3 = vmul.f32 %v5363_v12, %v6463_v34 }
 0x164   :  { %v1597_v13 = vadd.f32 0.05243302, %v1596_v48  ;;  %v1634_v35 = vmul.f32 %v1633_v50, %v6422_v8  ;;  %v1609_v33 = vmul.f32 %v1608_v30, %v6430_v15  ;;  %v1198_v29 = vmul.f32 %v1197_v60, %v6428_v59  ;;  %v338_v30 = vpop.permute.xlu1 %337 }
 0x165   :  { %v1876_v25 = vmul.f32 %v1844_v63, %v500_v20  ;;  %v1210_v39 = vadd.f32 0.4994258, %v1209_v41  ;;  %v1645_v38 = vmul.f32 %v1644_v31, %v6422_v8  ;;  %v256_v56 = vmul.f32 %v5665_v22, %v210_v18 }
 0x166   :  { %v1161_v61 = vadd.f32 1.1283791, %v1160_v27  ;;  %v1175_v62 = vsub.f32 1.0, %v1174_v3  ;;  %vm1178_vm4 = vweird.f32 %v6463_v34  ;;  %v1182_v26 = vand.u32 2147483647, %v6463_v34  ;;  %v6528_v27 = vpop.permute.xlu2 %381 }
 0x167   :  { %1969 = vmatmul.f32.gmra.mxu0 %v1876_v25  ;;  %v1184_v7 = vand.u32 2147483648, %v6463_v34  ;;  %v1610_v40 = vadd.f32 0.4994258, %v1609_v33  ;;  %v1211_v6 = vmul.f32 %v1210_v39, %v6428_v59  ;;  %vm1179_vm5 = vweird.f32 %v5363_v12  ;;  %v5520_v39 = vld [vmem:[%s9482_s2] sm:$0xff] }
 0x168   :  { %v1176_v44 = vmul.f32 %v5363_v12, %v1175_v62  ;;  %v1598_v47 = vmul.f32 %v1597_v13, %v6430_v15  ;;  %v1635_v54 = vadd.f32 0.0036580483, %v1634_v35  ;;  %v1199_v1 = vadd.f32 0.18741608, %v1198_v29  ;;  %vm1180_vm6 = vmor %vm1178_vm4, %vm1179_vm5 }
 0x169   :  { %v1611_v46 = vmul.f32 %v1610_v40, %v6430_v15  ;;  %v6504_v57 = vadd.f32 1.0, %v1211_v6  ;;  %v1646_v4 = vadd.f32 0.014752088, %v1645_v38  ;;  %v6507_v37 = vmul.f32 0.70710677, %v6489_v42 }
 0x16a   :  { %v441_v43 = vadd.f32 %v409_v51, %v248_v53  ;;  %v449_v10 = vadd.f32 %v417_v17, %v256_v56  ;;  %v1177_v11 = vadd.f32 %v5363_v12, %v1176_v44  ;;  %v1162_v5 = vmul.f32 %v1161_v61, %v6148_v45 }
 0x16b   :  { %v1185_v48 = vor.u32 1.1754944e-38, %v1184_v7  ;;  %v6512_v52 = vadd.f32 1.0, %v1611_v46  ;;  %5364 = vrcp.f32 %v6504_v57  ;;  %vm1183_vm7 = vcmp.eq.f32.partialorder %v1182_v26, 8.507059e+37 }
 0x16c   :  { %v1181_v50 = vsel %vm1180_vm6, %v5363_v12, %v1177_v11  ;;  %v1599_v60 = vadd.f32 0.18741608, %v1598_v47  ;;  %v1636_v24 = vmul.f32 %v1635_v54, %v6422_v8  ;;  %v1200_v17 = vmul.f32 %v1199_v1, %v6428_v59 }
 0x16d   :  { %v1186_v31 = vsel %vm1183_vm7, %v1185_v48, %v1181_v50  ;;  %5366 = vrcp.f32 %v6512_v52  ;;  %v1647_v45 = vmul.f32 %v1646_v4, %v6422_v8  ;;  %v6520_v34 = vadd.f32 %v5680_v28, %v449_v10 }
 0x16e   :  { %v1187_v51 = vmul.f32 %v1186_v31, %v1162_v5  ;;  %v6522_v20 = vmin.f32 %v1230_v36, 16.0  ;;  %v6526_v63 = vmul.f32 %v5665_v22, %v6439_v19  ;;  %v1600_v53 = vmul.f32 %v1599_v60, %v6430_v15 }
 0x16f   :  { %v1637_v18 = vadd.f32 0.05243302, %v1636_v24  ;;  %v6533_v41 = vmul.f32 %v6507_v37, %v6507_v37  ;;  %v6536_v25 = vadd.f32 %v5680_v28, %v441_v43  ;;  %v1201_v36 = vadd.f32 1.1283791, %v1200_v17  ;;  %v6565_v24 = vpop.permute.xlu2 %345 }
 0x170   :  { %v5155_v12 = vclamps-f32 %v1187_v51, 1.0  ;;  %v1648_v3 = vadd.f32 0.112945676, %v1647_v45  ;;  %v6539_v19 = vmul.f32 0.70710677, %v6520_v34  ;;  %v501_v13 = vmul.f32 0.5, %v6131_v58  ;;  %v1928_v45 = vpop.f32.mrf.mxu0 }
 0x171   :  { %v5365_v59 = vpop.eup %5364  ;;  %v408_v29 = vmul.f32 %v5668_v23, %v338_v30  ;;  %v6547_v38 = vperm.slane %v5520_v39, 1  ;;  %v1232_v61 = vmul.f32 2.1237322e-06, %v6522_v20  ;;  %v1601_v26 = vadd.f32 1.1283791, %v1600_v53 }
 0x172   :  { %v1845_v35 = vadd.f32 1.0, %v5155_v12  ;;  %v1214_v33 = vmul.f32 %v5365_v59, %v6504_v57  ;;  %v1649_v56 = vmul.f32 %v1648_v3, %v6422_v8  ;;  %v1638_v7 = vmul.f32 %v1637_v18, %v6422_v8  ;;  %v378_v18 = vpop.permute.xlu1 %377 }
 0x173   :  { %v5367_v15 = vpop.eup %5366  ;;  %v1624_v40 = vand.u32 2147483648, %v6512_v52  ;;  %v1202_v6 = vmul.f32 %v1201_v36, %v6385_v49  ;;  %vm1219_vm8 = vweird.f32 %v5365_v59  ;;  %v1222_v46 = vand.u32 2147483647, %v6504_v57 }
 0x174   :  { %v1877_v62 = vmul.f32 %v1845_v35, %v501_v13  ;;  %v1614_v58 = vmul.f32 %v5367_v15, %v6512_v52  ;;  %v1215_v44 = vsub.f32 1.0, %v1214_v33  ;;  %v1650_v47 = vadd.f32 0.4994258, %v1649_v56 }
 0x175   :  { %v1224_v1 = vand.u32 2147483648, %v6504_v57  ;;  %v1233_v10 = vadd.f32 0.00028619796, %v1232_v61  ;;  %v1243_v11 = vmul.f32 3.8918573e-05, %v6522_v20  ;;  %v1602_v5 = vmul.f32 %v1601_v26, %v6388_v55 }
 0x176   :  { %1972 = vmatmul.f32.gmra.mxu0 %v1877_v62  ;;  %v1615_v54 = vsub.f32 1.0, %v1614_v58  ;;  %v1216_v4 = vmul.f32 %v5365_v59, %v1215_v44  ;;  %v1651_v43 = vmul.f32 %v1650_v47, %v6422_v8  ;;  %vm1619_vm9 = vweird.f32 %v5367_v15 }
 0x177   :  { %v1622_v49 = vand.u32 2147483647, %v6512_v52  ;;  %vm1618_vm10 = vweird.f32 %v6512_v52  ;;  %vm1218_vm11 = vweird.f32 %v6504_v57  ;;  %v1625_v17 = vor.u32 1.1754944e-38, %v1624_v40 }
 0x178   :  { %v1616_v48 = vmul.f32 %v5367_v15, %v1615_v54  ;;  %v1217_v50 = vadd.f32 %v5365_v59, %v1216_v4  ;;  %v6563_v60 = vadd.f32 1.0, %v1651_v43  ;;  %vm1220_vm12 = vmor %vm1218_vm11, %vm1219_vm8  ;;  %vm1223_vm13 = vcmp.eq.f32.partialorder %v1222_v46, 8.507059e+37  ;;  %v6598_v43 = vpop.permute.xlu2 %179 }
 0x179   :  { %v1225_v55 = vor.u32 1.1754944e-38, %v1224_v1  ;;  %vm1620_vm14 = vmor %vm1618_vm10, %vm1619_vm9  ;;  %v1234_v52 = vmul.f32 %v1233_v10, %v6522_v20  ;;  %v1244_v30 = vadd.f32 0.001143296, %v1243_v11  ;;  %vm1623_vm15 = vcmp.eq.f32.partialorder %v1622_v49, 8.507059e+37 }
 0x17a   :  { %v1617_v31 = vadd.f32 %v5367_v15, %v1616_v48  ;;  %v1221_v51 = vsel %vm1220_vm12, %v5365_v59, %v1217_v50  ;;  %5368 = vrcp.f32 %v6563_v60  ;;  %v1639_v53 = vadd.f32 0.18741608, %v1638_v7 }
 0x17b   :  { %v1226_v57 = vsel %vm1223_vm13, %v1225_v55, %v1221_v51  ;;  %v6571_v3 = vadd.f32 %v1928_v45, %v6547_v38  ;;  %v257_v35 = vmul.f32 %v5665_v22, %v6446_v32  ;;  %v440_v59 = vadd.f32 %v408_v29, %v6526_v63  ;;  %v220_v55 = vpop.permute.xlu1 %219 }
 0x17c   :  { %v1621_v12 = vsel %vm1620_vm14, %v5367_v15, %v1617_v31  ;;  %v1227_v13 = vmul.f32 %v1226_v57, %v1202_v6  ;;  %v6577_v39 = vmul.f32 0.70710677, %v6536_v25  ;;  %v1235_v15 = vadd.f32 0.0036580483, %v1234_v52 }
 0x17d   :  { %v1626_v36 = vsel %vm1623_vm15, %v1625_v17, %v1621_v12  ;;  %v1245_v61 = vmul.f32 %v1244_v30, %v6522_v20  ;;  %v6581_v62 = vmin.f32 %v6533_v41, 16.0  ;;  %v1670_v26 = vmul.f32 %v6539_v19, %v6539_v19 }
 0x17e   :  { %v1627_v33 = vmul.f32 %v1626_v36, %v1602_v5  ;;  %v5156_v56 = vclamps-f32 %v1227_v13, 1.0  ;;  %v1640_v7 = vmul.f32 %v1639_v53, %v6422_v8  ;;  %v6587_v63 = vmul.f32 0.70710677, %v6571_v3 }
 0x17f   :  { %v502_v29 = vmul.f32 0.5, %v6361_v14  ;;  %v1246_v6 = vadd.f32 0.014752088, %v1245_v61  ;;  %v6591_v44 = vadd.f32 %v5680_v28, %v440_v59  ;;  %v512_v41 = vmul.f32 0.5, %v6365_v9  ;;  %v6600_v14 = vpop.permute.xlu0 %224 }
 0x180   :  { %v5166_v58 = vclamps-f32 %v1627_v33, 1.0  ;;  %v5369_v32 = vpop.eup %5368  ;;  %v1846_v40 = vadd.f32 1.0, %v5156_v56  ;;  %v418_v46 = vmul.f32 %v5668_v23, %v378_v18  ;;  %v1236_v8 = vmul.f32 %v1235_v15, %v6522_v20 }
 0x181   :  { %v1654_v54 = vmul.f32 %v5369_v32, %v6563_v60  ;;  %v1247_v4 = vmul.f32 %v1246_v6, %v6522_v20  ;;  %v1641_v11 = vadd.f32 1.1283791, %v1640_v7  ;;  %v1272_v48 = vmul.f32 2.1237322e-06, %v6581_v62 }
 0x182   :  { %v1856_v47 = vadd.f32 1.0, %v5166_v58  ;;  %v1878_v1 = vmul.f32 %v1846_v40, %v502_v29  ;;  %v2088_v9 = vmul.f32 %v6587_v63, %v6587_v63  ;;  %v1664_v49 = vand.u32 2147483648, %v6563_v60 }
 0x183   :  { %v1655_v5 = vsub.f32 1.0, %v1654_v54  ;;  %v1248_v50 = vadd.f32 0.112945676, %v1247_v4  ;;  %v1283_v31 = vmul.f32 3.8918573e-05, %v6581_v62  ;;  %vm1658_vm0 = vweird.f32 %v6563_v60  ;;  %v185_v54 = vpop.permute.xlu2 %184 }
 0x184   :  { %v1888_v10 = vmul.f32 %v1856_v47, %v512_v41  ;;  %1975 = vmatmul.f32.gmra.mxu0 %v1878_v1  ;;  %vm1659_vm1 = vweird.f32 %v5369_v32  ;;  %v1662_v45 = vand.u32 2147483647, %v6563_v60  ;;  %v1237_v51 = vadd.f32 0.05243302, %v1236_v8 }
 0x185   :  { %v1656_v17 = vmul.f32 %v5369_v32, %v1655_v5  ;;  %v1249_v52 = vmul.f32 %v1248_v50, %v6522_v20  ;;  %v1273_v30 = vadd.f32 0.00028619796, %v1272_v48  ;;  %v1284_v12 = vadd.f32 0.001143296, %v1283_v31  ;;  %vm1660_vm2 = vmor %vm1658_vm0, %vm1659_vm1 }
 0x186   :  { %2005 = vmatmul.f32.gmra.mxu3 %v1888_v10  ;;  %v1350_v57 = vmul.f32 %v6577_v39, %v6577_v39  ;;  %v6612_v53 = vmin.f32 %v1670_v26, 16.0  ;;  %v6615_v18 = vmul.f32 0.70710677, %v6591_v44  ;;  %v450_v13 = vadd.f32 %v418_v46, %v257_v35 }
 0x187   :  { %v1657_v36 = vadd.f32 %v5369_v32, %v1656_v17  ;;  %v6617_v59 = vmin.f32 %v2088_v9, 16.0  ;;  %v1665_v60 = vor.u32 1.1754944e-38, %v1664_v49  ;;  %v1250_v33 = vadd.f32 0.4994258, %v1249_v52  ;;  %v354_v1 = vpop.permute.xlu0 %353 }
 0x188   :  { %v1642_v56 = vmul.f32 %v1641_v11, %v6382_v21  ;;  %vm1663_vm3 = vcmp.eq.f32.partialorder %v1662_v45, 8.507059e+37  ;;  %v1285_v61 = vmul.f32 %v1284_v12, %v6581_v62  ;;  %v1238_v26 = vmul.f32 %v1237_v51, %v6522_v20  ;;  %v1931_v11 = vpop.f32.mrf.mxu0 }
 0x189   :  { %v1661_v15 = vsel %vm1660_vm2, %v5369_v32, %v1657_v36  ;;  %v1251_v7 = vmul.f32 %v1250_v33, %v6522_v20  ;;  %v1274_v29 = vmul.f32 %v1273_v30, %v6581_v62  ;;  %v1672_v35 = vmul.f32 2.1237322e-06, %v6612_v53 }
 0x18a   :  { %v1666_v58 = vsel %vm1663_vm3, %v1665_v60, %v1661_v15  ;;  %v6625_v6 = vmin.f32 %v1350_v57, 16.0  ;;  %v419_v41 = vmul.f32 %v5668_v23, %v6528_v27  ;;  %v6630_v21 = vadd.f32 %v5680_v28, %v450_v13 }
 0x18b   :  { %v1667_v40 = vmul.f32 %v1666_v58, %v1642_v56  ;;  %v6632_v32 = vadd.f32 1.0, %v1251_v7  ;;  %v1310_v47 = vmul.f32 %v6615_v18, %v6615_v18  ;;  %v258_v46 = vmul.f32 %v5665_v22, %v220_v55  ;;  %v175_v55 = vpop.permute.xlu1 %174 }
 0x18c   :  { %v1286_v4 = vadd.f32 0.014752088, %v1285_v61  ;;  %v2090_v10 = vmul.f32 2.1237322e-06, %v6617_v59  ;;  %v1239_v5 = vadd.f32 0.18741608, %v1238_v26  ;;  %v251_v17 = vmul.f32 %v5665_v22, %v185_v54 }
 0x18d   :  { %v5167_v8 = vclamps-f32 %v1667_v40, 1.0  ;;  %5370 = vrcp.f32 %v6632_v32  ;;  %v1275_v27 = vadd.f32 0.0036580483, %v1274_v29  ;;  %v513_v48 = vmul.f32 0.5, %v6288_v0 }
 0x18e   :  { %v1673_v49 = vadd.f32 0.00028619796, %v1672_v35  ;;  %v1683_v50 = vmul.f32 3.8918573e-05, %v6612_v53  ;;  %v6642_v31 = vmul.f32 0.70710677, %v6630_v21  ;;  %v412_v45 = vmul.f32 %v5668_v23, %v354_v1 }
 0x18f   :  { %v1857_v9 = vadd.f32 1.0, %v5167_v8  ;;  %v1287_v51 = vmul.f32 %v1286_v4, %v6581_v62  ;;  %v410_v52 = vmul.f32 %v5668_v23, %v6565_v24  ;;  %v451_v30 = vadd.f32 %v419_v41, %v258_v46 }
 0x190   :  { %v6650_v0 = vadd.f32 %v1931_v11, %v6547_v38  ;;  %v2091_v57 = vadd.f32 0.00028619796, %v2090_v10  ;;  %v1240_v36 = vmul.f32 %v1239_v5, %v6522_v20  ;;  %v1276_v13 = vmul.f32 %v1275_v27, %v6581_v62 }
 0x191   :  { %v1889_v12 = vmul.f32 %v1857_v9, %v513_v48  ;;  %v1288_v60 = vadd.f32 0.112945676, %v1287_v51  ;;  %v6654_v33 = vmin.f32 %v1310_v47, 16.0  ;;  %v249_v56 = vmul.f32 %v5665_v22, %v175_v55 }
 0x192   :  { %v1674_v15 = vmul.f32 %v1673_v49, %v6612_v53  ;;  %v1684_v61 = vadd.f32 0.001143296, %v1683_v50  ;;  %v1710_v58 = vmul.f32 %v6642_v31, %v6642_v31  ;;  %v6662_v26 = vmul.f32 %v5665_v22, %v6598_v43 }
 0x193   :  { %2008 = vmatmul.f32.gmra.mxu3 %v1889_v12  ;;  %v5371_v24 = vpop.eup %5370  ;;  %v444_v20 = vadd.f32 %v412_v45, %v251_v17  ;;  %v1289_v7 = vmul.f32 %v1288_v60, %v6581_v62  ;;  %v6666_v29 = vadd.f32 %v5680_v28, %v451_v30  ;;  %v6669_v40 = vmul.f32 0.70710677, %v6650_v0 }
 0x194   :  { %v1254_v35 = vmul.f32 %v5371_v24, %v6632_v32  ;;  %v1685_v41 = vmul.f32 %v1684_v61, %v6612_v53  ;;  %v2092_v47 = vmul.f32 %v2091_v57, %v6617_v59  ;;  %v1241_v54 = vadd.f32 1.1283791, %v1240_v36 }
 0x195   :  { %v1277_v46 = vadd.f32 0.05243302, %v1276_v13  ;;  %v1290_v1 = vadd.f32 0.4994258, %v1289_v7  ;;  %v442_v43 = vadd.f32 %v410_v52, %v249_v56  ;;  %v1675_v4 = vadd.f32 0.0036580483, %v1674_v15 }
 0x196   :  { %v1255_v8 = vsub.f32 1.0, %v1254_v35  ;;  %v1686_v10 = vadd.f32 0.014752088, %v1685_v41  ;;  %vm1259_vm4 = vweird.f32 %v5371_v24  ;;  %v1262_v11 = vand.u32 2147483647, %v6632_v32 }
 0x197   :  { %v1264_v5 = vand.u32 2147483648, %v6632_v32  ;;  %v1291_v27 = vmul.f32 %v1290_v1, %v6581_v62  ;;  %v1312_v49 = vmul.f32 2.1237322e-06, %v6654_v33  ;;  %v1323_v50 = vmul.f32 3.8918573e-05, %v6654_v33  ;;  %v3447_v1 = vld [vmem:[#allocation2 + $0xf0] sm:$0xff] }
 0x198   :  { %v1256_v48 = vmul.f32 %v5371_v24, %v1255_v8  ;;  %v1687_v9 = vmul.f32 %v1686_v10, %v6612_v53  ;;  %v2093_v17 = vadd.f32 0.0036580483, %v2092_v47  ;;  %v2128_v45 = vmul.f32 %v6669_v40, %v6669_v40 }
 0x199   :  { %v1278_v55 = vmul.f32 %v1277_v46, %v6581_v62  ;;  %v6683_v51 = vadd.f32 1.0, %v1291_v27  ;;  %vm1258_vm5 = vweird.f32 %v6632_v32  ;;  %v1676_v30 = vmul.f32 %v1675_v4, %v6612_v53  ;;  %v3448_v46 = vld [vmem:[#allocation2 + $0xf8] sm:$0xff]  ;;  %v3446_v27 = vld [vmem:[#allocation2 + $0xe8] sm:$0xff] }
 0x19a   :  { %v1257_v52 = vadd.f32 %v5371_v24, %v1256_v48  ;;  %v1688_v12 = vadd.f32 0.112945676, %v1687_v9  ;;  %v1242_v57 = vmul.f32 %v1241_v54, %v6475_v2  ;;  %vm1260_vm6 = vmor %vm1258_vm5, %vm1259_vm4  ;;  %vm1263_vm7 = vcmp.eq.f32.partialorder %v1262_v11, 8.507059e+37  ;;  %3450 = vmatpush.msra.mxu1 %v3448_v46  ;;  %5252 = vmatpush.msrb.mxu3 %v3448_v46 }
 0x19b   :  { %v1265_v36 = vor.u32 1.1754944e-38, %v1264_v5  ;;  %5372 = vrcp.f32 %v6683_v51  ;;  %v1313_v56 = vadd.f32 0.00028619796, %v1312_v49  ;;  %v1324_v15 = vadd.f32 0.001143296, %v1323_v50 }
 0x19c   :  { %v1261_v13 = vsel %vm1260_vm6, %v5371_v24, %v1257_v52  ;;  %v1689_v60 = vmul.f32 %v1688_v12, %v6612_v53  ;;  %v6692_v61 = vmul.f32 0.70710677, %v6666_v29  ;;  %v6695_v32 = vadd.f32 %v5680_v28, %v442_v43  ;;  %v386_v43 = vpop.permute.xlu1 %385  ;;  %3451 = vmatpush.msra.mxu1 %v3447_v1  ;;  %5253 = vmatpush.msrb.mxu3 %v3447_v1 }
 0x19d   :  { %v1266_v7 = vsel %vm1263_vm7, %v1265_v36, %v1261_v13  ;;  %v1279_v35 = vadd.f32 0.18741608, %v1278_v55  ;;  %v2094_v2 = vmul.f32 %v2093_v17, %v6617_v59  ;;  %v1677_v47 = vadd.f32 0.05243302, %v1676_v30 }
 0x19e   :  { %v1267_v41 = vmul.f32 %v1266_v7, %v1242_v57  ;;  %v1690_v54 = vadd.f32 0.4994258, %v1689_v60  ;;  %v6698_v24 = vmin.f32 %v1710_v58, 16.0  ;;  %v259_v8 = vmul.f32 %v5665_v22, %v6600_v14  ;;  %3452 = vmatpush.msra.mxu1 %v3446_v27  ;;  %5254 = vmatpush.msrb.mxu3 %v3446_v27 }
 0x19f   :  { %v6703_v4 = vadd.f32 %v5680_v28, %v444_v20  ;;  %v6705_v10 = vmin.f32 %v2128_v45, 16.0  ;;  %v1314_v48 = vmul.f32 %v1313_v56, %v6654_v33  ;;  %v1325_v58 = vmul.f32 %v1324_v15, %v6654_v33 }
 0x1a0   :  { %v5157_v11 = vclamps-f32 %v1267_v41, 1.0  ;;  %v1691_v5 = vmul.f32 %v1690_v54, %v6612_v53  ;;  %v6712_v22 = vmul.f32 %v6692_v61, %v6692_v61  ;;  %v6715_v14 = vmul.f32 0.70710677, %v6695_v32 }
 0x1a1   :  { %v5373_v9 = vpop.eup %5372  ;;  %v503_v20 = vmul.f32 0.5, %v6434_v16  ;;  %v1280_v49 = vmul.f32 %v1279_v35, %v6581_v62  ;;  %v2095_v50 = vadd.f32 0.05243302, %v2094_v2  ;;  %v1678_v55 = vmul.f32 %v1677_v47, %v6612_v53 }
 0x1a2   :  { %v1847_v17 = vadd.f32 1.0, %v5157_v11  ;;  %v1294_v45 = vmul.f32 %v5373_v9, %v6683_v51  ;;  %v420_v52 = vmul.f32 %v5668_v23, %v386_v43  ;;  %v2130_v30 = vmul.f32 2.1237322e-06, %v6705_v10 }
 0x1a3   :  { %v6723_v12 = vadd.f32 1.0, %v1691_v5  ;;  %v1352_v57 = vmul.f32 2.1237322e-06, %v6625_v6  ;;  %v1315_v36 = vadd.f32 0.0036580483, %v1314_v48  ;;  %v1304_v15 = vand.u32 2147483648, %v6683_v51 }
 0x1a4   :  { %v1879_v16 = vmul.f32 %v1847_v17, %v503_v20  ;;  %v1295_v62 = vsub.f32 1.0, %v1294_v45  ;;  %v1326_v13 = vadd.f32 0.014752088, %v1325_v58  ;;  %v1281_v60 = vadd.f32 1.1283791, %v1280_v49 }
 0x1a5   :  { %v1302_v56 = vand.u32 2147483647, %v6683_v51  ;;  %5374 = vrcp.f32 %v6723_v12  ;;  %vm1299_vm8 = vweird.f32 %v5373_v9  ;;  %v1679_v35 = vadd.f32 0.18741608, %v1678_v55  ;;  %v1934_v55 = vpop.f32.mrf.mxu0 }
 0x1a6   :  { %1978 = vmatmul.f32.gmra.mxu0 %v1879_v16  ;;  %v1296_v7 = vmul.f32 %v5373_v9, %v1295_v62  ;;  %v1327_v2 = vmul.f32 %v1326_v13, %v6654_v33  ;;  %v452_v41 = vadd.f32 %v420_v52, %v259_v8  ;;  %v2131_v47 = vadd.f32 0.00028619796, %v2130_v30  ;;  %v3445_v52 = vld [vmem:[#allocation2 + $0xe0] sm:$0xff]  ;;  %v3444_v62 = vld [vmem:[#allocation2 + $0xd8] sm:$0xff] }
 0x1a7   :  { %v1353_v54 = vadd.f32 0.00028619796, %v1352_v57  ;;  %v1363_v46 = vmul.f32 3.8918573e-05, %v6625_v6  ;;  %vm1298_vm9 = vweird.f32 %v6683_v51  ;;  %v1316_v43 = vmul.f32 %v1315_v36, %v6654_v33  ;;  %3453 = vmatpush.msra.mxu1 %v3445_v52  ;;  %5255 = vmatpush.msrb.mxu3 %v3445_v52 }
 0x1a8   :  { %v1297_v1 = vadd.f32 %v5373_v9, %v1296_v7  ;;  %v1328_v11 = vadd.f32 0.112945676, %v1327_v2  ;;  %v1282_v5 = vmul.f32 %v1281_v60, %v6507_v37  ;;  %vm1300_vm10 = vmor %vm1298_vm9, %vm1299_vm8  ;;  %v1305_v27 = vor.u32 1.1754944e-38, %v1304_v15 }
 0x1a9   :  { %v1354_v48 = vmul.f32 %v1353_v54, %v6625_v6  ;;  %v1364_v58 = vadd.f32 0.001143296, %v1363_v46  ;;  %vm1303_vm11 = vcmp.eq.f32.partialorder %v1302_v56, 8.507059e+37  ;;  %v1680_v8 = vmul.f32 %v1679_v35, %v6612_v53  ;;  %v3443_v56 = vld [vmem:[#allocation2 + $0xd0] sm:$0xff]  ;;  %3454 = vmatpush.msra.mxu1 %v3444_v62  ;;  %5256 = vmatpush.msrb.mxu3 %v3444_v62 }
 0x1aa   :  { %v1301_v20 = vsel %vm1300_vm10, %v5373_v9, %v1297_v1  ;;  %v1329_v49 = vmul.f32 %v1328_v11, %v6654_v33  ;;  %v1390_v51 = vmul.f32 %v6715_v14, %v6715_v14  ;;  %v6740_v45 = vadd.f32 %v5680_v28, %v452_v41  ;;  %v3442_v1 = vld [vmem:[#allocation2 + $0xc8] sm:$0xff] }
 0x1ab   :  { %v5375_v17 = vpop.eup %5374  ;;  %v1306_v37 = vsel %vm1303_vm11, %v1305_v27, %v1301_v20  ;;  %v1365_v30 = vmul.f32 %v1364_v58, %v6625_v6  ;;  %v2096_v57 = vmul.f32 %v2095_v50, %v6617_v59  ;;  %v1317_v53 = vadd.f32 0.05243302, %v1316_v43  ;;  %3455 = vmatpush.msra.mxu1 %v3443_v56  ;;  %5257 = vmatpush.msrb.mxu3 %v3443_v56 }
 0x1ac   :  { %v1307_v9 = vmul.f32 %v1306_v37, %v1282_v5  ;;  %v1694_v16 = vmul.f32 %v5375_v17, %v6723_v12  ;;  %v2132_v36 = vmul.f32 %v2131_v47, %v6705_v10  ;;  %v504_v13 = vmul.f32 0.5, %v6489_v42 }
 0x1ad   :  { %v1330_v60 = vadd.f32 0.4994258, %v1329_v49  ;;  %v1355_v15 = vadd.f32 0.0036580483, %v1354_v48  ;;  %v1681_v35 = vadd.f32 1.1283791, %v1680_v8  ;;  %vm1699_vm12 = vweird.f32 %v5375_v17  ;;  %3456 = vmatpush.msra.mxu1 %v3442_v1  ;;  %5258 = vmatpush.msrb.mxu3 %v3442_v1 }
 0x1ae   :  { %v5158_v7 = vclamps-f32 %v1307_v9, 1.0  ;;  %v1695_v2 = vsub.f32 1.0, %v1694_v16  ;;  %v1366_v41 = vadd.f32 0.014752088, %v1365_v30  ;;  %v1702_v50 = vand.u32 2147483647, %v6723_v12 }
 0x1af   :  { %v1704_v54 = vand.u32 2147483648, %v6723_v12  ;;  %v1331_v46 = vmul.f32 %v1330_v60, %v6654_v33  ;;  %v1712_v47 = vmul.f32 2.1237322e-06, %v6698_v24  ;;  %v6753_v5 = vadd.f32 %v1934_v55, %v6547_v38 }
 0x1b0   :  { %v1848_v43 = vadd.f32 1.0, %v5158_v7  ;;  %v1696_v42 = vmul.f32 %v5375_v17, %v1695_v2  ;;  %v1367_v11 = vmul.f32 %v1366_v41, %v6625_v6  ;;  %v1318_v27 = vmul.f32 %v1317_v53, %v6654_v33 }
 0x1b1   :  { %v6756_v48 = vadd.f32 1.0, %v1331_v46  ;;  %v1356_v58 = vmul.f32 %v1355_v15, %v6625_v6  ;;  %vm1698_vm13 = vweird.f32 %v6723_v12  ;;  %v1705_v37 = vor.u32 1.1754944e-38, %v1704_v54  ;;  %v1937_v12 = vpop.f32.mrf.mxu0  ;;  %v350_v46 = vpop.permute.xlu1 %349 }
 0x1b2   :  { %v1880_v20 = vmul.f32 %v1848_v43, %v504_v13  ;;  %v1697_v8 = vadd.f32 %v5375_v17, %v1696_v42  ;;  %v1368_v49 = vadd.f32 0.112945676, %v1367_v11  ;;  %vm1700_vm14 = vmor %vm1698_vm13, %vm1699_vm12  ;;  %v1713_v52 = vadd.f32 0.00028619796, %v1712_v47 }
 0x1b3   :  { %5376 = vrcp.f32 %v6756_v48  ;;  %v1723_v55 = vmul.f32 3.8918573e-05, %v6698_v24  ;;  %v6763_v30 = vmul.f32 0.70710677, %v6740_v45  ;;  %v1682_v9 = vmul.f32 %v1681_v35, %v6539_v19 }
 0x1b4   :  { %1981 = vmatmul.f32.gmra.mxu0 %v1880_v20  ;;  %v1701_v16 = vsel %vm1700_vm14, %v5375_v17, %v1697_v8  ;;  %vm1703_vm15 = vcmp.eq.f32.partialorder %v1702_v50, 8.507059e+37  ;;  %v1319_v62 = vadd.f32 0.18741608, %v1318_v27  ;;  %v1357_v13 = vadd.f32 0.05243302, %v1356_v58 }
 0x1b5   :  { %v1706_v53 = vsel %vm1703_vm15, %v1705_v37, %v1701_v16  ;;  %v1369_v60 = vmul.f32 %v1368_v49, %v6625_v6  ;;  %v6768_v56 = vmin.f32 %v6712_v22, 16.0  ;;  %v6770_v15 = vmin.f32 %v1390_v51, 16.0 }
 0x1b6   :  { %v2133_v7 = vadd.f32 0.0036580483, %v2132_v36  ;;  %v1707_v2 = vmul.f32 %v1706_v53, %v1682_v9  ;;  %v6773_v41 = vmul.f32 0.70710677, %v6753_v5  ;;  %v1714_v19 = vmul.f32 %v1713_v52, %v6698_v24 }
 0x1b7   :  { %v1370_v54 = vadd.f32 0.4994258, %v1369_v60  ;;  %v1724_v17 = vadd.f32 0.001143296, %v1723_v55  ;;  %v6776_v35 = vadd.f32 0.18741608, %v2096_v57  ;;  %v6780_v50 = vmul.f32 %v6763_v30, %v6763_v30 }
 0x1b8   :  { %v5168_v22 = vclamps-f32 %v1707_v2, 1.0  ;;  %v6783_v51 = vadd.f32 %v1937_v12, %v6547_v38  ;;  %v1320_v1 = vmul.f32 %v1319_v62, %v6654_v33  ;;  %v1358_v47 = vmul.f32 %v1357_v13, %v6625_v6 }
 0x1b9   :  { %v5377_v36 = vpop.eup %5376  ;;  %v1371_v43 = vmul.f32 %v1370_v54, %v6625_v6  ;;  %v1725_v42 = vmul.f32 %v1724_v17, %v6698_v24  ;;  %v2134_v57 = vmul.f32 %v2133_v7, %v6705_v10  ;;  %v514_v11 = vmul.f32 0.5, %v6520_v34 }
 0x1ba   :  { %v1858_v27 = vadd.f32 1.0, %v5168_v22  ;;  %v1334_v58 = vmul.f32 %v5377_v36, %v6756_v48  ;;  %v6793_v20 = vmul.f32 %v5668_v23, %v350_v46  ;;  %v2168_v8 = vmul.f32 %v6773_v41, %v6773_v41 }
 0x1bb   :  { %v6797_v33 = vadd.f32 1.0, %v1371_v43  ;;  %v1715_v49 = vadd.f32 0.0036580483, %v1714_v19  ;;  %v6800_v52 = vmul.f32 0.70710677, %v6783_v51  ;;  %v1344_v34 = vand.u32 2147483648, %v6756_v48 }
 0x1bc   :  { %v1890_v37 = vmul.f32 %v1858_v27, %v514_v11  ;;  %v1335_v55 = vsub.f32 1.0, %v1334_v58  ;;  %v1726_v9 = vadd.f32 0.014752088, %v1725_v42  ;;  %v1321_v16 = vadd.f32 1.1283791, %v1320_v1 }
 0x1bd   :  { %v1359_v53 = vadd.f32 0.18741608, %v1358_v47  ;;  %5378 = vrcp.f32 %v6797_v33  ;;  %vm1339_vm0 = vweird.f32 %v5377_v36  ;;  %v1342_v12 = vand.u32 2147483647, %v6756_v48 }
 0x1be   :  { %2011 = vmatmul.f32.gmra.mxu3 %v1890_v37  ;;  %v1336_v23 = vmul.f32 %v5377_v36, %v1335_v55  ;;  %v1727_v62 = vmul.f32 %v1726_v9, %v6698_v24  ;;  %v6806_v13 = vmin.f32 %v2168_v8, 16.0  ;;  %v1716_v60 = vmul.f32 %v1715_v49, %v6698_v24 }
 0x1bf   :  { %v1752_v7 = vmul.f32 2.1237322e-06, %v6768_v56  ;;  %v1763_v2 = vmul.f32 3.8918573e-05, %v6768_v56  ;;  %v2208_v54 = vmul.f32 %v6800_v52, %v6800_v52  ;;  %vm1338_vm1 = vweird.f32 %v6756_v48 }
 0x1c0   :  { %v1337_v19 = vadd.f32 %v5377_v36, %v1336_v23  ;;  %v1728_v17 = vadd.f32 0.112945676, %v1727_v62  ;;  %vm1340_vm2 = vmor %vm1338_vm1, %vm1339_vm0  ;;  %v1345_v46 = vor.u32 1.1754944e-38, %v1344_v34  ;;  %v1360_v22 = vmul.f32 %v1359_v53, %v6625_v6  ;;  %v3441_v6 = vld [vmem:[#allocation2 + $0xc0] sm:$0xff]  ;;  %v3440_v34 = vld [vmem:[#allocation2 + $0xb8] sm:$0xff] }
 0x1c1   :  { %v1753_v1 = vadd.f32 0.00028619796, %v1752_v7  ;;  %v1764_v47 = vadd.f32 0.001143296, %v1763_v2  ;;  %v1322_v43 = vmul.f32 %v1321_v16, %v6615_v18  ;;  %vm1343_vm3 = vcmp.eq.f32.partialorder %v1342_v12, 8.507059e+37  ;;  %3457 = vmatpush.msra.mxu1 %v3441_v6  ;;  %5259 = vmatpush.msrb.mxu3 %v3441_v6  ;;  %v3439_v62 = vld [vmem:[#allocation2 + $0xb0] sm:$0xff] }
 0x1c2   :  { %v1341_v42 = vsel %vm1340_vm2, %v5377_v36, %v1337_v19  ;;  %v1729_v11 = vmul.f32 %v1728_v17, %v6698_v24  ;;  %v2135_v58 = vadd.f32 0.05243302, %v2134_v57  ;;  %v1717_v49 = vadd.f32 0.05243302, %v1716_v60 }
 0x1c3   :  { %v5379_v27 = vpop.eup %5378  ;;  %v1346_v8 = vsel %vm1343_vm3, %v1345_v46, %v1341_v42  ;;  %v1754_v37 = vmul.f32 %v1753_v1, %v6768_v56  ;;  %v2170_v48 = vmul.f32 2.1237322e-06, %v6806_v13  ;;  %v1765_v53 = vmul.f32 %v1764_v47, %v6768_v56  ;;  %3458 = vmatpush.msra.mxu1 %v3440_v34  ;;  %5260 = vmatpush.msrb.mxu3 %v3440_v34  ;;  %v3438_v46 = vld [vmem:[#allocation2 + $0xa8] sm:$0xff] }
 0x1c4   :  { %v1347_v55 = vmul.f32 %v1346_v8, %v1322_v43  ;;  %v1374_v9 = vmul.f32 %v5379_v27, %v6797_v33  ;;  %v6821_v18 = vmin.f32 %v2208_v54, 16.0  ;;  %v505_v36 = vmul.f32 0.5, %v6591_v44 }
 0x1c5   :  { %v1361_v16 = vadd.f32 1.1283791, %v1360_v22  ;;  %v1730_v23 = vadd.f32 0.4994258, %v1729_v11  ;;  %vm1378_vm4 = vweird.f32 %v6797_v33  ;;  %v1755_v60 = vadd.f32 0.0036580483, %v1754_v37  ;;  %3459 = vmatpush.msra.mxu1 %v3439_v62  ;;  %5261 = vmatpush.msrb.mxu3 %v3439_v62 }
 0x1c6   :  { %v5159_v57 = vclamps-f32 %v1347_v55, 1.0  ;;  %v1375_v12 = vsub.f32 1.0, %v1374_v9  ;;  %v1382_v7 = vand.u32 2147483647, %v6797_v33  ;;  %v1384_v2 = vand.u32 2147483648, %v6797_v33 }
 0x1c7   :  { %v1718_v19 = vmul.f32 %v1717_v49, %v6698_v24  ;;  %v1731_v54 = vmul.f32 %v1730_v23, %v6698_v24  ;;  %vm1379_vm5 = vweird.f32 %v5379_v27  ;;  %v1766_v22 = vadd.f32 0.014752088, %v1765_v53  ;;  %v3437_v49 = vld [vmem:[#allocation2 + $0xa0] sm:$0xff]  ;;  %3460 = vmatpush.msra.mxu1 %v3438_v46  ;;  %5262 = vmatpush.msrb.mxu3 %v3438_v46 }
 0x1c8   :  { %v1849_v44 = vadd.f32 1.0, %v5159_v57  ;;  %v1376_v17 = vmul.f32 %v5379_v27, %v1375_v12  ;;  %v2136_v1 = vmul.f32 %v2135_v58, %v6705_v10  ;;  %v443_v47 = vadd.f32 %v6793_v20, %v6662_v26  ;;  %v1940_v58 = vpop.f32.mrf.mxu0  ;;  %vm1380_vm6 = vmor %vm1378_vm4, %vm1379_vm5 }
 0x1c9   :  { %v6832_v43 = vadd.f32 1.0, %v1731_v54  ;;  %v1392_v42 = vmul.f32 2.1237322e-06, %v6770_v15  ;;  %v1756_v37 = vmul.f32 %v1755_v60, %v6768_v56  ;;  %v1767_v55 = vmul.f32 %v1766_v22, %v6768_v56  ;;  %3461 = vmatpush.msra.mxu1 %v3437_v49  ;;  %5263 = vmatpush.msrb.mxu3 %v3437_v49 }
 0x1ca   :  { %v1881_v11 = vmul.f32 %v1849_v44, %v505_v36  ;;  %v1377_v8 = vadd.f32 %v5379_v27, %v1376_v17  ;;  %v2171_v9 = vadd.f32 0.00028619796, %v2170_v48  ;;  %v2210_v6 = vmul.f32 2.1237322e-06, %v6821_v18  ;;  %v3435_v44 = vld [vmem:[#allocation2 + $0x90] sm:$0xff] }
 0x1cb   :  { %v1385_v26 = vor.u32 1.1754944e-38, %v1384_v2  ;;  %5380 = vrcp.f32 %v6832_v43  ;;  %v1362_v20 = vmul.f32 %v1361_v16, %v6577_v39  ;;  %vm1383_vm7 = vcmp.eq.f32.partialorder %v1382_v7, 8.507059e+37 }
 0x1cc   :  { %1984 = vmatmul.f32.gmra.mxu0 %v1881_v11  ;;  %v1381_v34 = vsel %vm1380_vm6, %v5379_v27, %v1377_v8  ;;  %v1719_v53 = vadd.f32 0.18741608, %v1718_v19  ;;  %v6844_v48 = vmul.f32 0.70710677, %v6703_v4  ;;  %v1768_v23 = vadd.f32 0.112945676, %v1767_v55 }
 0x1cd   :  { %v1386_v36 = vsel %vm1383_vm7, %v1385_v26, %v1381_v34  ;;  %v1393_v57 = vadd.f32 0.00028619796, %v1392_v42  ;;  %v6848_v33 = vmul.f32 %v6776_v35, %v6617_v59  ;;  %v6851_v12 = vmin.f32 %v6780_v50, 16.0  ;;  %v3436_v50 = vld [vmem:[#allocation2 + $0x98] sm:$0xff] }
 0x1ce   :  { %v1387_v62 = vmul.f32 %v1386_v36, %v1362_v20  ;;  %v1757_v39 = vadd.f32 0.05243302, %v1756_v37  ;;  %v2172_v27 = vmul.f32 %v2171_v9, %v6806_v13  ;;  %v2211_v16 = vadd.f32 0.00028619796, %v2210_v6  ;;  %3462 = vmatpush.msra.mxu1 %v3436_v50  ;;  %5264 = vmatpush.msrb.mxu3 %v3436_v50  ;;  %v3433_v20 = vld [vmem:[#allocation2 + $0x80] sm:$0xff] }
 0x1cf   :  { %v6855_v60 = vadd.f32 %v1940_v58, %v6547_v38  ;;  %v1769_v7 = vmul.f32 %v1768_v23, %v6768_v56  ;;  %v6858_v2 = vadd.f32 0.18741608, %v2136_v1  ;;  %v6861_v19 = vadd.f32 %v5680_v28, %v443_v47  ;;  %v3434_v47 = vld [vmem:[#allocation2 + $0x88] sm:$0xff] }
 0x1d0   :  { %v5160_v35 = vclamps-f32 %v1387_v62, 1.0  ;;  %v1720_v54 = vmul.f32 %v1719_v53, %v6698_v24  ;;  %v506_v46 = vmul.f32 0.5, %v6536_v25  ;;  %v1394_v42 = vmul.f32 %v1393_v57, %v6770_v15  ;;  %3463 = vmatpush.msra.mxu1 %v3435_v44  ;;  %5265 = vmatpush.msrb.mxu3 %v3435_v44  ;;  %v1943_v53 = vpop.f32.mrf.mxu0 }
 0x1d1   :  { %v5381_v17 = vpop.eup %5380  ;;  %v1770_v22 = vadd.f32 0.4994258, %v1769_v7  ;;  %v1403_v11 = vmul.f32 3.8918573e-05, %v6770_v15  ;;  %v1758_v28 = vmul.f32 %v1757_v39, %v6768_v56  ;;  %v2101_v24 = vmul.f32 3.8918573e-05, %v6617_v59 }
 0x1d2   :  { %v1850_v1 = vadd.f32 1.0, %v5160_v35  ;;  %v1734_v8 = vmul.f32 %v5381_v17, %v6832_v43  ;;  %v2173_v49 = vadd.f32 0.0036580483, %v2172_v27  ;;  %v2212_v37 = vmul.f32 %v2211_v16, %v6821_v18  ;;  %3464 = vmatpush.msra.mxu1 %v3434_v47  ;;  %5266 = vmatpush.msrb.mxu3 %v3434_v47 }
 0x1d3   :  { %v6872_v25 = vmul.f32 0.70710677, %v6855_v60  ;;  %v1771_v55 = vmul.f32 %v1770_v22, %v6768_v56  ;;  %v1721_v6 = vadd.f32 1.1283791, %v1720_v54  ;;  %v1742_v26 = vand.u32 2147483647, %v6832_v43 }
 0x1d4   :  { %v1882_v9 = vmul.f32 %v1850_v1, %v506_v46  ;;  %v1735_v58 = vsub.f32 1.0, %v1734_v8  ;;  %v1744_v34 = vand.u32 2147483648, %v6832_v43  ;;  %v1395_v23 = vadd.f32 0.0036580483, %v1394_v42  ;;  %3465 = vmatpush.msra.mxu1 %v3433_v20  ;;  %5267 = vmatpush.msrb.mxu3 %v3433_v20 }
 0x1d5   :  { %v6877_v36 = vadd.f32 1.0, %v1771_v55  ;;  %v1404_v57 = vadd.f32 0.001143296, %v1403_v11  ;;  %vm1739_vm8 = vweird.f32 %v5381_v17  ;;  %v1759_v39 = vadd.f32 0.18741608, %v1758_v28 }
 0x1d6   :  { %1987 = vmatmul.f32.gmra.mxu0 %v1882_v9  ;;  %v1736_v62 = vmul.f32 %v5381_v17, %v1735_v58  ;;  %v2102_v27 = vadd.f32 0.001143296, %v2101_v24  ;;  %v6880_v16 = vmul.f32 0.70710677, %v6861_v19  ;;  %v2174_v7 = vmul.f32 %v2173_v49, %v6806_v13 }
 0x1d7   :  { %v2213_v35 = vadd.f32 0.0036580483, %v2212_v37  ;;  %5382 = vrcp.f32 %v6877_v36  ;;  %v2248_v54 = vmul.f32 %v6872_v25, %v6872_v25  ;;  %vm1738_vm9 = vweird.f32 %v6832_v43 }
 0x1d8   :  { %v1737_v50 = vadd.f32 %v5381_v17, %v1736_v62  ;;  %v6888_v44 = vadd.f32 %v1943_v53, %v6547_v38  ;;  %vm1740_vm10 = vmor %vm1738_vm9, %vm1739_vm8  ;;  %v1745_v46 = vor.u32 1.1754944e-38, %v1744_v34  ;;  %v1396_v22 = vmul.f32 %v1395_v23, %v6770_v15 }
 0x1d9   :  { %v1405_v42 = vmul.f32 %v1404_v57, %v6770_v15  ;;  %v2103_v11 = vmul.f32 %v2102_v27, %v6617_v59  ;;  %v1722_v1 = vmul.f32 %v1721_v6, %v6642_v31  ;;  %vm1743_vm11 = vcmp.eq.f32.partialorder %v1742_v26, 8.507059e+37 }
 0x1da   :  { %v1741_v8 = vsel %vm1740_vm10, %v5381_v17, %v1737_v50  ;;  %v1760_v28 = vmul.f32 %v1759_v39, %v6768_v56  ;;  %v2141_v49 = vmul.f32 3.8918573e-05, %v6705_v10  ;;  %v2138_v37 = vmul.f32 %v6858_v2, %v6705_v10 }
 0x1db   :  { %v1746_v47 = vsel %vm1743_vm11, %v1745_v46, %v1741_v8  ;;  %v1406_v24 = vadd.f32 0.014752088, %v1405_v42  ;;  %v2104_v43 = vadd.f32 0.014752088, %v2103_v11  ;;  %v6898_v55 = vadd.f32 0.05243302, %v2174_v7 }
 0x1dc   :  { %v515_v9 = vmul.f32 0.5, %v6630_v21  ;;  %v1747_v58 = vmul.f32 %v1746_v47, %v1722_v1  ;;  %v1397_v34 = vadd.f32 0.05243302, %v1396_v22  ;;  %v2142_v56 = vadd.f32 0.001143296, %v2141_v49 }
 0x1dd   :  { %v5383_v20 = vpop.eup %5382  ;;  %v1407_v31 = vmul.f32 %v1406_v24, %v6770_v15  ;;  %v2105_v17 = vmul.f32 %v2104_v43, %v6617_v59  ;;  %v6903_v6 = vmin.f32 %v2248_v54, 16.0  ;;  %v6906_v53 = vmul.f32 0.70710677, %v6888_v44 }
 0x1de   :  { %v5169_v26 = vclamps-f32 %v1747_v58, 1.0  ;;  %v1774_v2 = vmul.f32 %v5383_v20, %v6877_v36  ;;  %v2214_v23 = vmul.f32 %v2213_v35, %v6821_v18  ;;  %v1761_v57 = vadd.f32 1.1283791, %v1760_v28 }
 0x1df   :  { %v1408_v21 = vadd.f32 0.112945676, %v1407_v31  ;;  %v2106_v62 = vadd.f32 0.112945676, %v2105_v17  ;;  %v1782_v7 = vand.u32 2147483647, %v6877_v36  ;;  %v2143_v50 = vmul.f32 %v2142_v56, %v6705_v10 }
 0x1e0   :  { %v1859_v39 = vadd.f32 1.0, %v5169_v26  ;;  %v1775_v27 = vsub.f32 1.0, %v1774_v2  ;;  %v1784_v54 = vand.u32 2147483648, %v6877_v36  ;;  %v1398_v46 = vmul.f32 %v1397_v34, %v6770_v15 }
 0x1e1   :  { %v1409_v22 = vmul.f32 %v1408_v21, %v6770_v15  ;;  %v2107_v42 = vmul.f32 %v2106_v62, %v6617_v59  ;;  %vm1779_vm12 = vweird.f32 %v5383_v20  ;;  %v2144_v35 = vadd.f32 0.014752088, %v2143_v50 }
 0x1e2   :  { %v1891_v11 = vmul.f32 %v1859_v39, %v515_v9  ;;  %v1776_v1 = vmul.f32 %v5383_v20, %v1775_v27  ;;  %v2250_v8 = vmul.f32 2.1237322e-06, %v6903_v6  ;;  %v2288_v28 = vmul.f32 %v6906_v53, %v6906_v53 }
 0x1e3   :  { %v1410_v47 = vadd.f32 0.4994258, %v1409_v22  ;;  %v2108_v24 = vadd.f32 0.4994258, %v2107_v42  ;;  %v1762_v43 = vmul.f32 %v1761_v57, %v6692_v61  ;;  %vm1778_vm13 = vweird.f32 %v6877_v36 }
 0x1e4   :  { %2014 = vmatmul.f32.gmra.mxu3 %v1891_v11  ;;  %v1777_v49 = vadd.f32 %v5383_v20, %v1776_v1  ;;  %v2145_v58 = vmul.f32 %v2144_v35, %v6705_v10  ;;  %vm1780_vm14 = vmor %vm1778_vm13, %vm1779_vm12  ;;  %v1785_v9 = vor.u32 1.1754944e-38, %v1784_v54  ;;  %v1399_v34 = vadd.f32 0.18741608, %v1398_v46 }
 0x1e5   :  { %v1411_v31 = vmul.f32 %v1410_v47, %v6770_v15  ;;  %v2109_v17 = vmul.f32 %v2108_v24, %v6617_v59  ;;  %vm1783_vm15 = vcmp.eq.f32.partialorder %v1782_v7, 8.507059e+37  ;;  %v1792_v2 = vmul.f32 2.1237322e-06, %v6851_v12 }
 0x1e6   :  { %v1781_v56 = vsel %vm1780_vm14, %v5383_v20, %v1777_v49  ;;  %v2146_v26 = vadd.f32 0.112945676, %v2145_v58  ;;  %v2251_v21 = vadd.f32 0.00028619796, %v2250_v8  ;;  %v6931_v36 = vmul.f32 %v6844_v48, %v6844_v48 }
 0x1e7   :  { %v1786_v62 = vsel %vm1783_vm15, %v1785_v9, %v1781_v56  ;;  %v6925_v61 = vadd.f32 1.0, %v1411_v31  ;;  %v6927_v57 = vadd.f32 1.0, %v2109_v17  ;;  %v2099_v39 = vadd.f32 1.1283791, %v6848_v33 }
 0x1e8   :  { %v1787_v27 = vmul.f32 %v1786_v62, %v1762_v43  ;;  %v2147_v59 = vmul.f32 %v2146_v26, %v6705_v10  ;;  %v1430_v20 = vmul.f32 %v6880_v16, %v6880_v16  ;;  %v6937_v7 = vmin.f32 %v2288_v28, 16.0 }
 0x1e9   :  { %v1400_v50 = vmul.f32 %v1399_v34, %v6770_v15  ;;  %5384 = vrcp.f32 %v6925_v61  ;;  %v1793_v46 = vadd.f32 0.00028619796, %v1792_v2  ;;  %v1803_v22 = vmul.f32 3.8918573e-05, %v6851_v12 }
 0x1ea   :  { %v5170_v54 = vclamps-f32 %v1787_v27, 1.0  ;;  %5386 = vrcp.f32 %v6927_v57  ;;  %v2139_v42 = vadd.f32 1.1283791, %v2138_v37  ;;  %v2176_v33 = vmul.f32 %v6898_v55, %v6806_v13  ;;  %v1946_v55 = vpop.f32.mrf.mxu0 }
 0x1eb   :  { %v2215_v11 = vadd.f32 0.05243302, %v2214_v23  ;;  %v2252_v1 = vmul.f32 %v2251_v21, %v6903_v6  ;;  %v6947_v35 = vmul.f32 0.5, %v6571_v3  ;;  %v516_v15 = vmul.f32 0.5, %v6666_v29 }
 0x1ec   :  { %v1860_v8 = vadd.f32 1.0, %v5170_v54  ;;  %v2148_v28 = vadd.f32 0.4994258, %v2147_v59  ;;  %v6951_v47 = vmul.f32 %v2099_v39, %v6587_v63  ;;  %v6953_v24 = vmin.f32 %v1430_v20, 16.0 }
 0x1ed   :  { %v2290_v37 = vmul.f32 2.1237322e-06, %v6937_v7  ;;  %v1401_v43 = vadd.f32 1.1283791, %v1400_v50  ;;  %v1794_v58 = vmul.f32 %v1793_v46, %v6851_v12  ;;  %v1804_v3 = vadd.f32 0.001143296, %v1803_v22 }
 0x1ee   :  { %v1892_v49 = vmul.f32 %v1860_v8, %v516_v15  ;;  %v2149_v23 = vmul.f32 %v2148_v28, %v6705_v10  ;;  %v6959_v29 = vmul.f32 %v2139_v42, %v6669_v40  ;;  %v6961_v34 = vadd.f32 0.18741608, %v2176_v33 }
 0x1ef   :  { %v5385_v9 = vpop.eup %5384  ;;  %v6964_v63 = vmul.f32 %v2215_v11, %v6821_v18  ;;  %v6966_v31 = vadd.f32 0.0036580483, %v2252_v1  ;;  %v6969_v56 = vmul.f32 0.5, %v6695_v32  ;;  %v2181_v2 = vmul.f32 3.8918573e-05, %v6806_v13 }
 0x1f0   :  { %v5387_v17 = vpop.eup %5386  ;;  %2017 = vmatmul.f32.gmra.mxu3 %v1892_v49  ;;  %v1414_v10 = vmul.f32 %v5385_v9, %v6925_v61  ;;  %v6972_v26 = vadd.f32 1.0, %v2149_v23  ;;  %v6975_v40 = vadd.f32 0.00028619796, %v2290_v37  ;;  %v6978_v21 = vadd.f32 %v1946_v55, %v6547_v38 }
 0x1f1   :  { %v2112_v62 = vmul.f32 %v5387_v17, %v6927_v57  ;;  %v1805_v39 = vmul.f32 %v1804_v3, %v6851_v12  ;;  %v1402_v27 = vmul.f32 %v1401_v43, %v6715_v14  ;;  %v1795_v32 = vadd.f32 0.0036580483, %v1794_v58 }
 0x1f2   :  { %v1415_v59 = vsub.f32 1.0, %v1414_v10  ;;  %5388 = vrcp.f32 %v6972_v26  ;;  %v1422_v20 = vand.u32 2147483647, %v6925_v61  ;;  %v1424_v50 = vand.u32 2147483648, %v6925_v61 }
 0x1f3   :  { %v2113_v54 = vsub.f32 1.0, %v2112_v62  ;;  %v2122_v46 = vand.u32 2147483648, %v6927_v57  ;;  %vm1419_vm0 = vweird.f32 %v5385_v9  ;;  %v1806_v42 = vadd.f32 0.014752088, %v1805_v39 }
 0x1f4   :  { %v1416_v22 = vmul.f32 %v5385_v9, %v1415_v59  ;;  %v2182_v33 = vadd.f32 0.001143296, %v2181_v2  ;;  %vm1418_vm1 = vweird.f32 %v6925_v61  ;;  %vm2117_vm2 = vweird.f32 %v5387_v17 }
 0x1f5   :  { %v2114_v11 = vmul.f32 %v5387_v17, %v2113_v54  ;;  %v2120_v14 = vand.u32 2147483647, %v6927_v57  ;;  %v1796_v15 = vmul.f32 %v1795_v32, %v6851_v12  ;;  %v1807_v8 = vmul.f32 %v1806_v42, %v6851_v12  ;;  %vm1420_vm3 = vmor %vm1418_vm1, %vm1419_vm0 }
 0x1f6   :  { %v1417_v1 = vadd.f32 %v5385_v9, %v1416_v22  ;;  %v2183_v28 = vmul.f32 %v2182_v33, %v6806_v13  ;;  %vm1423_vm4 = vcmp.eq.f32.partialorder %v1422_v20, 8.507059e+37  ;;  %v1425_v37 = vor.u32 1.1754944e-38, %v1424_v50 }
 0x1f7   :  { %v2115_v43 = vadd.f32 %v5387_v17, %v2114_v11  ;;  %vm2116_vm5 = vweird.f32 %v6927_v57  ;;  %v2123_v61 = vor.u32 1.1754944e-38, %v2122_v46  ;;  %v1808_v23 = vadd.f32 0.112945676, %v1807_v8 }
 0x1f8   :  { %v5389_v49 = vpop.eup %5388  ;;  %v1421_v55 = vsel %vm1420_vm3, %v5385_v9, %v1417_v1  ;;  %vm2118_vm6 = vmor %vm2116_vm5, %vm2117_vm2  ;;  %v2184_v58 = vadd.f32 0.014752088, %v2183_v28  ;;  %vm2121_vm7 = vcmp.eq.f32.partialorder %v2120_v14, 8.507059e+37  ;;  %v2160_v59 = vand.u32 2147483647, %v6972_v26 }
 0x1f9   :  { %v1426_v3 = vsel %vm1423_vm4, %v1425_v37, %v1421_v55  ;;  %v2119_v10 = vsel %vm2118_vm6, %v5387_v17, %v2115_v43  ;;  %v2152_v2 = vmul.f32 %v5389_v49, %v6972_v26  ;;  %v1797_v32 = vadd.f32 0.05243302, %v1796_v15 }
 0x1fa   :  { %v1427_v62 = vmul.f32 %v1426_v3, %v1402_v27  ;;  %v2124_v39 = vsel %vm2121_vm7, %v2123_v61, %v2119_v10  ;;  %v1809_v57 = vmul.f32 %v1808_v23, %v6851_v12  ;;  %v2185_v9 = vmul.f32 %v2184_v58, %v6806_v13 }
 0x1fb   :  { %v2125_v20 = vmul.f32 %v2124_v39, %v6951_v47  ;;  %v2153_v50 = vsub.f32 1.0, %v2152_v2  ;;  %v6999_v54 = vmul.f32 0.70710677, %v6978_v21  ;;  %v2162_v17 = vand.u32 2147483648, %v6972_v26 }
 0x1fc   :  { %v5161_v46 = vclamps-f32 %v1427_v62, 1.0  ;;  %v1432_v22 = vmul.f32 2.1237322e-06, %v6953_v24  ;;  %vm2157_vm8 = vweird.f32 %v5389_v49  ;;  %v1810_v33 = vadd.f32 0.4994258, %v1809_v57 }
 0x1fd   :  { %v5172_v27 = vclamps-f32 %v2125_v20, 1.0  ;;  %v2154_v42 = vmul.f32 %v5389_v49, %v2153_v50  ;;  %vm2156_vm9 = vweird.f32 %v6972_v26  ;;  %v1798_v47 = vmul.f32 %v1797_v32, %v6851_v12 }
 0x1fe   :  { %v1851_v11 = vadd.f32 1.0, %v5161_v46  ;;  %v2186_v14 = vadd.f32 0.112945676, %v2185_v9  ;;  %vm2161_vm10 = vcmp.eq.f32.partialorder %v2160_v59, 8.507059e+37  ;;  %v1811_v8 = vmul.f32 %v1810_v33, %v6851_v12  ;;  %vm2158_vm11 = vmor %vm2156_vm9, %vm2157_vm8  ;;  %v1949_v59 = vpop.f32.mrf.mxu0 }
 0x1ff   :  { %v3368_v1 = vadd.f32 1.0, %v5172_v27  ;;  %v2155_v15 = vadd.f32 %v5389_v49, %v2154_v42  ;;  %v2163_v37 = vor.u32 1.1754944e-38, %v2162_v17  ;;  %v1433_v55 = vadd.f32 0.00028619796, %v1432_v22 }
 0x200   :  { %v1883_v28 = vmul.f32 %v1851_v11, %v6969_v56  ;;  %v2187_v43 = vmul.f32 %v2186_v14, %v6806_v13  ;;  %v7009_v58 = vadd.f32 1.0, %v1811_v8  ;;  %v1443_v26 = vmul.f32 3.8918573e-05, %v6953_v24 }
 0x201   :  { %v3400_v61 = vmul.f32 %v3368_v1, %v6947_v35  ;;  %v2159_v23 = vsel %vm2158_vm11, %v5389_v49, %v2155_v15  ;;  %v2178_v3 = vmul.f32 %v6961_v34, %v6806_v13  ;;  %v1799_v2 = vadd.f32 0.18741608, %v1798_v47 }
 0x202   :  { %1990 = vmatmul.f32.gmra.mxu0 %v1883_v28  ;;  %v2164_v10 = vsel %vm2161_vm10, %v2163_v37, %v2159_v23  ;;  %v2188_v62 = vadd.f32 0.4994258, %v2187_v43  ;;  %v2025_v56 = vmul.f32 0.5, %v6650_v0  ;;  %v2217_v39 = vadd.f32 0.18741608, %v6964_v63 }
 0x203   :  { %3466 = vmatmul.f32.vlgmr.msra.gmra.mxu1 %v3400_v61  ;;  %v2165_v35 = vmul.f32 %v2164_v10, %v6959_v29  ;;  %5390 = vrcp.f32 %v7009_v58  ;;  %v2254_v49 = vmul.f32 %v6966_v31, %v6903_v6  ;;  %v2328_v34 = vmul.f32 %v6999_v54, %v6999_v54 }
 0x204   :  { %v2189_v32 = vmul.f32 %v2188_v62, %v6806_v13  ;;  %v1434_v20 = vmul.f32 %v1433_v55, %v6953_v24  ;;  %v2292_v0 = vmul.f32 %v6975_v40, %v6937_v7  ;;  %v1444_v50 = vadd.f32 0.001143296, %v1443_v26 }
 0x205   :  { %v5173_v63 = vclamps-f32 %v2165_v35, 1.0  ;;  %v2221_v57 = vmul.f32 3.8918573e-05, %v6821_v18  ;;  %v2179_v29 = vadd.f32 1.1283791, %v2178_v3  ;;  %v7028_v9 = vadd.f32 %v1949_v59, %v6547_v38 }
 0x206   :  { %v1800_v31 = vmul.f32 %v1799_v2, %v6851_v12  ;;  %v7031_v46 = vadd.f32 1.0, %v2189_v32  ;;  %v2218_v17 = vmul.f32 %v2217_v39, %v6821_v18  ;;  %v1445_v22 = vmul.f32 %v1444_v50, %v6953_v24 }
 0x207   :  { %v3369_v13 = vadd.f32 1.0, %v5173_v63  ;;  %v2222_v27 = vadd.f32 0.001143296, %v2221_v57  ;;  %v2255_v42 = vadd.f32 0.05243302, %v2254_v49  ;;  %v7035_v40 = vmin.f32 %v2328_v34, 16.0 }
 0x208   :  { %5392 = vrcp.f32 %v7031_v46  ;;  %v1435_v33 = vadd.f32 0.0036580483, %v1434_v20  ;;  %v7039_v47 = vmin.f32 %v6931_v36, 16.0  ;;  %v2293_v14 = vadd.f32 0.0036580483, %v2292_v0 }
 0x209   :  { %v5391_v11 = vpop.eup %5390  ;;  %v3401_v12 = vmul.f32 %v3369_v13, %v2025_v56  ;;  %v1446_v1 = vadd.f32 0.014752088, %v1445_v22  ;;  %v7042_v15 = vmul.f32 %v2179_v29, %v6773_v41  ;;  %v7045_v8 = vmul.f32 0.70710677, %v7028_v9  ;;  %v1952_v29 = vpop.f32.mrf.mxu0 }
 0x20a   :  { %v1801_v28 = vadd.f32 1.1283791, %v1800_v31  ;;  %v1814_v37 = vmul.f32 %v5391_v11, %v7009_v58  ;;  %v7048_v43 = vadd.f32 1.1283791, %v2218_v17  ;;  %v1822_v55 = vand.u32 2147483647, %v7009_v58 }
 0x20b   :  { %3469 = vmatmul.f32.gmra.mxu1 %v3401_v12  ;;  %v1447_v36 = vmul.f32 %v1446_v1, %v6953_v24  ;;  %v2223_v61 = vmul.f32 %v2222_v27, %v6821_v18  ;;  %v2256_v23 = vmul.f32 %v2255_v42, %v6903_v6  ;;  %v2330_v41 = vmul.f32 2.1237322e-06, %v7035_v40 }
 0x20c   :  { %v1815_v26 = vsub.f32 1.0, %v1814_v37  ;;  %v1436_v3 = vmul.f32 %v1435_v33, %v6953_v24  ;;  %v2294_v10 = vmul.f32 %v2293_v14, %v6937_v7  ;;  %v1824_v2 = vand.u32 2147483648, %v7009_v58 }
 0x20d   :  { %v1448_v62 = vadd.f32 0.112945676, %v1447_v36  ;;  %v2224_v56 = vadd.f32 0.014752088, %v2223_v61  ;;  %v2368_v59 = vmul.f32 %v7045_v8, %v7045_v8  ;;  %v1802_v35 = vmul.f32 %v1801_v28, %v6763_v30 }
 0x20e   :  { %v5393_v39 = vpop.eup %5392  ;;  %v1816_v49 = vmul.f32 %v5391_v11, %v1815_v26  ;;  %vm1819_vm12 = vweird.f32 %v5391_v11  ;;  %vm1818_vm13 = vweird.f32 %v7009_v58  ;;  %vm7062_vm14 = vcmp.eq.f32.partialorder %v1822_v55, 8.507059e+37 }
 0x20f   :  { %v2192_v32 = vmul.f32 %v5393_v39, %v7031_v46  ;;  %v1449_v20 = vmul.f32 %v1448_v62, %v6953_v24  ;;  %v1437_v63 = vadd.f32 0.05243302, %v1436_v3  ;;  %v2225_v50 = vmul.f32 %v2224_v56, %v6821_v18  ;;  %vm1820_vm15 = vmor %vm1818_vm13, %vm1819_vm12 }
 0x210   :  { %v1817_v0 = vadd.f32 %v5391_v11, %v1816_v49  ;;  %v1472_v57 = vmul.f32 2.1237322e-06, %v7039_v47  ;;  %v1825_v30 = vor.u32 1.1754944e-38, %v1824_v2  ;;  %v2200_v58 = vand.u32 2147483647, %v7031_v46 }
 0x211   :  { %v2193_v31 = vsub.f32 1.0, %v2192_v32  ;;  %v1450_v17 = vadd.f32 0.4994258, %v1449_v20  ;;  %v2202_v22 = vand.u32 2147483648, %v7031_v46  ;;  %v2226_v27 = vadd.f32 0.112945676, %v2225_v50 }
 0x212   :  { %v1821_v13 = vsel %vm1820_vm15, %v5391_v11, %v1817_v0  ;;  %v1483_v42 = vmul.f32 3.8918573e-05, %v7039_v47  ;;  %vm2197_vm0 = vweird.f32 %v5393_v39  ;;  %v7076_v1 = vmin.f32 %v2368_v59, 16.0 }
 0x213   :  { %v1826_v33 = vsel %vm7062_vm14, %v1825_v30, %v1821_v13  ;;  %v2194_v14 = vmul.f32 %v5393_v39, %v2193_v31  ;;  %v1451_v12 = vmul.f32 %v1450_v17, %v6953_v24  ;;  %v7079_v37 = vadd.f32 %v1952_v29, %v6547_v38  ;;  %v1955_v17 = vpop.f32.mrf.mxu0 }
 0x214   :  { %v1827_v28 = vmul.f32 %v1826_v33, %v1802_v35  ;;  %v2227_v11 = vmul.f32 %v2226_v27, %v6821_v18  ;;  %vm2196_vm1 = vweird.f32 %v7031_v46  ;;  %v1473_v61 = vadd.f32 0.00028619796, %v1472_v57 }
 0x215   :  { %v2195_v55 = vadd.f32 %v5393_v39, %v2194_v14  ;;  %v7083_v36 = vadd.f32 1.0, %v1451_v12  ;;  %vm2198_vm2 = vmor %vm2196_vm1, %vm2197_vm0  ;;  %v2203_v3 = vor.u32 1.1754944e-38, %v2202_v22  ;;  %v1438_v2 = vmul.f32 %v1437_v63, %v6953_v24 }
 0x216   :  { %v5171_v26 = vclamps-f32 %v1827_v28, 1.0  ;;  %v2228_v62 = vadd.f32 0.4994258, %v2227_v11  ;;  %vm2201_vm3 = vcmp.eq.f32.partialorder %v2200_v58, 8.507059e+37  ;;  %v1484_v59 = vadd.f32 0.001143296, %v1483_v42 }
 0x217   :  { %v2199_v56 = vsel %vm2198_vm2, %v5393_v39, %v2195_v55  ;;  %5394 = vrcp.f32 %v7083_v36  ;;  %v2331_v35 = vadd.f32 0.00028619796, %v2330_v41  ;;  %v517_v49 = vmul.f32 0.5, %v6740_v45 }
 0x218   :  { %v1861_v34 = vadd.f32 1.0, %v5171_v26  ;;  %v2204_v32 = vsel %vm2201_vm3, %v2203_v3, %v2199_v56  ;;  %v2257_v46 = vadd.f32 0.18741608, %v2256_v23  ;;  %v2229_v0 = vmul.f32 %v2228_v62, %v6821_v18 }
 0x219   :  { %v2205_v20 = vmul.f32 %v2204_v32, %v7042_v15  ;;  %v1474_v50 = vmul.f32 %v1473_v61, %v7039_v47  ;;  %v2295_v57 = vadd.f32 0.05243302, %v2294_v10  ;;  %v2370_v63 = vmul.f32 2.1237322e-06, %v7076_v1 }
 0x21a   :  { %v1893_v39 = vmul.f32 %v1861_v34, %v517_v49  ;;  %v1439_v30 = vadd.f32 0.18741608, %v1438_v2  ;;  %v7093_v29 = vmul.f32 0.70710677, %v7079_v37  ;;  %v7095_v31 = vadd.f32 1.0, %v2229_v0 }
 0x21b   :  { %v5174_v41 = vclamps-f32 %v2205_v20, 1.0  ;;  %v1485_v45 = vmul.f32 %v1484_v59, %v7039_v47  ;;  %v2026_v23 = vmul.f32 0.5, %v6753_v5  ;;  %v2332_v15 = vmul.f32 %v2331_v35, %v7035_v40 }
 0x21c   :  { %2020 = vmatmul.f32.gmra.mxu3 %v1893_v39  ;;  %v7102_v10 = vmul.f32 %v7048_v43, %v6800_v52  ;;  %5396 = vrcp.f32 %v7095_v31  ;;  %v1475_v13 = vadd.f32 0.0036580483, %v1474_v50  ;;  %v7106_v22 = vmul.f32 %v2257_v46, %v6903_v6 }
 0x21d   :  { %v5395_v18 = vpop.eup %5394  ;;  %v3370_v58 = vadd.f32 1.0, %v5174_v41  ;;  %v7109_v27 = vmul.f32 %v2295_v57, %v6937_v7  ;;  %v1440_v5 = vmul.f32 %v1439_v30, %v6953_v24  ;;  %v2371_v33 = vadd.f32 0.00028619796, %v2370_v63 }
 0x21e   :  { %v1454_v42 = vmul.f32 %v5395_v18, %v7083_v36  ;;  %v2408_v52 = vmul.f32 %v7093_v29, %v7093_v29  ;;  %v1486_v14 = vadd.f32 0.014752088, %v1485_v45  ;;  %v7115_v12 = vadd.f32 0.0036580483, %v2332_v15 }
 0x21f   :  { %v3402_v43 = vmul.f32 %v3370_v58, %v2026_v23  ;;  %v508_v28 = vmul.f32 0.5, %v6861_v19  ;;  %v7119_v55 = vadd.f32 %v1955_v17, %v6547_v38  ;;  %v1464_v61 = vand.u32 2147483648, %v7083_v36 }
 0x220   :  { %v1455_v11 = vsub.f32 1.0, %v1454_v42  ;;  %v1476_v24 = vmul.f32 %v1475_v13, %v7039_v47  ;;  %v1487_v26 = vmul.f32 %v1486_v14, %v7039_v47  ;;  %v2261_v3 = vmul.f32 3.8918573e-05, %v6903_v6  ;;  %v1958_v13 = vpop.f32.mrf.mxu0 }
 0x221   :  { %3472 = vmatmul.f32.gmra.mxu1 %v3402_v43  ;;  %v1441_v2 = vadd.f32 1.1283791, %v1440_v5  ;;  %vm1459_vm4 = vweird.f32 %v5395_v18  ;;  %v1462_v56 = vand.u32 2147483647, %v7083_v36  ;;  %v2372_v19 = vmul.f32 %v2371_v33, %v7076_v1 }
 0x222   :  { %v1456_v62 = vmul.f32 %v5395_v18, %v1455_v11  ;;  %v5397_v59 = vpop.eup %5396  ;;  %v7127_v35 = vmin.f32 %v2408_v52, 16.0  ;;  %v1488_v49 = vadd.f32 0.112945676, %v1487_v26  ;;  %v2262_v34 = vadd.f32 0.001143296, %v2261_v3 }
 0x223   :  { %vm1458_vm5 = vweird.f32 %v7083_v36  ;;  %v7131_v46 = vmul.f32 0.70710677, %v7119_v55  ;;  %v2232_v20 = vmul.f32 %v5397_v59, %v7095_v31  ;;  %v1465_v0 = vor.u32 1.1754944e-38, %v1464_v61 }
 0x224   :  { %v1457_v32 = vadd.f32 %v5395_v18, %v1456_v62  ;;  %vm1460_vm6 = vmor %vm1458_vm5, %vm1459_vm4  ;;  %v1477_v50 = vadd.f32 0.05243302, %v1476_v24  ;;  %v1489_v57 = vmul.f32 %v1488_v49, %v7039_v47  ;;  %v2263_v63 = vmul.f32 %v2262_v34, %v6903_v6 }
 0x225   :  { %v1442_v39 = vmul.f32 %v1441_v2, %v6880_v16  ;;  %vm1463_vm7 = vcmp.eq.f32.partialorder %v1462_v56, 8.507059e+37  ;;  %v2233_v41 = vsub.f32 1.0, %v2232_v20  ;;  %v2240_v36 = vand.u32 2147483647, %v7095_v31 }
 0x226   :  { %v1461_v30 = vsel %vm1460_vm6, %v5395_v18, %v1457_v32  ;;  %v2242_v23 = vand.u32 2147483648, %v7095_v31  ;;  %v1490_v15 = vadd.f32 0.4994258, %v1489_v57  ;;  %vm2237_vm8 = vweird.f32 %v5397_v59 }
 0x227   :  { %v1466_v45 = vsel %vm1463_vm7, %v1465_v0, %v1461_v30  ;;  %v2234_v17 = vmul.f32 %v5397_v59, %v2233_v41  ;;  %v2264_v5 = vadd.f32 0.014752088, %v2263_v63  ;;  %v2448_v42 = vmul.f32 %v7131_v46, %v7131_v46 }
 0x228   :  { %v1467_v58 = vmul.f32 %v1466_v45, %v1442_v39  ;;  %vm2236_vm9 = vweird.f32 %v7095_v31  ;;  %v1478_v16 = vmul.f32 %v1477_v50, %v7039_v47  ;;  %v1491_v18 = vmul.f32 %v1490_v15, %v7039_v47 }
 0x229   :  { %v2235_v52 = vadd.f32 %v5397_v59, %v2234_v17  ;;  %v2265_v43 = vmul.f32 %v2264_v5, %v6903_v6  ;;  %v2301_v14 = vmul.f32 3.8918573e-05, %v6937_v7  ;;  %v2410_v11 = vmul.f32 2.1237322e-06, %v7127_v35  ;;  %vm2238_vm10 = vmor %vm2236_vm9, %vm2237_vm8 }
 0x22a   :  { %v5162_v33 = vclamps-f32 %v1467_v58, 1.0  ;;  %vm2241_vm11 = vcmp.eq.f32.partialorder %v2240_v36, 8.507059e+37  ;;  %v2243_v61 = vor.u32 1.1754944e-38, %v2242_v23  ;;  %v7147_v24 = vadd.f32 1.0, %v1491_v18  ;;  %v1961_v36 = vpop.f32.mrf.mxu0 }
 0x22b   :  { %v2239_v3 = vsel %vm2238_vm10, %v5397_v59, %v2235_v52  ;;  %v2266_v31 = vadd.f32 0.112945676, %v2265_v43  ;;  %v2302_v2 = vadd.f32 0.001143296, %v2301_v14  ;;  %v7149_v62 = vmin.f32 %v2448_v42, 16.0 }
 0x22c   :  { %v1852_v26 = vadd.f32 1.0, %v5162_v33  ;;  %v2244_v56 = vsel %vm2241_vm11, %v2243_v61, %v2239_v3  ;;  %5398 = vrcp.f32 %v7147_v24  ;;  %v2259_v49 = vadd.f32 1.1283791, %v7106_v22 }
 0x22d   :  { %v2245_v32 = vmul.f32 %v2244_v56, %v7102_v10  ;;  %v1479_v20 = vadd.f32 0.18741608, %v1478_v16  ;;  %v2297_v0 = vadd.f32 0.18741608, %v7109_v27  ;;  %v2334_v50 = vmul.f32 %v7115_v12, %v7035_v40 }
 0x22e   :  { %v1884_v34 = vmul.f32 %v1852_v26, %v508_v28  ;;  %v2267_v59 = vmul.f32 %v2266_v31, %v6903_v6  ;;  %v2303_v57 = vmul.f32 %v2302_v2, %v6937_v7  ;;  %v2373_v63 = vadd.f32 0.0036580483, %v2372_v19 }
 0x22f   :  { %v2411_v39 = vadd.f32 0.00028619796, %v2410_v11  ;;  %v5175_v30 = vclamps-f32 %v2245_v32, 1.0  ;;  %v2450_v41 = vmul.f32 2.1237322e-06, %v7149_v62  ;;  %v2027_v10 = vmul.f32 0.5, %v6783_v51 }
 0x230   :  { %1993 = vmatmul.f32.gmra.mxu0 %v1884_v34  ;;  %v2268_v22 = vadd.f32 0.4994258, %v2267_v59  ;;  %v2304_v28 = vadd.f32 0.014752088, %v2303_v57  ;;  %v7162_v45 = vmul.f32 0.5, %v6855_v60  ;;  %v1480_v12 = vmul.f32 %v1479_v20, %v7039_v47 }
 0x231   :  { %v3371_v27 = vadd.f32 1.0, %v5175_v30  ;;  %v7166_v15 = vmul.f32 %v2259_v49, %v6872_v25  ;;  %v2298_v19 = vmul.f32 %v2297_v0, %v6937_v7  ;;  %v2335_v58 = vadd.f32 0.05243302, %v2334_v50  ;;  %v2000_v0 = vpop.f32.mrf.mxu3 }
 0x232   :  { %v5399_v23 = vpop.eup %5398  ;;  %v2269_v17 = vmul.f32 %v2268_v22, %v6903_v6  ;;  %v2374_v5 = vmul.f32 %v2373_v63, %v7076_v1  ;;  %v2305_v60 = vmul.f32 %v2304_v28, %v6937_v7  ;;  %v2412_v16 = vmul.f32 %v2411_v39, %v7127_v35 }
 0x233   :  { %v3403_v42 = vmul.f32 %v3371_v27, %v2027_v10  ;;  %v1494_v51 = vmul.f32 %v5399_v23, %v7147_v24  ;;  %v2451_v47 = vadd.f32 0.00028619796, %v2450_v41  ;;  %v2341_v25 = vmul.f32 3.8918573e-05, %v7035_v40  ;;  %v1964_v41 = vpop.f32.mrf.mxu0 }
 0x234   :  { %v7174_v18 = vadd.f32 1.0, %v2269_v17  ;;  %v1481_v33 = vadd.f32 1.1283791, %v1480_v12  ;;  %v7178_v43 = vadd.f32 %v1958_v13, %v6547_v38  ;;  %v2306_v6 = vadd.f32 0.112945676, %v2305_v60 }
 0x235   :  { %3475 = vmatmul.f32.gmra.mxu1 %v3403_v42  ;;  %v1495_v52 = vsub.f32 1.0, %v1494_v51  ;;  %vm1498_vm12 = vweird.f32 %v7147_v24  ;;  %v1502_v14 = vand.u32 2147483647, %v7147_v24  ;;  %v1504_v11 = vand.u32 2147483648, %v7147_v24 }
 0x236   :  { %5400 = vrcp.f32 %v7174_v18  ;;  %vm1499_vm13 = vweird.f32 %v5399_v23  ;;  %v7185_v26 = vadd.f32 %v1961_v36, %v6547_v38  ;;  %v2307_v3 = vmul.f32 %v2306_v6, %v6937_v7 }
 0x237   :  { %v1496_v61 = vmul.f32 %v5399_v23, %v1495_v52  ;;  %v7188_v31 = vadd.f32 1.1283791, %v2298_v19  ;;  %v2336_v13 = vmul.f32 %v2335_v58, %v7035_v40  ;;  %v2375_v2 = vadd.f32 0.05243302, %v2374_v5  ;;  %vm1500_vm14 = vmor %vm1498_vm12, %vm1499_vm13 }
 0x238   :  { %v2342_v56 = vadd.f32 0.001143296, %v2341_v25  ;;  %v2413_v49 = vadd.f32 0.0036580483, %v2412_v16  ;;  %v2452_v34 = vmul.f32 %v2451_v47, %v7149_v62  ;;  %v2308_v20 = vadd.f32 0.4994258, %v2307_v3 }
 0x239   :  { %v1497_v32 = vadd.f32 %v5399_v23, %v1496_v61  ;;  %v1482_v50 = vmul.f32 %v1481_v33, %v6844_v48  ;;  %vm1503_vm15 = vcmp.eq.f32.partialorder %v1502_v14, 8.507059e+37  ;;  %v1505_v59 = vor.u32 1.1754944e-38, %v1504_v11 }
 0x23a   :  { %v7196_v57 = vmul.f32 0.70710677, %v7178_v43  ;;  %v7199_v39 = vmul.f32 0.70710677, %v7185_v26  ;;  %v2309_v30 = vmul.f32 %v2308_v20, %v6937_v7  ;;  %v7203_v22 = vadd.f32 %v2000_v0, %v6547_v38 }
 0x23b   :  { %v1501_v63 = vsel %vm1500_vm14, %v5399_v23, %v1497_v32  ;;  %v2376_v48 = vmul.f32 %v2375_v2, %v7076_v1  ;;  %v509_v24 = vmul.f32 0.5, %v6703_v4  ;;  %v2343_v27 = vmul.f32 %v2342_v56, %v7035_v40 }
 0x23c   :  { %v5401_v28 = vpop.eup %5400  ;;  %v1506_v10 = vsel %vm1503_vm15, %v1505_v59, %v1501_v63  ;;  %v2414_v12 = vmul.f32 %v2413_v49, %v7127_v35  ;;  %v2381_v19 = vmul.f32 3.8918573e-05, %v7076_v1  ;;  %v2453_v7 = vadd.f32 0.0036580483, %v2452_v34 }
 0x23d   :  { %v1507_v36 = vmul.f32 %v1506_v10, %v1482_v50  ;;  %v2272_v23 = vmul.f32 %v5401_v28, %v7174_v18  ;;  %v2488_v58 = vmul.f32 %v7196_v57, %v7196_v57  ;;  %v7213_v17 = vadd.f32 1.0, %v2309_v30 }
 0x23e   :  { %v7216_v5 = vadd.f32 %v1964_v41, %v6547_v38  ;;  %v2528_v51 = vmul.f32 %v7199_v39, %v7199_v39  ;;  %v7221_v60 = vmul.f32 0.70710677, %v7203_v22  ;;  %v2280_v16 = vand.u32 2147483647, %v7174_v18 }
 0x23f   :  { %v5163_v4 = vclamps-f32 %v1507_v36, 1.0  ;;  %v2273_v42 = vsub.f32 1.0, %v2272_v23  ;;  %v2282_v47 = vand.u32 2147483648, %v7174_v18  ;;  %5402 = vrcp.f32 %v7213_v17 }
 0x240   :  { %v2344_v25 = vadd.f32 0.014752088, %v2343_v27  ;;  %vm2277_vm0 = vweird.f32 %v5401_v28  ;;  %v2382_v6 = vadd.f32 0.001143296, %v2381_v19  ;;  %v2415_v14 = vadd.f32 0.05243302, %v2414_v12 }
 0x241   :  { %v1853_v33 = vadd.f32 1.0, %v5163_v4  ;;  %v2274_v52 = vmul.f32 %v5401_v28, %v2273_v42  ;;  %v2454_v11 = vmul.f32 %v2453_v7, %v7149_v62  ;;  %v7228_v61 = vmul.f32 0.70710677, %v7216_v5 }
 0x242   :  { %v3048_v3 = vmul.f32 %v7221_v60, %v7221_v60  ;;  %v7232_v56 = vmin.f32 %v2488_v58, 16.0  ;;  %vm2276_vm1 = vweird.f32 %v7174_v18  ;;  %v2283_v34 = vor.u32 1.1754944e-38, %v2282_v47 }
 0x243   :  { %v1885_v2 = vmul.f32 %v1853_v33, %v509_v24  ;;  %v2275_v49 = vadd.f32 %v5401_v28, %v2274_v52  ;;  %vm2278_vm2 = vmor %vm2276_vm1, %vm2277_vm0  ;;  %v7235_v32 = vmin.f32 %v2528_v51, 16.0  ;;  %v2345_v0 = vmul.f32 %v2344_v25, %v7035_v40 }
 0x244   :  { %v7237_v20 = vmin.f32 %v3048_v3, 16.0  ;;  %v2337_v50 = vadd.f32 0.18741608, %v2336_v13  ;;  %vm2281_vm3 = vcmp.eq.f32.partialorder %v2280_v16, 8.507059e+37  ;;  %v2383_v63 = vmul.f32 %v2382_v6, %v7076_v1 }
 0x245   :  { %1996 = vmatmul.f32.gmra.mxu0 %v1885_v2  ;;  %v2279_v59 = vsel %vm2278_vm2, %v5401_v28, %v2275_v49  ;;  %v5403_v30 = vpop.eup %5402  ;;  %v2377_v41 = vadd.f32 0.18741608, %v2376_v48  ;;  %v2568_v18 = vmul.f32 %v7228_v61, %v7228_v61  ;;  %v2455_v27 = vadd.f32 0.05243302, %v2454_v11 }
 0x246   :  { %v2284_v24 = vsel %vm2281_vm3, %v2283_v34, %v2279_v59  ;;  %v3061_v10 = vmul.f32 3.8918573e-05, %v7237_v20  ;;  %v2490_v12 = vmul.f32 2.1237322e-06, %v7232_v56  ;;  %v2312_v13 = vmul.f32 %v5403_v30, %v7213_v17 }
 0x247   :  { %v2285_v36 = vmul.f32 %v2284_v24, %v7166_v15  ;;  %v2416_v28 = vmul.f32 %v2415_v14, %v7127_v35  ;;  %v2530_v23 = vmul.f32 2.1237322e-06, %v7235_v32  ;;  %v2346_v7 = vadd.f32 0.112945676, %v2345_v0 }
 0x248   :  { %v3062_v19 = vadd.f32 0.001143296, %v3061_v10  ;;  %v2313_v58 = vsub.f32 1.0, %v2312_v13  ;;  %v2320_v4 = vand.u32 2147483647, %v7213_v17  ;;  %v2322_v51 = vand.u32 2147483648, %v7213_v17 }
 0x249   :  { %v5176_v48 = vclamps-f32 %v2285_v36, 1.0  ;;  %v2384_v42 = vadd.f32 0.014752088, %v2383_v63  ;;  %v7251_v16 = vmin.f32 %v2568_v18, 16.0  ;;  %v2347_v15 = vmul.f32 %v2346_v7, %v7035_v40 }
 0x24a   :  { %v3063_v47 = vmul.f32 %v3062_v19, %v7237_v20  ;;  %v2314_v33 = vmul.f32 %v5403_v30, %v2313_v58  ;;  %vm2317_vm4 = vweird.f32 %v5403_v30  ;;  %v2300_v6 = vmul.f32 %v7188_v31, %v6906_v53 }
 0x24b   :  { %v3372_v25 = vadd.f32 1.0, %v5176_v48  ;;  %v2385_v52 = vmul.f32 %v2384_v42, %v7076_v1  ;;  %v2417_v14 = vadd.f32 0.18741608, %v2416_v28  ;;  %v2491_v11 = vadd.f32 0.00028619796, %v2490_v12  ;;  %v1967_v28 = vpop.f32.mrf.mxu0 }
 0x24c   :  { %v2348_v3 = vadd.f32 0.4994258, %v2347_v15  ;;  %v2531_v49 = vadd.f32 0.00028619796, %v2530_v23  ;;  %v2315_v34 = vadd.f32 %v5403_v30, %v2314_v33  ;;  %vm2316_vm5 = vweird.f32 %v7213_v17 }
 0x24d   :  { %v3404_v2 = vmul.f32 %v3372_v25, %v7162_v45  ;;  %vm2318_vm6 = vmor %vm2316_vm5, %vm2317_vm4  ;;  %v2323_v0 = vor.u32 1.1754944e-38, %v2322_v51  ;;  %v2570_v59 = vmul.f32 2.1237322e-06, %v7251_v16  ;;  %v3064_v63 = vadd.f32 0.014752088, %v3063_v47 }
 0x24e   :  { %v2349_v24 = vmul.f32 %v2348_v3, %v7035_v40  ;;  %v2456_v18 = vmul.f32 %v2455_v27, %v7149_v62  ;;  %v2319_v53 = vsel %vm2318_vm6, %v5403_v30, %v2315_v34  ;;  %vm2321_vm7 = vcmp.eq.f32.partialorder %v2320_v4, 8.507059e+37  ;;  %v2003_v34 = vpop.f32.mrf.mxu3 }
 0x24f   :  { %3478 = vmatmul.f32.gmra.mxu1 %v3404_v2  ;;  %v2386_v31 = vadd.f32 0.112945676, %v2385_v52  ;;  %v2338_v10 = vmul.f32 %v2337_v50, %v7035_v40  ;;  %v2492_v45 = vmul.f32 %v2491_v11, %v7232_v56  ;;  %v2324_v12 = vsel %vm2321_vm7, %v2323_v0, %v2319_v53 }
 0x250   :  { %v2532_v17 = vmul.f32 %v2531_v49, %v7235_v32  ;;  %v2325_v36 = vmul.f32 %v2324_v12, %v2300_v6  ;;  %v7266_v13 = vadd.f32 1.0, %v2349_v24  ;;  %v2378_v23 = vmul.f32 %v2377_v41, %v7076_v1 }
 0x251   :  { %v2418_v19 = vmul.f32 %v2417_v14, %v7127_v35  ;;  %v2571_v27 = vadd.f32 0.00028619796, %v2570_v59  ;;  %v3065_v30 = vmul.f32 %v3064_v63, %v7237_v20  ;;  %v2457_v7 = vadd.f32 0.18741608, %v2456_v18 }
 0x252   :  { %v5177_v48 = vclamps-f32 %v2325_v36, 1.0  ;;  %5404 = vrcp.f32 %v7266_v13  ;;  %v2387_v40 = vmul.f32 %v2386_v31, %v7076_v1  ;;  %v2029_v50 = vmul.f32 0.5, %v6888_v44 }
 0x253   :  { %v2339_v58 = vadd.f32 1.1283791, %v2338_v10  ;;  %v2493_v4 = vadd.f32 0.0036580483, %v2492_v45  ;;  %v7275_v42 = vadd.f32 %v1967_v28, %v6547_v38  ;;  %v7278_v41 = vmul.f32 0.5, %v6978_v21 }
 0x254   :  { %v2533_v51 = vadd.f32 0.0036580483, %v2532_v17  ;;  %v3373_v47 = vadd.f32 1.0, %v5177_v48  ;;  %v3050_v15 = vmul.f32 2.1237322e-06, %v7237_v20  ;;  %v7282_v25 = vmul.f32 0.5, %v7028_v9 }
 0x255   :  { %v2379_v33 = vadd.f32 1.1283791, %v2378_v23  ;;  %v2572_v52 = vmul.f32 %v2571_v27, %v7251_v16  ;;  %v3066_v6 = vadd.f32 0.112945676, %v3065_v30  ;;  %v2419_v44 = vadd.f32 1.1283791, %v2418_v19 }
 0x256   :  { %v2458_v14 = vmul.f32 %v2457_v7, %v7149_v62  ;;  %v3405_v11 = vmul.f32 %v3373_v47, %v2029_v50  ;;  %v2388_v3 = vadd.f32 0.4994258, %v2387_v40  ;;  %v2340_v2 = vmul.f32 %v2339_v58, %v6999_v54 }
 0x257   :  { %v2494_v21 = vmul.f32 %v2493_v4, %v7232_v56  ;;  %v7289_v49 = vmul.f32 0.70710677, %v7275_v42  ;;  %v2421_v9 = vmul.f32 3.8918573e-05, %v7127_v35  ;;  %v7293_v59 = vmul.f32 0.5, %v7079_v37 }
 0x258   :  { %v5405_v0 = vpop.eup %5404  ;;  %v2534_v63 = vmul.f32 %v2533_v51, %v7235_v32  ;;  %3481 = vmatmul.f32.gmra.mxu1 %v3405_v11  ;;  %v3051_v24 = vadd.f32 0.00028619796, %v3050_v15  ;;  %v2389_v18 = vmul.f32 %v2388_v3, %v7076_v1  ;;  %v7298_v54 = vmul.f32 %v2379_v33, %v7045_v8 }
 0x259   :  { %v7301_v53 = vmul.f32 0.5, %v7119_v55  ;;  %v2573_v31 = vadd.f32 0.0036580483, %v2572_v52  ;;  %v3067_v10 = vmul.f32 %v3066_v6, %v7237_v20  ;;  %v7305_v45 = vmul.f32 %v2419_v44, %v7093_v29  ;;  %v1970_v52 = vpop.f32.mrf.mxu0 }
 0x25a   :  { %v2459_v37 = vadd.f32 1.1283791, %v2458_v14  ;;  %v2352_v12 = vmul.f32 %v5405_v0, %v7266_v13  ;;  %v7309_v17 = vadd.f32 %v2003_v34, %v6547_v38  ;;  %v2495_v36 = vadd.f32 0.05243302, %v2494_v21 }
 0x25b   :  { %v2608_v8 = vmul.f32 %v7289_v49, %v7289_v49  ;;  %v7313_v1 = vadd.f32 1.0, %v2389_v18  ;;  %v2422_v55 = vadd.f32 0.001143296, %v2421_v9  ;;  %v7316_v28 = vmul.f32 0.5, %v7178_v43 }
 0x25c   :  { %v2535_v23 = vadd.f32 0.05243302, %v2534_v63  ;;  %v3052_v29 = vmul.f32 %v3051_v24, %v7237_v20  ;;  %v2353_v19 = vsub.f32 1.0, %v2352_v12  ;;  %v2574_v27 = vmul.f32 %v2573_v31, %v7251_v16 }
 0x25d   :  { %v3068_v30 = vadd.f32 0.4994258, %v3067_v10  ;;  %v2362_v7 = vand.u32 2147483648, %v7266_v13  ;;  %5406 = vrcp.f32 %v7313_v1  ;;  %vm2357_vm8 = vweird.f32 %v5405_v0 }
 0x25e   :  { %v2354_v48 = vmul.f32 %v5405_v0, %v2353_v19  ;;  %v2360_v40 = vand.u32 2147483647, %v7266_v13  ;;  %v7324_v50 = vmul.f32 0.70710677, %v7309_v17  ;;  %v7327_v43 = vmul.f32 %v2459_v37, %v7131_v46 }
 0x25f   :  { %v2496_v58 = vmul.f32 %v2495_v36, %v7232_v56  ;;  %v7330_v4 = vmin.f32 %v2608_v8, 16.0  ;;  %v2423_v51 = vmul.f32 %v2422_v55, %v7127_v35  ;;  %v2536_v47 = vmul.f32 %v2535_v23, %v7235_v32 }
 0x260   :  { %v3053_v15 = vadd.f32 0.0036580483, %v3052_v29  ;;  %v2355_v33 = vadd.f32 %v5405_v0, %v2354_v48  ;;  %vm2356_vm9 = vweird.f32 %v7266_v13  ;;  %v3069_v6 = vmul.f32 %v3068_v30, %v7237_v20 }
 0x261   :  { %vm2358_vm10 = vmor %vm2356_vm9, %vm2357_vm8  ;;  %v2363_v44 = vor.u32 1.1754944e-38, %v2362_v7  ;;  %v2424_v14 = vadd.f32 0.014752088, %v2423_v51  ;;  %v2461_v46 = vmul.f32 3.8918573e-05, %v7149_v62  ;;  %vm2361_vm11 = vcmp.eq.f32.partialorder %v2360_v40, 8.507059e+37 }
 0x262   :  { %v2575_v11 = vadd.f32 0.05243302, %v2574_v27  ;;  %v2359_v3 = vsel %vm2358_vm10, %v5405_v0, %v2355_v33  ;;  %v3088_v21 = vmul.f32 %v7324_v50, %v7324_v50  ;;  %v2610_v63 = vmul.f32 2.1237322e-06, %v7330_v4 }
 0x263   :  { %v5407_v34 = vpop.eup %5406  ;;  %v2364_v9 = vsel %vm2361_vm11, %v2363_v44, %v2359_v3  ;;  %v7341_v13 = vadd.f32 %v1970_v52, %v6547_v38  ;;  %v2425_v24 = vmul.f32 %v2424_v14, %v7127_v35  ;;  %v2497_v18 = vadd.f32 0.18741608, %v2496_v58  ;;  %v1973_v3 = vpop.f32.mrf.mxu0 }
 0x264   :  { %v2537_v31 = vadd.f32 0.18741608, %v2536_v47  ;;  %v2365_v10 = vmul.f32 %v2364_v9, %v2340_v2  ;;  %v2392_v37 = vmul.f32 %v5407_v34, %v7313_v1  ;;  %v3054_v0 = vmul.f32 %v3053_v15, %v7237_v20 }
 0x265   :  { %v7346_v12 = vadd.f32 1.0, %v3069_v6  ;;  %v2426_v36 = vadd.f32 0.112945676, %v2425_v24  ;;  %v2462_v8 = vadd.f32 0.001143296, %v2461_v46  ;;  %v2576_v55 = vmul.f32 %v2575_v11, %v7251_v16 }
 0x266   :  { %v5178_v23 = vclamps-f32 %v2365_v10, 1.0  ;;  %v7349_v29 = vmin.f32 %v3088_v21, 16.0  ;;  %v2393_v19 = vsub.f32 1.0, %v2392_v37  ;;  %v2611_v27 = vadd.f32 0.00028619796, %v2610_v63 }
 0x267   :  { %v2402_v30 = vand.u32 2147483648, %v7313_v1  ;;  %v7353_v7 = vmul.f32 0.70710677, %v7341_v13  ;;  %v2427_v2 = vmul.f32 %v2426_v36, %v7127_v35  ;;  %vm2397_vm12 = vweird.f32 %v5407_v34 }
 0x268   :  { %v3374_v48 = vadd.f32 1.0, %v5178_v23  ;;  %v2394_v40 = vmul.f32 %v5407_v34, %v2393_v19  ;;  %v2400_v58 = vand.u32 2147483647, %v7313_v1  ;;  %v3055_v51 = vadd.f32 0.05243302, %v3054_v0 }
 0x269   :  { %5408 = vrcp.f32 %v7346_v12  ;;  %v2428_v47 = vadd.f32 0.4994258, %v2427_v2  ;;  %v2463_v15 = vmul.f32 %v2462_v8, %v7149_v62  ;;  %v3090_v52 = vmul.f32 2.1237322e-06, %v7349_v29 }
 0x26a   :  { %v3406_v33 = vmul.f32 %v3374_v48, %v7278_v41  ;;  %v2395_v6 = vadd.f32 %v5407_v34, %v2394_v40  ;;  %vm2396_vm13 = vweird.f32 %v7313_v1  ;;  %v2498_v44 = vmul.f32 %v2497_v18, %v7232_v56 }
 0x26b   :  { %v2612_v14 = vmul.f32 %v2611_v27, %v7330_v4  ;;  %vm2398_vm14 = vmor %vm2396_vm13, %vm2397_vm12  ;;  %v2403_v46 = vor.u32 1.1754944e-38, %v2402_v30  ;;  %v2429_v11 = vmul.f32 %v2428_v47, %v7127_v35  ;;  %v2538_v21 = vmul.f32 %v2537_v31, %v7235_v32 }
 0x26c   :  { %3484 = vmatmul.f32.gmra.mxu1 %v3406_v33  ;;  %v2399_v9 = vsel %vm2398_vm14, %v5407_v34, %v2395_v6  ;;  %vm2401_vm15 = vcmp.eq.f32.partialorder %v2400_v58, 8.507059e+37  ;;  %v2648_v41 = vmul.f32 %v7353_v7, %v7353_v7  ;;  %v2577_v63 = vadd.f32 0.18741608, %v2576_v55 }
 0x26d   :  { %v2404_v24 = vsel %vm2401_vm15, %v2403_v46, %v2399_v9  ;;  %v7368_v1 = vadd.f32 1.0, %v2429_v11  ;;  %v2464_v18 = vadd.f32 0.014752088, %v2463_v15  ;;  %v3056_v10 = vmul.f32 %v3055_v51, %v7237_v20  ;;  %v2006_v51 = vpop.f32.mrf.mxu3 }
 0x26e   :  { %v3091_v37 = vadd.f32 0.00028619796, %v3090_v52  ;;  %v2405_v0 = vmul.f32 %v2404_v24, %v7298_v54  ;;  %v7373_v35 = vadd.f32 %v1973_v3, %v6547_v38  ;;  %v7378_v34 = vmul.f32 0.5, %v7185_v26 }
 0x26f   :  { %v7375_v31 = vpop.eup %5408  ;;  %v7381_v36 = vmul.f32 0.5, %v7216_v5  ;;  %v2613_v8 = vadd.f32 0.0036580483, %v2612_v14  ;;  %5410 = vrcp.f32 %v7368_v1  ;;  %v2499_v55 = vadd.f32 1.1283791, %v2498_v44 }
 0x270   :  { %v2539_v23 = vadd.f32 1.1283791, %v2538_v21  ;;  %v5179_v19 = vclamps-f32 %v2405_v0, 1.0  ;;  %v7384_v27 = vmin.f32 %v2648_v41, 16.0  ;;  %v2578_v54 = vmul.f32 %v2577_v63, %v7251_v16 }
 0x271   :  { %v7388_v30 = vmul.f32 0.5, %v7203_v22  ;;  %v2465_v2 = vmul.f32 %v2464_v18, %v7149_v62  ;;  %v2501_v26 = vmul.f32 3.8918573e-05, %v7232_v56  ;;  %v3057_v48 = vadd.f32 0.18741608, %v3056_v10 }
 0x272   :  { %v3092_v5 = vmul.f32 %v3091_v37, %v7349_v29  ;;  %v3375_v40 = vadd.f32 1.0, %v5179_v19  ;;  %v7394_v58 = vmul.f32 0.70710677, %v7373_v35  ;;  %v3072_v47 = vmul.f32 %v7375_v31, %v7346_v12 }
 0x273   :  { %v2614_v15 = vmul.f32 %v2613_v8, %v7330_v4  ;;  %v2466_v33 = vadd.f32 0.112945676, %v2465_v2  ;;  %v2502_v22 = vadd.f32 0.001143296, %v2501_v26  ;;  %v7400_v52 = vmul.f32 %v2499_v55, %v7196_v57 }
 0x274   :  { %v7403_v6 = vmul.f32 %v2539_v23, %v7199_v39  ;;  %v3407_v44 = vmul.f32 %v3375_v40, %v7282_v25  ;;  %v2650_v14 = vmul.f32 2.1237322e-06, %v7384_v27  ;;  %v7408_v11 = vmul.f32 0.5, %v7275_v42 }
 0x275   :  { %v5411_v46 = vpop.eup %5410  ;;  %v7411_v3 = vadd.f32 %v2006_v51, %v6547_v38  ;;  %v2467_v21 = vmul.f32 %v2466_v33, %v7149_v62  ;;  %v2503_v9 = vmul.f32 %v2502_v22, %v7232_v56  ;;  %v7415_v57 = vadd.f32 1.1283791, %v2578_v54 }
 0x276   :  { %v3093_v41 = vadd.f32 0.0036580483, %v3092_v5  ;;  %3487 = vmatmul.f32.gmra.mxu1 %v3407_v44  ;;  %v2432_v39 = vmul.f32 %v5411_v46, %v7368_v1  ;;  %v2688_v25 = vmul.f32 %v7394_v58, %v7394_v58  ;;  %v3058_v63 = vmul.f32 %v3057_v48, %v7237_v20 }
 0x277   :  { %v3073_v42 = vsub.f32 1.0, %v3072_v47  ;;  %v2615_v24 = vadd.f32 0.05243302, %v2614_v15  ;;  %v2468_v18 = vadd.f32 0.4994258, %v2467_v21  ;;  %v7422_v10 = vmul.f32 0.5, %v7309_v17  ;;  %v1976_v21 = vpop.f32.mrf.mxu0 }
 0x278   :  { %v2651_v37 = vadd.f32 0.00028619796, %v2650_v14  ;;  %v2433_v0 = vsub.f32 1.0, %v2432_v39  ;;  %v2440_v8 = vand.u32 2147483647, %v7368_v1  ;;  %v2442_v55 = vand.u32 2147483648, %v7368_v1 }
 0x279   :  { %v7427_v23 = vmul.f32 0.70710677, %v7411_v3  ;;  %v2469_v19 = vmul.f32 %v2468_v18, %v7149_v62  ;;  %v2504_v54 = vadd.f32 0.014752088, %v2503_v9  ;;  %vm2437_vm0 = vweird.f32 %v5411_v46  ;;  %v2009_v18 = vpop.f32.mrf.mxu3 }
 0x27a   :  { %v2434_v2 = vmul.f32 %v5411_v46, %v2433_v0  ;;  %v7430_v20 = vmin.f32 %v2688_v25, 16.0  ;;  %v2541_v26 = vmul.f32 3.8918573e-05, %v7235_v32  ;;  %v7433_v17 = vadd.f32 1.1283791, %v3058_v63 }
 0x27b   :  { %v3074_v48 = vmul.f32 %v7375_v31, %v3073_v42  ;;  %v3094_v5 = vmul.f32 %v3093_v41, %v7349_v29  ;;  %v7437_v40 = vadd.f32 1.0, %v2469_v19  ;;  %v2616_v51 = vmul.f32 %v2615_v24, %v7330_v4 }
 0x27c   :  { %v2652_v47 = vmul.f32 %v2651_v37, %v7384_v27  ;;  %v2435_v62 = vadd.f32 %v5411_v46, %v2434_v2  ;;  %vm2436_vm1 = vweird.f32 %v7368_v1  ;;  %v2443_v15 = vor.u32 1.1754944e-38, %v2442_v55 }
 0x27d   :  { %vm2438_vm2 = vmor %vm2436_vm1, %vm2437_vm0  ;;  %v3128_v33 = vmul.f32 %v7427_v23, %v7427_v23  ;;  %5412 = vrcp.f32 %v7437_v40  ;;  %v2505_v22 = vmul.f32 %v2504_v54, %v7232_v56  ;;  %vm2441_vm3 = vcmp.eq.f32.partialorder %v2440_v8, 8.507059e+37 }
 0x27e   :  { %v2439_v44 = vsel %vm2438_vm2, %v5411_v46, %v2435_v62  ;;  %v2690_v14 = vmul.f32 2.1237322e-06, %v7430_v20  ;;  %v2542_v9 = vadd.f32 0.001143296, %v2541_v26  ;;  %v3080_v41 = vand.u32 2147483647, %v7346_v12 }
 0x27f   :  { %v3082_v39 = vand.u32 2147483648, %v7346_v12  ;;  %v3095_v1 = vadd.f32 0.05243302, %v3094_v5  ;;  %v2444_v25 = vsel %vm2441_vm3, %v2443_v15, %v2439_v44  ;;  %v3075_v63 = vadd.f32 %v7375_v31, %v3074_v48 }
 0x280   :  { %vm3077_vm4 = vweird.f32 %v7375_v31  ;;  %v2617_v42 = vadd.f32 0.18741608, %v2616_v51  ;;  %v2445_v24 = vmul.f32 %v2444_v25, %v7305_v45  ;;  %v2653_v46 = vadd.f32 0.0036580483, %v2652_v47 }
 0x281   :  { %v7452_v37 = vmin.f32 %v3128_v33, 16.0  ;;  %v7455_v0 = vadd.f32 %v1976_v21, %v6547_v38  ;;  %v2506_v8 = vadd.f32 0.112945676, %v2505_v22  ;;  %vm3076_vm5 = vweird.f32 %v7346_v12 }
 0x282   :  { %v5180_v55 = vclamps-f32 %v2445_v24, 1.0  ;;  %v2691_v19 = vadd.f32 0.00028619796, %v2690_v14  ;;  %v2543_v54 = vmul.f32 %v2542_v9, %v7235_v32  ;;  %vm7459_vm6 = vmor %vm3076_vm5, %vm3077_vm4  ;;  %vm7463_vm7 = vcmp.eq.f32.partialorder %v3080_v41, 8.507059e+37 }
 0x283   :  { %v5413_v2 = vpop.eup %5412  ;;  %v3083_v48 = vor.u32 1.1754944e-38, %v3082_v39  ;;  %v3096_v5 = vmul.f32 %v3095_v1, %v7349_v29  ;;  %v7469_v51 = vadd.f32 %v2009_v18, %v6547_v38  ;;  %v2507_v12 = vmul.f32 %v2506_v8, %v7232_v56 }
 0x284   :  { %v3079_v47 = vsel %vm7459_vm6, %v7375_v31, %v3075_v63  ;;  %v2618_v62 = vmul.f32 %v2617_v42, %v7330_v4  ;;  %v3376_v15 = vadd.f32 1.0, %v5180_v55  ;;  %v2472_v33 = vmul.f32 %v5413_v2, %v7437_v40 }
 0x285   :  { %v2654_v22 = vmul.f32 %v2653_v46, %v7384_v27  ;;  %v3130_v44 = vmul.f32 2.1237322e-06, %v7452_v37  ;;  %v7480_v14 = vmul.f32 0.70710677, %v7455_v0  ;;  %v2508_v21 = vadd.f32 0.4994258, %v2507_v12 }
 0x286   :  { %v3408_v9 = vmul.f32 %v3376_v15, %v7293_v59  ;;  %v2692_v41 = vmul.f32 %v2691_v19, %v7430_v20  ;;  %v2473_v39 = vsub.f32 1.0, %v2472_v33  ;;  %v2544_v1 = vadd.f32 0.014752088, %v2543_v54 }
 0x287   :  { %v2482_v31 = vand.u32 2147483648, %v7437_v40  ;;  %v7486_v25 = vmul.f32 0.70710677, %v7469_v51  ;;  %v2509_v63 = vmul.f32 %v2508_v21, %v7232_v56  ;;  %v2581_v42 = vmul.f32 3.8918573e-05, %v7251_v16 }
 0x288   :  { %v3097_v24 = vadd.f32 0.18741608, %v3096_v5  ;;  %3490 = vmatmul.f32.gmra.mxu1 %v3408_v9  ;;  %v2474_v18 = vmul.f32 %v5413_v2, %v2473_v39  ;;  %vm2477_vm8 = vweird.f32 %v5413_v2  ;;  %v2480_v46 = vand.u32 2147483647, %v7437_v40 }
 0x289   :  { %v2655_v59 = vadd.f32 0.05243302, %v2654_v22  ;;  %v3131_v8 = vadd.f32 0.00028619796, %v3130_v44  ;;  %v2728_v55 = vmul.f32 %v7480_v14, %v7480_v14  ;;  %v7493_v19 = vadd.f32 1.0, %v2509_v63 }
 0x28a   :  { %v2693_v54 = vadd.f32 0.0036580483, %v2692_v41  ;;  %v2475_v26 = vadd.f32 %v5413_v2, %v2474_v18  ;;  %vm2476_vm9 = vweird.f32 %v7437_v40  ;;  %v2545_v56 = vmul.f32 %v2544_v1, %v7235_v32 }
 0x28b   :  { %vm2478_vm10 = vmor %vm2476_vm9, %vm2477_vm8  ;;  %v2483_v5 = vor.u32 1.1754944e-38, %v2482_v31  ;;  %v3168_v12 = vmul.f32 %v7486_v25, %v7486_v25  ;;  %5414 = vrcp.f32 %v7493_v19  ;;  %v2582_v15 = vadd.f32 0.001143296, %v2581_v42 }
 0x28c   :  { %v7502_v33 = vmul.f32 %v7415_v57, %v7228_v61  ;;  %v3084_v22 = vsel %vm7463_vm7, %v3083_v48, %v3079_v47  ;;  %v2479_v44 = vsel %vm2478_vm10, %v5413_v2, %v2475_v26  ;;  %vm2481_vm11 = vcmp.eq.f32.partialorder %v2480_v46, 8.507059e+37 }
 0x28d   :  { %v2619_v40 = vadd.f32 1.1283791, %v2618_v62  ;;  %v3098_v21 = vmul.f32 %v3097_v24, %v7349_v29  ;;  %v2484_v9 = vsel %vm2481_vm11, %v2483_v5, %v2479_v44  ;;  %v7507_v41 = vmin.f32 %v2728_v55, 16.0 }
 0x28e   :  { %v3060_v39 = vmul.f32 %v7433_v17, %v7221_v60  ;;  %v2656_v1 = vmul.f32 %v2655_v59, %v7384_v27  ;;  %v2485_v31 = vmul.f32 %v2484_v9, %v7327_v43  ;;  %v2546_v61 = vadd.f32 0.112945676, %v2545_v56  ;;  %v1979_v60 = vpop.f32.mrf.mxu0 }
 0x28f   :  { %v2694_v57 = vmul.f32 %v2693_v54, %v7430_v20  ;;  %v3132_v45 = vmul.f32 %v3131_v8, %v7452_v37  ;;  %v7515_v2 = vmin.f32 %v3168_v12, 16.0  ;;  %v2583_v48 = vmul.f32 %v2582_v15, %v7251_v16 }
 0x290   :  { %v7518_v47 = vmul.f32 %v3084_v22, %v3060_v39  ;;  %v7521_v62 = vmul.f32 0.5, %v7341_v13  ;;  %v5181_v63 = vclamps-f32 %v2485_v31, 1.0  ;;  %v2547_v17 = vmul.f32 %v2546_v61, %v7235_v32 }
 0x291   :  { %v5415_v42 = vpop.eup %5414  ;;  %v7525_v43 = vmul.f32 %v2619_v40, %v7289_v49  ;;  %v3099_v24 = vadd.f32 1.1283791, %v3098_v21  ;;  %v2730_v18 = vmul.f32 2.1237322e-06, %v7507_v41  ;;  %v2584_v46 = vadd.f32 0.014752088, %v2583_v48 }
 0x292   :  { %v2657_v59 = vadd.f32 0.18741608, %v2656_v1  ;;  %v3377_v8 = vadd.f32 1.0, %v5181_v63  ;;  %v2512_v55 = vmul.f32 %v5415_v42, %v7493_v19  ;;  %v2548_v54 = vadd.f32 0.4994258, %v2547_v17 }
 0x293   :  { %v2695_v26 = vadd.f32 0.05243302, %v2694_v57  ;;  %v3133_v13 = vadd.f32 0.0036580483, %v3132_v45  ;;  %v3170_v56 = vmul.f32 2.1237322e-06, %v7515_v2  ;;  %v7531_v5 = vadd.f32 %v1979_v60, %v6547_v38 }
 0x294   :  { %v3409_v12 = vmul.f32 %v3377_v8, %v7301_v53  ;;  %v2513_v49 = vsub.f32 1.0, %v2512_v55  ;;  %v2549_v15 = vmul.f32 %v2548_v54, %v7235_v32  ;;  %v2585_v22 = vmul.f32 %v2584_v46, %v7251_v16 }
 0x295   :  { %v7537_v44 = vmul.f32 0.5, %v7373_v35  ;;  %v2731_v40 = vadd.f32 0.00028619796, %v2730_v18  ;;  %v2520_v21 = vand.u32 2147483647, %v7493_v19  ;;  %v2522_v9 = vand.u32 2147483648, %v7493_v19 }
 0x296   :  { %3493 = vmatmul.f32.gmra.mxu1 %v3409_v12  ;;  %v2514_v39 = vmul.f32 %v5415_v42, %v2513_v49  ;;  %vm2517_vm12 = vweird.f32 %v5415_v42  ;;  %v7541_v1 = vadd.f32 1.0, %v2549_v15  ;;  %v2586_v31 = vadd.f32 0.112945676, %v2585_v22  ;;  %v1982_v46 = vpop.f32.mrf.mxu0 }
 0x297   :  { %v2696_v53 = vmul.f32 %v2695_v26, %v7430_v20  ;;  %v7545_v32 = vmul.f32 0.5, %v7411_v3  ;;  %v3134_v61 = vmul.f32 %v3133_v13, %v7452_v37  ;;  %v3171_v35 = vadd.f32 0.00028619796, %v3170_v56 }
 0x298   :  { %v2515_v57 = vadd.f32 %v5415_v42, %v2514_v39  ;;  %vm2516_vm13 = vweird.f32 %v7493_v19  ;;  %v7550_v45 = vmul.f32 0.70710677, %v7531_v5  ;;  %5416 = vrcp.f32 %v7541_v1 }
 0x299   :  { %v2732_v48 = vmul.f32 %v2731_v40, %v7507_v41  ;;  %vm2518_vm14 = vmor %vm2516_vm13, %vm2517_vm12  ;;  %v2523_v63 = vor.u32 1.1754944e-38, %v2522_v9  ;;  %v2587_v60 = vmul.f32 %v2586_v31, %v7251_v16  ;;  %v2621_v3 = vmul.f32 3.8918573e-05, %v7330_v4 }
 0x29a   :  { %v2658_v17 = vmul.f32 %v2657_v59, %v7384_v27  ;;  %v2519_v18 = vsel %vm2518_vm14, %v5415_v42, %v2515_v57  ;;  %vm2521_vm15 = vcmp.eq.f32.partialorder %v2520_v21, 8.507059e+37  ;;  %v3101_v19 = vmul.f32 3.8918573e-05, %v7349_v29 }
 0x29b   :  { %v2697_v8 = vadd.f32 0.18741608, %v2696_v53  ;;  %v3135_v55 = vadd.f32 0.05243302, %v3134_v61  ;;  %v3172_v54 = vmul.f32 %v3171_v35, %v7515_v2  ;;  %v2524_v26 = vsel %vm2521_vm15, %v2523_v63, %v2519_v18 }
 0x29c   :  { %v2525_v13 = vmul.f32 %v2524_v26, %v7400_v52  ;;  %v2768_v56 = vmul.f32 %v7550_v45, %v7550_v45  ;;  %v2588_v12 = vadd.f32 0.4994258, %v2587_v60  ;;  %v5196_v49 = vclamps-f32 %v7518_v47, 1.0 }
 0x29d   :  { %v7564_v59 = vmul.f32 %v3099_v24, %v7324_v50  ;;  %v2733_v42 = vadd.f32 0.0036580483, %v2732_v48  ;;  %v7567_v15 = vadd.f32 %v1982_v46, %v6547_v38  ;;  %v2622_v22 = vadd.f32 0.001143296, %v2621_v3 }
 0x29e   :  { %v5417_v40 = vpop.eup %5416  ;;  %v7569_v21 = vadd.f32 1.1283791, %v2658_v17  ;;  %v5182_v9 = vclamps-f32 %v2525_v13, 1.0  ;;  %v2589_v52 = vmul.f32 %v2588_v12, %v7251_v16  ;;  %v3102_v39 = vadd.f32 0.001143296, %v3101_v19 }
 0x29f   :  { %v7573_v31 = vmul.f32 %v2697_v8, %v7430_v20  ;;  %v3136_v47 = vmul.f32 %v3135_v55, %v7452_v37  ;;  %v3173_v53 = vadd.f32 0.0036580483, %v3172_v54  ;;  %v2552_v50 = vmul.f32 %v5417_v40, %v7541_v1  ;;  %v2012_v55 = vpop.f32.mrf.mxu3 }
 0x2a0   :  { %v3378_v24 = vadd.f32 1.0, %v5182_v9  ;;  %v7577_v61 = vmin.f32 %v2768_v56, 16.0  ;;  %v7579_v35 = vadd.f32 1.0, %v2589_v52  ;;  %v3392_v57 = vadd.f32 1.0, %v5196_v49  ;;  %v1985_v49 = vpop.f32.mrf.mxu0 }
 0x2a1   :  { %v2734_v48 = vmul.f32 %v2733_v42, %v7507_v41  ;;  %v2553_v63 = vsub.f32 1.0, %v2552_v50  ;;  %v7583_v16 = vmul.f32 0.70710677, %v7567_v15  ;;  %v2623_v60 = vmul.f32 %v2622_v22, %v7330_v4 }
 0x2a2   :  { %v3410_v3 = vmul.f32 %v3378_v24, %v7316_v28  ;;  %v2562_v17 = vand.u32 2147483648, %v7541_v1  ;;  %5418 = vrcp.f32 %v7579_v35  ;;  %v3103_v18 = vmul.f32 %v3102_v39, %v7349_v29 }
 0x2a3   :  { %v3174_v46 = vmul.f32 %v3173_v53, %v7515_v2  ;;  %v2554_v19 = vmul.f32 %v5417_v40, %v2553_v63  ;;  %vm2557_vm0 = vweird.f32 %v5417_v40  ;;  %v2560_v8 = vand.u32 2147483647, %v7541_v1 }
 0x2a4   :  { %v3137_v54 = vadd.f32 0.18741608, %v3136_v47  ;;  %3496 = vmatmul.f32.gmra.mxu1 %v3410_v3  ;;  %v2770_v26 = vmul.f32 2.1237322e-06, %v7577_v61  ;;  %v3424_v13 = vmul.f32 %v3392_v57, %v7388_v30  ;;  %v2661_v28 = vmul.f32 3.8918573e-05, %v7384_v27 }
 0x2a5   :  { %v2555_v56 = vadd.f32 %v5417_v40, %v2554_v19  ;;  %vm2556_vm1 = vweird.f32 %v7541_v1  ;;  %v2808_v12 = vmul.f32 %v7583_v16, %v7583_v16  ;;  %v2624_v42 = vadd.f32 0.014752088, %v2623_v60 }
 0x2a6   :  { %v2735_v22 = vadd.f32 0.05243302, %v2734_v48  ;;  %vm2558_vm2 = vmor %vm2556_vm1, %vm2557_vm0  ;;  %v2563_v9 = vor.u32 1.1754944e-38, %v2562_v17  ;;  %v7599_v52 = vadd.f32 %v2012_v55, %v6547_v38  ;;  %3538 = vmatmul.f32.vlgmr.msrb.gmra.mxu3 %v3424_v13  ;;  %v3104_v39 = vadd.f32 0.014752088, %v3103_v18 }
 0x2a7   :  { %v3175_v47 = vadd.f32 0.05243302, %v3174_v46  ;;  %v2559_v30 = vsel %vm2558_vm2, %v5417_v40, %v2555_v56  ;;  %vm2561_vm3 = vcmp.eq.f32.partialorder %v2560_v8, 8.507059e+37  ;;  %v2625_v53 = vmul.f32 %v2624_v42, %v7330_v4 }
 0x2a8   :  { %v5419_v50 = vpop.eup %5418  ;;  %v3138_v1 = vmul.f32 %v3137_v54, %v7452_v37  ;;  %v2771_v24 = vadd.f32 0.00028619796, %v2770_v26  ;;  %v2564_v57 = vsel %vm2561_vm3, %v2563_v9, %v2559_v30  ;;  %v3105_v63 = vmul.f32 %v3104_v39, %v7349_v29 }
 0x2a9   :  { %v2565_v48 = vmul.f32 %v2564_v57, %v7403_v6  ;;  %v7605_v60 = vmin.f32 %v2808_v12, 16.0  ;;  %v2592_v3 = vmul.f32 %v5419_v50, %v7579_v35  ;;  %v2662_v17 = vadd.f32 0.001143296, %v2661_v28  ;;  %v1988_v57 = vpop.f32.mrf.mxu0 }
 0x2aa   :  { %v2736_v18 = vmul.f32 %v2735_v22, %v7507_v41  ;;  %v7610_v40 = vmul.f32 0.70710677, %v7599_v52  ;;  %v2626_v46 = vadd.f32 0.112945676, %v2625_v53  ;;  %v3106_v19 = vadd.f32 0.112945676, %v3105_v63 }
 0x2ab   :  { %v3176_v8 = vmul.f32 %v3175_v47, %v7515_v2  ;;  %v5183_v55 = vclamps-f32 %v2565_v48, 1.0  ;;  %v2593_v54 = vsub.f32 1.0, %v2592_v3  ;;  %v7614_v26 = vadd.f32 %v1985_v49, %v6547_v38 }
 0x2ac   :  { %v2600_v6 = vand.u32 2147483647, %v7579_v35  ;;  %v2602_v13 = vand.u32 2147483648, %v7579_v35  ;;  %v2627_v28 = vmul.f32 %v2626_v46, %v7330_v4  ;;  %v3107_v56 = vmul.f32 %v3106_v19, %v7349_v29 }
 0x2ad   :  { %v3379_v12 = vadd.f32 1.0, %v5183_v55  ;;  %v2594_v42 = vmul.f32 %v5419_v50, %v2593_v54  ;;  %vm2597_vm4 = vweird.f32 %v5419_v50  ;;  %v2663_v22 = vmul.f32 %v2662_v17, %v7384_v27 }
 0x2ae   :  { %v2772_v9 = vmul.f32 %v2771_v24, %v7577_v61  ;;  %v2810_v39 = vmul.f32 2.1237322e-06, %v7605_v60  ;;  %v3208_v49 = vmul.f32 %v7610_v40, %v7610_v40  ;;  %v2628_v47 = vadd.f32 0.4994258, %v2627_v28 }
 0x2af   :  { %v3411_v30 = vmul.f32 %v3379_v12, %v7378_v34  ;;  %v2595_v53 = vadd.f32 %v5419_v50, %v2594_v42  ;;  %vm2596_vm5 = vweird.f32 %v7579_v35  ;;  %v3108_v63 = vadd.f32 0.4994258, %v3107_v56 }
 0x2b0   :  { %v2737_v48 = vadd.f32 0.18741608, %v2736_v18  ;;  %vm2598_vm6 = vmor %vm2596_vm5, %vm2597_vm4  ;;  %v2603_v3 = vor.u32 1.1754944e-38, %v2602_v13  ;;  %v7628_v17 = vmul.f32 0.70710677, %v7614_v26  ;;  %v2629_v24 = vmul.f32 %v2628_v47, %v7330_v4 }
 0x2b1   :  { %3499 = vmatmul.f32.gmra.mxu1 %v3411_v30  ;;  %v2599_v46 = vsel %vm2598_vm6, %v5419_v50, %v2595_v53  ;;  %vm2601_vm7 = vcmp.eq.f32.partialorder %v2600_v6, 8.507059e+37  ;;  %v3109_v19 = vmul.f32 %v3108_v63, %v7349_v29  ;;  %v2664_v55 = vadd.f32 0.014752088, %v2663_v22 }
 0x2b2   :  { %v2773_v34 = vadd.f32 0.0036580483, %v2772_v9  ;;  %v2604_v54 = vsel %vm2601_vm7, %v2603_v3, %v2599_v46  ;;  %v7632_v28 = vadd.f32 1.0, %v2629_v24  ;;  %v7635_v35 = vadd.f32 %v1988_v57, %v6547_v38 }
 0x2b3   :  { %v2811_v18 = vadd.f32 0.00028619796, %v2810_v39  ;;  %v2605_v13 = vmul.f32 %v2604_v54, %v7502_v33  ;;  %v7638_v56 = vmin.f32 %v3208_v49, 16.0  ;;  %v7640_v12 = vadd.f32 1.0, %v3109_v19 }
 0x2b4   :  { %v7644_v4 = vmul.f32 %v7569_v21, %v7353_v7  ;;  %v2699_v29 = vadd.f32 1.1283791, %v7573_v31  ;;  %v2848_v50 = vmul.f32 %v7628_v17, %v7628_v17  ;;  %5420 = vrcp.f32 %v7632_v28 }
 0x2b5   :  { %v3139_v6 = vadd.f32 1.1283791, %v3138_v1  ;;  %v3177_v42 = vadd.f32 0.18741608, %v3176_v8  ;;  %v5184_v22 = vclamps-f32 %v2605_v13, 1.0  ;;  %v2665_v33 = vmul.f32 %v2664_v55, %v7384_v27 }
 0x2b6   :  { %v2738_v9 = vmul.f32 %v2737_v48, %v7507_v41  ;;  %v2774_v39 = vmul.f32 %v2773_v34, %v7577_v61  ;;  %v7654_v49 = vmul.f32 0.70710677, %v7635_v35  ;;  %5422 = vrcp.f32 %v7640_v12 }
 0x2b7   :  { %v7658_v7 = vmul.f32 0.5, %v7455_v0  ;;  %v2812_v21 = vmul.f32 %v2811_v18, %v7605_v60  ;;  %v3380_v31 = vadd.f32 1.0, %v5184_v22  ;;  %v3210_v1 = vmul.f32 2.1237322e-06, %v7638_v56 }
 0x2b8   :  { %v7663_v8 = vmul.f32 %v2699_v29, %v7394_v58  ;;  %v7666_v47 = vmul.f32 0.5, %v7469_v51  ;;  %v7669_v30 = vmul.f32 0.5, %v7531_v5  ;;  %v7671_v53 = vmin.f32 %v2848_v50, 16.0 }
 0x2b9   :  { %v7674_v57 = vmul.f32 %v3139_v6, %v7427_v23  ;;  %v3412_v0 = vmul.f32 %v3380_v31, %v7381_v36  ;;  %v2666_v63 = vadd.f32 0.112945676, %v2665_v33  ;;  %v2701_v48 = vmul.f32 3.8918573e-05, %v7430_v20 }
 0x2ba   :  { %9499 = vst [vmem:[#allocation5_spill] sm:$0xff] %v7669_v30  ;;  %v5421_v3 = vpop.eup %5420  ;;  %v7678_v24 = vadd.f32 1.1283791, %v2738_v9  ;;  %v3178_v58 = vmul.f32 %v3177_v42, %v7515_v2  ;;  %v2775_v51 = vadd.f32 0.05243302, %v2774_v39  ;;  %v2888_v5 = vmul.f32 %v7654_v49, %v7654_v49  ;;  %v2015_v42 = vpop.f32.mrf.mxu3 }
 0x2bb   :  { %v2813_v46 = vadd.f32 0.0036580483, %v2812_v21  ;;  %3502 = vmatmul.f32.gmra.mxu1 %v3412_v0  ;;  %v3211_v19 = vadd.f32 0.00028619796, %v3210_v1  ;;  %v2632_v23 = vmul.f32 %v5421_v3, %v7632_v28  ;;  %v2667_v55 = vmul.f32 %v2666_v63, %v7384_v27 }
 0x2bc   :  { %v5423_v36 = vpop.eup %5422  ;;  %v2850_v34 = vmul.f32 2.1237322e-06, %v7671_v53  ;;  %vm2636_vm8 = vweird.f32 %v7632_v28  ;;  %v2702_v54 = vadd.f32 0.001143296, %v2701_v48  ;;  %v3141_v18 = vmul.f32 3.8918573e-05, %v7452_v37 }
 0x2bd   :  { %v2633_v13 = vsub.f32 1.0, %v2632_v23  ;;  %v2640_v29 = vand.u32 2147483647, %v7632_v28  ;;  %v2642_v50 = vand.u32 2147483648, %v7632_v28  ;;  %v3112_v6 = vmul.f32 %v5423_v36, %v7640_v12 }
 0x2be   :  { %v7691_v22 = vmin.f32 %v2888_v5, 16.0  ;;  %vm3116_vm9 = vweird.f32 %v7640_v12  ;;  %v2668_v33 = vadd.f32 0.4994258, %v2667_v55  ;;  %v2703_v9 = vmul.f32 %v2702_v54, %v7430_v20 }
 0x2bf   :  { %v2634_v39 = vmul.f32 %v5421_v3, %v2633_v13  ;;  %vm2637_vm10 = vweird.f32 %v5421_v3  ;;  %v3113_v21 = vsub.f32 1.0, %v3112_v6  ;;  %v3142_v31 = vadd.f32 0.001143296, %v3141_v18 }
 0x2c0   :  { %v3122_v1 = vand.u32 2147483648, %v7640_v12  ;;  %v2669_v0 = vmul.f32 %v2668_v33, %v7384_v27  ;;  %v7698_v63 = vadd.f32 %v2015_v42, %v6547_v38  ;;  %v2704_v48 = vadd.f32 0.014752088, %v2703_v9  ;;  %vm2638_vm12 = vmor %vm2636_vm8, %vm2637_vm10 }
 0x2c1   :  { %v2635_v23 = vadd.f32 %v5421_v3, %v2634_v39  ;;  %v3114_v5 = vmul.f32 %v5423_v36, %v3113_v21  ;;  %vm3117_vm11 = vweird.f32 %v5423_v36  ;;  %v3120_v30 = vand.u32 2147483647, %v7640_v12 }
 0x2c2   :  { %v2643_v55 = vor.u32 1.1754944e-38, %v2642_v50  ;;  %v7703_v54 = vadd.f32 1.0, %v2669_v0  ;;  %v2705_v18 = vmul.f32 %v2704_v48, %v7430_v20  ;;  %v2741_v13 = vmul.f32 3.8918573e-05, %v7507_v41  ;;  %vm3118_vm14 = vmor %vm3116_vm9, %vm3117_vm11 }
 0x2c3   :  { %v2639_v27 = vsel %vm2638_vm12, %v5421_v3, %v2635_v23  ;;  %vm2641_vm13 = vcmp.eq.f32.partialorder %v2640_v29, 8.507059e+37  ;;  %v3115_v6 = vadd.f32 %v5423_v36, %v3114_v5  ;;  %v3143_v42 = vmul.f32 %v3142_v31, %v7452_v37 }
 0x2c4   :  { %v2644_v33 = vsel %vm2641_vm13, %v2643_v55, %v2639_v27  ;;  %v3123_v9 = vor.u32 1.1754944e-38, %v3122_v1  ;;  %5424 = vrcp.f32 %v7703_v54  ;;  %v7712_v28 = vmul.f32 0.70710677, %v7698_v63 }
 0x2c5   :  { %v3212_v50 = vmul.f32 %v3211_v19, %v7638_v56  ;;  %v2645_v39 = vmul.f32 %v2644_v33, %v7525_v43  ;;  %v3119_v21 = vsel %vm3118_vm14, %v5423_v36, %v3115_v6  ;;  %vm3121_vm15 = vcmp.eq.f32.partialorder %v3120_v30, 8.507059e+37 }
 0x2c6   :  { %v2776_v3 = vmul.f32 %v2775_v51, %v7577_v61  ;;  %v3124_v29 = vsel %vm3121_vm15, %v3123_v9, %v3119_v21  ;;  %v2706_v31 = vadd.f32 0.112945676, %v2705_v18  ;;  %v2742_v0 = vadd.f32 0.001143296, %v2741_v13  ;;  %v2018_v9 = vpop.f32.mrf.mxu3 }
 0x2c7   :  { %v3179_v48 = vadd.f32 1.1283791, %v3178_v58  ;;  %v5185_v12 = vclamps-f32 %v2645_v39, 1.0  ;;  %v3125_v1 = vmul.f32 %v3124_v29, %v7564_v59  ;;  %v3144_v23 = vadd.f32 0.014752088, %v3143_v42 }
 0x2c8   :  { %v2814_v5 = vmul.f32 %v2813_v46, %v7605_v60  ;;  %v2890_v55 = vmul.f32 2.1237322e-06, %v7691_v22  ;;  %v3248_v19 = vmul.f32 %v7712_v28, %v7712_v28  ;;  %v2707_v43 = vmul.f32 %v2706_v31, %v7430_v20 }
 0x2c9   :  { %v3213_v30 = vadd.f32 0.0036580483, %v3212_v50  ;;  %v2851_v36 = vadd.f32 0.00028619796, %v2850_v34  ;;  %v3381_v51 = vadd.f32 1.0, %v5185_v12  ;;  %v5197_v27 = vclamps-f32 %v3125_v1, 1.0 }
 0x2ca   :  { %v5425_v18 = vpop.eup %5424  ;;  %v7725_v58 = vmul.f32 %v7678_v24, %v7480_v14  ;;  %v2777_v59 = vadd.f32 0.18741608, %v2776_v3  ;;  %v2708_v13 = vadd.f32 0.4994258, %v2707_v43  ;;  %v2743_v46 = vmul.f32 %v2742_v0, %v7507_v41 }
 0x2cb   :  { %v3413_v6 = vmul.f32 %v3381_v51, %v7408_v11  ;;  %v3393_v42 = vadd.f32 1.0, %v5197_v27  ;;  %v2672_v33 = vmul.f32 %v5425_v18, %v7703_v54  ;;  %v3145_v50 = vmul.f32 %v3144_v23, %v7452_v37  ;;  %v1991_v51 = vpop.f32.mrf.mxu0 }
 0x2cc   :  { %v2815_v34 = vadd.f32 0.05243302, %v2814_v5  ;;  %v2891_v39 = vadd.f32 0.00028619796, %v2890_v55  ;;  %v7731_v21 = vmin.f32 %v3248_v19, 16.0  ;;  %v2709_v29 = vmul.f32 %v2708_v13, %v7430_v20 }
 0x2cd   :  { %v3214_v14 = vmul.f32 %v3213_v30, %v7638_v56  ;;  %v2852_v24 = vmul.f32 %v2851_v36, %v7671_v53  ;;  %3505 = vmatmul.f32.gmra.mxu1 %v3413_v6  ;;  %v3425_v3 = vmul.f32 %v3393_v42, %v7422_v10  ;;  %v2673_v11 = vsub.f32 1.0, %v2672_v33 }
 0x2ce   :  { %v2682_v31 = vand.u32 2147483648, %v7703_v54  ;;  %v7738_v0 = vadd.f32 1.0, %v2709_v29  ;;  %v7741_v12 = vadd.f32 %v2018_v9, %v6547_v38  ;;  %v2744_v1 = vadd.f32 0.014752088, %v2743_v46 }
 0x2cf   :  { %3541 = vmatmul.f32.gmra.mxu3 %v3425_v3  ;;  %v2674_v23 = vmul.f32 %v5425_v18, %v2673_v11  ;;  %vm2677_vm0 = vweird.f32 %v5425_v18  ;;  %v2680_v20 = vand.u32 2147483647, %v7703_v54  ;;  %v3146_v5 = vadd.f32 0.112945676, %v3145_v50 }
 0x2d0   :  { %v7745_v55 = vmul.f32 %v3179_v48, %v7486_v25  ;;  %v2892_v10 = vmul.f32 %v2891_v39, %v7691_v22  ;;  %v3250_v19 = vmul.f32 2.1237322e-06, %v7731_v21  ;;  %5426 = vrcp.f32 %v7738_v0 }
 0x2d1   :  { %v2778_v43 = vmul.f32 %v2777_v59, %v7577_v61  ;;  %v2816_v30 = vmul.f32 %v2815_v34, %v7605_v60  ;;  %v2675_v36 = vadd.f32 %v5425_v18, %v2674_v23  ;;  %vm2676_vm1 = vweird.f32 %v7703_v54 }
 0x2d2   :  { %vm2678_vm2 = vmor %vm2676_vm1, %vm2677_vm0  ;;  %v2683_v27 = vor.u32 1.1754944e-38, %v2682_v31  ;;  %v7754_v13 = vmul.f32 0.70710677, %v7741_v12  ;;  %v3147_v25 = vmul.f32 %v3146_v5, %v7452_v37  ;;  %v2745_v48 = vmul.f32 %v2744_v1, %v7507_v41 }
 0x2d3   :  { %v3215_v46 = vadd.f32 0.05243302, %v3214_v14  ;;  %v2853_v6 = vadd.f32 0.0036580483, %v2852_v24  ;;  %v2679_v42 = vsel %vm2678_vm2, %v5425_v18, %v2675_v36  ;;  %vm2681_vm3 = vcmp.eq.f32.partialorder %v2680_v20, 8.507059e+37 }
 0x2d4   :  { %v2893_v59 = vadd.f32 0.0036580483, %v2892_v10  ;;  %v2684_v33 = vsel %vm2681_vm3, %v2683_v27, %v2679_v42  ;;  %v3251_v9 = vadd.f32 0.00028619796, %v3250_v19  ;;  %v7759_v50 = vadd.f32 %v1991_v51, %v6547_v38 }
 0x2d5   :  { %v7762_v54 = vmul.f32 0.5, %v7567_v15  ;;  %v7765_v34 = vmul.f32 0.5, %v7599_v52  ;;  %v2685_v39 = vmul.f32 %v2684_v33, %v7644_v4  ;;  %v3148_v29 = vadd.f32 0.4994258, %v3147_v25 }
 0x2d6   :  { %v5427_v3 = vpop.eup %5426  ;;  %v2779_v14 = vadd.f32 1.1283791, %v2778_v43  ;;  %v2817_v24 = vadd.f32 0.18741608, %v2816_v30  ;;  %v3288_v18 = vmul.f32 %v7754_v13, %v7754_v13  ;;  %v2746_v11 = vadd.f32 0.112945676, %v2745_v48 }
 0x2d7   :  { %v3216_v31 = vmul.f32 %v3215_v46, %v7638_v56  ;;  %v2854_v1 = vmul.f32 %v2853_v6, %v7671_v53  ;;  %v5186_v23 = vclamps-f32 %v2685_v39, 1.0  ;;  %v2712_v15 = vmul.f32 %v5427_v3, %v7738_v0  ;;  %v5521_v43 = vld [vmem:[%s9482_s2] sm:$0xff]  ;;  %v3467_v6 = vpop.f32.mrf.mxu1 }
 0x2d8   :  { %v2894_v52 = vmul.f32 %v2893_v59, %v7691_v22  ;;  %v3252_v20 = vmul.f32 %v3251_v9, %v7731_v21  ;;  %v7776_v4 = vmul.f32 0.70710677, %v7759_v50  ;;  %v3149_v5 = vmul.f32 %v3148_v29, %v7452_v37 }
 0x2d9   :  { %v3382_v10 = vadd.f32 1.0, %v5186_v23  ;;  %v2713_v19 = vsub.f32 1.0, %v2712_v15  ;;  %v7782_v30 = vperm.slane %v5521_v43, 2  ;;  %v2747_v36 = vmul.f32 %v2746_v11, %v7507_v41 }
 0x2da   :  { %v2720_v51 = vand.u32 2147483647, %v7738_v0  ;;  %v2722_v27 = vand.u32 2147483648, %v7738_v0  ;;  %v7787_v25 = vmin.f32 %v3288_v18, 16.0  ;;  %v7789_v48 = vadd.f32 1.0, %v3149_v5 }
 0x2db   :  { %v3414_v37 = vmul.f32 %v3382_v10, %v7521_v62  ;;  %v2714_v46 = vmul.f32 %v5427_v3, %v2713_v19  ;;  %vm2717_vm4 = vweird.f32 %v5427_v3  ;;  %v2748_v42 = vadd.f32 0.4994258, %v2747_v36 }
 0x2dc   :  { %v2855_v59 = vadd.f32 0.05243302, %v2854_v1  ;;  %v2895_v33 = vadd.f32 0.05243302, %v2894_v52  ;;  %v2928_v9 = vmul.f32 %v7776_v4, %v7776_v4  ;;  %5428 = vrcp.f32 %v7789_v48 }
 0x2dd   :  { %3508 = vmatmul.f32.gmra.mxu1 %v3414_v37  ;;  %v3253_v39 = vadd.f32 0.0036580483, %v3252_v20  ;;  %v2715_v29 = vadd.f32 %v5427_v3, %v2714_v46  ;;  %vm2716_vm5 = vweird.f32 %v7738_v0  ;;  %v3181_v18 = vmul.f32 3.8918573e-05, %v7515_v2 }
 0x2de   :  { %vm2718_vm6 = vmor %vm2716_vm5, %vm2717_vm4  ;;  %v2723_v62 = vor.u32 1.1754944e-38, %v2722_v27  ;;  %v3290_v11 = vmul.f32 2.1237322e-06, %v7787_v25  ;;  %v7799_v23 = vadd.f32 %v3467_v6, %v7782_v30  ;;  %v2749_v1 = vmul.f32 %v2748_v42, %v7507_v41 }
 0x2df   :  { %v2818_v15 = vmul.f32 %v2817_v24, %v7605_v60  ;;  %v7804_v52 = vmul.f32 0.5, %v7614_v26  ;;  %v2719_v20 = vsel %vm2718_vm6, %v5427_v3, %v2715_v29  ;;  %vm2721_vm7 = vcmp.eq.f32.partialorder %v2720_v51, 8.507059e+37 }
 0x2e0   :  { %v2856_v0 = vmul.f32 %v2855_v59, %v7671_v53  ;;  %v2896_v5 = vmul.f32 %v2895_v33, %v7691_v22  ;;  %v2724_v10 = vsel %vm2721_vm7, %v2723_v62, %v2719_v20  ;;  %v7808_v19 = vmin.f32 %v2928_v9, 16.0 }
 0x2e1   :  { %v3217_v43 = vadd.f32 0.18741608, %v3216_v31  ;;  %v2725_v36 = vmul.f32 %v2724_v10, %v7663_v8  ;;  %v7811_v27 = vadd.f32 1.0, %v2749_v1  ;;  %v3182_v41 = vadd.f32 0.001143296, %v3181_v18 }
 0x2e2   :  { %v5429_v37 = vpop.eup %5428  ;;  %v7814_v24 = vmul.f32 %v2779_v14, %v7550_v45  ;;  %v3254_v26 = vmul.f32 %v3253_v39, %v7731_v21  ;;  %v3291_v3 = vadd.f32 0.00028619796, %v3290_v11  ;;  %v7818_v51 = vmul.f32 0.70710677, %v7799_v23 }
 0x2e3   :  { %v7820_v46 = vadd.f32 1.1283791, %v2818_v15  ;;  %v7823_v6 = vmul.f32 0.5, %v7635_v35  ;;  %v5187_v31 = vclamps-f32 %v2725_v36, 1.0  ;;  %v3152_v8 = vmul.f32 %v5429_v37, %v7789_v48 }
 0x2e4   :  { %v2857_v42 = vadd.f32 0.18741608, %v2856_v0  ;;  %v2897_v59 = vadd.f32 0.18741608, %v2896_v5  ;;  %v2930_v33 = vmul.f32 2.1237322e-06, %v7808_v19  ;;  %5430 = vrcp.f32 %v7811_v27 }
 0x2e5   :  { %9500 = vst [vmem:[#allocation6_spill] sm:$0xff] %v7823_v6  ;;  %v7829_v45 = vmul.f32 %v3217_v43, %v7638_v56  ;;  %v3383_v14 = vadd.f32 1.0, %v5187_v31  ;;  %v3153_v9 = vsub.f32 1.0, %v3152_v8  ;;  %v3183_v39 = vmul.f32 %v3182_v41, %v7515_v2  ;;  %v3470_v43 = vpop.f32.mrf.mxu1 }
 0x2e6   :  { %v3255_v29 = vadd.f32 0.05243302, %v3254_v26  ;;  %v3292_v35 = vmul.f32 %v3291_v3, %v7787_v25  ;;  %v3627_v18 = vmul.f32 %v7818_v51, %v7818_v51  ;;  %v3162_v62 = vand.u32 2147483648, %v7789_v48 }
 0x2e7   :  { %v3415_v11 = vmul.f32 %v3383_v14, %v7537_v44  ;;  %v3154_v1 = vmul.f32 %v5429_v37, %v3153_v9  ;;  %vm3157_vm8 = vweird.f32 %v5429_v37  ;;  %v3160_v15 = vand.u32 2147483647, %v7789_v48 }
 0x2e8   :  { %v2858_v20 = vmul.f32 %v2857_v42, %v7671_v53  ;;  %v7840_v0 = vmul.f32 %v2897_v59, %v7691_v22  ;;  %v2931_v5 = vadd.f32 0.00028619796, %v2930_v33  ;;  %vm3156_vm9 = vweird.f32 %v7789_v48 }
 0x2e9   :  { %3511 = vmatmul.f32.gmra.mxu1 %v3415_v11  ;;  %v3155_v10 = vadd.f32 %v5429_v37, %v3154_v1  ;;  %v3184_v36 = vadd.f32 0.014752088, %v3183_v39  ;;  %v2781_v41 = vmul.f32 3.8918573e-05, %v7577_v61  ;;  %v2821_v44 = vmul.f32 3.8918573e-05, %v7605_v60  ;;  %vm3158_vm10 = vmor %vm3156_vm9, %vm3157_vm8 }
 0x2ea   :  { %v5431_v26 = vpop.eup %5430  ;;  %v3256_v3 = vmul.f32 %v3255_v29, %v7731_v21  ;;  %v3293_v31 = vadd.f32 0.0036580483, %v3292_v35  ;;  %v7846_v8 = vmin.f32 %v3627_v18, 16.0  ;;  %v3163_v42 = vor.u32 1.1754944e-38, %v3162_v62 }
 0x2eb   :  { %v3159_v59 = vsel %vm3158_vm10, %v5429_v37, %v3155_v10  ;;  %vm3161_vm11 = vcmp.eq.f32.partialorder %v3160_v15, 8.507059e+37  ;;  %v2752_v48 = vmul.f32 %v5431_v26, %v7811_v27  ;;  %v3185_v33 = vmul.f32 %v3184_v36, %v7515_v2 }
 0x2ec   :  { %v2932_v14 = vmul.f32 %v2931_v5, %v7808_v19  ;;  %v3164_v9 = vsel %vm3161_vm11, %v3163_v42, %v3159_v59  ;;  %v7853_v39 = vadd.f32 %v3470_v43, %v7782_v30  ;;  %v2782_v11 = vadd.f32 0.001143296, %v2781_v41 }
 0x2ed   :  { %v3165_v29 = vmul.f32 %v3164_v9, %v7674_v57  ;;  %v2753_v35 = vsub.f32 1.0, %v2752_v48  ;;  %v3186_v18 = vadd.f32 0.112945676, %v3185_v33  ;;  %v2822_v1 = vadd.f32 0.001143296, %v2821_v44 }
 0x2ee   :  { %vm2757_vm12 = vweird.f32 %v5431_v26  ;;  %v2760_v37 = vand.u32 2147483647, %v7811_v27  ;;  %v2762_v62 = vand.u32 2147483648, %v7811_v27  ;;  %v2783_v15 = vmul.f32 %v2782_v11, %v7577_v61 }
 0x2ef   :  { %v5198_v10 = vclamps-f32 %v3165_v29, 1.0  ;;  %v2754_v36 = vmul.f32 %v5431_v26, %v2753_v35  ;;  %v3187_v5 = vmul.f32 %v3186_v18, %v7515_v2  ;;  %v2823_v43 = vmul.f32 %v2822_v1, %v7605_v60 }
 0x2f0   :  { %v3629_v41 = vmul.f32 2.1237322e-06, %v7846_v8  ;;  %vm2756_vm13 = vweird.f32 %v7811_v27  ;;  %v7864_v57 = vmul.f32 0.70710677, %v7853_v39  ;;  %v2784_v44 = vadd.f32 0.014752088, %v2783_v15 }
 0x2f1   :  { %v3394_v42 = vadd.f32 1.0, %v5198_v10  ;;  %v2755_v59 = vadd.f32 %v5431_v26, %v2754_v36  ;;  %v3188_v48 = vadd.f32 0.4994258, %v3187_v5  ;;  %v2824_v33 = vadd.f32 0.014752088, %v2823_v43  ;;  %vm2758_vm14 = vmor %vm2756_vm13, %vm2757_vm12 }
 0x2f2   :  { %v3294_v9 = vmul.f32 %v3293_v31, %v7787_v25  ;;  %v2933_v11 = vadd.f32 0.0036580483, %v2932_v14  ;;  %v2763_v29 = vor.u32 1.1754944e-38, %v2762_v62  ;;  %v2785_v35 = vmul.f32 %v2784_v44, %v7577_v61 }
 0x2f3   :  { %v3426_v18 = vmul.f32 %v3394_v42, %v7545_v32  ;;  %v2759_v1 = vsel %vm2758_vm14, %v5431_v26, %v2755_v59  ;;  %vm2761_vm15 = vcmp.eq.f32.partialorder %v2760_v37, 8.507059e+37  ;;  %v3189_v27 = vmul.f32 %v3188_v48, %v7515_v2  ;;  %v2021_v48 = vpop.f32.mrf.mxu3 }
 0x2f4   :  { %v3257_v6 = vadd.f32 0.18741608, %v3256_v3  ;;  %v2764_v15 = vsel %vm2761_vm15, %v2763_v29, %v2759_v1  ;;  %v2786_v10 = vadd.f32 0.112945676, %v2785_v35  ;;  %v3221_v36 = vmul.f32 3.8918573e-05, %v7638_v56  ;;  %v3473_v1 = vpop.f32.mrf.mxu1 }
 0x2f5   :  { %3544 = vmatmul.f32.gmra.mxu3 %v3426_v18  ;;  %v2765_v31 = vmul.f32 %v2764_v15, %v7725_v58  ;;  %v3667_v14 = vmul.f32 %v7864_v57, %v7864_v57  ;;  %v7875_v62 = vadd.f32 1.0, %v3189_v27  ;;  %v2825_v5 = vmul.f32 %v2824_v33, %v7605_v60 }
 0x2f6   :  { %v3219_v32 = vadd.f32 1.1283791, %v7829_v45  ;;  %v2859_v26 = vadd.f32 1.1283791, %v2858_v20  ;;  %v3630_v37 = vadd.f32 0.00028619796, %v3629_v41  ;;  %v2787_v2 = vmul.f32 %v2786_v10, %v7577_v61 }
 0x2f7   :  { %v3295_v3 = vadd.f32 0.05243302, %v3294_v9  ;;  %v2934_v43 = vmul.f32 %v2933_v11, %v7808_v19  ;;  %v5188_v44 = vclamps-f32 %v2765_v31, 1.0  ;;  %5432 = vrcp.f32 %v7875_v62 }
 0x2f8   :  { %v7884_v58 = vmul.f32 %v7820_v46, %v7583_v16  ;;  %v2899_v42 = vadd.f32 1.1283791, %v7840_v0  ;;  %v2788_v59 = vadd.f32 0.4994258, %v2787_v2  ;;  %v3222_v33 = vadd.f32 0.001143296, %v3221_v36 }
 0x2f9   :  { %v3258_v45 = vmul.f32 %v3257_v6, %v7731_v21  ;;  %v3384_v20 = vadd.f32 1.0, %v5188_v44  ;;  %v7888_v41 = vmin.f32 %v3667_v14, 16.0  ;;  %v2826_v9 = vadd.f32 0.112945676, %v2825_v5  ;;  %v1994_v5 = vpop.f32.mrf.mxu0  ;;  %v4987_v2 = vld [vmem:[#allocation2 + $0x178] sm:$0xff] }
 0x2fa   :  { %v7891_v11 = vmul.f32 %v3219_v32, %v7610_v40  ;;  %v7894_v29 = vmul.f32 %v2859_v26, %v7628_v17  ;;  %v3631_v16 = vmul.f32 %v3630_v37, %v7846_v8  ;;  %v2789_v46 = vmul.f32 %v2788_v59, %v7577_v61  ;;  %4989 = vmatpush.msra.mxu2 %v4987_v2 }
 0x2fb   :  { %v3296_v0 = vmul.f32 %v3295_v3, %v7787_v25  ;;  %v2935_v35 = vadd.f32 0.05243302, %v2934_v43  ;;  %v3416_v18 = vmul.f32 %v3384_v20, %v7658_v7  ;;  %v7901_v6 = vadd.f32 %v2021_v48, %v6547_v38  ;;  %5268 = vmatpush.msra.mxu3 %v4987_v2 }
 0x2fc   :  { %v7904_v27 = vmul.f32 %v2899_v42, %v7654_v49  ;;  %v7907_v40 = vmul.f32 0.5, %v7698_v63  ;;  %v7909_v17 = vadd.f32 1.0, %v2789_v46  ;;  %v3223_v15 = vmul.f32 %v3222_v33, %v7638_v56 }
 0x2fd   :  { %v5433_v61 = vpop.eup %5432  ;;  %v7912_v10 = vadd.f32 1.1283791, %v3258_v45  ;;  %v7915_v36 = vmul.f32 0.5, %v7741_v12  ;;  %3514 = vmatmul.f32.gmra.mxu1 %v3416_v18  ;;  %v3669_v7 = vmul.f32 2.1237322e-06, %v7888_v41  ;;  %v2827_v31 = vmul.f32 %v2826_v9, %v7605_v60 }
 0x2fe   :  { %v3632_v49 = vadd.f32 0.0036580483, %v3631_v16  ;;  %v3192_v14 = vmul.f32 %v5433_v61, %v7875_v62  ;;  %5434 = vrcp.f32 %v7909_v17  ;;  %v7922_v63 = vadd.f32 %v3473_v1, %v7782_v30 }
 0x2ff   :  { %v3297_v32 = vadd.f32 0.18741608, %v3296_v0  ;;  %v7925_v26 = vmul.f32 0.5, %v7759_v50  ;;  %v2936_v12 = vmul.f32 %v2935_v35, %v7808_v19  ;;  %v7929_v37 = vmul.f32 0.70710677, %v7901_v6 }
 0x300   :  { %v7932_v3 = vmul.f32 0.5, %v7799_v23  ;;  %v3193_v43 = vsub.f32 1.0, %v3192_v14  ;;  %v2828_v44 = vadd.f32 0.4994258, %v2827_v31  ;;  %v3224_v42 = vadd.f32 0.014752088, %v3223_v15 }
 0x301   :  { %9501 = vst [vmem:[#allocation7_spill] sm:$0xff] %v7925_v26  ;;  %v3670_v59 = vadd.f32 0.00028619796, %v3669_v7  ;;  %v3200_v48 = vand.u32 2147483647, %v7875_v62  ;;  %v3202_v50 = vand.u32 2147483648, %v7875_v62  ;;  %v7937_v33 = vadd.f32 %v1994_v5, %v6547_v38 }
 0x302   :  { %9502 = vst [vmem:[#allocation8_spill] sm:$0xff] %v7932_v3  ;;  %v3194_v45 = vmul.f32 %v5433_v61, %v3193_v43  ;;  %vm3197_vm0 = vweird.f32 %v5433_v61  ;;  %v7940_v20 = vmul.f32 0.70710677, %v7922_v63  ;;  %v2829_v23 = vmul.f32 %v2828_v44, %v7605_v60  ;;  %v4986_v43 = vld [vmem:[#allocation2 + $0x170] sm:$0xff] }
 0x303   :  { %v3298_v9 = vmul.f32 %v3297_v32, %v7787_v25  ;;  %v2937_v16 = vadd.f32 0.18741608, %v2936_v12  ;;  %v3633_v46 = vmul.f32 %v3632_v49, %v7846_v8  ;;  %v3328_v0 = vmul.f32 %v7929_v37, %v7929_v37  ;;  %4990 = vmatpush.msra.mxu2 %v4986_v43  ;;  %5269 = vmatpush.msra.mxu3 %v4986_v43 }
 0x304   :  { %v5435_v35 = vpop.eup %5434  ;;  %v3195_v18 = vadd.f32 %v5433_v61, %v3194_v45  ;;  %vm3196_vm1 = vweird.f32 %v7875_v62  ;;  %v7948_v1 = vadd.f32 1.0, %v2829_v23  ;;  %v3225_v15 = vmul.f32 %v3224_v42, %v7638_v56 }
 0x305   :  { %v3671_v7 = vmul.f32 %v3670_v59, %v7888_v41  ;;  %vm3198_vm2 = vmor %vm3196_vm1, %vm3197_vm0  ;;  %vm3201_vm3 = vcmp.eq.f32.partialorder %v3200_v48, 8.507059e+37  ;;  %v3203_v60 = vor.u32 1.1754944e-38, %v3202_v50  ;;  %v2792_v31 = vmul.f32 %v5435_v35, %v7909_v17 }
 0x306   :  { %v3199_v14 = vsel %vm3198_vm2, %v5433_v61, %v3195_v18  ;;  %v3707_v49 = vmul.f32 %v7940_v20, %v7940_v20  ;;  %v7956_v5 = vmul.f32 0.70710677, %v7937_v33  ;;  %5436 = vrcp.f32 %v7948_v1 }
 0x307   :  { %v3634_v62 = vadd.f32 0.05243302, %v3633_v46  ;;  %v3204_v32 = vsel %vm3201_vm3, %v3203_v60, %v3199_v14  ;;  %v2793_v12 = vsub.f32 1.0, %v2792_v31  ;;  %v7959_v2 = vmin.f32 %v3328_v0, 16.0 }
 0x308   :  { %v7961_v44 = vadd.f32 1.1283791, %v3298_v9  ;;  %v3205_v42 = vmul.f32 %v3204_v32, %v7745_v55  ;;  %v2802_v61 = vand.u32 2147483648, %v7909_v17  ;;  %v3226_v59 = vadd.f32 0.112945676, %v3225_v15 }
 0x309   :  { %v3672_v48 = vadd.f32 0.0036580483, %v3671_v7  ;;  %v2794_v50 = vmul.f32 %v5435_v35, %v2793_v12  ;;  %vm2797_vm4 = vweird.f32 %v5435_v35  ;;  %v2800_v45 = vand.u32 2147483647, %v7909_v17 }
 0x30a   :  { %v7967_v23 = vmul.f32 %v2937_v16, %v7808_v19  ;;  %v5199_v46 = vclamps-f32 %v3205_v42, 1.0  ;;  %v7969_v0 = vmin.f32 %v3707_v49, 16.0  ;;  %v2968_v9 = vmul.f32 %v7956_v5, %v7956_v5 }
 0x30b   :  { %v3635_v55 = vmul.f32 %v3634_v62, %v7846_v8  ;;  %v2795_v18 = vadd.f32 %v5435_v35, %v2794_v50  ;;  %vm2796_vm5 = vweird.f32 %v7909_v17  ;;  %v3330_v15 = vmul.f32 2.1237322e-06, %v7959_v2  ;;  %v3476_v62 = vpop.f32.mrf.mxu1 }
 0x30c   :  { %v5437_v7 = vpop.eup %5436  ;;  %v3395_v60 = vadd.f32 1.0, %v5199_v46  ;;  %vm2798_vm6 = vmor %vm2796_vm5, %vm2797_vm4  ;;  %v2803_v31 = vor.u32 1.1754944e-38, %v2802_v61  ;;  %v3227_v16 = vmul.f32 %v3226_v59, %v7638_v56  ;;  %v2861_v14 = vmul.f32 3.8918573e-05, %v7671_v53 }
 0x30d   :  { %v3673_v49 = vmul.f32 %v3672_v48, %v7888_v41  ;;  %v2799_v32 = vsel %vm2798_vm6, %v5435_v35, %v2795_v18  ;;  %vm2801_vm7 = vcmp.eq.f32.partialorder %v2800_v45, 8.507059e+37  ;;  %v2832_v12 = vmul.f32 %v5437_v7, %v7948_v1 }
 0x30e   :  { %v3427_v43 = vmul.f32 %v3395_v60, %v7666_v47  ;;  %v2804_v17 = vsel %vm2801_vm7, %v2803_v31, %v2799_v32  ;;  %v3709_v42 = vmul.f32 2.1237322e-06, %v7969_v0  ;;  %v7982_v50 = vmin.f32 %v2968_v9, 16.0  ;;  %v4985_v9 = vld [vmem:[#allocation2 + $0x168] sm:$0xff] }
 0x30f   :  { %v3636_v46 = vadd.f32 0.18741608, %v3635_v55  ;;  %v2805_v61 = vmul.f32 %v2804_v17, %v7814_v24  ;;  %v3331_v59 = vadd.f32 0.00028619796, %v3330_v15  ;;  %v2833_v3 = vsub.f32 1.0, %v2832_v12  ;;  %4991 = vmatpush.msra.mxu2 %v4985_v9  ;;  %5270 = vmatpush.msra.mxu3 %v4985_v9 }
 0x310   :  { %3547 = vmatmul.f32.gmra.mxu3 %v3427_v43  ;;  %v2842_v48 = vand.u32 2147483648, %v7948_v1  ;;  %v7987_v35 = vadd.f32 %v3476_v62, %v7782_v30  ;;  %v3228_v45 = vadd.f32 0.4994258, %v3227_v16  ;;  %v2862_v18 = vadd.f32 0.001143296, %v2861_v14  ;;  %v9503_v43 = vld [vmem:[#allocation5_spill] sm:$0xff] }
 0x311   :  { %v5189_v26 = vclamps-f32 %v2805_v61, 1.0  ;;  %v2834_v47 = vmul.f32 %v5437_v7, %v2833_v3  ;;  %vm2837_vm8 = vweird.f32 %v5437_v7  ;;  %v2840_v60 = vand.u32 2147483647, %v7948_v1 }
 0x312   :  { %v3674_v31 = vadd.f32 0.05243302, %v3673_v49  ;;  %v3710_v55 = vadd.f32 0.00028619796, %v3709_v42  ;;  %v2970_v24 = vmul.f32 2.1237322e-06, %v7982_v50  ;;  %v3229_v15 = vmul.f32 %v3228_v45, %v7638_v56 }
 0x313   :  { %v3385_v32 = vadd.f32 1.0, %v5189_v26  ;;  %v3332_v12 = vmul.f32 %v3331_v59, %v7959_v2  ;;  %v2835_v62 = vadd.f32 %v5437_v7, %v2834_v47  ;;  %vm2836_vm9 = vweird.f32 %v7948_v1 }
 0x314   :  { %v3637_v3 = vmul.f32 %v3636_v46, %v7846_v8  ;;  %vm2838_vm10 = vmor %vm2836_vm9, %vm2837_vm8  ;;  %v2843_v16 = vor.u32 1.1754944e-38, %v2842_v48  ;;  %v7996_v14 = vmul.f32 0.70710677, %v7987_v35  ;;  %v7998_v49 = vadd.f32 1.0, %v3229_v15 }
 0x315   :  { %v3417_v17 = vmul.f32 %v3385_v32, %v9503_v43  ;;  %v2839_v56 = vsel %vm2838_vm10, %v5437_v7, %v2835_v62  ;;  %vm2841_vm11 = vcmp.eq.f32.partialorder %v2840_v60, 8.507059e+37  ;;  %v2863_v26 = vmul.f32 %v2862_v18, %v7671_v53 }
 0x316   :  { %v3675_v42 = vmul.f32 %v3674_v31, %v7888_v41  ;;  %v3711_v61 = vmul.f32 %v3710_v55, %v7969_v0  ;;  %v2971_v1 = vadd.f32 0.00028619796, %v2970_v24  ;;  %v2844_v59 = vsel %vm2841_vm11, %v2843_v16, %v2839_v56  ;;  %v1997_v56 = vpop.f32.mrf.mxu0 }
 0x317   :  { %v8006_v46 = vmul.f32 %v7912_v10, %v7712_v28  ;;  %3517 = vmatmul.f32.gmra.mxu1 %v3417_v17  ;;  %v3333_v48 = vadd.f32 0.0036580483, %v3332_v12  ;;  %v2845_v45 = vmul.f32 %v2844_v59, %v7884_v58  ;;  %5438 = vrcp.f32 %v7998_v49 }
 0x318   :  { %v2939_v7 = vadd.f32 1.1283791, %v7967_v23  ;;  %v3638_v47 = vadd.f32 1.1283791, %v3637_v3  ;;  %v8012_v18 = vmul.f32 0.5, %v7853_v39  ;;  %v3747_v60 = vmul.f32 %v7996_v14, %v7996_v14 }
 0x319   :  { %v8018_v9 = vmul.f32 %v7961_v44, %v7754_v13  ;;  %v5190_v28 = vclamps-f32 %v2845_v45, 1.0  ;;  %v2864_v10 = vadd.f32 0.014752088, %v2863_v26  ;;  %v2901_v31 = vmul.f32 3.8918573e-05, %v7691_v22 }
 0x31a   :  { %v3676_v58 = vadd.f32 0.18741608, %v3675_v42  ;;  %v3712_v55 = vadd.f32 0.0036580483, %v3711_v61  ;;  %v2972_v24 = vmul.f32 %v2971_v1, %v7982_v50  ;;  %v3261_v23 = vmul.f32 3.8918573e-05, %v7731_v21 }
 0x31b   :  { %v3334_v39 = vmul.f32 %v3333_v48, %v7959_v2  ;;  %v3386_v15 = vadd.f32 1.0, %v5190_v28  ;;  %v2865_v32 = vmul.f32 %v2864_v10, %v7671_v53  ;;  %v2902_v12 = vadd.f32 0.001143296, %v2901_v31  ;;  %v4984_v10 = vld [vmem:[#allocation2 + $0x160] sm:$0xff]  ;;  %v4983_v31 = vld [vmem:[#allocation2 + $0x158] sm:$0xff] }
 0x31c   :  { %v8026_v62 = vmul.f32 %v2939_v7, %v7776_v4  ;;  %v8028_v13 = vmin.f32 %v3747_v60, 16.0  ;;  %v3262_v44 = vadd.f32 0.001143296, %v3261_v23  ;;  %v3301_v3 = vmul.f32 3.8918573e-05, %v7787_v25  ;;  %4992 = vmatpush.msra.mxu2 %v4984_v10  ;;  %5271 = vmatpush.msra.mxu3 %v4984_v10 }
 0x31d   :  { %v5439_v16 = vpop.eup %5438  ;;  %v8032_v43 = vmul.f32 %v3638_v47, %v7818_v51  ;;  %v3418_v17 = vmul.f32 %v3386_v15, %v7762_v54  ;;  %v2866_v26 = vadd.f32 0.112945676, %v2865_v32  ;;  %v2903_v42 = vmul.f32 %v2902_v12, %v7691_v22  ;;  %v4982_v32 = vld [vmem:[#allocation2 + $0x150] sm:$0xff] }
 0x31e   :  { %v3713_v61 = vmul.f32 %v3712_v55, %v7969_v0  ;;  %v2973_v1 = vadd.f32 0.0036580483, %v2972_v24  ;;  %v3232_v4 = vmul.f32 %v5439_v16, %v7998_v49  ;;  %v3263_v59 = vmul.f32 %v3262_v44, %v7731_v21  ;;  %4993 = vmatpush.msra.mxu2 %v4983_v31  ;;  %5272 = vmatpush.msra.mxu3 %v4983_v31 }
 0x31f   :  { %v3335_v48 = vadd.f32 0.05243302, %v3334_v39  ;;  %3520 = vmatmul.f32.gmra.mxu1 %v3418_v17  ;;  %v2867_v45 = vmul.f32 %v2866_v26, %v7671_v53  ;;  %v2904_v7 = vadd.f32 0.014752088, %v2903_v42  ;;  %v3302_v51 = vadd.f32 0.001143296, %v3301_v3 }
 0x320   :  { %v3677_v47 = vmul.f32 %v3676_v58, %v7888_v41  ;;  %v3749_v54 = vmul.f32 2.1237322e-06, %v8028_v13  ;;  %v8043_v60 = vadd.f32 %v1997_v56, %v6547_v38  ;;  %v3233_v28 = vsub.f32 1.0, %v3232_v4  ;;  %v3479_v58 = vpop.f32.mrf.mxu1  ;;  %v4981_v4 = vld [vmem:[#allocation2 + $0x148] sm:$0xff]  ;;  %4994 = vmatpush.msra.mxu2 %v4982_v32  ;;  %5273 = vmatpush.msra.mxu3 %v4982_v32 }
 0x321   :  { %v3240_v55 = vand.u32 2147483647, %v7998_v49  ;;  %v3242_v24 = vand.u32 2147483648, %v7998_v49  ;;  %v2868_v23 = vadd.f32 0.4994258, %v2867_v45  ;;  %v2905_v39 = vmul.f32 %v2904_v7, %v7691_v22 }
 0x322   :  { %v3234_v15 = vmul.f32 %v5439_v16, %v3233_v28  ;;  %vm3237_vm12 = vweird.f32 %v5439_v16  ;;  %v3264_v12 = vadd.f32 0.014752088, %v3263_v59  ;;  %v3303_v38 = vmul.f32 %v3302_v51, %v7787_v25  ;;  %4995 = vmatpush.msra.mxu2 %v4981_v4  ;;  %5274 = vmatpush.msra.mxu3 %v4981_v4 }
 0x323   :  { %v3714_v44 = vadd.f32 0.05243302, %v3713_v61  ;;  %v2974_v3 = vmul.f32 %v2973_v1, %v7982_v50  ;;  %v2869_v17 = vmul.f32 %v2868_v23, %v7671_v53  ;;  %v2906_v56 = vadd.f32 0.112945676, %v2905_v39 }
 0x324   :  { %v8052_v26 = vmul.f32 0.70710677, %v8043_v60  ;;  %v3235_v42 = vadd.f32 %v5439_v16, %v3234_v15  ;;  %vm3236_vm13 = vweird.f32 %v7998_v49  ;;  %v3265_v45 = vmul.f32 %v3264_v12, %v7731_v21  ;;  %v4980_v15 = vld [vmem:[#allocation2 + $0x140] sm:$0xff] }
 0x325   :  { %vm3238_vm14 = vmor %vm3236_vm13, %vm3237_vm12  ;;  %v3243_v59 = vor.u32 1.1754944e-38, %v3242_v24  ;;  %v8057_v61 = vadd.f32 1.0, %v2869_v17  ;;  %v2907_v53 = vmul.f32 %v2906_v56, %v7691_v22  ;;  %v3304_v1 = vadd.f32 0.014752088, %v3303_v38  ;;  %4996 = vmatpush.msra.mxu2 %v4980_v15  ;;  %5275 = vmatpush.msra.mxu3 %v4980_v15 }
 0x326   :  { %v8061_v7 = vmul.f32 0.5, %v7901_v6  ;;  %v3239_v51 = vsel %vm3238_vm14, %v5439_v16, %v3235_v42  ;;  %vm3241_vm15 = vcmp.eq.f32.partialorder %v3240_v55, 8.507059e+37  ;;  %v3266_v28 = vadd.f32 0.112945676, %v3265_v45  ;;  %v4979_v16 = vld [vmem:[#allocation2 + $0x138] sm:$0xff] }
 0x327   :  { %v3336_v49 = vmul.f32 %v3335_v48, %v7959_v2  ;;  %v3750_v10 = vadd.f32 0.00028619796, %v3749_v54  ;;  %v3244_v31 = vsel %vm3241_vm15, %v3243_v59, %v3239_v51  ;;  %5440 = vrcp.f32 %v8057_v61  ;;  %4997 = vmatpush.msra.mxu2 %v4979_v16  ;;  %5276 = vmatpush.msra.mxu3 %v4979_v16  ;;  %v4975_v16 = vld [vmem:[#allocation2 + $0x118] sm:$0xff] }
 0x328   :  { %v3715_v24 = vmul.f32 %v3714_v44, %v7969_v0  ;;  %v2975_v23 = vadd.f32 0.05243302, %v2974_v3  ;;  %v3008_v39 = vmul.f32 %v8052_v26, %v8052_v26  ;;  %v3245_v6 = vmul.f32 %v3244_v31, %v7891_v11  ;;  %v4978_v3 = vld [vmem:[#allocation2 + $0x130] sm:$0xff]  ;;  %v3482_v59 = vpop.f32.mrf.mxu1 }
 0x329   :  { %v8070_v55 = vadd.f32 %v3479_v58, %v7782_v30  ;;  %v2908_v48 = vadd.f32 0.4994258, %v2907_v53  ;;  %v3267_v54 = vmul.f32 %v3266_v28, %v7731_v21  ;;  %v3305_v32 = vmul.f32 %v3304_v1, %v7787_v25  ;;  %v4977_v53 = vld [vmem:[#allocation2 + $0x128] sm:$0xff]  ;;  %4998 = vmatpush.msra.mxu2 %v4978_v3  ;;  %5277 = vmatpush.msra.mxu3 %v4978_v3 }
 0x32a   :  { %v3678_v12 = vadd.f32 1.1283791, %v3677_v47  ;;  %v8075_v38 = vmul.f32 0.5, %v7922_v63  ;;  %v8078_v44 = vmul.f32 0.5, %v7937_v33  ;;  %v5200_v11 = vclamps-f32 %v3245_v6, 1.0 }
 0x32b   :  { %v3337_v17 = vadd.f32 0.18741608, %v3336_v49  ;;  %v3751_v58 = vmul.f32 %v3750_v10, %v8028_v13  ;;  %v2909_v56 = vmul.f32 %v2908_v48, %v7691_v22  ;;  %v3268_v42 = vadd.f32 0.4994258, %v3267_v54  ;;  %4999 = vmatpush.msra.mxu2 %v4977_v53  ;;  %5278 = vmatpush.msra.mxu3 %v4977_v53 }
 0x32c   :  { %v3716_v4 = vadd.f32 0.18741608, %v3715_v24  ;;  %v2976_v45 = vmul.f32 %v2975_v23, %v7982_v50  ;;  %v8083_v47 = vmin.f32 %v3008_v39, 16.0  ;;  %v3396_v63 = vadd.f32 1.0, %v5200_v11  ;;  %v4976_v23 = vld [vmem:[#allocation2 + $0x120] sm:$0xff] }
 0x32d   :  { %v5441_v33 = vpop.eup %5440  ;;  %v8086_v1 = vmul.f32 0.70710677, %v8070_v55  ;;  %v8088_v51 = vadd.f32 1.0, %v2909_v56  ;;  %v3269_v22 = vmul.f32 %v3268_v42, %v7731_v21  ;;  %v3306_v28 = vadd.f32 0.112945676, %v3305_v32  ;;  %5000 = vmatpush.msra.mxu2 %v4976_v23  ;;  %5279 = vmatpush.msra.mxu3 %v4976_v23 }
 0x32e   :  { %v8092_v49 = vmul.f32 %v3678_v12, %v7864_v57  ;;  %v8095_v10 = vmul.f32 0.5, %v7987_v35  ;;  %v3428_v31 = vmul.f32 %v3396_v63, %v7765_v34  ;;  %v2872_v24 = vmul.f32 %v5441_v33, %v8057_v61 }
 0x32f   :  { %v3338_v39 = vmul.f32 %v3337_v17, %v7959_v2  ;;  %v3752_v6 = vadd.f32 0.0036580483, %v3751_v58  ;;  %5442 = vrcp.f32 %v8088_v51  ;;  %v8102_v21 = vadd.f32 %v3482_v59, %v7782_v30  ;;  %v4974_v17 = vld [vmem:[#allocation2 + $0x110] sm:$0xff]  ;;  %5001 = vmatpush.msra.mxu2 %v4975_v16  ;;  %5280 = vmatpush.msra.mxu3 %v4975_v16  ;;  %v4973_v59 = vld [vmem:[#allocation2 + $0x108] sm:$0xff] }
 0x330   :  { %v3717_v57 = vmul.f32 %v3716_v4, %v7969_v0  ;;  %v3010_v35 = vmul.f32 2.1237322e-06, %v8083_v47  ;;  %3550 = vmatmul.f32.gmra.mxu3 %v3428_v31  ;;  %v2873_v15 = vsub.f32 1.0, %v2872_v24  ;;  %v8106_v34 = vadd.f32 1.0, %v3269_v22 }
 0x331   :  { %v2977_v48 = vadd.f32 0.18741608, %v2976_v45  ;;  %v2882_v54 = vand.u32 2147483648, %v8057_v61  ;;  %v3787_v32 = vmul.f32 %v8086_v1, %v8086_v1  ;;  %v3307_v12 = vmul.f32 %v3306_v28, %v7787_v25  ;;  %5002 = vmatpush.msra.mxu2 %v4974_v17  ;;  %5281 = vmatpush.msra.mxu3 %v4974_v17 }
 0x332   :  { %v2874_v11 = vmul.f32 %v5441_v33, %v2873_v15  ;;  %vm2877_vm0 = vweird.f32 %v5441_v33  ;;  %v2880_v3 = vand.u32 2147483647, %v8057_v61  ;;  %5444 = vrcp.f32 %v8106_v34 }
 0x333   :  { %v8114_v58 = vadd.f32 1.1283791, %v3338_v39  ;;  %v3753_v56 = vmul.f32 %v3752_v6, %v8028_v13  ;;  %v8118_v42 = vmul.f32 0.5, %v8043_v60  ;;  %v8121_v4 = vmul.f32 0.70710677, %v8102_v21  ;;  %v4972_v6 = vld [vmem:[#allocation2 + $0x100] sm:$0xff]  ;;  %5003 = vmatpush.msra.mxu2 %v4973_v59  ;;  %5282 = vmatpush.msra.mxu3 %v4973_v59 }
 0x334   :  { %v3011_v45 = vadd.f32 0.00028619796, %v3010_v35  ;;  %v2875_v63 = vadd.f32 %v5441_v33, %v2874_v11  ;;  %vm2876_vm1 = vweird.f32 %v8057_v61  ;;  %v2941_v53 = vmul.f32 3.8918573e-05, %v7808_v19 }
 0x335   :  { %9504 = vst [vmem:[#allocation5_spill] sm:$0xff] %v8118_v42  ;;  %v5443_v22 = vpop.eup %5442  ;;  %v8125_v28 = vadd.f32 1.1283791, %v3717_v57  ;;  %vm2878_vm2 = vmor %vm2876_vm1, %vm2877_vm0  ;;  %v2883_v31 = vor.u32 1.1754944e-38, %v2882_v54  ;;  %v8128_v60 = vmin.f32 %v3787_v32, 16.0  ;;  %v8131_v23 = vmul.f32 %v2977_v48, %v7982_v50  ;;  %5004 = vmatpush.msra.mxu2 %v4972_v6  ;;  %5283 = vmatpush.msra.mxu3 %v4972_v6 }
 0x336   :  { %v3308_v24 = vadd.f32 0.4994258, %v3307_v12  ;;  %v2879_v39 = vsel %vm2878_vm2, %v5441_v33, %v2875_v63  ;;  %vm2881_vm3 = vcmp.eq.f32.partialorder %v2880_v3, 8.507059e+37  ;;  %v2912_v61 = vmul.f32 %v5443_v22, %v8088_v51 }
 0x337   :  { %v3754_v35 = vadd.f32 0.05243302, %v3753_v56  ;;  %v2884_v15 = vsel %vm2881_vm3, %v2883_v31, %v2879_v39  ;;  %v3827_v57 = vmul.f32 %v8121_v4, %v8121_v4  ;;  %v3012_v32 = vmul.f32 %v3011_v45, %v8083_v47 }
 0x338   :  { %v3309_v16 = vmul.f32 %v3308_v24, %v7787_v25  ;;  %v5445_v54 = vpop.eup %5444  ;;  %v2885_v12 = vmul.f32 %v2884_v15, %v7894_v29  ;;  %v2913_v48 = vsub.f32 1.0, %v2912_v61  ;;  %v2942_v11 = vadd.f32 0.001143296, %v2941_v53 }
 0x339   :  { %v3789_v33 = vmul.f32 2.1237322e-06, %v8128_v60  ;;  %v2920_v3 = vand.u32 2147483647, %v8088_v51  ;;  %v2922_v17 = vand.u32 2147483648, %v8088_v51  ;;  %v3272_v56 = vmul.f32 %v5445_v54, %v8106_v34 }
 0x33a   :  { %v5191_v63 = vclamps-f32 %v2885_v12, 1.0  ;;  %v2914_v31 = vmul.f32 %v5443_v22, %v2913_v48  ;;  %vm2917_vm4 = vweird.f32 %v5443_v22  ;;  %v8143_v25 = vadd.f32 1.0, %v3309_v16  ;;  %v3485_v12 = vpop.f32.mrf.mxu1 }
 0x33b   :  { %vm2916_vm5 = vweird.f32 %v8088_v51  ;;  %v8146_v29 = vmin.f32 %v3827_v57, 16.0  ;;  %v3273_v45 = vsub.f32 1.0, %v3272_v56  ;;  %v3282_v59 = vand.u32 2147483648, %v8106_v34 }
 0x33c   :  { %v3387_v53 = vadd.f32 1.0, %v5191_v63  ;;  %v2915_v24 = vadd.f32 %v5443_v22, %v2914_v31  ;;  %5446 = vrcp.f32 %v8143_v25  ;;  %v2943_v39 = vmul.f32 %v2942_v11, %v7808_v19  ;;  %vm2918_vm6 = vmor %vm2916_vm5, %vm2917_vm4 }
 0x33d   :  { %v2923_v61 = vor.u32 1.1754944e-38, %v2922_v17  ;;  %v3274_v15 = vmul.f32 %v5445_v54, %v3273_v45  ;;  %vm3277_vm7 = vweird.f32 %v5445_v54  ;;  %v3280_v16 = vand.u32 2147483647, %v8106_v34 }
 0x33e   :  { %v3013_v6 = vadd.f32 0.0036580483, %v3012_v32  ;;  %v3419_v51 = vmul.f32 %v3387_v53, %v7804_v52  ;;  %v2919_v57 = vsel %vm2918_vm6, %v5443_v22, %v2915_v24  ;;  %vm2921_vm8 = vcmp.eq.f32.partialorder %v2920_v3, 8.507059e+37 }
 0x33f   :  { %v2924_v48 = vsel %vm2921_vm8, %v2923_v61, %v2919_v57  ;;  %v3829_v56 = vmul.f32 2.1237322e-06, %v8146_v29  ;;  %v3275_v63 = vadd.f32 %v5445_v54, %v3274_v15  ;;  %vm3276_vm9 = vweird.f32 %v8106_v34 }
 0x340   :  { %3523 = vmatmul.f32.gmra.mxu1 %v3419_v51  ;;  %v3790_v11 = vadd.f32 0.00028619796, %v3789_v33  ;;  %v2925_v17 = vmul.f32 %v2924_v48, %v7904_v27  ;;  %vm3278_vm10 = vmor %vm3276_vm9, %vm3277_vm7  ;;  %v3283_v31 = vor.u32 1.1754944e-38, %v3282_v59  ;;  %v2944_v45 = vadd.f32 0.014752088, %v2943_v39 }
 0x341   :  { %v3279_v42 = vsel %vm3278_vm10, %v5445_v54, %v3275_v63  ;;  %vm3281_vm11 = vcmp.eq.f32.partialorder %v3280_v16, 8.507059e+37  ;;  %v8157_v52 = vadd.f32 %v3485_v12, %v7782_v30  ;;  %v3640_v22 = vmul.f32 3.8918573e-05, %v7846_v8  ;;  %v9505_v12 = vld [vmem:[#allocation6_spill] sm:$0xff] }
 0x342   :  { %v5447_v32 = vpop.eup %5446  ;;  %v3755_v3 = vmul.f32 %v3754_v35, %v8028_v13  ;;  %v5192_v53 = vclamps-f32 %v2925_v17, 1.0  ;;  %v3284_v24 = vsel %vm3281_vm11, %v3283_v31, %v3279_v42  ;;  %v2945_v34 = vmul.f32 %v2944_v45, %v7808_v19 }
 0x343   :  { %v3014_v33 = vmul.f32 %v3013_v6, %v8083_v47  ;;  %v3830_v27 = vadd.f32 0.00028619796, %v3829_v56  ;;  %v3285_v59 = vmul.f32 %v3284_v24, %v8006_v46  ;;  %v3312_v54 = vmul.f32 %v5447_v32, %v8143_v25 }
 0x344   :  { %v3791_v39 = vmul.f32 %v3790_v11, %v8128_v60  ;;  %v3388_v61 = vadd.f32 1.0, %v5192_v53  ;;  %v2946_v15 = vadd.f32 0.112945676, %v2945_v34  ;;  %v3641_v16 = vadd.f32 0.001143296, %v3640_v22 }
 0x345   :  { %v5201_v51 = vclamps-f32 %v3285_v59, 1.0  ;;  %v8167_v57 = vmul.f32 0.70710677, %v8157_v52  ;;  %v3313_v35 = vsub.f32 1.0, %v3312_v54  ;;  %v3322_v42 = vand.u32 2147483648, %v8143_v25 }
 0x346   :  { %v3420_v48 = vmul.f32 %v3388_v61, %v9505_v12  ;;  %v2947_v6 = vmul.f32 %v2946_v15, %v7808_v19  ;;  %v3642_v46 = vmul.f32 %v3641_v16, %v7846_v8  ;;  %v3680_v56 = vmul.f32 3.8918573e-05, %v7888_v41 }
 0x347   :  { %v3397_v63 = vadd.f32 1.0, %v5201_v51  ;;  %v3314_v11 = vmul.f32 %v5447_v32, %v3313_v35  ;;  %vm3317_vm12 = vweird.f32 %v5447_v32  ;;  %v3320_v17 = vand.u32 2147483647, %v8143_v25 }
 0x348   :  { %3526 = vmatmul.f32.gmra.mxu1 %v3420_v48  ;;  %vm3316_vm13 = vweird.f32 %v8143_v25  ;;  %v2948_v31 = vadd.f32 0.4994258, %v2947_v6  ;;  %v3643_v45 = vadd.f32 0.014752088, %v3642_v46  ;;  %v3681_v22 = vadd.f32 0.001143296, %v3680_v56 }
 0x349   :  { %v3429_v53 = vmul.f32 %v3397_v63, %v7907_v40  ;;  %v3315_v24 = vadd.f32 %v5447_v32, %v3314_v11  ;;  %v3323_v34 = vor.u32 1.1754944e-38, %v3322_v42  ;;  %v3341_v59 = vmul.f32 3.8918573e-05, %v7959_v2  ;;  %vm3318_vm14 = vmor %vm3316_vm13, %vm3317_vm12 }
 0x34a   :  { %v2949_v54 = vmul.f32 %v2948_v31, %v7808_v19  ;;  %v3644_v61 = vmul.f32 %v3643_v45, %v7846_v8  ;;  %v3682_v15 = vmul.f32 %v3681_v22, %v7888_v41  ;;  %v3720_v16 = vmul.f32 3.8918573e-05, %v7969_v0 }
 0x34b   :  { %v3831_v25 = vmul.f32 %v3830_v27, %v8146_v29  ;;  %3553 = vmatmul.f32.gmra.mxu3 %v3429_v53  ;;  %v3319_v51 = vsel %vm3318_vm14, %v5447_v32, %v3315_v24  ;;  %vm3321_vm15 = vcmp.eq.f32.partialorder %v3320_v17, 8.507059e+37  ;;  %v3342_v35 = vadd.f32 0.001143296, %v3341_v59 }
 0x34c   :  { %v3324_v40 = vsel %vm3321_vm15, %v3323_v34, %v3319_v51  ;;  %v8183_v12 = vadd.f32 1.0, %v2949_v54  ;;  %v3645_v42 = vadd.f32 0.112945676, %v3644_v61  ;;  %v3683_v48 = vadd.f32 0.014752088, %v3682_v15 }
 0x34d   :  { %v8187_v19 = vmul.f32 %v8114_v58, %v7929_v37  ;;  %v3325_v6 = vmul.f32 %v3324_v40, %v8018_v9  ;;  %v3343_v46 = vmul.f32 %v3342_v35, %v7959_v2  ;;  %v3721_v56 = vadd.f32 0.001143296, %v3720_v16 }
 0x34e   :  { %v2979_v27 = vadd.f32 1.1283791, %v8131_v23  ;;  %v3756_v63 = vadd.f32 0.18741608, %v3755_v3  ;;  %v3015_v32 = vadd.f32 0.05243302, %v3014_v33  ;;  %5448 = vrcp.f32 %v8183_v12 }
 0x34f   :  { %v3792_v11 = vadd.f32 0.0036580483, %v3791_v39  ;;  %v5202_v17 = vclamps-f32 %v3325_v6, 1.0  ;;  %v3646_v31 = vmul.f32 %v3645_v42, %v7846_v8  ;;  %v3684_v45 = vmul.f32 %v3683_v48, %v7888_v41 }
 0x350   :  { %v3832_v22 = vadd.f32 0.0036580483, %v3831_v25  ;;  %v3867_v37 = vmul.f32 %v8167_v57, %v8167_v57  ;;  %v3344_v9 = vadd.f32 0.014752088, %v3343_v46  ;;  %v3722_v58 = vmul.f32 %v3721_v56, %v7969_v0 }
 0x351   :  { %v8200_v23 = vmul.f32 %v8125_v28, %v7940_v20  ;;  %v3398_v3 = vadd.f32 1.0, %v5202_v17  ;;  %v3647_v33 = vadd.f32 0.4994258, %v3646_v31  ;;  %v3685_v53 = vadd.f32 0.112945676, %v3684_v45 }
 0x352   :  { %v8203_v39 = vmul.f32 %v2979_v27, %v7956_v5  ;;  %v3016_v24 = vmul.f32 %v3015_v32, %v8083_v47  ;;  %v3345_v34 = vmul.f32 %v3344_v9, %v7959_v2  ;;  %v3723_v59 = vadd.f32 0.014752088, %v3722_v58  ;;  %v3488_v9 = vpop.f32.mrf.mxu1 }
 0x353   :  { %v3793_v54 = vmul.f32 %v3792_v11, %v8128_v60  ;;  %v3430_v61 = vmul.f32 %v3398_v3, %v7915_v36  ;;  %v3648_v15 = vmul.f32 %v3647_v33, %v7846_v8  ;;  %v2981_v20 = vmul.f32 3.8918573e-05, %v7982_v50 }
 0x354   :  { %v5449_v28 = vpop.eup %5448  ;;  %v8211_v16 = vmin.f32 %v3867_v37, 16.0  ;;  %v3686_v25 = vmul.f32 %v3685_v53, %v7888_v41  ;;  %v3346_v5 = vadd.f32 0.112945676, %v3345_v34  ;;  %v3724_v51 = vmul.f32 %v3723_v59, %v7969_v0 }
 0x355   :  { %v3757_v35 = vmul.f32 %v3756_v63, %v8028_v13  ;;  %v3833_v40 = vmul.f32 %v3832_v22, %v8146_v29  ;;  %3556 = vmatmul.f32.gmra.mxu3 %v3430_v61  ;;  %v2952_v42 = vmul.f32 %v5449_v28, %v8183_v12  ;;  %v8218_v36 = vadd.f32 1.0, %v3648_v15 }
 0x356   :  { %v3017_v8 = vadd.f32 0.18741608, %v3016_v24  ;;  %v3687_v48 = vadd.f32 0.4994258, %v3686_v25  ;;  %v3347_v6 = vmul.f32 %v3346_v5, %v7959_v2  ;;  %v3725_v46 = vadd.f32 0.112945676, %v3724_v51 }
 0x357   :  { %v3794_v56 = vadd.f32 0.05243302, %v3793_v54  ;;  %v2953_v27 = vsub.f32 1.0, %v2952_v42  ;;  %5450 = vrcp.f32 %v8218_v36  ;;  %v2982_v32 = vadd.f32 0.001143296, %v2981_v20 }
 0x358   :  { %v3869_v11 = vmul.f32 2.1237322e-06, %v8211_v16  ;;  %v2962_v63 = vand.u32 2147483648, %v8183_v12  ;;  %v3688_v17 = vmul.f32 %v3687_v48, %v7888_v41  ;;  %v3348_v31 = vadd.f32 0.4994258, %v3347_v6 }
 0x359   :  { %v3834_v45 = vadd.f32 0.05243302, %v3833_v40  ;;  %v2954_v22 = vmul.f32 %v5449_v28, %v2953_v27  ;;  %vm2957_vm0 = vweird.f32 %v5449_v28  ;;  %v2960_v37 = vand.u32 2147483647, %v8183_v12 }
 0x35a   :  { %v3018_v58 = vmul.f32 %v3017_v8, %v8083_v47  ;;  %v8227_v3 = vadd.f32 1.0, %v3688_v17  ;;  %v3349_v33 = vmul.f32 %v3348_v31, %v7959_v2  ;;  %v3726_v53 = vmul.f32 %v3725_v46, %v7969_v0 }
 0x35b   :  { %v3795_v24 = vmul.f32 %v3794_v56, %v8128_v60  ;;  %v2955_v34 = vadd.f32 %v5449_v28, %v2954_v22  ;;  %vm2956_vm1 = vweird.f32 %v8183_v12  ;;  %v2983_v41 = vmul.f32 %v2982_v32, %v7982_v50 }
 0x35c   :  { %v3870_v59 = vadd.f32 0.00028619796, %v3869_v11  ;;  %vm2958_vm2 = vmor %vm2956_vm1, %vm2957_vm0  ;;  %v2963_v54 = vor.u32 1.1754944e-38, %v2962_v63  ;;  %v8235_v61 = vadd.f32 %v3488_v9, %v7782_v30  ;;  %5452 = vrcp.f32 %v8227_v3 }
 0x35d   :  { %v5451_v15 = vpop.eup %5450  ;;  %v3835_v2 = vmul.f32 %v3834_v45, %v8146_v29  ;;  %v2959_v20 = vsel %vm2958_vm2, %v5449_v28, %v2955_v34  ;;  %vm2961_vm3 = vcmp.eq.f32.partialorder %v2960_v37, 8.507059e+37  ;;  %v8239_v25 = vadd.f32 1.0, %v3349_v33 }
 0x35e   :  { %v8241_v5 = vadd.f32 1.1283791, %v3757_v35  ;;  %v2964_v12 = vsel %vm2961_vm3, %v2963_v54, %v2959_v20  ;;  %v3651_v51 = vmul.f32 %v5451_v15, %v8218_v36  ;;  %v3727_v40 = vadd.f32 0.4994258, %v3726_v53  ;;  %v9506_v53 = vld [vmem:[#allocation7_spill] sm:$0xff] }
 0x35f   :  { %v8244_v42 = vadd.f32 1.1283791, %v3018_v58  ;;  %v8247_v8 = vmul.f32 0.5, %v8070_v55  ;;  %v2965_v48 = vmul.f32 %v2964_v12, %v8026_v62  ;;  %v2984_v6 = vadd.f32 0.014752088, %v2983_v41  ;;  %v3491_v41 = vpop.f32.mrf.mxu1 }
 0x360   :  { %v3652_v46 = vsub.f32 1.0, %v3651_v51  ;;  %v3661_v28 = vand.u32 2147483648, %v8218_v36  ;;  %v8252_v56 = vmul.f32 0.70710677, %v8235_v61  ;;  %5454 = vrcp.f32 %v8239_v25 }
 0x361   :  { %v8255_v35 = vadd.f32 0.18741608, %v3795_v24  ;;  %v8257_v27 = vadd.f32 0.18741608, %v3835_v2  ;;  %v3871_v32 = vmul.f32 %v3870_v59, %v8211_v16  ;;  %v5193_v11 = vclamps-f32 %v2965_v48, 1.0 }
 0x362   :  { %v5453_v55 = vpop.eup %5452  ;;  %v3653_v63 = vmul.f32 %v5451_v15, %v3652_v46  ;;  %vm3656_vm4 = vweird.f32 %v5451_v15  ;;  %v3659_v62 = vand.u32 2147483647, %v8218_v36  ;;  %v3728_v17 = vmul.f32 %v3727_v40, %v7969_v0 }
 0x363   :  { %v3389_v31 = vadd.f32 1.0, %v5193_v11  ;;  %v3691_v45 = vmul.f32 %v5453_v55, %v8227_v3  ;;  %v2985_v22 = vmul.f32 %v2984_v6, %v7982_v50  ;;  %v3760_v37 = vmul.f32 3.8918573e-05, %v8028_v13 }
 0x364   :  { %v3654_v9 = vadd.f32 %v5451_v15, %v3653_v63  ;;  %vm3655_vm5 = vweird.f32 %v8218_v36  ;;  %v3662_v58 = vor.u32 1.1754944e-38, %v3661_v28  ;;  %v3907_v33 = vmul.f32 %v8252_v56, %v8252_v56 }
 0x365   :  { %v3421_v24 = vmul.f32 %v3389_v31, %v9506_v53  ;;  %vm3657_vm6 = vmor %vm3655_vm5, %vm3656_vm4  ;;  %v3692_v34 = vsub.f32 1.0, %v3691_v45  ;;  %v3699_v0 = vand.u32 2147483647, %v8227_v3  ;;  %v8270_v59 = vadd.f32 1.0, %v3728_v17 }
 0x366   :  { %v5455_v54 = vpop.eup %5454  ;;  %v3658_v2 = vsel %vm3657_vm6, %v5451_v15, %v3654_v9  ;;  %vm3660_vm7 = vcmp.eq.f32.partialorder %v3659_v62, 8.507059e+37  ;;  %vm3696_vm8 = vweird.f32 %v5453_v55  ;;  %v3701_v20 = vand.u32 2147483648, %v8227_v3 }
 0x367   :  { %3529 = vmatmul.f32.gmra.mxu1 %v3421_v24  ;;  %v3663_v36 = vsel %vm3660_vm7, %v3662_v58, %v3658_v2  ;;  %v3693_v12 = vmul.f32 %v5453_v55, %v3692_v34  ;;  %v3352_v51 = vmul.f32 %v5455_v54, %v8239_v25  ;;  %v2986_v40 = vadd.f32 0.112945676, %v2985_v22 }
 0x368   :  { %v3664_v48 = vmul.f32 %v3663_v36, %v8032_v43  ;;  %v8275_v6 = vmin.f32 %v3907_v33, 16.0  ;;  %v8278_v46 = vadd.f32 %v3491_v41, %v7782_v30  ;;  %5456 = vrcp.f32 %v8270_v59 }
 0x369   :  { %v3694_v15 = vadd.f32 %v5453_v55, %v3693_v12  ;;  %vm3695_vm9 = vweird.f32 %v8227_v3  ;;  %vm3700_vm10 = vcmp.eq.f32.partialorder %v3699_v0, 8.507059e+37  ;;  %v3353_v28 = vsub.f32 1.0, %v3352_v51  ;;  %v9507_v0 = vld [vmem:[#allocation8_spill] sm:$0xff] }
 0x36a   :  { %v5204_v11 = vclamps-f32 %v3664_v48, 1.0  ;;  %vm3697_vm11 = vmor %vm3695_vm9, %vm3696_vm8  ;;  %v3702_v63 = vor.u32 1.1754944e-38, %v3701_v20  ;;  %v3360_v62 = vand.u32 2147483647, %v8239_v25  ;;  %v3362_v43 = vand.u32 2147483648, %v8239_v25 }
 0x36b   :  { %v3698_v17 = vsel %vm3697_vm11, %v5453_v55, %v3694_v15  ;;  %v3354_v31 = vmul.f32 %v5455_v54, %v3353_v28  ;;  %vm3357_vm12 = vweird.f32 %v5455_v54  ;;  %v2987_v45 = vmul.f32 %v2986_v40, %v7982_v50 }
 0x36c   :  { %v3872_v22 = vadd.f32 0.0036580483, %v3871_v32  ;;  %v4907_v9 = vadd.f32 1.0, %v5204_v11  ;;  %v3909_v58 = vmul.f32 2.1237322e-06, %v8275_v6  ;;  %v3703_v3 = vsel %vm3700_vm10, %v3702_v63, %v3698_v17  ;;  %v3494_v63 = vpop.f32.mrf.mxu1 }
 0x36d   :  { %v3704_v33 = vmul.f32 %v3703_v3, %v8092_v49  ;;  %v8289_v53 = vmul.f32 0.70710677, %v8278_v46  ;;  %v3355_v24 = vadd.f32 %v5455_v54, %v3354_v31  ;;  %vm3356_vm13 = vweird.f32 %v8239_v25 }
 0x36e   :  { %v5457_v34 = vpop.eup %5456  ;;  %v4939_v55 = vmul.f32 %v4907_v9, %v9507_v0  ;;  %vm3358_vm14 = vmor %vm3356_vm13, %vm3357_vm12  ;;  %v3363_v41 = vor.u32 1.1754944e-38, %v3362_v43  ;;  %v2988_v2 = vadd.f32 0.4994258, %v2987_v45  ;;  %v3761_v20 = vadd.f32 0.001143296, %v3760_v37 }
 0x36f   :  { %v5205_v32 = vclamps-f32 %v3704_v33, 1.0  ;;  %v3359_v36 = vsel %vm3358_vm14, %v5455_v54, %v3355_v24  ;;  %vm3361_vm15 = vcmp.eq.f32.partialorder %v3360_v62, 8.507059e+37  ;;  %v3731_v12 = vmul.f32 %v5457_v34, %v8270_v59 }
 0x370   :  { %v3873_v49 = vmul.f32 %v3872_v22, %v8211_v16  ;;  %5005 = vmatmul.f32.vlgmr.msra.gmra.mxu2 %v4939_v55  ;;  %v3910_v51 = vadd.f32 0.00028619796, %v3909_v58  ;;  %v3364_v40 = vsel %vm3361_vm15, %v3363_v41, %v3359_v36  ;;  %v2989_v48 = vmul.f32 %v2988_v2, %v7982_v50 }
 0x371   :  { %v4908_v25 = vadd.f32 1.0, %v5205_v32  ;;  %v3947_v15 = vmul.f32 %v8289_v53, %v8289_v53  ;;  %v3365_v28 = vmul.f32 %v3364_v40, %v8187_v19  ;;  %v3732_v11 = vsub.f32 1.0, %v3731_v12 }
 0x372   :  { %v3741_v37 = vand.u32 2147483648, %v8270_v59  ;;  %v8300_v54 = vadd.f32 1.0, %v2989_v48  ;;  %v3762_v62 = vmul.f32 %v3761_v20, %v8028_v13  ;;  %v3021_v43 = vmul.f32 3.8918573e-05, %v8083_v47 }
 0x373   :  { %v5203_v17 = vclamps-f32 %v3365_v28, 1.0  ;;  %v3733_v31 = vmul.f32 %v5457_v34, %v3732_v11  ;;  %vm3736_vm0 = vweird.f32 %v5457_v34  ;;  %v3739_v50 = vand.u32 2147483647, %v8270_v59 }
 0x374   :  { %v8305_v45 = vadd.f32 0.05243302, %v3873_v49  ;;  %v3911_v22 = vmul.f32 %v3910_v51, %v8275_v6  ;;  %v4940_v19 = vmul.f32 %v4908_v25, %v8012_v18  ;;  %5458 = vrcp.f32 %v8300_v54 }
 0x375   :  { %v3399_v9 = vadd.f32 1.0, %v5203_v17  ;;  %v3734_v58 = vadd.f32 %v5457_v34, %v3733_v31  ;;  %vm3735_vm1 = vweird.f32 %v8270_v59  ;;  %v8312_v3 = vadd.f32 %v3494_v63, %v7782_v30 }
 0x376   :  { %v8314_v33 = vmin.f32 %v3947_v15, 16.0  ;;  %vm3737_vm2 = vmor %vm3735_vm1, %vm3736_vm0  ;;  %v3742_v24 = vor.u32 1.1754944e-38, %v3741_v37  ;;  %v3763_v0 = vadd.f32 0.014752088, %v3762_v62  ;;  %v3022_v55 = vadd.f32 0.001143296, %v3021_v43 }
 0x377   :  { %v3431_v41 = vmul.f32 %v3399_v9, %v8061_v7  ;;  %v3738_v2 = vsel %vm3737_vm2, %v5457_v34, %v3734_v58  ;;  %vm3740_vm3 = vcmp.eq.f32.partialorder %v3739_v50, 8.507059e+37  ;;  %v3800_v18 = vmul.f32 3.8918573e-05, %v8128_v60 }
 0x378   :  { %5008 = vmatmul.f32.gmra.mxu2 %v4940_v19  ;;  %v3743_v20 = vsel %vm3740_vm3, %v3742_v24, %v3738_v2  ;;  %v3764_v32 = vmul.f32 %v3763_v0, %v8028_v13  ;;  %v3023_v59 = vmul.f32 %v3022_v55, %v8083_v47  ;;  %v3840_v36 = vmul.f32 3.8918573e-05, %v8146_v29 }
 0x379   :  { %v3912_v12 = vadd.f32 0.0036580483, %v3911_v22  ;;  %3559 = vmatmul.f32.gmra.mxu3 %v3431_v41  ;;  %v3744_v49 = vmul.f32 %v3743_v20, %v8200_v23  ;;  %v8323_v51 = vmul.f32 0.70710677, %v8312_v3  ;;  %v3801_v7 = vadd.f32 0.001143296, %v3800_v18 }
 0x37a   :  { %v5459_v34 = vpop.eup %5458  ;;  %v8327_v40 = vmul.f32 %v8241_v5, %v7996_v14  ;;  %v3765_v48 = vadd.f32 0.112945676, %v3764_v32  ;;  %v3024_v25 = vadd.f32 0.014752088, %v3023_v59  ;;  %v3841_v15 = vadd.f32 0.001143296, %v3840_v36 }
 0x37b   :  { %v3949_v28 = vmul.f32 2.1237322e-06, %v8314_v33  ;;  %v5206_v11 = vclamps-f32 %v3744_v49, 1.0  ;;  %v2992_v37 = vmul.f32 %v5459_v34, %v8300_v54  ;;  %v3000_v63 = vand.u32 2147483647, %v8300_v54 }
 0x37c   :  { %v3766_v23 = vmul.f32 %v3765_v48, %v8028_v13  ;;  %v3025_v62 = vmul.f32 %v3024_v25, %v8083_v47  ;;  %v3802_v43 = vmul.f32 %v3801_v7, %v8128_v60  ;;  %v3842_v17 = vmul.f32 %v3841_v15, %v8146_v29  ;;  %v3497_v25 = vpop.f32.mrf.mxu1 }
 0x37d   :  { %v4909_v14 = vadd.f32 1.0, %v5206_v11  ;;  %v2993_v5 = vsub.f32 1.0, %v2992_v37  ;;  %v3002_v31 = vand.u32 2147483648, %v8300_v54  ;;  %v3987_v50 = vmul.f32 %v8323_v51, %v8323_v51 }
 0x37e   :  { %v3797_v22 = vmul.f32 %v8255_v35, %v8128_v60  ;;  %v3767_v19 = vadd.f32 0.4994258, %v3766_v23  ;;  %v3026_v9 = vadd.f32 0.112945676, %v3025_v62  ;;  %v3803_v58 = vadd.f32 0.014752088, %v3802_v43 }
 0x37f   :  { %v4941_v24 = vmul.f32 %v4909_v14, %v8075_v38  ;;  %v2994_v0 = vmul.f32 %v5459_v34, %v2993_v5  ;;  %vm2997_vm4 = vweird.f32 %v5459_v34  ;;  %v3843_v55 = vadd.f32 0.014752088, %v3842_v17 }
 0x380   :  { %v3913_v41 = vmul.f32 %v3912_v12, %v8275_v6  ;;  %v3768_v2 = vmul.f32 %v3767_v19, %v8028_v13  ;;  %v3027_v18 = vmul.f32 %v3026_v9, %v8083_v47  ;;  %v3804_v20 = vmul.f32 %v3803_v58, %v8128_v60 }
 0x381   :  { %5011 = vmatmul.f32.gmra.mxu2 %v4941_v24  ;;  %v2995_v32 = vadd.f32 %v5459_v34, %v2994_v0  ;;  %vm2996_vm5 = vweird.f32 %v8300_v54  ;;  %v8347_v35 = vmin.f32 %v3987_v50, 16.0  ;;  %v3844_v59 = vmul.f32 %v3843_v55, %v8146_v29 }
 0x382   :  { %vm2998_vm6 = vmor %vm2996_vm5, %vm2997_vm4  ;;  %v3003_v38 = vor.u32 1.1754944e-38, %v3002_v31  ;;  %v8350_v36 = vadd.f32 1.0, %v3768_v2  ;;  %v3028_v49 = vadd.f32 0.4994258, %v3027_v18  ;;  %v3805_v12 = vadd.f32 0.112945676, %v3804_v20 }
 0x383   :  { %v3875_v13 = vmul.f32 %v8305_v45, %v8211_v16  ;;  %v3950_v7 = vadd.f32 0.00028619796, %v3949_v28  ;;  %v2999_v48 = vsel %vm2998_vm6, %v5459_v34, %v2995_v32  ;;  %vm3001_vm7 = vcmp.eq.f32.partialorder %v3000_v63, 8.507059e+37 }
 0x384   :  { %v3914_v15 = vadd.f32 0.05243302, %v3913_v41  ;;  %v3004_v11 = vsel %vm3001_vm7, %v3003_v38, %v2999_v48  ;;  %5460 = vrcp.f32 %v8350_v36  ;;  %v3880_v54 = vmul.f32 3.8918573e-05, %v8211_v16 }
 0x385   :  { %v3005_v37 = vmul.f32 %v3004_v11, %v8203_v39  ;;  %v3989_v23 = vmul.f32 2.1237322e-06, %v8347_v35  ;;  %v3029_v62 = vmul.f32 %v3028_v49, %v8083_v47  ;;  %v3845_v43 = vadd.f32 0.112945676, %v3844_v59 }
 0x386   :  { %v8361_v45 = vmul.f32 %v8244_v42, %v8052_v26  ;;  %v3798_v34 = vadd.f32 1.1283791, %v3797_v22  ;;  %v8364_v28 = vadd.f32 %v3497_v25, %v7782_v30  ;;  %v3806_v63 = vmul.f32 %v3805_v12, %v8128_v60 }
 0x387   :  { %v3837_v17 = vmul.f32 %v8257_v27, %v8146_v29  ;;  %v3876_v14 = vadd.f32 0.18741608, %v3875_v13  ;;  %v5194_v39 = vclamps-f32 %v3005_v37, 1.0  ;;  %v8369_v5 = vadd.f32 1.0, %v3029_v62 }
 0x388   :  { %v3915_v47 = vmul.f32 %v3914_v15, %v8275_v6  ;;  %v3951_v31 = vmul.f32 %v3950_v7, %v8314_v33  ;;  %v3807_v50 = vadd.f32 0.4994258, %v3806_v63  ;;  %v3881_v26 = vadd.f32 0.001143296, %v3880_v54  ;;  %v3500_v15 = vpop.f32.mrf.mxu1 }
 0x389   :  { %v3390_v42 = vadd.f32 1.0, %v5194_v39  ;;  %v3990_v22 = vadd.f32 0.00028619796, %v3989_v23  ;;  %5462 = vrcp.f32 %v8369_v5  ;;  %v3846_v19 = vmul.f32 %v3845_v43, %v8146_v29 }
 0x38a   :  { %v5461_v9 = vpop.eup %5460  ;;  %v8376_v58 = vmul.f32 0.5, %v8102_v21  ;;  %v8379_v27 = vmul.f32 0.5, %v8157_v52  ;;  %v8382_v24 = vmul.f32 0.70710677, %v8364_v28  ;;  %v3808_v0 = vmul.f32 %v3807_v50, %v8128_v60 }
 0x38b   :  { %v3838_v55 = vadd.f32 1.1283791, %v3837_v17  ;;  %v3877_v41 = vmul.f32 %v3876_v14, %v8211_v16  ;;  %v3422_v2 = vmul.f32 %v3390_v42, %v8078_v44  ;;  %v3771_v18 = vmul.f32 %v5461_v9, %v8350_v36 }
 0x38c   :  { %v3916_v20 = vadd.f32 0.18741608, %v3915_v47  ;;  %v3952_v32 = vadd.f32 0.0036580483, %v3951_v31  ;;  %v8388_v59 = vadd.f32 1.0, %v3808_v0  ;;  %v3882_v21 = vmul.f32 %v3881_v26, %v8211_v16 }
 0x38d   :  { %v8392_v52 = vmul.f32 %v3798_v34, %v8086_v1  ;;  %3532 = vmatmul.f32.gmra.mxu1 %v3422_v2  ;;  %v3991_v38 = vmul.f32 %v3990_v22, %v8347_v35  ;;  %v3772_v60 = vsub.f32 1.0, %v3771_v18  ;;  %v3847_v49 = vadd.f32 0.4994258, %v3846_v19 }
 0x38e   :  { %v3779_v12 = vand.u32 2147483647, %v8350_v36  ;;  %v3781_v44 = vand.u32 2147483648, %v8350_v36  ;;  %v4027_v13 = vmul.f32 %v8382_v24, %v8382_v24  ;;  %5464 = vrcp.f32 %v8388_v59 }
 0x38f   :  { %v5463_v7 = vpop.eup %5462  ;;  %v8401_v48 = vmul.f32 %v3838_v55, %v8121_v4  ;;  %v8403_v1 = vadd.f32 1.1283791, %v3877_v41  ;;  %v3773_v25 = vmul.f32 %v5461_v9, %v3772_v60  ;;  %vm3776_vm8 = vweird.f32 %v5461_v9 }
 0x390   :  { %v3917_v11 = vmul.f32 %v3916_v20, %v8275_v6  ;;  %v3953_v54 = vmul.f32 %v3952_v32, %v8314_v33  ;;  %v3032_v37 = vmul.f32 %v5463_v7, %v8369_v5  ;;  %v3883_v23 = vadd.f32 0.014752088, %v3882_v21 }
 0x391   :  { %v3992_v62 = vadd.f32 0.0036580483, %v3991_v38  ;;  %v3774_v43 = vadd.f32 %v5461_v9, %v3773_v25  ;;  %vm3775_vm9 = vweird.f32 %v8350_v36  ;;  %v3848_v34 = vmul.f32 %v3847_v49, %v8146_v29 }
 0x392   :  { %vm3777_vm10 = vmor %vm3775_vm9, %vm3776_vm8  ;;  %vm3780_vm11 = vcmp.eq.f32.partialorder %v3779_v12, 8.507059e+37  ;;  %v3782_v4 = vor.u32 1.1754944e-38, %v3781_v44  ;;  %v3033_v63 = vsub.f32 1.0, %v3032_v37  ;;  %v8410_v17 = vmin.f32 %v4027_v13, 16.0 }
 0x393   :  { %v3778_v14 = vsel %vm3777_vm10, %v5461_v9, %v3774_v43  ;;  %v3040_v39 = vand.u32 2147483647, %v8369_v5  ;;  %v3042_v47 = vand.u32 2147483648, %v8369_v5  ;;  %v8414_v31 = vadd.f32 1.0, %v3848_v34 }
 0x394   :  { %v5465_v50 = vpop.eup %5464  ;;  %v3783_v26 = vsel %vm3780_vm11, %v3782_v4, %v3778_v14  ;;  %v3034_v42 = vmul.f32 %v5463_v7, %v3033_v63  ;;  %vm3037_vm12 = vweird.f32 %v5463_v7  ;;  %v3884_v36 = vmul.f32 %v3883_v23, %v8211_v16 }
 0x395   :  { %v3954_v29 = vadd.f32 0.05243302, %v3953_v54  ;;  %v3993_v22 = vmul.f32 %v3992_v62, %v8347_v35  ;;  %v3784_v19 = vmul.f32 %v3783_v26, %v8327_v40  ;;  %v3811_v0 = vmul.f32 %v5465_v50, %v8388_v59 }
 0x396   :  { %v3035_v9 = vadd.f32 %v5463_v7, %v3034_v42  ;;  %vm3036_vm13 = vweird.f32 %v8369_v5  ;;  %v4029_v55 = vmul.f32 2.1237322e-06, %v8410_v17  ;;  %5466 = vrcp.f32 %v8414_v31  ;;  %v3503_v5 = vpop.f32.mrf.mxu1 }
 0x397   :  { %v5207_v41 = vclamps-f32 %v3784_v19, 1.0  ;;  %vm3038_vm14 = vmor %vm3036_vm13, %vm3037_vm12  ;;  %vm3041_vm15 = vcmp.eq.f32.partialorder %v3040_v39, 8.507059e+37  ;;  %v3043_v2 = vor.u32 1.1754944e-38, %v3042_v47  ;;  %v3812_v18 = vsub.f32 1.0, %v3811_v0 }
 0x398   :  { %v3039_v20 = vsel %vm3038_vm14, %v5463_v7, %v3035_v9  ;;  %v3819_v32 = vand.u32 2147483647, %v8388_v59  ;;  %v3821_v21 = vand.u32 2147483648, %v8388_v59  ;;  %v3885_v40 = vadd.f32 0.112945676, %v3884_v36  ;;  %v3539_v36 = vpop.f32.mrf.mxu3 }
 0x399   :  { %v4910_v38 = vadd.f32 1.0, %v5207_v41  ;;  %v3044_v60 = vsel %vm3041_vm15, %v3043_v2, %v3039_v20  ;;  %v3813_v49 = vmul.f32 %v5465_v50, %v3812_v18  ;;  %vm3816_vm0 = vweird.f32 %v5465_v50 }
 0x39a   :  { %v8425_v12 = vadd.f32 1.1283791, %v3917_v11  ;;  %v3045_v44 = vmul.f32 %v3044_v60, %v8361_v45  ;;  %v4030_v13 = vadd.f32 0.00028619796, %v4029_v55  ;;  %v8429_v25 = vadd.f32 %v3500_v15, %v7782_v30 }
 0x39b   :  { %v3955_v7 = vmul.f32 %v3954_v29, %v8314_v33  ;;  %v4942_v54 = vmul.f32 %v4910_v38, %v8095_v10  ;;  %v3814_v37 = vadd.f32 %v5465_v50, %v3813_v49  ;;  %vm3815_vm1 = vweird.f32 %v8388_v59  ;;  %v9508_v29 = vld [vmem:[#allocation5_spill] sm:$0xff] }
 0x39c   :  { %v5467_v23 = vpop.eup %5466  ;;  %v5195_v62 = vclamps-f32 %v3045_v44, 1.0  ;;  %vm3817_vm2 = vmor %vm3815_vm1, %vm3816_vm0  ;;  %v3822_v43 = vor.u32 1.1754944e-38, %v3821_v21  ;;  %v3886_v11 = vmul.f32 %v3885_v40, %v8211_v16  ;;  %v3920_v34 = vmul.f32 3.8918573e-05, %v8275_v6 }
 0x39d   :  { %v3994_v45 = vadd.f32 0.05243302, %v3993_v22  ;;  %5014 = vmatmul.f32.gmra.mxu2 %v4942_v54  ;;  %v3818_v4 = vsel %vm3817_vm2, %v5465_v50, %v3814_v37  ;;  %vm3820_vm3 = vcmp.eq.f32.partialorder %v3819_v32, 8.507059e+37  ;;  %v3851_v15 = vmul.f32 %v5467_v23, %v8414_v31 }
 0x39e   :  { %v3391_v63 = vadd.f32 1.0, %v5195_v62  ;;  %v4031_v10 = vmul.f32 %v4030_v13, %v8410_v17  ;;  %v3823_v14 = vsel %vm3820_vm3, %v3822_v43, %v3818_v4  ;;  %v8439_v59 = vmul.f32 0.70710677, %v8429_v25  ;;  %v3506_v38 = vpop.f32.mrf.mxu1 }
 0x39f   :  { %v3956_v39 = vadd.f32 0.18741608, %v3955_v7  ;;  %v3824_v47 = vmul.f32 %v3823_v14, %v8392_v52  ;;  %v3852_v26 = vsub.f32 1.0, %v3851_v15  ;;  %v3887_v42 = vadd.f32 0.4994258, %v3886_v11 }
 0x3a0   :  { %v3423_v22 = vmul.f32 %v3391_v63, %v9508_v29  ;;  %v3859_v50 = vand.u32 2147483647, %v8414_v31  ;;  %v3861_v19 = vand.u32 2147483648, %v8414_v31  ;;  %v3921_v0 = vadd.f32 0.001143296, %v3920_v34 }
 0x3a1   :  { %v5208_v9 = vclamps-f32 %v3824_v47, 1.0  ;;  %v3853_v55 = vmul.f32 %v5467_v23, %v3852_v26  ;;  %vm3856_vm4 = vweird.f32 %v5467_v23  ;;  %v3888_v41 = vmul.f32 %v3887_v42, %v8211_v16 }
 0x3a2   :  { %v3995_v2 = vmul.f32 %v3994_v45, %v8347_v35  ;;  %3535 = vmatmul.f32.gmra.mxu1 %v3423_v22  ;;  %v4032_v18 = vadd.f32 0.0036580483, %v4031_v10  ;;  %v4067_v52 = vmul.f32 %v8439_v59, %v8439_v59  ;;  %v8450_v20 = vadd.f32 %v3539_v36, %v7782_v30 }
 0x3a3   :  { %v4911_v32 = vadd.f32 1.0, %v5208_v9  ;;  %v3854_v21 = vadd.f32 %v5467_v23, %v3853_v55  ;;  %vm3855_vm5 = vweird.f32 %v8414_v31  ;;  %v8453_v40 = vadd.f32 1.0, %v3888_v41 }
 0x3a4   :  { %vm3857_vm6 = vmor %vm3855_vm5, %vm3856_vm4  ;;  %v3862_v60 = vor.u32 1.1754944e-38, %v3861_v19  ;;  %v8456_v16 = vadd.f32 %v3503_v5, %v7782_v30  ;;  %v8459_v49 = vmul.f32 0.70710677, %v8450_v20  ;;  %v3922_v44 = vmul.f32 %v3921_v0, %v8275_v6 }
 0x3a5   :  { %v4943_v13 = vmul.f32 %v4911_v32, %v8247_v8  ;;  %v3858_v7 = vsel %vm3857_vm6, %v5467_v23, %v3854_v21  ;;  %vm3860_vm7 = vcmp.eq.f32.partialorder %v3859_v50, 8.507059e+37  ;;  %5468 = vrcp.f32 %v8453_v40 }
 0x3a6   :  { %v8466_v31 = vmul.f32 %v8403_v1, %v8167_v57  ;;  %v3957_v54 = vmul.f32 %v3956_v39, %v8314_v33  ;;  %v3863_v37 = vsel %vm3860_vm7, %v3862_v60, %v3858_v7  ;;  %v8470_v5 = vadd.f32 %v3506_v38, %v7782_v30 }
 0x3a7   :  { %v3996_v62 = vadd.f32 0.18741608, %v3995_v2  ;;  %v4033_v43 = vmul.f32 %v4032_v18, %v8410_v17  ;;  %5017 = vmatmul.f32.gmra.mxu2 %v4943_v13  ;;  %v8473_v11 = vmin.f32 %v4067_v52, 16.0  ;;  %v3864_v8 = vmul.f32 %v3863_v37, %v8401_v48 }
 0x3a8   :  { %v8477_v23 = vmul.f32 0.5, %v8235_v61  ;;  %v8480_v57 = vmul.f32 0.5, %v8278_v46  ;;  %v4587_v1 = vmul.f32 %v8459_v49, %v8459_v49  ;;  %v3923_v34 = vadd.f32 0.014752088, %v3922_v44 }
 0x3a9   :  { %v8486_v45 = vmul.f32 %v8425_v12, %v8252_v56  ;;  %v8489_v4 = vmul.f32 0.5, %v8312_v3  ;;  %v5209_v15 = vclamps-f32 %v3864_v8, 1.0  ;;  %v8492_v48 = vmul.f32 0.70710677, %v8456_v16 }
 0x3aa   :  { %v3958_v61 = vadd.f32 1.1283791, %v3957_v54  ;;  %v8495_v63 = vmul.f32 0.70710677, %v8470_v5  ;;  %v8497_v46 = vmin.f32 %v4587_v1, 16.0  ;;  %v3924_v10 = vmul.f32 %v3923_v34, %v8275_v6 }
 0x3ab   :  { %v5469_v14 = vpop.eup %5468  ;;  %v3997_v39 = vmul.f32 %v3996_v62, %v8347_v35  ;;  %v4034_v56 = vadd.f32 0.05243302, %v4033_v43  ;;  %v4069_v12 = vmul.f32 2.1237322e-06, %v8473_v11  ;;  %v4912_v3 = vadd.f32 1.0, %v5209_v15  ;;  %v3509_v15 = vpop.f32.mrf.mxu1 }
 0x3ac   :  { %v3891_v47 = vmul.f32 %v5469_v14, %v8453_v40  ;;  %v4589_v26 = vmul.f32 2.1237322e-06, %v8497_v46  ;;  %v3960_v42 = vmul.f32 3.8918573e-05, %v8314_v33  ;;  %v4000_v36 = vmul.f32 3.8918573e-05, %v8347_v35 }
 0x3ad   :  { %v4944_v29 = vmul.f32 %v4912_v3, %v8376_v58  ;;  %v4107_v22 = vmul.f32 %v8492_v48, %v8492_v48  ;;  %v4600_v50 = vmul.f32 3.8918573e-05, %v8497_v46  ;;  %v3925_v19 = vadd.f32 0.112945676, %v3924_v10 }
 0x3ae   :  { %v3892_v0 = vsub.f32 1.0, %v3891_v47  ;;  %v3899_v9 = vand.u32 2147483647, %v8453_v40  ;;  %v4147_v55 = vmul.f32 %v8495_v63, %v8495_v63  ;;  %v4590_v41 = vadd.f32 0.00028619796, %v4589_v26 }
 0x3af   :  { %5020 = vmatmul.f32.gmra.mxu2 %v4944_v29  ;;  %vm3896_vm8 = vweird.f32 %v5469_v14  ;;  %v3901_v2 = vand.u32 2147483648, %v8453_v40  ;;  %v4601_v18 = vadd.f32 0.001143296, %v4600_v50  ;;  %v3926_v58 = vmul.f32 %v3925_v19, %v8275_v6  ;;  %v3542_v29 = vpop.f32.mrf.mxu3 }
 0x3b0   :  { %v3893_v52 = vmul.f32 %v5469_v14, %v3892_v0  ;;  %v4591_v32 = vmul.f32 %v4590_v41, %v8497_v46  ;;  %v3961_v21 = vadd.f32 0.001143296, %v3960_v42  ;;  %v4001_v38 = vadd.f32 0.001143296, %v4000_v36 }
 0x3b1   :  { %v4035_v60 = vmul.f32 %v4034_v56, %v8410_v17  ;;  %v4070_v44 = vadd.f32 0.00028619796, %v4069_v12  ;;  %v4602_v13 = vmul.f32 %v4601_v18, %v8497_v46  ;;  %v3927_v7 = vadd.f32 0.4994258, %v3926_v58 }
 0x3b2   :  { %v8518_v54 = vmin.f32 %v4107_v22, 16.0  ;;  %v3894_v37 = vadd.f32 %v5469_v14, %v3893_v52  ;;  %vm3895_vm9 = vweird.f32 %v8453_v40  ;;  %v4592_v62 = vadd.f32 0.0036580483, %v4591_v32 }
 0x3b3   :  { %vm3897_vm10 = vmor %vm3895_vm9, %vm3896_vm8  ;;  %v3902_v43 = vor.u32 1.1754944e-38, %v3901_v2  ;;  %v8522_v8 = vmin.f32 %v4147_v55, 16.0  ;;  %v4603_v1 = vadd.f32 0.014752088, %v4602_v13  ;;  %v3928_v34 = vmul.f32 %v3927_v7, %v8275_v6 }
 0x3b4   :  { %v3898_v10 = vsel %vm3897_vm10, %v5469_v14, %v3894_v37  ;;  %vm3900_vm11 = vcmp.eq.f32.partialorder %v3899_v9, 8.507059e+37  ;;  %v3962_v56 = vmul.f32 %v3961_v21, %v8314_v33  ;;  %v4002_v12 = vmul.f32 %v4001_v38, %v8347_v35 }
 0x3b5   :  { %v3903_v3 = vsel %vm3900_vm11, %v3902_v43, %v3898_v10  ;;  %v4604_v47 = vmul.f32 %v4603_v1, %v8497_v46  ;;  %v8528_v40 = vadd.f32 1.0, %v3928_v34  ;;  %v8531_v26 = vadd.f32 %v3509_v15, %v7782_v30 }
 0x3b6   :  { %v3998_v42 = vadd.f32 1.1283791, %v3997_v39  ;;  %v4071_v36 = vmul.f32 %v4070_v44, %v8473_v11  ;;  %v3904_v6 = vmul.f32 %v3903_v3, %v8466_v31  ;;  %v4593_v14 = vmul.f32 %v4592_v62, %v8497_v46 }
 0x3b7   :  { %v4036_v22 = vadd.f32 0.18741608, %v4035_v60  ;;  %v4109_v50 = vmul.f32 2.1237322e-06, %v8518_v54  ;;  %v4605_v19 = vadd.f32 0.112945676, %v4604_v47  ;;  %5470 = vrcp.f32 %v8528_v40 }
 0x3b8   :  { %v8539_v0 = vmul.f32 %v3958_v61, %v8289_v53  ;;  %v5210_v9 = vclamps-f32 %v3904_v6, 1.0  ;;  %v4149_v55 = vmul.f32 2.1237322e-06, %v8522_v8  ;;  %v3963_v39 = vadd.f32 0.014752088, %v3962_v56 }
 0x3b9   :  { %v4606_v41 = vmul.f32 %v4605_v19, %v8497_v46  ;;  %v8544_v31 = vmul.f32 0.70710677, %v8531_v26  ;;  %v8547_v2 = vadd.f32 %v3542_v29, %v7782_v30  ;;  %v4003_v18 = vadd.f32 0.014752088, %v4002_v12 }
 0x3ba   :  { %v8550_v58 = vmul.f32 0.5, %v8364_v28  ;;  %v4072_v52 = vadd.f32 0.0036580483, %v4071_v36  ;;  %v4913_v32 = vadd.f32 1.0, %v5210_v9  ;;  %v4594_v53 = vadd.f32 0.05243302, %v4593_v14 }
 0x3bb   :  { %v8553_v61 = vmul.f32 %v3998_v42, %v8323_v51  ;;  %v4037_v21 = vmul.f32 %v4036_v22, %v8410_v17  ;;  %v4607_v38 = vadd.f32 0.4994258, %v4606_v41  ;;  %v4187_v60 = vmul.f32 %v8544_v31, %v8544_v31 }
 0x3bc   :  { %v4110_v44 = vadd.f32 0.00028619796, %v4109_v50  ;;  %v4945_v13 = vmul.f32 %v4913_v32, %v8379_v27  ;;  %v8560_v7 = vmul.f32 0.70710677, %v8547_v2  ;;  %v3964_v28 = vmul.f32 %v3963_v39, %v8314_v33 }
 0x3bd   :  { %v5471_v37 = vpop.eup %5470  ;;  %v8564_v62 = vmul.f32 0.5, %v8429_v25  ;;  %v4150_v51 = vadd.f32 0.00028619796, %v4149_v55  ;;  %v4608_v43 = vmul.f32 %v4607_v38, %v8497_v46  ;;  %v4004_v1 = vmul.f32 %v4003_v18, %v8347_v35 }
 0x3be   :  { %v4073_v34 = vmul.f32 %v4072_v52, %v8473_v11  ;;  %v8570_v15 = vmul.f32 0.5, %v8456_v16  ;;  %5023 = vmatmul.f32.gmra.mxu2 %v4945_v13  ;;  %v4595_v27 = vmul.f32 %v4594_v53, %v8497_v46  ;;  %v3931_v10 = vmul.f32 %v5471_v37, %v8528_v40  ;;  %v3512_v53 = vpop.f32.mrf.mxu1 }
 0x3bf   :  { %v8574_v56 = vadd.f32 1.0, %v4608_v43  ;;  %v8576_v12 = vmin.f32 %v4187_v60, 16.0  ;;  %v4627_v25 = vmul.f32 %v8560_v7, %v8560_v7  ;;  %v3965_v3 = vadd.f32 0.112945676, %v3964_v28 }
 0x3c0   :  { %v8580_v47 = vadd.f32 1.1283791, %v4037_v21  ;;  %v4111_v42 = vmul.f32 %v4110_v44, %v8518_v54  ;;  %v3932_v36 = vsub.f32 1.0, %v3931_v10  ;;  %v4005_v16 = vadd.f32 0.112945676, %v4004_v1 }
 0x3c1   :  { %v4151_v6 = vmul.f32 %v4150_v51, %v8522_v8  ;;  %5472 = vrcp.f32 %v8574_v56  ;;  %v3939_v14 = vand.u32 2147483647, %v8528_v40  ;;  %v3941_v29 = vand.u32 2147483648, %v8528_v40 }
 0x3c2   :  { %v4596_v22 = vadd.f32 0.18741608, %v4595_v27  ;;  %v3933_v50 = vmul.f32 %v5471_v37, %v3932_v36  ;;  %vm3936_vm12 = vweird.f32 %v5471_v37  ;;  %v3966_v19 = vmul.f32 %v3965_v3, %v8314_v33 }
 0x3c3   :  { %v4074_v9 = vadd.f32 0.05243302, %v4073_v34  ;;  %v4189_v55 = vmul.f32 2.1237322e-06, %v8576_v12  ;;  %v8589_v39 = vmin.f32 %v4627_v25, 16.0  ;;  %v4006_v41 = vmul.f32 %v4005_v16, %v8347_v35 }
 0x3c4   :  { %v4112_v18 = vadd.f32 0.0036580483, %v4111_v42  ;;  %v3934_v52 = vadd.f32 %v5471_v37, %v3933_v50  ;;  %vm3935_vm13 = vweird.f32 %v8528_v40  ;;  %v3967_v32 = vadd.f32 0.4994258, %v3966_v19 }
 0x3c5   :  { %v4152_v21 = vadd.f32 0.0036580483, %v4151_v6  ;;  %vm3937_vm14 = vmor %vm3935_vm13, %vm3936_vm12  ;;  %v3942_v38 = vor.u32 1.1754944e-38, %v3941_v29  ;;  %v8594_v60 = vadd.f32 %v3512_v53, %v7782_v30  ;;  %v4007_v44 = vadd.f32 0.4994258, %v4006_v41 }
 0x3c6   :  { %v4597_v13 = vmul.f32 %v4596_v22, %v8497_v46  ;;  %v3938_v28 = vsel %vm3937_vm14, %v5471_v37, %v3934_v52  ;;  %vm3940_vm15 = vcmp.eq.f32.partialorder %v3939_v14, 8.507059e+37  ;;  %v3968_v51 = vmul.f32 %v3967_v32, %v8314_v33 }
 0x3c7   :  { %v5473_v43 = vpop.eup %5472  ;;  %v3943_v1 = vsel %vm3940_vm15, %v3942_v38, %v3938_v28  ;;  %v4190_v34 = vadd.f32 0.00028619796, %v4189_v55  ;;  %v4629_v40 = vmul.f32 2.1237322e-06, %v8589_v39  ;;  %v4008_v27 = vmul.f32 %v4007_v44, %v8347_v35 }
 0x3c8   :  { %v4075_v10 = vmul.f32 %v4074_v9, %v8473_v11  ;;  %v4113_v25 = vmul.f32 %v4112_v18, %v8518_v54  ;;  %v4611_v3 = vmul.f32 %v5473_v43, %v8574_v56  ;;  %v3944_v42 = vmul.f32 %v3943_v1, %v8486_v45 }
 0x3c9   :  { %v4153_v46 = vmul.f32 %v4152_v21, %v8522_v8  ;;  %v8605_v37 = vadd.f32 1.0, %v3968_v51  ;;  %v8608_v33 = vmul.f32 0.70710677, %v8594_v60  ;;  %v8610_v36 = vadd.f32 1.0, %v4008_v27  ;;  %v3515_v21 = vpop.f32.mrf.mxu1 }
 0x3ca   :  { %v4598_v16 = vadd.f32 1.1283791, %v4597_v13  ;;  %v4612_v6 = vsub.f32 1.0, %v4611_v3  ;;  %v4621_v35 = vand.u32 2147483648, %v8574_v56  ;;  %v5211_v14 = vclamps-f32 %v3944_v42, 1.0 }
 0x3cb   :  { %v4191_v29 = vmul.f32 %v4190_v34, %v8576_v12  ;;  %v4630_v22 = vadd.f32 0.00028619796, %v4629_v40  ;;  %5474 = vrcp.f32 %v8605_v37  ;;  %v4040_v45 = vmul.f32 3.8918573e-05, %v8410_v17 }
 0x3cc   :  { %v4613_v50 = vmul.f32 %v5473_v43, %v4612_v6  ;;  %vm4616_vm0 = vweird.f32 %v5473_v43  ;;  %v4619_v19 = vand.u32 2147483647, %v8574_v56  ;;  %v4914_v9 = vadd.f32 1.0, %v5211_v14  ;;  %v3545_v6 = vpop.f32.mrf.mxu3 }
 0x3cd   :  { %v8617_v55 = vadd.f32 0.18741608, %v4075_v10  ;;  %v4114_v41 = vadd.f32 0.05243302, %v4113_v25  ;;  %v4227_v18 = vmul.f32 %v8608_v33, %v8608_v33  ;;  %5476 = vrcp.f32 %v8610_v36 }
 0x3ce   :  { %v4154_v52 = vadd.f32 0.05243302, %v4153_v46  ;;  %v4614_v32 = vadd.f32 %v5473_v43, %v4613_v50  ;;  %vm4615_vm1 = vweird.f32 %v8574_v56  ;;  %v4946_v53 = vmul.f32 %v4914_v9, %v8477_v23 }
 0x3cf   :  { %vm4617_vm2 = vmor %vm4615_vm1, %vm4616_vm0  ;;  %v4622_v38 = vor.u32 1.1754944e-38, %v4621_v35  ;;  %v4192_v44 = vadd.f32 0.0036580483, %v4191_v29  ;;  %v4631_v13 = vmul.f32 %v4630_v22, %v8589_v39  ;;  %v4041_v28 = vadd.f32 0.001143296, %v4040_v45 }
 0x3d0   :  { %v3587_v51 = vmul.f32 0.5, %v8450_v20  ;;  %v4599_v1 = vmul.f32 %v4598_v16, %v8459_v49  ;;  %v4618_v34 = vsel %vm4617_vm2, %v5473_v43, %v4614_v32  ;;  %vm4620_vm3 = vcmp.eq.f32.partialorder %v4619_v19, 8.507059e+37  ;;  %5026 = vmatmul.f32.gmra.mxu2 %v4946_v53 }
 0x3d1   :  { %v5475_v40 = vpop.eup %5474  ;;  %v4115_v27 = vmul.f32 %v4114_v41, %v8518_v54  ;;  %v4623_v56 = vsel %vm4620_vm3, %v4622_v38, %v4618_v34  ;;  %v8628_v10 = vmin.f32 %v4227_v18, 16.0  ;;  %v8631_v23 = vadd.f32 %v3515_v21, %v7782_v30 }
 0x3d2   :  { %v4155_v25 = vmul.f32 %v4154_v52, %v8522_v8  ;;  %v4624_v3 = vmul.f32 %v4623_v56, %v4599_v1  ;;  %v3971_v42 = vmul.f32 %v5475_v40, %v8605_v37  ;;  %v4080_v20 = vmul.f32 3.8918573e-05, %v8473_v11 }
 0x3d3   :  { %v5477_v49 = vpop.eup %5476  ;;  %v4193_v43 = vmul.f32 %v4192_v44, %v8576_v12  ;;  %v4632_v46 = vadd.f32 0.0036580483, %v4631_v13  ;;  %v3979_v16 = vand.u32 2147483647, %v8605_v37  ;;  %v4042_v35 = vmul.f32 %v4041_v28, %v8410_v17 }
 0x3d4   :  { %v5228_v14 = vclamps-f32 %v4624_v3, 1.0  ;;  %v3972_v29 = vsub.f32 1.0, %v3971_v42  ;;  %vm3975_vm4 = vweird.f32 %v8605_v37  ;;  %v4011_v22 = vmul.f32 %v5477_v49, %v8610_v36 }
 0x3d5   :  { %vm3976_vm5 = vweird.f32 %v5475_v40  ;;  %v3981_v45 = vand.u32 2147483648, %v8605_v37  ;;  %v4229_v50 = vmul.f32 2.1237322e-06, %v8628_v10  ;;  %v8644_v19 = vmul.f32 0.70710677, %v8631_v23 }
 0x3d6   :  { %v4931_v9 = vadd.f32 1.0, %v5228_v14  ;;  %v3973_v41 = vmul.f32 %v5475_v40, %v3972_v29  ;;  %v4012_v18 = vsub.f32 1.0, %v4011_v22  ;;  %v8647_v52 = vadd.f32 %v3545_v6, %v7782_v30  ;;  %vm3977_vm8 = vmor %vm3975_vm4, %vm3976_vm5 }
 0x3d7   :  { %vm8649_vm6 = vcmp.eq.f32.partialorder %v3979_v16, 8.507059e+37  ;;  %v4019_v53 = vand.u32 2147483647, %v8610_v36  ;;  %v4021_v21 = vand.u32 2147483648, %v8610_v36  ;;  %v4043_v38 = vadd.f32 0.014752088, %v4042_v35 }
 0x3d8   :  { %v4963_v44 = vmul.f32 %v4931_v9, %v3587_v51  ;;  %v3974_v13 = vadd.f32 %v5475_v40, %v3973_v41  ;;  %v4013_v28 = vmul.f32 %v5477_v49, %v4012_v18  ;;  %vm4016_vm7 = vweird.f32 %v5477_v49 }
 0x3d9   :  { %v3982_v1 = vor.u32 1.1754944e-38, %v3981_v45  ;;  %v4267_v34 = vmul.f32 %v8644_v19, %v8644_v19  ;;  %v8661_v56 = vmul.f32 0.70710677, %v8647_v52  ;;  %v4044_v3 = vmul.f32 %v4043_v38, %v8410_v17  ;;  %v3548_v38 = vpop.f32.mrf.mxu3 }
 0x3da   :  { %v3978_v42 = vsel %vm3977_vm8, %v5475_v40, %v3974_v13  ;;  %v4014_v16 = vadd.f32 %v5477_v49, %v4013_v28  ;;  %vm4015_vm9 = vweird.f32 %v8610_v36  ;;  %v4081_v51 = vadd.f32 0.001143296, %v4080_v20  ;;  %5077 = vmatmul.f32.vlgmr.msra.gmra.mxu3 %v4963_v44 }
 0x3db   :  { %v4194_v6 = vadd.f32 0.05243302, %v4193_v43  ;;  %v3983_v37 = vsel %vm8649_vm6, %v3982_v1, %v3978_v42  ;;  %v4230_v35 = vadd.f32 0.00028619796, %v4229_v50  ;;  %vm4017_vm10 = vmor %vm4015_vm9, %vm4016_vm7  ;;  %v4022_v14 = vor.u32 1.1754944e-38, %v4021_v21  ;;  %v3518_v21 = vpop.f32.mrf.mxu1 }
 0x3dc   :  { %v3984_v29 = vmul.f32 %v3983_v37, %v8539_v0  ;;  %v4018_v22 = vsel %vm4017_vm10, %v5477_v49, %v4014_v16  ;;  %vm4020_vm11 = vcmp.eq.f32.partialorder %v4019_v53, 8.507059e+37  ;;  %v4045_v45 = vadd.f32 0.112945676, %v4044_v3 }
 0x3dd   :  { %v4023_v9 = vsel %vm4020_vm11, %v4022_v14, %v4018_v22  ;;  %v8668_v41 = vmin.f32 %v4267_v34, 16.0  ;;  %v4667_v36 = vmul.f32 %v8661_v56, %v8661_v56  ;;  %v4082_v40 = vmul.f32 %v4081_v51, %v8473_v11 }
 0x3de   :  { %v4077_v20 = vmul.f32 %v8617_v55, %v8473_v11  ;;  %v5212_v43 = vclamps-f32 %v3984_v29, 1.0  ;;  %v4024_v50 = vmul.f32 %v4023_v9, %v8553_v61  ;;  %v4046_v18 = vmul.f32 %v4045_v45, %v8410_v17 }
 0x3df   :  { %v4116_v0 = vadd.f32 0.18741608, %v4115_v27  ;;  %v4156_v49 = vadd.f32 0.18741608, %v4155_v25  ;;  %v4633_v32 = vmul.f32 %v4632_v46, %v8589_v39  ;;  %v4231_v53 = vmul.f32 %v4230_v35, %v8628_v10 }
 0x3e0   :  { %v4915_v44 = vadd.f32 1.0, %v5212_v43  ;;  %v5213_v13 = vclamps-f32 %v4024_v50, 1.0  ;;  %v4047_v28 = vadd.f32 0.4994258, %v4046_v18  ;;  %v4120_v1 = vmul.f32 3.8918573e-05, %v8518_v54 }
 0x3e1   :  { %v4195_v55 = vmul.f32 %v4194_v6, %v8576_v12  ;;  %v4269_v34 = vmul.f32 2.1237322e-06, %v8668_v41  ;;  %v8682_v61 = vmin.f32 %v4667_v36, 16.0  ;;  %v4083_v3 = vadd.f32 0.014752088, %v4082_v40 }
 0x3e2   :  { %v4947_v27 = vmul.f32 %v4915_v44, %v8480_v57  ;;  %v4048_v25 = vmul.f32 %v4047_v28, %v8410_v17  ;;  %v8687_v46 = vadd.f32 %v3518_v21, %v7782_v30  ;;  %v8690_v42 = vadd.f32 %v3548_v38, %v7782_v30 }
 0x3e3   :  { %v4078_v16 = vadd.f32 1.1283791, %v4077_v20  ;;  %v4117_v51 = vmul.f32 %v4116_v0, %v8518_v54  ;;  %v4634_v37 = vadd.f32 0.05243302, %v4633_v32  ;;  %v4232_v6 = vadd.f32 0.0036580483, %v4231_v53 }
 0x3e4   :  { %v4157_v35 = vmul.f32 %v4156_v49, %v8522_v8  ;;  %5029 = vmatmul.f32.gmra.mxu2 %v4947_v27  ;;  %v4916_v14 = vadd.f32 1.0, %v5213_v13  ;;  %v8694_v29 = vadd.f32 1.0, %v4048_v25  ;;  %v4121_v57 = vadd.f32 0.001143296, %v4120_v1 }
 0x3e5   :  { %v4196_v22 = vadd.f32 0.18741608, %v4195_v55  ;;  %v4270_v17 = vadd.f32 0.00028619796, %v4269_v34  ;;  %v4669_v45 = vmul.f32 2.1237322e-06, %v8682_v61  ;;  %v4084_v9 = vmul.f32 %v4083_v3, %v8473_v11 }
 0x3e6   :  { %v8700_v36 = vmul.f32 %v8580_v47, %v8382_v24  ;;  %5478 = vrcp.f32 %v8694_v29  ;;  %v8704_v40 = vmul.f32 0.70710677, %v8687_v46  ;;  %v8707_v20 = vmul.f32 0.70710677, %v8690_v42 }
 0x3e7   :  { %v4118_v43 = vadd.f32 1.1283791, %v4117_v51  ;;  %v8710_v50 = vmul.f32 0.5, %v8470_v5  ;;  %v4635_v18 = vmul.f32 %v4634_v37, %v8589_v39  ;;  %v4233_v0 = vmul.f32 %v4232_v6, %v8628_v10 }
 0x3e8   :  { %v4158_v49 = vadd.f32 1.1283791, %v4157_v35  ;;  %v4948_v24 = vmul.f32 %v4916_v14, %v8489_v4  ;;  %v4085_v47 = vadd.f32 0.112945676, %v4084_v9  ;;  %v4122_v32 = vmul.f32 %v4121_v57, %v8518_v54  ;;  %v3521_v35 = vpop.f32.mrf.mxu1 }
 0x3e9   :  { %v8717_v53 = vmul.f32 %v4078_v16, %v8439_v59  ;;  %v4197_v21 = vmul.f32 %v4196_v22, %v8576_v12  ;;  %v4271_v38 = vmul.f32 %v4270_v17, %v8668_v41  ;;  %v4670_v44 = vadd.f32 0.00028619796, %v4669_v45 }
 0x3ea   :  { %v4307_v5 = vmul.f32 %v8704_v40, %v8704_v40  ;;  %v4707_v13 = vmul.f32 %v8707_v20, %v8707_v20  ;;  %v4086_v28 = vmul.f32 %v4085_v47, %v8473_v11  ;;  %v4123_v4 = vadd.f32 0.014752088, %v4122_v32 }
 0x3eb   :  { %v8727_v1 = vmul.f32 %v4118_v43, %v8492_v48  ;;  %v8730_v59 = vmul.f32 0.5, %v8531_v26  ;;  %v4636_v55 = vadd.f32 0.18741608, %v4635_v18  ;;  %v4234_v34 = vadd.f32 0.05243302, %v4233_v0 }
 0x3ec   :  { %v5479_v3 = vpop.eup %5478  ;;  %v8733_v27 = vmul.f32 %v4158_v49, %v8495_v63  ;;  %v8736_v25 = vmul.f32 0.5, %v8547_v2  ;;  %5032 = vmatmul.f32.gmra.mxu2 %v4948_v24  ;;  %v4087_v16 = vadd.f32 0.4994258, %v4086_v28  ;;  %v4124_v51 = vmul.f32 %v4123_v4, %v8518_v54 }
 0x3ed   :  { %v4198_v37 = vadd.f32 1.1283791, %v4197_v21  ;;  %v8740_v48 = vmul.f32 0.5, %v8594_v60  ;;  %v4272_v6 = vadd.f32 0.0036580483, %v4271_v38  ;;  %v4051_v26 = vmul.f32 %v5479_v3, %v8694_v29 }
 0x3ee   :  { %v4671_v14 = vmul.f32 %v4670_v44, %v8682_v61  ;;  %v8744_v57 = vmin.f32 %v4307_v5, 16.0  ;;  %v8746_v63 = vmin.f32 %v4707_v13, 16.0  ;;  %v4088_v2 = vmul.f32 %v4087_v16, %v8473_v11 }
 0x3ef   :  { %v4637_v22 = vmul.f32 %v4636_v55, %v8589_v39  ;;  %v4235_v17 = vmul.f32 %v4234_v34, %v8628_v10  ;;  %v4052_v45 = vsub.f32 1.0, %v4051_v26  ;;  %v4061_v60 = vand.u32 2147483648, %v8694_v29 }
 0x3f0   :  { %v8752_v9 = vadd.f32 1.0, %v4088_v2  ;;  %v8755_v43 = vadd.f32 %v3521_v35, %v7782_v30  ;;  %v4125_v18 = vadd.f32 0.112945676, %v4124_v51  ;;  %v4160_v0 = vmul.f32 3.8918573e-05, %v8522_v8 }
 0x3f1   :  { %v4273_v49 = vmul.f32 %v4272_v6, %v8668_v41  ;;  %v4053_v24 = vmul.f32 %v5479_v3, %v4052_v45  ;;  %vm4056_vm12 = vweird.f32 %v5479_v3  ;;  %v4059_v11 = vand.u32 2147483647, %v8694_v29 }
 0x3f2   :  { %v4672_v47 = vadd.f32 0.0036580483, %v4671_v14  ;;  %v4309_v32 = vmul.f32 2.1237322e-06, %v8744_v57  ;;  %v4709_v21 = vmul.f32 2.1237322e-06, %v8746_v63  ;;  %5480 = vrcp.f32 %v8752_v9  ;;  %v3524_v14 = vpop.f32.mrf.mxu1 }
 0x3f3   :  { %v4638_v38 = vadd.f32 1.1283791, %v4637_v22  ;;  %v8764_v44 = vmul.f32 0.5, %v8631_v23  ;;  %v4054_v5 = vadd.f32 %v5479_v3, %v4053_v24  ;;  %vm4055_vm13 = vweird.f32 %v8694_v29 }
 0x3f4   :  { %vm4057_vm14 = vmor %vm4055_vm13, %vm4056_vm12  ;;  %v4062_v13 = vor.u32 1.1754944e-38, %v4061_v60  ;;  %v8768_v28 = vmul.f32 0.70710677, %v8755_v43  ;;  %v4126_v4 = vmul.f32 %v4125_v18, %v8518_v54  ;;  %v4161_v55 = vadd.f32 0.001143296, %v4160_v0 }
 0x3f5   :  { %v4236_v34 = vadd.f32 0.18741608, %v4235_v17  ;;  %v4274_v16 = vadd.f32 0.05243302, %v4273_v49  ;;  %v4058_v51 = vsel %vm4057_vm14, %v5479_v3, %v4054_v5  ;;  %vm4060_vm15 = vcmp.eq.f32.partialorder %v4059_v11, 8.507059e+37  ;;  %v3551_v5 = vpop.f32.mrf.mxu3 }
 0x3f6   :  { %v4673_v6 = vmul.f32 %v4672_v47, %v8682_v61  ;;  %v4063_v26 = vsel %vm4060_vm15, %v4062_v13, %v4058_v51  ;;  %v4310_v23 = vadd.f32 0.00028619796, %v4309_v32  ;;  %v4710_v35 = vadd.f32 0.00028619796, %v4709_v21 }
 0x3f7   :  { %v8773_v29 = vmul.f32 %v4198_v37, %v8544_v31  ;;  %v8776_v2 = vmul.f32 %v4638_v38, %v8560_v7  ;;  %v4064_v22 = vmul.f32 %v4063_v26, %v8700_v36  ;;  %v4127_v45 = vadd.f32 0.4994258, %v4126_v4 }
 0x3f8   :  { %v5481_v60 = vpop.eup %5480  ;;  %v8780_v17 = vmul.f32 0.5, %v8647_v52  ;;  %v4347_v3 = vmul.f32 %v8768_v28, %v8768_v28  ;;  %v8785_v18 = vadd.f32 %v3524_v14, %v7782_v30  ;;  %v4162_v0 = vmul.f32 %v4161_v55, %v8522_v8 }
 0x3f9   :  { %v4237_v31 = vmul.f32 %v4236_v34, %v8628_v10  ;;  %v5214_v37 = vclamps-f32 %v4064_v22, 1.0  ;;  %v4091_v7 = vmul.f32 %v5481_v60, %v8752_v9  ;;  %v4128_v36 = vmul.f32 %v4127_v45, %v8518_v54 }
 0x3fa   :  { %v4275_v49 = vmul.f32 %v4274_v16, %v8668_v41  ;;  %v4674_v24 = vadd.f32 0.05243302, %v4673_v6  ;;  %v4311_v52 = vmul.f32 %v4310_v23, %v8744_v57  ;;  %v4711_v11 = vmul.f32 %v4710_v35, %v8746_v63 }
 0x3fb   :  { %v4917_v47 = vadd.f32 1.0, %v5214_v37  ;;  %v4092_v32 = vsub.f32 1.0, %v4091_v7  ;;  %v4099_v21 = vand.u32 2147483647, %v8752_v9  ;;  %v8795_v38 = vadd.f32 1.0, %v4128_v36 }
 0x3fc   :  { %v4101_v13 = vand.u32 2147483648, %v8752_v9  ;;  %v8798_v4 = vmin.f32 %v4347_v3, 16.0  ;;  %v8801_v54 = vmul.f32 0.70710677, %v8785_v18  ;;  %v4163_v55 = vadd.f32 0.014752088, %v4162_v0 }
 0x3fd   :  { %v4949_v34 = vmul.f32 %v4917_v47, %v8550_v58  ;;  %v4093_v16 = vmul.f32 %v5481_v60, %v4092_v32  ;;  %vm4096_vm0 = vweird.f32 %v5481_v60  ;;  %5482 = vrcp.f32 %v8795_v38 }
 0x3fe   :  { %v4238_v51 = vadd.f32 1.1283791, %v4237_v31  ;;  %v8806_v6 = vmul.f32 0.5, %v8687_v46  ;;  %v8809_v26 = vadd.f32 %v3551_v5, %v7782_v30  ;;  %v4200_v23 = vmul.f32 3.8918573e-05, %v8576_v12 }
 0x3ff   :  { %v4276_v35 = vadd.f32 0.18741608, %v4275_v49  ;;  %v4675_v14 = vmul.f32 %v4674_v24, %v8682_v61  ;;  %5035 = vmatmul.f32.gmra.mxu2 %v4949_v34  ;;  %v4094_v22 = vadd.f32 %v5481_v60, %v4093_v16  ;;  %vm4095_vm1 = vweird.f32 %v8752_v9 }
 0x400   :  { %v4312_v58 = vadd.f32 0.0036580483, %v4311_v52  ;;  %vm4097_vm2 = vmor %vm4095_vm1, %vm4096_vm0  ;;  %v4102_v45 = vor.u32 1.1754944e-38, %v4101_v13  ;;  %v4387_v3 = vmul.f32 %v8801_v54, %v8801_v54  ;;  %v4164_v46 = vmul.f32 %v4163_v55, %v8522_v8 }
 0x401   :  { %v4712_v0 = vadd.f32 0.0036580483, %v4711_v11  ;;  %v4098_v31 = vsel %vm4097_vm2, %v5481_v60, %v4094_v22  ;;  %vm4100_vm3 = vcmp.eq.f32.partialorder %v4099_v21, 8.507059e+37  ;;  %v4349_v37 = vmul.f32 2.1237322e-06, %v8798_v4 }
 0x402   :  { %v4103_v7 = vsel %vm4100_vm3, %v4102_v45, %v4098_v31  ;;  %v8819_v36 = vmul.f32 0.70710677, %v8809_v26  ;;  %v4165_v49 = vadd.f32 0.112945676, %v4164_v46  ;;  %v4201_v24 = vadd.f32 0.001143296, %v4200_v23 }
 0x403   :  { %v5483_v9 = vpop.eup %5482  ;;  %v8822_v52 = vmul.f32 %v4238_v51, %v8608_v33  ;;  %v4277_v47 = vmul.f32 %v4276_v35, %v8668_v41  ;;  %v4676_v32 = vadd.f32 0.18741608, %v4675_v14  ;;  %v4104_v5 = vmul.f32 %v4103_v7, %v8717_v53 }
 0x404   :  { %v4313_v60 = vmul.f32 %v4312_v58, %v8744_v57  ;;  %v4131_v11 = vmul.f32 %v5483_v9, %v8795_v38  ;;  %v8828_v21 = vmin.f32 %v4387_v3, 16.0  ;;  %v4166_v13 = vmul.f32 %v4165_v49, %v8522_v8 }
 0x405   :  { %v4713_v55 = vmul.f32 %v4712_v0, %v8746_v63  ;;  %v5215_v34 = vclamps-f32 %v4104_v5, 1.0  ;;  %v4350_v16 = vadd.f32 0.00028619796, %v4349_v37  ;;  %v4202_v33 = vmul.f32 %v4201_v24, %v8576_v12 }
 0x406   :  { %v4132_v51 = vsub.f32 1.0, %v4131_v11  ;;  %v4139_v23 = vand.u32 2147483647, %v8795_v38  ;;  %v4747_v53 = vmul.f32 %v8819_v36, %v8819_v36  ;;  %v4167_v35 = vadd.f32 0.4994258, %v4166_v13  ;;  %v3527_v11 = vpop.f32.mrf.mxu1 }
 0x407   :  { %v4918_v14 = vadd.f32 1.0, %v5215_v34  ;;  %v4141_v22 = vand.u32 2147483648, %v8795_v38  ;;  %v4203_v58 = vadd.f32 0.014752088, %v4202_v33  ;;  %v4640_v45 = vmul.f32 3.8918573e-05, %v8589_v39 }
 0x408   :  { %v4133_v3 = vmul.f32 %v5483_v9, %v4132_v51  ;;  %vm4136_vm4 = vweird.f32 %v5483_v9  ;;  %v4389_v46 = vmul.f32 2.1237322e-06, %v8828_v21  ;;  %v4168_v0 = vmul.f32 %v4167_v35, %v8522_v8 }
 0x409   :  { %v4314_v31 = vadd.f32 0.05243302, %v4313_v60  ;;  %v4950_v37 = vmul.f32 %v4918_v14, %v8564_v62  ;;  %v4351_v7 = vmul.f32 %v4350_v16, %v8798_v4  ;;  %vm4135_vm5 = vweird.f32 %v8795_v38 }
 0x40a   :  { %v4134_v49 = vadd.f32 %v5483_v9, %v4133_v3  ;;  %v8843_v24 = vmin.f32 %v4747_v53, 16.0  ;;  %v8845_v5 = vadd.f32 1.0, %v4168_v0  ;;  %v4204_v13 = vmul.f32 %v4203_v58, %v8576_v12  ;;  %vm4137_vm6 = vmor %vm4135_vm5, %vm4136_vm4 }
 0x40b   :  { %v4677_v34 = vmul.f32 %v4676_v32, %v8682_v61  ;;  %v4714_v33 = vadd.f32 0.05243302, %v4713_v55  ;;  %5038 = vmatmul.f32.gmra.mxu2 %v4950_v37  ;;  %v4142_v8 = vor.u32 1.1754944e-38, %v4141_v22  ;;  %v4641_v62 = vadd.f32 0.001143296, %v4640_v45 }
 0x40c   :  { %v4138_v60 = vsel %vm4137_vm6, %v5483_v9, %v4134_v49  ;;  %vm4140_vm7 = vcmp.eq.f32.partialorder %v4139_v23, 8.507059e+37  ;;  %v4390_v16 = vadd.f32 0.00028619796, %v4389_v46  ;;  %5484 = vrcp.f32 %v8845_v5 }
 0x40d   :  { %v8852_v38 = vmul.f32 0.5, %v8690_v42  ;;  %v4352_v51 = vadd.f32 0.0036580483, %v4351_v7  ;;  %v4143_v53 = vsel %vm4140_vm7, %v4142_v8, %v4138_v60  ;;  %v8855_v35 = vadd.f32 %v3527_v11, %v7782_v30 }
 0x40e   :  { %v4278_v32 = vadd.f32 1.1283791, %v4277_v47  ;;  %v4144_v55 = vmul.f32 %v4143_v53, %v8727_v1  ;;  %v4749_v14 = vmul.f32 2.1237322e-06, %v8843_v24  ;;  %v4205_v22 = vadd.f32 0.112945676, %v4204_v13 }
 0x40f   :  { %v4678_v58 = vadd.f32 1.1283791, %v4677_v34  ;;  %v4315_v9 = vmul.f32 %v4314_v31, %v8744_v57  ;;  %v4715_v23 = vmul.f32 %v4714_v33, %v8746_v63  ;;  %v4642_v45 = vmul.f32 %v4641_v62, %v8589_v39 }
 0x410   :  { %v8863_v42 = vmul.f32 0.5, %v8755_v43  ;;  %v5216_v3 = vclamps-f32 %v4144_v55, 1.0  ;;  %v4391_v46 = vmul.f32 %v4390_v16, %v8828_v21  ;;  %v4206_v47 = vmul.f32 %v4205_v22, %v8576_v12 }
 0x411   :  { %v4353_v1 = vmul.f32 %v4352_v51, %v8798_v4  ;;  %v8869_v0 = vmul.f32 0.70710677, %v8855_v35  ;;  %v4643_v37 = vadd.f32 0.014752088, %v4642_v45  ;;  %v4240_v31 = vmul.f32 3.8918573e-05, %v8628_v10 }
 0x412   :  { %v5485_v7 = vpop.eup %5484  ;;  %v8873_v49 = vmul.f32 %v4278_v32, %v8644_v19  ;;  %v4919_v11 = vadd.f32 1.0, %v5216_v3  ;;  %v4750_v43 = vadd.f32 0.00028619796, %v4749_v14  ;;  %v4207_v13 = vadd.f32 0.4994258, %v4206_v47 }
 0x413   :  { %v8876_v34 = vmul.f32 %v4678_v58, %v8661_v56  ;;  %v4316_v33 = vadd.f32 0.18741608, %v4315_v9  ;;  %v4716_v8 = vadd.f32 0.18741608, %v4715_v23  ;;  %v4171_v62 = vmul.f32 %v5485_v7, %v8845_v5 }
 0x414   :  { %v4951_v60 = vmul.f32 %v4919_v11, %v8570_v15  ;;  %v4392_v16 = vadd.f32 0.0036580483, %v4391_v46  ;;  %v4208_v51 = vmul.f32 %v4207_v13, %v8576_v12  ;;  %v4644_v53 = vmul.f32 %v4643_v37, %v8589_v39 }
 0x415   :  { %v4354_v55 = vadd.f32 0.05243302, %v4353_v1  ;;  %v4172_v19 = vsub.f32 1.0, %v4171_v62  ;;  %v4427_v32 = vmul.f32 %v8869_v0, %v8869_v0  ;;  %v4241_v14 = vadd.f32 0.001143296, %v4240_v31 }
 0x416   :  { %5041 = vmatmul.f32.gmra.mxu2 %v4951_v60  ;;  %v4751_v56 = vmul.f32 %v4750_v43, %v8843_v24  ;;  %v4181_v22 = vand.u32 2147483648, %v8845_v5  ;;  %v8886_v58 = vadd.f32 1.0, %v4208_v51  ;;  %v4645_v9 = vadd.f32 0.112945676, %v4644_v53 }
 0x417   :  { %v4173_v15 = vmul.f32 %v5485_v7, %v4172_v19  ;;  %vm4176_vm8 = vweird.f32 %v5485_v7  ;;  %v4179_v12 = vand.u32 2147483647, %v8845_v5  ;;  %v4242_v23 = vmul.f32 %v4241_v14, %v8628_v10 }
 0x418   :  { %v4317_v45 = vmul.f32 %v4316_v33, %v8744_v57  ;;  %v4393_v3 = vmul.f32 %v4392_v16, %v8828_v21  ;;  %5486 = vrcp.f32 %v8886_v58  ;;  %v4280_v46 = vmul.f32 3.8918573e-05, %v8668_v41 }
 0x419   :  { %v4174_v47 = vadd.f32 %v5485_v7, %v4173_v15  ;;  %vm4175_vm9 = vweird.f32 %v8845_v5  ;;  %v8895_v1 = vmin.f32 %v4427_v32, 16.0  ;;  %v4646_v37 = vmul.f32 %v4645_v9, %v8589_v39 }
 0x41a   :  { %v4717_v31 = vmul.f32 %v4716_v8, %v8746_v63  ;;  %v4355_v11 = vmul.f32 %v4354_v55, %v8798_v4  ;;  %vm4177_vm10 = vmor %vm4175_vm9, %vm4176_vm8  ;;  %v4182_v43 = vor.u32 1.1754944e-38, %v4181_v22  ;;  %v4243_v13 = vadd.f32 0.014752088, %v4242_v23 }
 0x41b   :  { %v4752_v33 = vadd.f32 0.0036580483, %v4751_v56  ;;  %v4178_v62 = vsel %vm4177_vm10, %v5485_v7, %v4174_v47  ;;  %vm4180_vm11 = vcmp.eq.f32.partialorder %v4179_v12, 8.507059e+37  ;;  %v4647_v60 = vadd.f32 0.4994258, %v4646_v37 }
 0x41c   :  { %v4394_v16 = vadd.f32 0.05243302, %v4393_v3  ;;  %v4183_v51 = vsel %vm4180_vm11, %v4182_v43, %v4178_v62  ;;  %v4244_v53 = vmul.f32 %v4243_v13, %v8628_v10  ;;  %v4281_v5 = vadd.f32 0.001143296, %v4280_v46 }
 0x41d   :  { %v4318_v19 = vadd.f32 1.1283791, %v4317_v45  ;;  %v4184_v32 = vmul.f32 %v4183_v51, %v8733_v27  ;;  %v4429_v14 = vmul.f32 2.1237322e-06, %v8895_v1  ;;  %v4648_v8 = vmul.f32 %v4647_v60, %v8589_v39 }
 0x41e   :  { %v5487_v55 = vpop.eup %5486  ;;  %v4718_v9 = vadd.f32 1.1283791, %v4717_v31  ;;  %v8905_v22 = vmul.f32 0.5, %v8785_v18  ;;  %v8908_v7 = vmul.f32 0.5, %v8809_v26  ;;  %v4245_v56 = vadd.f32 0.112945676, %v4244_v53  ;;  %v3554_v26 = vpop.f32.mrf.mxu3 }
 0x41f   :  { %v5217_v15 = vclamps-f32 %v4184_v32, 1.0  ;;  %v4211_v12 = vmul.f32 %v5487_v55, %v8886_v58  ;;  %v8911_v23 = vadd.f32 1.0, %v4648_v8  ;;  %v4282_v27 = vmul.f32 %v4281_v5, %v8668_v41 }
 0x420   :  { %v4356_v45 = vadd.f32 0.18741608, %v4355_v11  ;;  %v4395_v3 = vmul.f32 %v4394_v16, %v8828_v21  ;;  %v4753_v39 = vmul.f32 %v4752_v33, %v8843_v24  ;;  %v4246_v46 = vmul.f32 %v4245_v56, %v8628_v10 }
 0x421   :  { %v4920_v18 = vadd.f32 1.0, %v5217_v15  ;;  %v4430_v47 = vadd.f32 0.00028619796, %v4429_v14  ;;  %v4212_v37 = vsub.f32 1.0, %v4211_v12  ;;  %5488 = vrcp.f32 %v8911_v23 }
 0x422   :  { %vm4216_vm12 = vweird.f32 %v5487_v55  ;;  %v4219_v31 = vand.u32 2147483647, %v8886_v58  ;;  %v4221_v43 = vand.u32 2147483648, %v8886_v58  ;;  %v4680_v13 = vmul.f32 3.8918573e-05, %v8682_v61 }
 0x423   :  { %v4952_v11 = vmul.f32 %v4920_v18, %v8710_v50  ;;  %v4213_v62 = vmul.f32 %v5487_v55, %v4212_v37  ;;  %v4247_v60 = vadd.f32 0.4994258, %v4246_v46  ;;  %v4283_v33 = vadd.f32 0.014752088, %v4282_v27 }
 0x424   :  { %v8923_v16 = vmul.f32 %v4318_v19, %v8704_v40  ;;  %v8926_v51 = vmul.f32 %v4718_v9, %v8707_v20  ;;  %v4357_v53 = vmul.f32 %v4356_v45, %v8798_v4  ;;  %v8930_v5 = vadd.f32 %v3554_v26, %v7782_v30  ;;  %v3530_v20 = vpop.f32.mrf.mxu1 }
 0x425   :  { %v4754_v32 = vadd.f32 0.05243302, %v4753_v39  ;;  %5044 = vmatmul.f32.gmra.mxu2 %v4952_v11  ;;  %v4214_v14 = vadd.f32 %v5487_v55, %v4213_v62  ;;  %vm4215_vm13 = vweird.f32 %v8886_v58  ;;  %v4248_v50 = vmul.f32 %v4247_v60, %v8628_v10 }
 0x426   :  { %v4396_v8 = vadd.f32 0.18741608, %v4395_v3  ;;  %v4431_v56 = vmul.f32 %v4430_v47, %v8895_v1  ;;  %vm4217_vm14 = vmor %vm4215_vm13, %vm4216_vm12  ;;  %vm4220_vm15 = vcmp.eq.f32.partialorder %v4219_v31, 8.507059e+37  ;;  %v4222_v40 = vor.u32 1.1754944e-38, %v4221_v43 }
 0x427   :  { %v5489_v19 = vpop.eup %5488  ;;  %v4218_v9 = vsel %vm4217_vm14, %v5487_v55, %v4214_v14  ;;  %v8936_v15 = vadd.f32 1.0, %v4248_v50  ;;  %v4284_v12 = vmul.f32 %v4283_v33, %v8668_v41  ;;  %v4681_v27 = vadd.f32 0.001143296, %v4680_v13 }
 0x428   :  { %v8939_v45 = vadd.f32 1.1283791, %v4357_v53  ;;  %v4223_v58 = vsel %vm4220_vm15, %v4222_v40, %v4218_v9  ;;  %v4651_v10 = vmul.f32 %v5489_v19, %v8911_v23  ;;  %v8943_v3 = vmul.f32 0.70710677, %v8930_v5  ;;  %v5522_v9 = vld [vmem:[%s9482_s2] sm:$0xff] }
 0x429   :  { %v4755_v39 = vmul.f32 %v4754_v32, %v8843_v24  ;;  %v4224_v46 = vmul.f32 %v4223_v58, %v8773_v29  ;;  %5490 = vrcp.f32 %v8936_v15  ;;  %v8949_v55 = vadd.f32 %v3530_v20, %v7782_v30 }
 0x42a   :  { %v8952_v18 = vmul.f32 0.5, %v8855_v35  ;;  %v4432_v47 = vadd.f32 0.0036580483, %v4431_v56  ;;  %v4652_v37 = vsub.f32 1.0, %v4651_v10  ;;  %v4661_v26 = vand.u32 2147483648, %v8911_v23 }
 0x42b   :  { %v8956_v31 = vmul.f32 %v4396_v8, %v8828_v21  ;;  %v5218_v43 = vclamps-f32 %v4224_v46, 1.0  ;;  %v4285_v13 = vadd.f32 0.112945676, %v4284_v12  ;;  %v4682_v11 = vmul.f32 %v4681_v27, %v8682_v61  ;;  %v5006_v46 = vpop.f32.mrf.mxu2 }
 0x42c   :  { %v4653_v29 = vmul.f32 %v5489_v19, %v4652_v37  ;;  %vm4656_vm0 = vweird.f32 %v5489_v19  ;;  %v4659_v62 = vand.u32 2147483647, %v8911_v23  ;;  %v4787_v60 = vmul.f32 %v8943_v3, %v8943_v3 }
 0x42d   :  { %v4756_v35 = vadd.f32 0.18741608, %v4755_v39  ;;  %v4921_v33 = vadd.f32 1.0, %v5218_v43  ;;  %v8963_v53 = vmul.f32 0.70710677, %v8949_v55  ;;  %v4286_v32 = vmul.f32 %v4285_v13, %v8668_v41 }
 0x42e   :  { %v4433_v14 = vmul.f32 %v4432_v47, %v8895_v1  ;;  %v4654_v50 = vadd.f32 %v5489_v19, %v4653_v29  ;;  %vm4655_vm1 = vweird.f32 %v8911_v23  ;;  %v4662_v8 = vor.u32 1.1754944e-38, %v4661_v26  ;;  %v3557_v23 = vpop.f32.mrf.mxu3 }
 0x42f   :  { %v5491_v56 = vpop.eup %5490  ;;  %v4953_v40 = vmul.f32 %v4921_v33, %v8730_v59  ;;  %vm4657_vm2 = vmor %vm4655_vm1, %vm4656_vm0  ;;  %v4287_v20 = vadd.f32 0.4994258, %v4286_v32  ;;  %v8972_v12 = vperm.slane %v5522_v9, 3  ;;  %v4683_v27 = vadd.f32 0.014752088, %v4682_v11 }
 0x430   :  { %v4658_v58 = vsel %vm4657_vm2, %v5489_v19, %v4654_v50  ;;  %vm4660_vm3 = vcmp.eq.f32.partialorder %v4659_v62, 8.507059e+37  ;;  %v8974_v10 = vmin.f32 %v4787_v60, 16.0  ;;  %v4251_v39 = vmul.f32 %v5491_v56, %v8936_v15 }
 0x431   :  { %5047 = vmatmul.f32.gmra.mxu2 %v4953_v40  ;;  %v4663_v47 = vsel %vm4660_vm3, %v4662_v8, %v4658_v58  ;;  %v4467_v59 = vmul.f32 %v8963_v53, %v8963_v53  ;;  %v4288_v37 = vmul.f32 %v4287_v20, %v8668_v41  ;;  %v4320_v26 = vmul.f32 3.8918573e-05, %v8744_v57 }
 0x432   :  { %v4664_v43 = vmul.f32 %v4663_v47, %v8776_v2  ;;  %v4252_v13 = vsub.f32 1.0, %v4251_v39  ;;  %v4261_v19 = vand.u32 2147483648, %v8936_v15  ;;  %vm5102_vm4 = vcmask 15360  }
 0x433   :  { %v8983_v11 = vadd.f32 1.0, %v4288_v37  ;;  %v8986_v29 = vadd.f32 %v3557_v23, %v7782_v30  ;;  %v5007_v62 = vadd.f32 %v5006_v46, %v8972_v12  ;;  %v4684_v60 = vmul.f32 %v4683_v27, %v8682_v61 }
 0x434   :  { %v5229_v33 = vclamps-f32 %v4664_v43, 1.0  ;;  %v4253_v32 = vmul.f32 %v5491_v56, %v4252_v13  ;;  %vm4256_vm5 = vweird.f32 %v5491_v56  ;;  %v4259_v41 = vand.u32 2147483647, %v8936_v15 }
 0x435   :  { %v4434_v50 = vadd.f32 0.05243302, %v4433_v14  ;;  %v8991_v2 = vmin.f32 %v4467_v59, 16.0  ;;  %5492 = vrcp.f32 %v8983_v11  ;;  %5103 = vst.msk [vmem:[%s9484_s4] sm:$0xff] %vm5102_vm4, %v5007_v62  ;;  %v4720_v8 = vmul.f32 3.8918573e-05, %v8746_v63 }
 0x436   :  { %v4932_v40 = vadd.f32 1.0, %v5229_v33  ;;  %v4254_v20 = vadd.f32 %v5491_v56, %v4253_v32  ;;  %vm4255_vm6 = vweird.f32 %v8936_v15  ;;  %v4321_v9 = vadd.f32 0.001143296, %v4320_v26 }
 0x437   :  { %v9002_v27 = vmul.f32 %v8939_v45, %v8768_v28  ;;  %vm4257_vm7 = vmor %vm4255_vm6, %vm4256_vm5  ;;  %v4262_v14 = vor.u32 1.1754944e-38, %v4261_v19  ;;  %v9005_v58 = vmul.f32 0.70710677, %v8986_v29  ;;  %v4685_v39 = vadd.f32 0.112945676, %v4684_v60 }
 0x438   :  { %v4964_v23 = vmul.f32 %v4932_v40, %v8736_v25  ;;  %v4789_v46 = vmul.f32 2.1237322e-06, %v8974_v10  ;;  %v4258_v47 = vsel %vm4257_vm7, %v5491_v56, %v4254_v20  ;;  %vm4260_vm8 = vcmp.eq.f32.partialorder %v4259_v41, 8.507059e+37 }
 0x439   :  { %v4398_v59 = vadd.f32 1.1283791, %v8956_v31  ;;  %v4263_v15 = vsel %vm4260_vm8, %v4262_v14, %v4258_v47  ;;  %v4469_v37 = vmul.f32 2.1237322e-06, %v8991_v2  ;;  %v4686_v28 = vmul.f32 %v4685_v39, %v8682_v61 }
 0x43a   :  { %v4757_v45 = vmul.f32 %v4756_v35, %v8843_v24  ;;  %5080 = vmatmul.f32.gmra.mxu3 %v4964_v23  ;;  %v4264_v26 = vmul.f32 %v4263_v15, %v8822_v52  ;;  %v4322_v43 = vmul.f32 %v4321_v9, %v8744_v57  ;;  %v4721_v13 = vadd.f32 0.001143296, %v4720_v8 }
 0x43b   :  { %v5493_v25 = vpop.eup %5492  ;;  %v4435_v19 = vmul.f32 %v4434_v50, %v8895_v1  ;;  %v4827_v56 = vmul.f32 %v9005_v58, %v9005_v58  ;;  %v4687_v31 = vadd.f32 0.4994258, %v4686_v28  ;;  %v4360_v62 = vmul.f32 3.8918573e-05, %v8798_v4 }
 0x43c   :  { %v4790_v60 = vadd.f32 0.00028619796, %v4789_v46  ;;  %v5219_v33 = vclamps-f32 %v4264_v26, 1.0  ;;  %v4291_v32 = vmul.f32 %v5493_v25, %v8983_v11  ;;  %v4323_v35 = vadd.f32 0.014752088, %v4322_v43 }
 0x43d   :  { %v4470_v41 = vadd.f32 0.00028619796, %v4469_v37  ;;  %v4299_v52 = vand.u32 2147483647, %v8983_v11  ;;  %v4688_v40 = vmul.f32 %v4687_v31, %v8682_v61  ;;  %v4722_v8 = vmul.f32 %v4721_v13, %v8746_v63 }
 0x43e   :  { %v4922_v20 = vadd.f32 1.0, %v5219_v33  ;;  %v4292_v50 = vsub.f32 1.0, %v4291_v32  ;;  %v4301_v9 = vand.u32 2147483648, %v8983_v11  ;;  %v4324_v14 = vmul.f32 %v4323_v35, %v8744_v57  ;;  %v5009_v33 = vpop.f32.mrf.mxu2 }
 0x43f   :  { %vm4296_vm9 = vweird.f32 %v5493_v25  ;;  %v9025_v39 = vmin.f32 %v4827_v56, 16.0  ;;  %v9027_v23 = vadd.f32 1.0, %v4688_v40  ;;  %v4361_v46 = vadd.f32 0.001143296, %v4360_v62 }
 0x440   :  { %v4954_v47 = vmul.f32 %v4922_v20, %v8740_v48  ;;  %v4293_v15 = vmul.f32 %v5493_v25, %v4292_v50  ;;  %v4325_v37 = vadd.f32 0.112945676, %v4324_v14  ;;  %v4723_v28 = vadd.f32 0.014752088, %v4722_v8 }
 0x441   :  { %v9031_v61 = vmul.f32 %v4398_v59, %v8801_v54  ;;  %v4758_v26 = vadd.f32 1.1283791, %v4757_v45  ;;  %v4436_v43 = vadd.f32 0.18741608, %v4435_v19  ;;  %5494 = vrcp.f32 %v9027_v23 }
 0x442   :  { %v4791_v13 = vmul.f32 %v4790_v60, %v8974_v10  ;;  %5050 = vmatmul.f32.gmra.mxu2 %v4954_v47  ;;  %v4294_v56 = vadd.f32 %v5493_v25, %v4293_v15  ;;  %vm4295_vm10 = vweird.f32 %v8983_v11  ;;  %v4326_v31 = vmul.f32 %v4325_v37, %v8744_v57  ;;  %v3533_v15 = vpop.f32.mrf.mxu1 }
 0x443   :  { %v4471_v48 = vmul.f32 %v4470_v41, %v8991_v2  ;;  %vm4297_vm11 = vmor %vm4295_vm10, %vm4296_vm9  ;;  %v4302_v62 = vor.u32 1.1754944e-38, %v4301_v9  ;;  %v4724_v54 = vmul.f32 %v4723_v28, %v8746_v63  ;;  %v4362_v59 = vmul.f32 %v4361_v46, %v8798_v4 }
 0x444   :  { %v4298_v45 = vsel %vm4297_vm11, %v5493_v25, %v4294_v56  ;;  %vm4300_vm12 = vcmp.eq.f32.partialorder %v4299_v52, 8.507059e+37  ;;  %v4829_v19 = vmul.f32 2.1237322e-06, %v9025_v39  ;;  %v4327_v60 = vadd.f32 0.4994258, %v4326_v31 }
 0x445   :  { %v4303_v32 = vsel %vm4300_vm12, %v4302_v62, %v4298_v45  ;;  %v5010_v11 = vadd.f32 %v5009_v33, %v8972_v12  ;;  %v4725_v35 = vadd.f32 0.112945676, %v4724_v54  ;;  %v4400_v40 = vmul.f32 3.8918573e-05, %v8828_v21 }
 0x446   :  { %v9045_v41 = vmul.f32 %v4758_v26, %v8819_v36  ;;  %v4304_v8 = vmul.f32 %v4303_v32, %v8873_v49  ;;  %v4328_v20 = vmul.f32 %v4327_v60, %v8744_v57  ;;  %v4363_v50 = vadd.f32 0.014752088, %v4362_v59 }
 0x447   :  { %v5495_v9 = vpop.eup %5494  ;;  %v4437_v25 = vmul.f32 %v4436_v43, %v8895_v1  ;;  %v9051_v52 = vmul.f32 0.5, %v8930_v5  ;;  %v4792_v14 = vadd.f32 0.0036580483, %v4791_v13  ;;  %5104 = vst.msk [vmem:[%s9484_s4 + $0x8] sm:$0xff] %vm5102_vm4, %v5010_v11  ;;  %v4726_v36 = vmul.f32 %v4725_v35, %v8746_v63 }
 0x448   :  { %v4472_v46 = vadd.f32 0.0036580483, %v4471_v48  ;;  %v5220_v47 = vclamps-f32 %v4304_v8, 1.0  ;;  %v4691_v49 = vmul.f32 %v5495_v9, %v9027_v23  ;;  %v9059_v57 = vadd.f32 1.0, %v4328_v20 }
 0x449   :  { %v4830_v37 = vadd.f32 0.00028619796, %v4829_v19  ;;  %v4727_v28 = vadd.f32 0.4994258, %v4726_v36  ;;  %v9062_v5 = vadd.f32 %v3533_v15, %v7782_v30  ;;  %v4401_v26 = vadd.f32 0.001143296, %v4400_v40 }
 0x44a   :  { %v4923_v43 = vadd.f32 1.0, %v5220_v47  ;;  %v4692_v13 = vsub.f32 1.0, %v4691_v49  ;;  %5496 = vrcp.f32 %v9059_v57  ;;  %v4364_v56 = vmul.f32 %v4363_v50, %v8798_v4 }
 0x44b   :  { %v4793_v31 = vmul.f32 %v4792_v14, %v8974_v10  ;;  %v4699_v48 = vand.u32 2147483647, %v9027_v23  ;;  %v4701_v62 = vand.u32 2147483648, %v9027_v23  ;;  %v4728_v33 = vmul.f32 %v4727_v28, %v8746_v63 }
 0x44c   :  { %v4955_v54 = vmul.f32 %v4923_v43, %v8764_v44  ;;  %v4693_v59 = vmul.f32 %v5495_v9, %v4692_v13  ;;  %vm4696_vm13 = vweird.f32 %v5495_v9  ;;  %v9072_v45 = vmul.f32 0.70710677, %v9062_v5  ;;  %v5012_v13 = vpop.f32.mrf.mxu2 }
 0x44d   :  { %v4473_v19 = vmul.f32 %v4472_v46, %v8991_v2  ;;  %v4831_v60 = vmul.f32 %v4830_v37, %v9025_v39  ;;  %vm4695_vm14 = vweird.f32 %v9027_v23  ;;  %v9077_v32 = vadd.f32 1.0, %v4728_v33 }
 0x44e   :  { %5053 = vmatmul.f32.gmra.mxu2 %v4955_v54  ;;  %v4694_v11 = vadd.f32 %v5495_v9, %v4693_v59  ;;  %v4507_v63 = vmul.f32 %v9072_v45, %v9072_v45  ;;  %v4365_v35 = vadd.f32 0.112945676, %v4364_v56  ;;  %v4402_v44 = vmul.f32 %v4401_v26, %v8828_v21  ;;  %vm4697_vm15 = vmor %vm4695_vm14, %vm4696_vm13 }
 0x44f   :  { %v4794_v40 = vadd.f32 0.05243302, %v4793_v31  ;;  %vm4700_vm0 = vcmp.eq.f32.partialorder %v4699_v48, 8.507059e+37  ;;  %v4702_v8 = vor.u32 1.1754944e-38, %v4701_v62  ;;  %5498 = vrcp.f32 %v9077_v32 }
 0x450   :  { %v5497_v20 = vpop.eup %5496  ;;  %v4698_v50 = vsel %vm4697_vm15, %v5495_v9, %v4694_v11  ;;  %v9083_v14 = vmin.f32 %v4507_v63, 16.0  ;;  %v4366_v23 = vmul.f32 %v4365_v35, %v8798_v4  ;;  %v4403_v36 = vadd.f32 0.014752088, %v4402_v44 }
 0x451   :  { %v4474_v46 = vadd.f32 0.05243302, %v4473_v19  ;;  %v4832_v47 = vadd.f32 0.0036580483, %v4831_v60  ;;  %v4703_v49 = vsel %vm4700_vm0, %v4702_v8, %v4698_v50  ;;  %v4331_v15 = vmul.f32 %v5497_v20, %v9059_v57 }
 0x452   :  { %v9087_v37 = vadd.f32 1.1283791, %v4437_v25  ;;  %v4704_v28 = vmul.f32 %v4703_v49, %v8876_v34  ;;  %v4509_v26 = vmul.f32 2.1237322e-06, %v9083_v14  ;;  %v4367_v43 = vadd.f32 0.4994258, %v4366_v23  ;;  %v3560_v25 = vpop.f32.mrf.mxu3 }
 0x453   :  { %v4795_v9 = vmul.f32 %v4794_v40, %v8974_v10  ;;  %v4332_v56 = vsub.f32 1.0, %v4331_v15  ;;  %v4339_v31 = vand.u32 2147483647, %v9059_v57  ;;  %v5013_v48 = vadd.f32 %v5012_v13, %v8972_v12 }
 0x454   :  { %v5230_v62 = vclamps-f32 %v4704_v28, 1.0  ;;  %v4341_v33 = vand.u32 2147483648, %v9059_v57  ;;  %v4368_v54 = vmul.f32 %v4367_v43, %v8798_v4  ;;  %v4404_v59 = vmul.f32 %v4403_v36, %v8828_v21  ;;  %v3536_v43 = vpop.f32.mrf.mxu1 }
 0x455   :  { %v5499_v34 = vpop.eup %5498  ;;  %v4475_v19 = vmul.f32 %v4474_v46, %v8991_v2  ;;  %v4833_v60 = vmul.f32 %v4832_v47, %v9025_v39  ;;  %v4333_v11 = vmul.f32 %v5497_v20, %v4332_v56  ;;  %vm4336_vm1 = vweird.f32 %v5497_v20  ;;  %5105 = vst.msk [vmem:[%s9484_s4 + $0x10] sm:$0xff] %vm5102_vm4, %v5013_v48 }
 0x456   :  { %v4933_v63 = vadd.f32 1.0, %v5230_v62  ;;  %vm4335_vm2 = vweird.f32 %v9059_v57  ;;  %v4731_v4 = vmul.f32 %v5499_v34, %v9077_v32  ;;  %v4510_v35 = vadd.f32 0.00028619796, %v4509_v26 }
 0x457   :  { %v4334_v44 = vadd.f32 %v5497_v20, %v4333_v11  ;;  %vm4340_vm3 = vcmp.eq.f32.partialorder %v4339_v31, 8.507059e+37  ;;  %v9105_v40 = vadd.f32 1.0, %v4368_v54  ;;  %v9108_v8 = vadd.f32 %v3560_v25, %v7782_v30  ;;  %vm4337_vm5 = vmor %vm4335_vm2, %vm4336_vm1 }
 0x458   :  { %v4965_v50 = vmul.f32 %v4933_v63, %v8780_v17  ;;  %v4342_v23 = vor.u32 1.1754944e-38, %v4341_v33  ;;  %v4732_v36 = vsub.f32 1.0, %v4731_v4  ;;  %v4405_v46 = vadd.f32 0.112945676, %v4404_v59 }
 0x459   :  { %v4338_v47 = vsel %vm4337_vm5, %v5497_v20, %v4334_v44  ;;  %v4739_v49 = vand.u32 2147483647, %v9077_v32  ;;  %v4741_v57 = vand.u32 2147483648, %v9077_v32  ;;  %5500 = vrcp.f32 %v9105_v40 }
 0x45a   :  { %5083 = vmatmul.f32.gmra.mxu3 %v4965_v50  ;;  %v4343_v15 = vsel %vm4340_vm3, %v4342_v23, %v4338_v47  ;;  %v4733_v28 = vmul.f32 %v5499_v34, %v4732_v36  ;;  %vm4736_vm6 = vweird.f32 %v5499_v34  ;;  %v4511_v26 = vmul.f32 %v4510_v35, %v9083_v14 }
 0x45b   :  { %v4796_v13 = vadd.f32 0.18741608, %v4795_v9  ;;  %v4344_v17 = vmul.f32 %v4343_v15, %v8923_v16  ;;  %v9117_v56 = vmul.f32 0.70710677, %v9108_v8  ;;  %v4760_v20 = vmul.f32 3.8918573e-05, %v8843_v24 }
 0x45c   :  { %v4834_v31 = vadd.f32 0.05243302, %v4833_v60  ;;  %v4734_v48 = vadd.f32 %v5499_v34, %v4733_v28  ;;  %vm4735_vm7 = vweird.f32 %v9077_v32  ;;  %v4406_v62 = vmul.f32 %v4405_v46, %v8828_v21  ;;  %v5015_v32 = vpop.f32.mrf.mxu2 }
 0x45d   :  { %v4476_v33 = vadd.f32 0.18741608, %v4475_v19  ;;  %v5221_v54 = vclamps-f32 %v4344_v17, 1.0  ;;  %vm4737_vm8 = vmor %vm4735_vm7, %vm4736_vm6  ;;  %v4742_v25 = vor.u32 1.1754944e-38, %v4741_v57  ;;  %v9123_v59 = vadd.f32 %v3536_v43, %v7782_v30 }
 0x45e   :  { %v4738_v9 = vsel %vm4737_vm8, %v5499_v34, %v4734_v48  ;;  %vm4740_vm9 = vcmp.eq.f32.partialorder %v4739_v49, 8.507059e+37  ;;  %v4512_v16 = vadd.f32 0.0036580483, %v4511_v26  ;;  %v4407_v11 = vadd.f32 0.4994258, %v4406_v62 }
 0x45f   :  { %v5501_v63 = vpop.eup %5500  ;;  %v4924_v4 = vadd.f32 1.0, %v5221_v54  ;;  %v4743_v35 = vsel %vm4740_vm9, %v4742_v25, %v4738_v9  ;;  %v4867_v60 = vmul.f32 %v9117_v56, %v9117_v56  ;;  %v4761_v44 = vadd.f32 0.001143296, %v4760_v20 }
 0x460   :  { %v4835_v19 = vmul.f32 %v4834_v31, %v9025_v39  ;;  %v4744_v50 = vmul.f32 %v4743_v35, %v8926_v51  ;;  %v4371_v23 = vmul.f32 %v5501_v63, %v9105_v40  ;;  %v4440_v30 = vmul.f32 3.8918573e-05, %v8895_v1 }
 0x461   :  { %v4956_v34 = vmul.f32 %v4924_v4, %v8806_v6  ;;  %v4379_v36 = vand.u32 2147483647, %v9105_v40  ;;  %v9134_v46 = vmul.f32 0.70710677, %v9123_v59  ;;  %v4408_v47 = vmul.f32 %v4407_v11, %v8828_v21 }
 0x462   :  { %v5231_v49 = vclamps-f32 %v4744_v50, 1.0  ;;  %v4513_v57 = vmul.f32 %v4512_v16, %v9083_v14  ;;  %v4372_v15 = vsub.f32 1.0, %v4371_v23  ;;  %v5016_v28 = vadd.f32 %v5015_v32, %v8972_v12 }
 0x463   :  { %5056 = vmatmul.f32.gmra.mxu2 %v4956_v34  ;;  %v4381_v51 = vand.u32 2147483648, %v9105_v40  ;;  %v9140_v26 = vmin.f32 %v4867_v60, 16.0  ;;  %v9142_v43 = vadd.f32 1.0, %v4408_v47  ;;  %v4762_v6 = vmul.f32 %v4761_v44, %v8843_v24 }
 0x464   :  { %v4934_v17 = vadd.f32 1.0, %v5231_v49  ;;  %v4373_v20 = vmul.f32 %v5501_v63, %v4372_v15  ;;  %vm4376_vm10 = vweird.f32 %v5501_v63  ;;  %5106 = vst.msk [vmem:[%s9484_s4 + $0x18] sm:$0xff] %vm5102_vm4, %v5016_v28  ;;  %v4441_v21 = vadd.f32 0.001143296, %v4440_v30 }
 0x465   :  { %v4797_v31 = vmul.f32 %v4796_v13, %v8974_v10  ;;  %v4477_v48 = vmul.f32 %v4476_v33, %v8991_v2  ;;  %v4836_v62 = vadd.f32 0.18741608, %v4835_v19  ;;  %5502 = vrcp.f32 %v9142_v43 }
 0x466   :  { %v4966_v54 = vmul.f32 %v4934_v17, %v8852_v38  ;;  %v4374_v25 = vadd.f32 %v5501_v63, %v4373_v20  ;;  %vm4375_vm11 = vweird.f32 %v9105_v40  ;;  %vm4380_vm12 = vcmp.eq.f32.partialorder %v4379_v36, 8.507059e+37 }
 0x467   :  { %v4514_v9 = vadd.f32 0.05243302, %v4513_v57  ;;  %vm4377_vm13 = vmor %vm4375_vm11, %vm4376_vm10  ;;  %v4382_v16 = vor.u32 1.1754944e-38, %v4381_v51  ;;  %v4547_v11 = vmul.f32 %v9134_v46, %v9134_v46  ;;  %v4763_v4 = vadd.f32 0.014752088, %v4762_v6 }
 0x468   :  { %5086 = vmatmul.f32.gmra.mxu3 %v4966_v54  ;;  %v4378_v13 = vsel %vm4377_vm13, %v5501_v63, %v4374_v25  ;;  %v4869_v33 = vmul.f32 2.1237322e-06, %v9140_v26  ;;  %v4442_v35 = vmul.f32 %v4441_v21, %v8895_v1  ;;  %v4800_v60 = vmul.f32 3.8918573e-05, %v8974_v10 }
 0x469   :  { %v9161_v38 = vmul.f32 %v9087_v37, %v8869_v0  ;;  %v9163_v40 = vadd.f32 1.1283791, %v4797_v31  ;;  %v9165_v32 = vadd.f32 1.1283791, %v4477_v48  ;;  %v4383_v44 = vsel %vm4380_vm12, %v4382_v16, %v4378_v13 }
 0x46a   :  { %v4384_v19 = vmul.f32 %v4383_v44, %v9002_v27  ;;  %v4764_v50 = vmul.f32 %v4763_v4, %v8843_v24  ;;  %v4443_v63 = vadd.f32 0.014752088, %v4442_v35  ;;  %v4801_v23 = vadd.f32 0.001143296, %v4800_v60  ;;  %v5018_v44 = vpop.f32.mrf.mxu2 }
 0x46b   :  { %v5503_v30 = vpop.eup %5502  ;;  %v4837_v34 = vmul.f32 %v4836_v62, %v9025_v39  ;;  %v4515_v36 = vmul.f32 %v4514_v9, %v9083_v14  ;;  %v9171_v47 = vmin.f32 %v4547_v11, 16.0  ;;  %v4480_v0 = vmul.f32 3.8918573e-05, %v8991_v2 }
 0x46c   :  { %v5222_v37 = vclamps-f32 %v4384_v19, 1.0  ;;  %v4870_v49 = vadd.f32 0.00028619796, %v4869_v33  ;;  %v4411_v57 = vmul.f32 %v5503_v30, %v9142_v43  ;;  %v4765_v15 = vadd.f32 0.112945676, %v4764_v50 }
 0x46d   :  { %v4419_v27 = vand.u32 2147483647, %v9142_v43  ;;  %v4444_v28 = vmul.f32 %v4443_v63, %v8895_v1  ;;  %v4802_v51 = vmul.f32 %v4801_v23, %v8974_v10  ;;  %v4840_v6 = vmul.f32 3.8918573e-05, %v9025_v39 }
 0x46e   :  { %v4925_v17 = vadd.f32 1.0, %v5222_v37  ;;  %v4412_v20 = vsub.f32 1.0, %v4411_v57  ;;  %v4766_v21 = vmul.f32 %v4765_v15, %v8843_v24  ;;  %v4481_v31 = vadd.f32 0.001143296, %v4480_v0 }
 0x46f   :  { %vm4416_vm14 = vweird.f32 %v5503_v30  ;;  %v4421_v48 = vand.u32 2147483648, %v9142_v43  ;;  %v4445_v62 = vadd.f32 0.112945676, %v4444_v28  ;;  %v4803_v54 = vadd.f32 0.014752088, %v4802_v51 }
 0x470   :  { %v4957_v25 = vmul.f32 %v4925_v17, %v8863_v42  ;;  %v4413_v9 = vmul.f32 %v5503_v30, %v4412_v20  ;;  %v4767_v16 = vadd.f32 0.4994258, %v4766_v21  ;;  %v4482_v11 = vmul.f32 %v4481_v31, %v8991_v2 }
 0x471   :  { %vm4415_vm15 = vweird.f32 %v9142_v43  ;;  %vm9184_vm0 = vcmp.eq.f32.partialorder %v4419_v27, 8.507059e+37  ;;  %v4446_v13 = vmul.f32 %v4445_v62, %v8895_v1  ;;  %v4804_v33 = vmul.f32 %v4803_v54, %v8974_v10 }
 0x472   :  { %5059 = vmatmul.f32.gmra.mxu2 %v4957_v25  ;;  %v4414_v35 = vadd.f32 %v5503_v30, %v4413_v9  ;;  %v4768_v60 = vmul.f32 %v4767_v16, %v8843_v24  ;;  %v4483_v42 = vadd.f32 0.014752088, %v4482_v11  ;;  %v4841_v19 = vadd.f32 0.001143296, %v4840_v6  ;;  %vm4417_vm1 = vmor %vm4415_vm15, %vm4416_vm14  ;;  %v5021_v11 = vpop.f32.mrf.mxu2 }
 0x473   :  { %v4422_v50 = vor.u32 1.1754944e-38, %v4421_v48  ;;  %v4447_v63 = vadd.f32 0.4994258, %v4446_v13  ;;  %v5019_v43 = vadd.f32 %v5018_v44, %v8972_v12  ;;  %v4805_v23 = vadd.f32 0.112945676, %v4804_v33 }
 0x474   :  { %v4418_v0 = vsel %vm4417_vm1, %v5503_v30, %v4414_v35  ;;  %v9193_v37 = vadd.f32 1.0, %v4768_v60  ;;  %v4484_v57 = vmul.f32 %v4483_v42, %v8991_v2  ;;  %v4842_v15 = vmul.f32 %v4841_v19, %v9025_v39 }
 0x475   :  { %v4423_v24 = vsel %vm9184_vm0, %v4422_v50, %v4418_v0  ;;  %v4448_v27 = vmul.f32 %v4447_v63, %v8895_v1  ;;  %5107 = vst.msk [vmem:[%s9484_s4 + $0x20] sm:$0xff] %vm5102_vm4, %v5019_v43  ;;  %v4806_v28 = vmul.f32 %v4805_v23, %v8974_v10  ;;  %v4520_v30 = vmul.f32 3.8918573e-05, %v9083_v14 }
 0x476   :  { %v9207_v51 = vmul.f32 0.5, %v8949_v55  ;;  %v4549_v6 = vmul.f32 2.1237322e-06, %v9171_v47  ;;  %v4424_v17 = vmul.f32 %v4423_v24, %v9031_v61  ;;  %5504 = vrcp.f32 %v9193_v37 }
 0x477   :  { %v4871_v1 = vmul.f32 %v4870_v49, %v9140_v26  ;;  %v9213_v20 = vadd.f32 1.0, %v4448_v27  ;;  %v4807_v21 = vadd.f32 0.4994258, %v4806_v28  ;;  %v4485_v31 = vadd.f32 0.112945676, %v4484_v57 }
 0x478   :  { %v9217_v48 = vmul.f32 %v9163_v40, %v8943_v3  ;;  %v5223_v62 = vclamps-f32 %v4424_v17, 1.0  ;;  %v4843_v54 = vadd.f32 0.014752088, %v4842_v15  ;;  %v4521_v55 = vadd.f32 0.001143296, %v4520_v30 }
 0x479   :  { %v9221_v25 = vmul.f32 %v9165_v32, %v8963_v53  ;;  %v9223_v61 = vadd.f32 1.1283791, %v4837_v34  ;;  %v4516_v9 = vadd.f32 0.18741608, %v4515_v36  ;;  %5506 = vrcp.f32 %v9213_v20 }
 0x47a   :  { %v9226_v49 = vadd.f32 0.00028619796, %v4549_v6  ;;  %v4926_v16 = vadd.f32 1.0, %v5223_v62  ;;  %v4808_v4 = vmul.f32 %v4807_v21, %v8974_v10  ;;  %v4486_v3 = vmul.f32 %v4485_v31, %v8991_v2  ;;  %v5024_v31 = vpop.f32.mrf.mxu2 }
 0x47b   :  { %v9230_v40 = vadd.f32 0.0036580483, %v4871_v1  ;;  %v5022_v13 = vadd.f32 %v5021_v11, %v8972_v12  ;;  %v4844_v53 = vmul.f32 %v4843_v54, %v9025_v39  ;;  %v4522_v32 = vmul.f32 %v4521_v55, %v9083_v14 }
 0x47c   :  { %v5505_v34 = vpop.eup %5504  ;;  %v4958_v36 = vmul.f32 %v4926_v16, %v8905_v22  ;;  %v4779_v33 = vand.u32 2147483647, %v9193_v37  ;;  %v9237_v35 = vadd.f32 1.0, %v4808_v4  ;;  %v4487_v60 = vadd.f32 0.4994258, %v4486_v3 }
 0x47d   :  { %v9240_v10 = vmul.f32 %v4516_v9, %v9083_v14  ;;  %v4771_v44 = vmul.f32 %v5505_v34, %v9193_v37  ;;  %5108 = vst.msk [vmem:[%s9484_s4 + $0x28] sm:$0xff] %vm5102_vm4, %v5022_v13  ;;  %v4845_v42 = vadd.f32 0.112945676, %v4844_v53  ;;  %v4523_v19 = vadd.f32 0.014752088, %v4522_v32 }
 0x47e   :  { %5062 = vmatmul.f32.gmra.mxu2 %v4958_v36  ;;  %vm4775_vm2 = vweird.f32 %v9193_v37  ;;  %v4781_v22 = vand.u32 2147483648, %v9193_v37  ;;  %v4459_v50 = vand.u32 2147483647, %v9213_v20  ;;  %5508 = vrcp.f32 %v9237_v35 }
 0x47f   :  { %v5507_v63 = vpop.eup %5506  ;;  %v4772_v43 = vsub.f32 1.0, %v4771_v44  ;;  %v4488_v23 = vmul.f32 %v4487_v60, %v8991_v2  ;;  %v4846_v0 = vmul.f32 %v4845_v42, %v9025_v39  ;;  %v4524_v57 = vmul.f32 %v4523_v19, %v9083_v14 }
 0x480   :  { %vm4776_vm3 = vweird.f32 %v5505_v34  ;;  %vm9254_vm5 = vcmp.eq.f32.partialorder %v4779_v33, 8.507059e+37  ;;  %v4451_v24 = vmul.f32 %v5507_v63, %v9213_v20  ;;  %v4461_v27 = vand.u32 2147483648, %v9213_v20 }
 0x481   :  { %v4773_v28 = vmul.f32 %v5505_v34, %v4772_v43  ;;  %v9260_v30 = vadd.f32 1.0, %v4488_v23  ;;  %v4847_v6 = vadd.f32 0.4994258, %v4846_v0  ;;  %v4525_v17 = vadd.f32 0.112945676, %v4524_v57  ;;  %vm4777_vm8 = vmor %vm4775_vm2, %vm4776_vm3 }
 0x482   :  { %v4782_v1 = vor.u32 1.1754944e-38, %v4781_v22  ;;  %v4452_v2 = vsub.f32 1.0, %v4451_v24  ;;  %vm4455_vm6 = vweird.f32 %v9213_v20  ;;  %v4819_v21 = vand.u32 2147483647, %v9237_v35 }
 0x483   :  { %v4774_v62 = vadd.f32 %v5505_v34, %v4773_v28  ;;  %vm9264_vm7 = vcmp.eq.f32.partialorder %v4459_v50, 8.507059e+37  ;;  %v5025_v55 = vadd.f32 %v5024_v31, %v8972_v12  ;;  %5510 = vrcp.f32 %v9260_v30 }
 0x484   :  { %v5509_v9 = vpop.eup %5508  ;;  %v4453_v16 = vmul.f32 %v5507_v63, %v4452_v2  ;;  %vm4456_vm9 = vweird.f32 %v5507_v63  ;;  %v4462_v11 = vor.u32 1.1754944e-38, %v4461_v27  ;;  %v4848_v4 = vmul.f32 %v4847_v6, %v9025_v39 }
 0x485   :  { %v4778_v3 = vsel %vm4777_vm8, %v5505_v34, %v4774_v62  ;;  %v4811_v13 = vmul.f32 %v5509_v9, %v9237_v35  ;;  %vm4815_vm10 = vweird.f32 %v9237_v35  ;;  %5109 = vst.msk [vmem:[%s9484_s4 + $0x30] sm:$0xff] %vm5102_vm4, %v5025_v55  ;;  %v4526_v53 = vmul.f32 %v4525_v17, %v9083_v14  ;;  %vm4457_vm12 = vmor %vm4455_vm6, %vm4456_vm9 }
 0x486   :  { %v4783_v37 = vsel %vm9254_vm5, %v4782_v1, %v4778_v3  ;;  %v4454_v32 = vadd.f32 %v5507_v63, %v4453_v16  ;;  %vm9283_vm11 = vcmp.eq.f32.partialorder %v4819_v21, 8.507059e+37  ;;  %v4821_v39 = vand.u32 2147483648, %v9237_v35 }
 0x487   :  { %v4784_v34 = vmul.f32 %v4783_v37, %v9045_v41  ;;  %v4812_v33 = vsub.f32 1.0, %v4811_v13  ;;  %v9291_v60 = vadd.f32 1.0, %v4848_v4  ;;  %v4880_v44 = vmul.f32 3.8918573e-05, %v9140_v26 }
 0x488   :  { %v4458_v42 = vsel %vm4457_vm12, %v5507_v63, %v4454_v32  ;;  %vm4816_vm13 = vweird.f32 %v5509_v9  ;;  %v4527_v19 = vadd.f32 0.4994258, %v4526_v53  ;;  %v4560_v22 = vmul.f32 3.8918573e-05, %v9171_v47  ;;  %v5027_v63 = vpop.f32.mrf.mxu2 }
 0x489   :  { %v5511_v50 = vpop.eup %5510  ;;  %v5232_v43 = vclamps-f32 %v4784_v34, 1.0  ;;  %v4463_v23 = vsel %vm9264_vm7, %v4462_v11, %v4458_v42  ;;  %v4813_v0 = vmul.f32 %v5509_v9, %v4812_v33  ;;  %5512 = vrcp.f32 %v9291_v60  ;;  %vm4817_vm14 = vmor %vm4815_vm10, %vm4816_vm13 }
 0x48a   :  { %v4464_v41 = vmul.f32 %v4463_v23, %v9161_v38  ;;  %v4822_v20 = vor.u32 1.1754944e-38, %v4821_v39  ;;  %v4491_v57 = vmul.f32 %v5511_v50, %v9260_v30  ;;  %v4499_v15 = vand.u32 2147483647, %v9260_v30 }
 0x48b   :  { %v4935_v24 = vadd.f32 1.0, %v5232_v43  ;;  %v4814_v27 = vadd.f32 %v5509_v9, %v4813_v0  ;;  %v4501_v28 = vand.u32 2147483648, %v9260_v30  ;;  %v4881_v6 = vadd.f32 0.001143296, %v4880_v44 }
 0x48c   :  { %v5224_v17 = vclamps-f32 %v4464_v41, 1.0  ;;  %v4492_v1 = vsub.f32 1.0, %v4491_v57  ;;  %v5028_v2 = vadd.f32 %v5027_v63, %v8972_v12  ;;  %v4528_v38 = vmul.f32 %v4527_v19, %v9083_v14 }
 0x48d   :  { %v4967_v21 = vmul.f32 %v4935_v24, %v8908_v7  ;;  %v4818_v31 = vsel %vm4817_vm14, %v5509_v9, %v4814_v27  ;;  %vm4496_vm15 = vweird.f32 %v5511_v50  ;;  %v4561_v62 = vadd.f32 0.001143296, %v4560_v22 }
 0x48e   :  { %v4927_v54 = vadd.f32 1.0, %v5224_v17  ;;  %v4823_v55 = vsel %vm9283_vm11, %v4822_v20, %v4818_v31  ;;  %v4493_v16 = vmul.f32 %v5511_v50, %v4492_v1  ;;  %5110 = vst.msk [vmem:[%s9484_s4 + $0x38] sm:$0xff] %vm5102_vm4, %v5028_v2  ;;  %v9314_v35 = vadd.f32 1.0, %v4528_v38 }
 0x48f   :  { %v5513_v11 = vpop.eup %5512  ;;  %v4551_v14 = vmul.f32 %v9226_v49, %v9171_v47  ;;  %5089 = vmatmul.f32.gmra.mxu3 %v4967_v21  ;;  %v4824_v7 = vmul.f32 %v4823_v55, %v9217_v48  ;;  %vm4495_vm0 = vweird.f32 %v9260_v30  ;;  %v4882_v9 = vmul.f32 %v4881_v6, %v9140_v26 }
 0x490   :  { %v4959_v4 = vmul.f32 %v4927_v54, %v8952_v18  ;;  %v4494_v3 = vadd.f32 %v5511_v50, %v4493_v16  ;;  %vm4500_vm1 = vcmp.eq.f32.partialorder %v4499_v15, 8.507059e+37  ;;  %v4851_v13 = vmul.f32 %v5513_v11, %v9291_v60  ;;  %vm4497_vm2 = vmor %vm4495_vm0, %vm4496_vm15  ;;  %v5030_v36 = vpop.f32.mrf.mxu2 }
 0x491   :  { %v5233_v53 = vclamps-f32 %v4824_v7, 1.0  ;;  %v4502_v37 = vor.u32 1.1754944e-38, %v4501_v28  ;;  %5514 = vrcp.f32 %v9314_v35  ;;  %v4562_v49 = vmul.f32 %v4561_v62, %v9171_v47 }
 0x492   :  { %5065 = vmatmul.f32.gmra.mxu2 %v4959_v4  ;;  %v4498_v48 = vsel %vm4497_vm2, %v5511_v50, %v4494_v3  ;;  %v4852_v32 = vsub.f32 1.0, %v4851_v13  ;;  %v4859_v30 = vand.u32 2147483647, %v9291_v60  ;;  %v4883_v39 = vadd.f32 0.014752088, %v4882_v9  ;;  %v5078_v4 = vpop.f32.mrf.mxu3 }
 0x493   :  { %v4936_v18 = vadd.f32 1.0, %v5233_v53  ;;  %v4503_v34 = vsel %vm4500_vm1, %v4502_v37, %v4498_v48  ;;  %v4861_v33 = vand.u32 2147483648, %v9291_v60  ;;  %v5031_v44 = vadd.f32 %v5030_v36, %v8972_v12 }
 0x494   :  { %v4504_v42 = vmul.f32 %v4503_v34, %v9221_v25  ;;  %v4853_v19 = vmul.f32 %v5513_v11, %v4852_v32  ;;  %vm4856_vm3 = vweird.f32 %v5513_v11  ;;  %v4884_v22 = vmul.f32 %v4883_v39, %v9140_v26 }
 0x495   :  { %v4873_v50 = vmul.f32 %v9230_v40, %v9140_v26  ;;  %v4552_v43 = vadd.f32 0.0036580483, %v4551_v14  ;;  %v4968_v23 = vmul.f32 %v4936_v18, %v9051_v52  ;;  %5111 = vst.msk [vmem:[%s9484_s4 + $0x40] sm:$0xff] %vm5102_vm4, %v5031_v44  ;;  %v4563_v0 = vadd.f32 0.014752088, %v4562_v49 }
 0x496   :  { %v5225_v41 = vclamps-f32 %v4504_v42, 1.0  ;;  %v4854_v20 = vadd.f32 %v5513_v11, %v4853_v19  ;;  %vm4855_vm5 = vweird.f32 %v9291_v60  ;;  %v4885_v25 = vadd.f32 0.112945676, %v4884_v22 }
 0x497   :  { %v5515_v57 = vpop.eup %5514  ;;  %v4839_v15 = vmul.f32 %v9223_v61, %v9005_v58  ;;  %v4518_v40 = vadd.f32 1.1283791, %v9240_v10  ;;  %5092 = vmatmul.f32.gmra.mxu3 %v4968_v23  ;;  %vm4857_vm6 = vmor %vm4855_vm5, %vm4856_vm3  ;;  %v4862_v52 = vor.u32 1.1754944e-38, %v4861_v33  ;;  %v4564_v63 = vmul.f32 %v4563_v0, %v9171_v47 }
 0x498   :  { %v4928_v24 = vadd.f32 1.0, %v5225_v41  ;;  %v4858_v27 = vsel %vm4857_vm6, %v5513_v11, %v4854_v20  ;;  %vm4860_vm7 = vcmp.eq.f32.partialorder %v4859_v30, 8.507059e+37  ;;  %v4531_v28 = vmul.f32 %v5515_v57, %v9314_v35  ;;  %v5033_v38 = vpop.f32.mrf.mxu2 }
 0x499   :  { %v4553_v60 = vmul.f32 %v4552_v43, %v9171_v47  ;;  %v4863_v6 = vsel %vm4860_vm7, %v4862_v52, %v4858_v27  ;;  %v4886_v17 = vmul.f32 %v4885_v25, %v9140_v26  ;;  %v4565_v1 = vadd.f32 0.112945676, %v4564_v63 }
 0x49a   :  { %v4874_v58 = vadd.f32 0.05243302, %v4873_v50  ;;  %v4960_v61 = vmul.f32 %v4928_v24, %v9207_v51  ;;  %v4864_v10 = vmul.f32 %v4863_v6, %v4839_v15  ;;  %v4532_v2 = vsub.f32 1.0, %v4531_v28 }
 0x49b   :  { %v4541_v21 = vand.u32 2147483648, %v9314_v35  ;;  %v4887_v31 = vadd.f32 0.4994258, %v4886_v17  ;;  %v5034_v62 = vadd.f32 %v5033_v38, %v8972_v12  ;;  %v4566_v54 = vmul.f32 %v4565_v1, %v9171_v47 }
 0x49c   :  { %5068 = vmatmul.f32.gmra.mxu2 %v4960_v61  ;;  %v5234_v55 = vclamps-f32 %v4864_v10, 1.0  ;;  %v4533_v16 = vmul.f32 %v5515_v57, %v4532_v2  ;;  %vm4536_vm8 = vweird.f32 %v5515_v57  ;;  %v4539_v11 = vand.u32 2147483647, %v9314_v35 }
 0x49d   :  { %v3593_v14 = vmul.f32 0.5, %v8986_v29  ;;  %v4554_v7 = vadd.f32 0.05243302, %v4553_v60  ;;  %v4888_v51 = vmul.f32 %v4887_v31, %v9140_v26  ;;  %5112 = vst.msk [vmem:[%s9484_s4 + $0x48] sm:$0xff] %vm5102_vm4, %v5034_v62  ;;  %v4567_v9 = vadd.f32 0.4994258, %v4566_v54 }
 0x49e   :  { %v4937_v3 = vadd.f32 1.0, %v5234_v55  ;;  %v4534_v13 = vadd.f32 %v5515_v57, %v4533_v16  ;;  %vm4535_vm9 = vweird.f32 %v9314_v35  ;;  %v5079_v53 = vadd.f32 %v5078_v4, %v8972_v12 }
 0x49f   :  { %v4519_v37 = vmul.f32 %v4518_v40, %v9072_v45  ;;  %vm4537_vm10 = vmor %vm4535_vm9, %vm4536_vm8  ;;  %v4542_v29 = vor.u32 1.1754944e-38, %v4541_v21  ;;  %v4889_v49 = vadd.f32 1.0, %v4888_v51  ;;  %v4568_v48 = vmul.f32 %v4567_v9, %v9171_v47 }
 0x4a0   :  { %v4875_v32 = vmul.f32 %v4874_v58, %v9140_v26  ;;  %v4969_v30 = vmul.f32 %v4937_v3, %v3593_v14  ;;  %v4538_v36 = vsel %vm4537_vm10, %v5515_v57, %v4534_v13  ;;  %vm4540_vm11 = vcmp.eq.f32.partialorder %v4539_v11, 8.507059e+37  ;;  %5127 = vst.msk [vmem:[%s9484_s4 + $0xc0] sm:$0xff] %vm5102_vm4, %v5079_v53  ;;  %v5036_v34 = vpop.f32.mrf.mxu2 }
 0x4a1   :  { %v4543_v35 = vsel %vm4540_vm11, %v4542_v29, %v4538_v36  ;;  %5516 = vrcp.f32 %v4889_v49  ;;  %v4555_v39 = vmul.f32 %v4554_v7, %v9171_v47  ;;  %v4569_v18 = vadd.f32 1.0, %v4568_v48 }
 0x4a2   :  { %5095 = vmatmul.f32.gmra.mxu3 %v4969_v30  ;;  %v4544_v45 = vmul.f32 %v4543_v35, %v4519_v37  ;;  %v5037_v33 = vadd.f32 %v5036_v34, %v8972_v12  ;;  %v4876_v44 = vadd.f32 0.18741608, %v4875_v32  ;;  %v3585_v19 = vmul.f32 0.5, %v9062_v5 }
 0x4a3   :  { %5518 = vrcp.f32 %v4569_v18  ;;  %v4556_v22 = vadd.f32 0.18741608, %v4555_v39  ;;  %v4901_v40 = vand.u32 2147483648, %v4889_v49  ;;  %v4899_v5 = vand.u32 2147483647, %v4889_v49 }
 0x4a4   :  { %v5226_v42 = vclamps-f32 %v4544_v45, 1.0  ;;  %5113 = vst.msk [vmem:[%s9484_s4 + $0x50] sm:$0xff] %vm5102_vm4, %v5037_v33  ;;  %v4877_v23 = vmul.f32 %v4876_v44, %v9140_v26  ;;  %vm4895_vm13 = vweird.f32 %v4889_v49  ;;  %v4579_v1 = vand.u32 2147483647, %v4569_v18 }
 0x4a5   :  { %v4557_v25 = vmul.f32 %v4556_v22, %v9171_v47  ;;  %v4581_v47 = vand.u32 2147483648, %v4569_v18  ;;  %v4902_v6 = vor.u32 1.1754944e-38, %v4901_v40  ;;  %vm4900_vm0 = vcmp.eq.f32.partialorder %v4899_v5, 8.507059e+37 }
 0x4a6   :  { %v4929_v50 = vadd.f32 1.0, %v5226_v42  ;;  %v4878_v24 = vadd.f32 1.1283791, %v4877_v23  ;;  %vm4575_vm1 = vweird.f32 %v4569_v18  ;;  %vm4580_vm3 = vcmp.eq.f32.partialorder %v4579_v1, 8.507059e+37 }
 0x4a7   :  { %v5517_v43 = vpop.eup %5516  ;;  %v4558_v26 = vadd.f32 1.1283791, %v4557_v25  ;;  %v4582_v21 = vor.u32 1.1754944e-38, %v4581_v47  ;;  %v3586_v4 = vmul.f32 0.5, %v9123_v59 }
 0x4a8   :  { %v4961_v0 = vmul.f32 %v4929_v50, %v3585_v19  ;;  %v4891_v41 = vmul.f32 %v5517_v43, %v4889_v49  ;;  %v5039_v15 = vpop.f32.mrf.mxu2  ;;  %vm4896_vm12 = vweird.f32 %v5517_v43  ;;  %v4879_v58 = vmul.f32 %v4878_v24, %v9117_v56 }
 0x4a9   :  { %v5519_v20 = vpop.eup %5518  ;;  %v5040_v63 = vadd.f32 %v5039_v15, %v8972_v12  ;;  %vm4897_vm14 = vmor %vm4895_vm13, %vm4896_vm12  ;;  %v4559_v62 = vmul.f32 %v4558_v26, %v9134_v46  ;;  %v3594_v56 = vmul.f32 0.5, %v9108_v8 }
 0x4aa   :  { %5071 = vmatmul.f32.gmra.mxu2 %v4961_v0  ;;  %v4892_v57 = vsub.f32 1.0, %v4891_v41  ;;  %v4571_v52 = vmul.f32 %v5519_v20, %v4569_v18  ;;  %vm4576_vm15 = vweird.f32 %v5519_v20 }
 0x4ab   :  { %5114 = vst.msk [vmem:[%s9484_s4 + $0x58] sm:$0xff] %vm5102_vm4, %v5040_v63  ;;  %vm4577_vm2 = vmor %vm4575_vm1, %vm4576_vm15 }
 0x4ac   :  { %v4893_v27 = vmul.f32 %v5517_v43, %v4892_v57  ;;  %v4572_v28 = vsub.f32 1.0, %v4571_v52 }
 0x4ae   :  { %v4894_v60 = vadd.f32 %v5517_v43, %v4893_v27  ;;  %v4573_v17 = vmul.f32 %v5519_v20, %v4572_v28 }
 0x4b0   :  { %v4898_v61 = vsel %vm4897_vm14, %v5517_v43, %v4894_v60  ;;  %v4574_v2 = vadd.f32 %v5519_v20, %v4573_v17  ;;  %v5042_v31 = vpop.f32.mrf.mxu2 }
 0x4b1   :  { %v4903_v10 = vsel %vm4900_vm0, %v4902_v6, %v4898_v61  ;;  %v5043_v55 = vadd.f32 %v5042_v31, %v8972_v12 }
 0x4b2   :  { %v4904_v38 = vmul.f32 %v4903_v10, %v4879_v58  ;;  %v4578_v54 = vsel %vm4577_vm2, %v5519_v20, %v4574_v2 }
 0x4b3   :  { %v4583_v11 = vsel %vm4580_vm3, %v4582_v21, %v4578_v54  ;;  %5115 = vst.msk [vmem:[%s9484_s4 + $0x60] sm:$0xff] %vm5102_vm4, %v5043_v55 }
 0x4b4   :  { %v5235_v16 = vclamps-f32 %v4904_v38, 1.0  ;;  %v4584_v14 = vmul.f32 %v4583_v11, %v4559_v62 }
 0x4b6   :  { %v4938_v7 = vadd.f32 1.0, %v5235_v16  ;;  %v5227_v51 = vclamps-f32 %v4584_v14, 1.0 }
 0x4b8   :  { %v4970_v9 = vmul.f32 %v4938_v7, %v3594_v56  ;;  %v4930_v46 = vadd.f32 1.0, %v5227_v51  ;;  %v5045_v3 = vpop.f32.mrf.mxu2 }
 0x4b9   :  { %v5046_v53 = vadd.f32 %v5045_v3, %v8972_v12 }
 0x4ba   :  { %5098 = vmatmul.f32.gmra.mxu3 %v4970_v9  ;;  %v4962_v13 = vmul.f32 %v4930_v46, %v3586_v4 }
 0x4bb   :  { %5116 = vst.msk [vmem:[%s9484_s4 + $0x68] sm:$0xff] %vm5102_vm4, %v5046_v53 }
 0x4bc   :  { %5074 = vmatmul.f32.gmra.mxu2 %v4962_v13 }
 0x4bd   :  { %v5081_v37 = vpop.f32.mrf.mxu3 }
 0x4be   :  { %v5082_v8 = vadd.f32 %v5081_v37, %v8972_v12 }
 0x4c0   :  { %5128 = vst.msk [vmem:[%s9484_s4 + $0xc8] sm:$0xff] %vm5102_vm4, %v5082_v8  ;;  %v5048_v59 = vpop.f32.mrf.mxu2 }
 0x4c1   :  { %v5049_v29 = vadd.f32 %v5048_v59, %v8972_v12 }
 0x4c3   :  { %5117 = vst.msk [vmem:[%s9484_s4 + $0x70] sm:$0xff] %vm5102_vm4, %v5049_v29 }
 0x4c8   :  { %v5051_v49 = vpop.f32.mrf.mxu2 }
 0x4c9   :  { %v5052_v48 = vadd.f32 %v5051_v49, %v8972_v12 }
 0x4cb   :  { %5118 = vst.msk [vmem:[%s9484_s4 + $0x78] sm:$0xff] %vm5102_vm4, %v5052_v48 }
 0x4d1   :  { %v5054_v32 = vpop.f32.mrf.mxu2 }
 0x4d2   :  { %v5055_v30 = vadd.f32 %v5054_v32, %v8972_v12 }
 0x4d4   :  { %5119 = vst.msk [vmem:[%s9484_s4 + $0x80] sm:$0xff] %vm5102_vm4, %v5055_v30 }
 0x4dd   :  { %v5084_v36 = vpop.f32.mrf.mxu3 }
 0x4de   :  { %v5085_v35 = vadd.f32 %v5084_v36, %v8972_v12 }
 0x4e0   :  { %5129 = vst.msk [vmem:[%s9484_s4 + $0xd0] sm:$0xff] %vm5102_vm4, %v5085_v35 }
 0x4e6   :  { %v5057_v39 = vpop.f32.mrf.mxu2 }
 0x4e7   :  { %v5058_v45 = vadd.f32 %v5057_v39, %v8972_v12 }
 0x4e9   :  { %5120 = vst.msk [vmem:[%s9484_s4 + $0x88] sm:$0xff] %vm5102_vm4, %v5058_v45 }
 0x4eb   :  { %v5087_v18 = vpop.f32.mrf.mxu3 }
 0x4ec   :  { %v5088_v34 = vadd.f32 %v5087_v18, %v8972_v12 }
 0x4ee   :  { %5130 = vst.msk [vmem:[%s9484_s4 + $0xd8] sm:$0xff] %vm5102_vm4, %v5088_v34 }
 0x4f5   :  { %v5060_v33 = vpop.f32.mrf.mxu2 }
 0x4f6   :  { %v5061_v44 = vadd.f32 %v5060_v33, %v8972_v12 }
 0x4f8   :  { %5121 = vst.msk [vmem:[%s9484_s4 + $0x90] sm:$0xff] %vm5102_vm4, %v5061_v44 }
 0x501   :  { %v5063_v42 = vpop.f32.mrf.mxu2 }
 0x502   :  { %v5064_v19 = vadd.f32 %v5063_v42, %v8972_v12 }
 0x504   :  { %5122 = vst.msk [vmem:[%s9484_s4 + $0x98] sm:$0xff] %vm5102_vm4, %v5064_v19 }
 0x512   :  { %v5090_v22 = vpop.f32.mrf.mxu3 }
 0x513   :  { %v5091_v50 = vadd.f32 %v5090_v22, %v8972_v12 }
 0x515   :  { %5131 = vst.msk [vmem:[%s9484_s4 + $0xe0] sm:$0xff] %vm5102_vm4, %v5091_v50  ;;  %v5066_v43 = vpop.f32.mrf.mxu2 }
 0x516   :  { %v5067_v23 = vadd.f32 %v5066_v43, %v8972_v12 }
 0x518   :  { %5123 = vst.msk [vmem:[%s9484_s4 + $0xa0] sm:$0xff] %vm5102_vm4, %v5067_v23 }
 0x51a   :  { %v5093_v0 = vpop.f32.mrf.mxu3 }
 0x51b   :  { %v5094_v41 = vadd.f32 %v5093_v0, %v8972_v12 }
 0x51d   :  { %5132 = vst.msk [vmem:[%s9484_s4 + $0xe8] sm:$0xff] %vm5102_vm4, %v5094_v41 }
 0x51f   :  { %v5069_v20 = vpop.f32.mrf.mxu2 }
 0x520   :  { %v5070_v25 = vadd.f32 %v5069_v20, %v8972_v12 }
 0x522   :  { %5124 = vst.msk [vmem:[%s9484_s4 + $0xa8] sm:$0xff] %vm5102_vm4, %v5070_v25 }
 0x525   :  { %v5096_v57 = vpop.f32.mrf.mxu3 }
 0x526   :  { %v5097_v15 = vadd.f32 %v5096_v57, %v8972_v12 }
 0x528   :  { %5133 = vst.msk [vmem:[%s9484_s4 + $0xf0] sm:$0xff] %vm5102_vm4, %v5097_v15 }
 0x52d   :  { %v5072_v40 = vpop.f32.mrf.mxu2 }
 0x52e   :  { %v5073_v52 = vadd.f32 %v5072_v40, %v8972_v12 }
 0x530   :  { %5125 = vst.msk [vmem:[%s9484_s4 + $0xb0] sm:$0xff] %vm5102_vm4, %v5073_v52 }
 0x53d   :  { %v5099_v63 = vpop.f32.mrf.mxu3 }
 0x53e   :  { %v5100_v24 = vadd.f32 %v5099_v63, %v8972_v12 }
 0x53f   :  { %v5075_v27 = vpop.f32.mrf.mxu2 }
 0x540   :  { %5134 = vst.msk [vmem:[%s9484_s4 + $0xf8] sm:$0xff] %vm5102_vm4, %v5100_v24  ;;  %v5076_v5 = vadd.f32 %v5075_v27, %v8972_v12 }
 0x542   :  { %5126 = vst.msk [vmem:[%s9484_s4 + $0xb8] sm:$0xff] %vm5102_vm4, %v5076_v5 }
 0x543   :  { %5139 = vsyncpa [#allocation3], 1 }

</bundles_post_ra>
